<compile_context>
chip_gen: v7x
topology: tpu7x:2x2x1
jax: 0.10.0
libtpu: 0.0.40
codegen_flags: <defaults>
</compile_context>

<pallas_src>
import math

import jax
import jax.numpy as jnp
from jax.experimental import pallas as pl
from jax.experimental.pallas import tpu as pltpu


_ROW_TILE = 1024  # points per tile; bounds per-call VMEM and amortizes step cost


# ----------------------------------------------------------------------------
# Pallas kernels
# ----------------------------------------------------------------------------
def _stage1(x_ref, w1_ref, s1_ref, t1_ref, w2_ref, b2_ref):
    """first_conv on one point tile: relu((x@w1)*s1+t1) @ w2 + b2 -> [tn, 256] f32."""
    x = x_ref[0].astype(jnp.bfloat16)                               # [tn, 8]
    h = jnp.dot(x, w1_ref[...], preferred_element_type=jnp.float32)
    h = jnp.maximum(h * s1_ref[...] + t1_ref[...], 0.0).astype(jnp.bfloat16)
    return jnp.dot(h, w2_ref[...], preferred_element_type=jnp.float32) + b2_ref[...]


def _enc1_kernel(x_ref, w1_ref, s1_ref, t1_ref, w2_ref, b2_ref, g_ref):
    """first_conv fused; only the running per-batch max is written (no [B,N,256])."""
    n = pl.program_id(1)
    f = _stage1(x_ref, w1_ref, s1_ref, t1_ref, w2_ref, b2_ref)      # [tn, 256]

    @pl.when(n == 0)
    def _():
        g_ref[...] = jnp.full(g_ref.shape, -jnp.inf, dtype=g_ref.dtype)

    g_ref[...] = jnp.maximum(g_ref[...], jnp.max(f, axis=0)[None, None, :])


def _enc2_kernel(x_ref, g1_ref, w1_ref, s1_ref, t1_ref, w2_ref, b2_ref,
                 wg_ref, wf_ref, s2_ref, t2_ref, w3_ref, b3_ref, g2_ref):
    """Recompute stage-1 features, then second_conv fused; concat replaced by split weights."""
    n = pl.program_id(1)
    f3 = _stage1(x_ref, w1_ref, s1_ref, t1_ref, w2_ref, b2_ref)     # [tn, 256] f32
    f3 = f3.astype(jnp.bfloat16)
    g1 = g1_ref[0].astype(jnp.bfloat16)                             # [1, 256]
    hg = jnp.dot(g1, wg_ref[...], preferred_element_type=jnp.float32)    # [1, 512]
    h = jnp.dot(f3, wf_ref[...], preferred_element_type=jnp.float32) + hg
    h = jnp.maximum(h * s2_ref[...] + t2_ref[...], 0.0).astype(jnp.bfloat16)
    f2 = jnp.dot(h, w3_ref[...], preferred_element_type=jnp.float32) + b3_ref[...]

    @pl.when(n == 0)
    def _():
        g2_ref[...] = jnp.full(g2_ref.shape, -jnp.inf, dtype=g2_ref.dtype)

    g2_ref[...] = jnp.maximum(g2_ref[...], jnp.max(f2, axis=0)[None, None, :])


def _coarse_mlp_kernel(z_ref, w1_ref, b1_ref, w2_ref, b2_ref, w3_ref, b3_ref,
                       o_ref):
    """Coarse MLP: Linear+ReLU, Linear+ReLU, Linear (m3 tiled over columns)."""
    z = z_ref[...].astype(jnp.bfloat16)                             # [B, latent]
    h = jnp.dot(z, w1_ref[...], preferred_element_type=jnp.float32) + b1_ref[...]
    h = jnp.maximum(h, 0.0).astype(jnp.bfloat16)
    h = jnp.dot(h, w2_ref[...], preferred_element_type=jnp.float32) + b2_ref[...]
    h = jnp.maximum(h, 0.0).astype(jnp.bfloat16)
    y = jnp.dot(h, w3_ref[...], preferred_element_type=jnp.float32) + b3_ref[...]
    o_ref[...] = y.astype(o_ref.dtype)


def _decoder_kernel(sp_ref, g_ref, w1g_ref, w1s_ref, s3_ref, t3_ref,
                    w2_ref, s4_ref, t4_ref, w3_ref, b3_ref, o_ref):
    """final_conv fused + residual.  sp channels = [point_feat(3), seed(2), 0pad(3)]."""
    sp = sp_ref[0]                                                  # [tn, 8] f32
    g = g_ref[0].astype(jnp.bfloat16)                               # [1, latent]
    hg = jnp.dot(g, w1g_ref[...], preferred_element_type=jnp.float32)    # [1, 512]
    h = jnp.dot(sp.astype(jnp.bfloat16), w1s_ref[...],
                preferred_element_type=jnp.float32) + hg
    h = jnp.maximum(h * s3_ref[...] + t3_ref[...], 0.0).astype(jnp.bfloat16)
    h = jnp.dot(h, w2_ref[...], preferred_element_type=jnp.float32)
    h = jnp.maximum(h * s4_ref[...] + t4_ref[...], 0.0).astype(jnp.bfloat16)
    y = jnp.dot(h, w3_ref[...], preferred_element_type=jnp.float32) + b3_ref[...]
    o_ref[0] = (y + sp[:, 0:3]).astype(o_ref.dtype)                 # residual = point_feat


# ----------------------------------------------------------------------------
# Tiling helpers
# ----------------------------------------------------------------------------
def _row_tile(rows, max_tile=_ROW_TILE):
    if rows >= max_tile:
        return max_tile
    return ((rows + 15) // 16) * 16


def _pad_rows(x, axis, multiple):
    rows = x.shape[axis]
    target = ((rows + multiple - 1) // multiple) * multiple
    if target == rows:
        return x
    pad = [(0, 0)] * x.ndim
    pad[axis] = (0, target - rows)
    # edge padding duplicates real points -> max reductions stay correct,
    # padded output rows are sliced off afterwards.
    return jnp.pad(x, pad, mode="edge")


def _pick_col_tile(total, candidates=(1024, 768, 512, 384, 256, 128)):
    for c in candidates:
        if total % c == 0:
            return c
    return total


# ----------------------------------------------------------------------------
# Parameter init (deterministic, mirrors the nn.Module __init__ shapes)
# ----------------------------------------------------------------------------
def _w(key, cin, cout):
    return jax.random.normal(key, (cin, cout), jnp.float32) * (1.0 / math.sqrt(cin))


def _b(key, cout):
    return jax.random.normal(key, (cout,), jnp.float32) * 0.01


def _bn(cout, eps=1e-5):
    gamma = jnp.ones((cout,), jnp.float32)
    beta = jnp.zeros((cout,), jnp.float32)
    running_mean = jnp.zeros((cout,), jnp.float32)
    running_var = jnp.ones((cout,), jnp.float32)
    scale = gamma / jnp.sqrt(running_var + eps)
    shift = beta - running_mean * scale
    return scale, shift


def init_params(key, num_dense, grid_size, latent_dim):
    num_coarse = num_dense // grid_size ** 2
    keys = jax.random.split(key, 20)
    p = {}
    # first_conv: Conv1d(3,128,1) + BN(128) + ReLU + Conv1d(128,256,1)
    p["fc1_w"], p["fc1_b"] = _w(keys[0], 3, 128), _b(keys[1], 128)
    p["bn1_scale"], p["bn1_shift"] = _bn(128)
    p["fc2_w"], p["fc2_b"] = _w(keys[2], 128, 256), _b(keys[3], 256)
    # second_conv: Conv1d(512,512,1) + BN(512) + ReLU + Conv1d(512,latent,1)
    p["sc1_w"], p["sc1_b"] = _w(keys[4], 512, 512), _b(keys[5], 512)
    p["bn2_scale"], p["bn2_shift"] = _bn(512)
    p["sc2_w"], p["sc2_b"] = _w(keys[6], 512, latent_dim), _b(keys[7], latent_dim)
    # mlp: Linear(latent,1024)+ReLU + Linear(1024,1024)+ReLU + Linear(1024,3*num_coarse)
    p["m1_w"], p["m1_b"] = _w(keys[8], latent_dim, 1024), _b(keys[9], 1024)
    p["m2_w"], p["m2_b"] = _w(keys[10], 1024, 1024), _b(keys[11], 1024)
    p["m3_w"], p["m3_b"] = _w(keys[12], 1024, 3 * num_coarse), _b(keys[13], 3 * num_coarse)
    # final_conv: Conv1d(latent+5,512,1)+BN+ReLU + Conv1d(512,512,1)+BN+ReLU + Conv1d(512,3,1)
    p["f1_w"], p["f1_b"] = _w(keys[14], latent_dim + 5, 512), _b(keys[15], 512)
    p["bn3_scale"], p["bn3_shift"] = _bn(512)
    p["f2_w"], p["f2_b"] = _w(keys[16], 512, 512), _b(keys[17], 512)
    p["bn4_scale"], p["bn4_shift"] = _bn(512)
    p["f3_w"], p["f3_b"] = _w(keys[18], 512, 3), _b(keys[19], 3)
    return p


# ----------------------------------------------------------------------------
# Forward pass (matches PCN.forward, classifier=False)
# ----------------------------------------------------------------------------
def pcn_forward(params, xyz, grid_size):
    B, _, N = xyz.shape
    latent = params["sc2_w"].shape[1]
    num_coarse = params["m3_w"].shape[1] // 3
    G2 = grid_size ** 2
    num_dense = num_coarse * G2
    f32, bf16 = jnp.float32, jnp.bfloat16

    def row2(v):
        return v.reshape(1, -1).astype(f32)

    # Fold conv biases into the BN shifts (inference-mode BN affine).
    s1 = row2(params["bn1_scale"])
    t1 = row2(params["fc1_b"] * params["bn1_scale"] + params["bn1_shift"])
    s2 = row2(params["bn2_scale"])
    t2 = row2(params["sc1_b"] * params["bn2_scale"] + params["bn2_shift"])
    s3 = row2(params["bn3_scale"])
    t3 = row2(params["f1_b"] * params["bn3_scale"] + params["bn3_shift"])
    s4 = row2(params["bn4_scale"])
    t4 = row2(params["f2_b"] * params["bn4_scale"] + params["bn4_shift"])

    # Weights in bf16; tiny contracting dims zero-padded to 8.
    w_fc1 = jnp.concatenate([params["fc1_w"], jnp.zeros((5, 128), f32)],
                            axis=0).astype(bf16)                      # [8, 128]
    w_fc2 = params["fc2_w"].astype(bf16)                              # [128, 256]
    w_sc1_g = params["sc1_w"][:256].astype(bf16)                      # global half
    w_sc1_f = params["sc1_w"][256:].astype(bf16)                      # per-point half
    w_sc2 = params["sc2_w"].astype(bf16)                              # [512, latent]
    w_m1 = params["m1_w"].astype(bf16)
    w_m2 = params["m2_w"].astype(bf16)
    w_m3 = params["m3_w"].astype(bf16)
    w_f1_g = params["f1_w"][:latent].astype(bf16)                     # [latent, 512]
    # per-point half, re-ordered to [point_feat(3), seed(2)] + zero rows -> [8, 512]
    w_f1_sp = jnp.concatenate([params["f1_w"][latent + 2:latent + 5],
                               params["f1_w"][latent:latent + 2],
                               jnp.zeros((3, 512), f32)], axis=0).astype(bf16)
    w_f2 = params["f2_w"].astype(bf16)                                # [512, 512]
    w_f3 = params["f3_w"].astype(bf16)                                # [512, 3]
    b_fc2, b_sc2 = row2(params["fc2_b"]), row2(params["sc2_b"])
    b_m1, b_m2, b_m3 = row2(params["m1_b"]), row2(params["m2_b"]), row2(params["m3_b"])
    b_f3 = row2(params["f3_b"])

    # ---------------- encoder inputs: [B, Np, 8] point slab ----------------
    x = jnp.transpose(xyz, (0, 2, 1))                                 # [B, N, 3]
    x = jnp.concatenate([x, jnp.zeros((B, N, 5), x.dtype)], axis=-1)  # pad 3 -> 8 ch
    tn = _row_tile(N)
    x = _pad_rows(x, 1, tn)                                           # [B, Np, 8] f32
    Np = x.shape[1]
    nsteps = Np // tn

    # ---------------- encoder pass 1: first_conv -> per-batch max ----------------
    fg1 = pl.pallas_call(
        _enc1_kernel,
        out_shape=jax.ShapeDtypeStruct((B, 1, 256), f32),
        grid=(B, nsteps),
        in_specs=[
            pl.BlockSpec((1, tn, 8), lambda b, n: (b, n, 0)),
            pl.BlockSpec((8, 128), lambda b, n: (0, 0)),
            pl.BlockSpec((1, 128), lambda b, n: (0, 0)),
            pl.BlockSpec((1, 128), lambda b, n: (0, 0)),
            pl.BlockSpec((128, 256), lambda b, n: (0, 0)),
            pl.BlockSpec((1, 256), lambda b, n: (0, 0)),
        ],
        out_specs=pl.BlockSpec((1, 1, 256), lambda b, n: (b, 0, 0)),
        compiler_params=pltpu.CompilerParams(
            dimension_semantics=("parallel", "arbitrary")),
    )(x, w_fc1, s1, t1, w_fc2, b_fc2)

    # ---------------- encoder pass 2: recompute stage-1 + second_conv -> max ------
    feature_global = pl.pallas_call(
        _enc2_kernel,
        out_shape=jax.ShapeDtypeStruct((B, 1, latent), f32),
        grid=(B, nsteps),
        in_specs=[
            pl.BlockSpec((1, tn, 8), lambda b, n: (b, n, 0)),
            pl.BlockSpec((1, 1, 256), lambda b, n: (b, 0, 0)),
            pl.BlockSpec((8, 128), lambda b, n: (0, 0)),
            pl.BlockSpec((1, 128), lambda b, n: (0, 0)),
            pl.BlockSpec((1, 128), lambda b, n: (0, 0)),
            pl.BlockSpec((128, 256), lambda b, n: (0, 0)),
            pl.BlockSpec((1, 256), lambda b, n: (0, 0)),
            pl.BlockSpec((256, 512), lambda b, n: (0, 0)),
            pl.BlockSpec((256, 512), lambda b, n: (0, 0)),
            pl.BlockSpec((1, 512), lambda b, n: (0, 0)),
            pl.BlockSpec((1, 512), lambda b, n: (0, 0)),
            pl.BlockSpec((512, latent), lambda b, n: (0, 0)),
            pl.BlockSpec((1, latent), lambda b, n: (0, 0)),
        ],
        out_specs=pl.BlockSpec((1, 1, latent), lambda b, n: (b, 0, 0)),
        compiler_params=pltpu.CompilerParams(
            dimension_semantics=("parallel", "arbitrary")),
    )(x, fg1, w_fc1, s1, t1, w_fc2, b_fc2, w_sc1_g, w_sc1_f, s2, t2, w_sc2, b_sc2)

    feature_global_return = feature_global.reshape(B, latent)          # [B, latent] f32

    # ---------------- coarse MLP (fused, m3 column-tiled) ----------------
    C3 = 3 * num_coarse
    tc = _pick_col_tile(C3)
    coarse_flat = pl.pallas_call(
        _coarse_mlp_kernel,
        out_shape=jax.ShapeDtypeStruct((B, C3), f32),
        grid=(C3 // tc,),
        in_specs=[
            pl.BlockSpec((B, latent), lambda j: (0, 0)),
            pl.BlockSpec((latent, 1024), lambda j: (0, 0)),
            pl.BlockSpec((1, 1024), lambda j: (0, 0)),
            pl.BlockSpec((1024, 1024), lambda j: (0, 0)),
            pl.BlockSpec((1, 1024), lambda j: (0, 0)),
            pl.BlockSpec((1024, tc), lambda j: (0, j)),
            pl.BlockSpec((1, tc), lambda j: (0, j)),
        ],
        out_specs=pl.BlockSpec((B, tc), lambda j: (0, j)),
        compiler_params=pltpu.CompilerParams(
            dimension_semantics=("parallel",)),
    )(feature_global_return, w_m1, b_m1, w_m2, b_m2, w_m3, b_m3)
    coarse = coarse_flat.reshape(B, num_coarse, 3)

    # ---------------- folding decoder (final_conv + residual) ----------------
    point_feat = jnp.repeat(coarse, G2, axis=1)                        # [B, nd, 3]
    lin = jnp.linspace(-0.05, 0.05, grid_size, dtype=f32)
    seed = jnp.stack([jnp.tile(lin, grid_size),
                      jnp.repeat(lin, grid_size)], axis=-1)            # [G2, 2]
    seed_d = jnp.broadcast_to(jnp.tile(seed, (num_coarse, 1))[None],
                              (B, num_dense, 2))
    sp = jnp.concatenate([point_feat, seed_d,
                          jnp.zeros((B, num_dense, 3), f32)], axis=-1)  # [B, nd, 8]
    td = _row_tile(num_dense)
    sp = _pad_rows(sp, 1, td)
    ndp = sp.shape[1]

    fine = pl.pallas_call(
        _decoder_kernel,
        out_shape=jax.ShapeDtypeStruct((B, ndp, 3), f32),
        grid=(B, ndp // td),
        in_specs=[
            pl.BlockSpec((1, td, 8), lambda b, n: (b, n, 0)),
            pl.BlockSpec((1, 1, latent), lambda b, n: (b, 0, 0)),
            pl.BlockSpec((latent, 512), lambda b, n: (0, 0)),
            pl.BlockSpec((8, 512), lambda b, n: (0, 0)),
            pl.BlockSpec((1, 512), lambda b, n: (0, 0)),
            pl.BlockSpec((1, 512), lambda b, n: (0, 0)),
            pl.BlockSpec((512, 512), lambda b, n: (0, 0)),
            pl.BlockSpec((1, 512), lambda b, n: (0, 0)),
            pl.BlockSpec((1, 512), lambda b, n: (0, 0)),
            pl.BlockSpec((512, 3), lambda b, n: (0, 0)),
            pl.BlockSpec((1, 3), lambda b, n: (0, 0)),
        ],
        out_specs=pl.BlockSpec((1, td, 3), lambda b, n: (b, n, 0)),
        compiler_params=pltpu.CompilerParams(
            dimension_semantics=("parallel", "parallel")),
    )(sp, feature_global, w_f1_g, w_f1_sp, s3, t3, w_f2, s4, t4, w_f3, b_f3)
    fine = fine[:, :num_dense, :]

    return coarse, fine, feature_global_return


# ----------------------------------------------------------------------------
if __name__ == "__main__":
    key = jax.random.PRNGKey(0)
    k_param, k_data = jax.random.split(key)

    # small but structure-consistent shapes
    B, N = 2, 64
    grid_size = 4
    num_dense = 256                 # -> num_coarse = 16
    latent_dim = 256

    params = init_params(k_param, num_dense, grid_size, latent_dim)
    xyz = jax.random.normal(k_data, (B, 3, N), jnp.float32)

    fwd = jax.jit(pcn_forward, static_argnums=(2,))
    coarse, fine, feat_global = fwd(params, xyz, grid_size)
    jax.block_until_ready((coarse, fine, feat_global))

    assert coarse.shape == (B, num_dense // grid_size ** 2, 3)
    assert fine.shape == (B, num_dense, 3)
    assert feat_global.shape == (B, latent_dim)
    assert bool(jnp.all(jnp.isfinite(coarse)))
    assert bool(jnp.all(jnp.isfinite(fine)))
    assert bool(jnp.all(jnp.isfinite(feat_global)))
    print("KERNEL_OK")
</pallas_src>

<mosaic_0001>
module attributes {stable_mosaic.version = 11 : i64} {
  func.func @_enc1_kernel(%arg0: i32, %arg1: i32, %arg2: memref<1x64x8xf32, #tpu.memory_space<vmem>>, %arg3: memref<8x128xbf16, #tpu.memory_space<vmem>>, %arg4: memref<1x128xf32, #tpu.memory_space<vmem>>, %arg5: memref<1x128xf32, #tpu.memory_space<vmem>>, %arg6: memref<128x256xbf16, #tpu.memory_space<vmem>>, %arg7: memref<1x256xf32, #tpu.memory_space<vmem>>, %arg8: memref<1x1x256xf32, #tpu.memory_space<vmem>>) attributes {dimension_semantics = [#tpu.dimension_semantics<parallel>, #tpu.dimension_semantics<arbitrary>], iteration_bounds = array<i64: 2, 1>, scalar_prefetch = 0 : i64, scratch_operands = 0 : i64, tpu.core_type = #tpu.core_type<tc>, window_params = [{transform_indices = @transform_0, window_bounds = array<i64: 1, 64, 8>}, {pipeline_mode = #tpu.pipeline_mode<synchronous>, transform_indices = @transform_1, window_bounds = array<i64: 8, 128>}, {pipeline_mode = #tpu.pipeline_mode<synchronous>, transform_indices = @transform_2, window_bounds = array<i64: 1, 128>}, {pipeline_mode = #tpu.pipeline_mode<synchronous>, transform_indices = @transform_3, window_bounds = array<i64: 1, 128>}, {pipeline_mode = #tpu.pipeline_mode<synchronous>, transform_indices = @transform_4, window_bounds = array<i64: 128, 256>}, {pipeline_mode = #tpu.pipeline_mode<synchronous>, transform_indices = @transform_5, window_bounds = array<i64: 1, 256>}, {transform_indices = @transform_6, window_bounds = array<i64: 1, 1, 256>}]} {
    %c0 = arith.constant 0 : index
    %c0_0 = arith.constant 0 : index
    %c0_1 = arith.constant 0 : index
    %0 = vector.load %arg2[%c0, %c0_0, %c0_1] : memref<1x64x8xf32, #tpu.memory_space<vmem>>, vector<1x64x8xf32>
    %1 = vector.shape_cast %0 : vector<1x64x8xf32> to vector<64x8xf32>
    %2 = arith.truncf %1 : vector<64x8xf32> to vector<64x8xbf16>
    %c0_2 = arith.constant 0 : index
    %c0_3 = arith.constant 0 : index
    %3 = vector.load %arg3[%c0_2, %c0_3] : memref<8x128xbf16, #tpu.memory_space<vmem>>, vector<8x128xbf16>
    %cst = arith.constant dense<0.000000e+00> : vector<64x128xf32>
    %4 = tpu.matmul %2, %3, %cst {dimension_numbers = #tpu.dot_dimension_numbers<[1], [0], [0], [1], [0, 0, 1, 1], [], []>} : vector<64x8xbf16>, vector<8x128xbf16>, vector<64x128xf32> -> vector<64x128xf32>
    %c0_4 = arith.constant 0 : index
    %c0_5 = arith.constant 0 : index
    %5 = vector.load %arg4[%c0_4, %c0_5] : memref<1x128xf32, #tpu.memory_space<vmem>>, vector<1x128xf32>
    %6 = vector.broadcast %5 : vector<1x128xf32> to vector<64x128xf32>
    %7 = arith.mulf %4, %6 : vector<64x128xf32>
    %c0_6 = arith.constant 0 : index
    %c0_7 = arith.constant 0 : index
    %8 = vector.load %arg5[%c0_6, %c0_7] : memref<1x128xf32, #tpu.memory_space<vmem>>, vector<1x128xf32>
    %9 = vector.broadcast %8 : vector<1x128xf32> to vector<64x128xf32>
    %10 = arith.addf %7, %9 : vector<64x128xf32>
    %cst_8 = arith.constant 0.000000e+00 : f32
    %11 = vector.broadcast %cst_8 : f32 to vector<64x128xf32>
    %12 = arith.maximumf %10, %11 : vector<64x128xf32>
    %13 = arith.truncf %12 : vector<64x128xf32> to vector<64x128xbf16>
    %c0_9 = arith.constant 0 : index
    %c0_10 = arith.constant 0 : index
    %14 = vector.load %arg6[%c0_9, %c0_10] : memref<128x256xbf16, #tpu.memory_space<vmem>>, vector<128x256xbf16>
    %cst_11 = arith.constant dense<0.000000e+00> : vector<64x256xf32>
    %15 = tpu.matmul %13, %14, %cst_11 {dimension_numbers = #tpu.dot_dimension_numbers<[1], [0], [0], [1], [0, 0, 1, 1], [], []>} : vector<64x128xbf16>, vector<128x256xbf16>, vector<64x256xf32> -> vector<64x256xf32>
    %c0_12 = arith.constant 0 : index
    %c0_13 = arith.constant 0 : index
    %16 = vector.load %arg7[%c0_12, %c0_13] : memref<1x256xf32, #tpu.memory_space<vmem>>, vector<1x256xf32>
    %17 = vector.broadcast %16 : vector<1x256xf32> to vector<64x256xf32>
    %18 = arith.addf %15, %17 : vector<64x256xf32>
    %c0_i32 = arith.constant 0 : i32
    %19 = arith.cmpi eq, %arg1, %c0_i32 : i32
    %20 = arith.extui %19 : i1 to i32
    %c0_i32_14 = arith.constant 0 : i32
    %21 = arith.cmpi ne, %20, %c0_i32_14 : i32
    scf.if %21 {
      %cst_22 = arith.constant 0xFF800000 : f32
      %27 = vector.broadcast %cst_22 : f32 to vector<1x1x256xf32>
      %c0_23 = arith.constant 0 : index
      %c0_24 = arith.constant 0 : index
      %c0_25 = arith.constant 0 : index
      %28 = vector.load %arg8[%c0_23, %c0_24, %c0_25] : memref<1x1x256xf32, #tpu.memory_space<vmem>>, vector<1x1x256xf32>
      tpu.vector_store %arg8[%c0_23, %c0_24, %c0_25], %27 {strides = array<i32>} : memref<1x1x256xf32, #tpu.memory_space<vmem>>, vector<1x1x256xf32>,
    } else {
    }
    %c0_15 = arith.constant 0 : index
    %c0_16 = arith.constant 0 : index
    %c0_17 = arith.constant 0 : index
    %22 = vector.load %arg8[%c0_15, %c0_16, %c0_17] : memref<1x1x256xf32, #tpu.memory_space<vmem>>, vector<1x1x256xf32>
    %cst_18 = arith.constant dense<0xFF800000> : vector<256xf32>
    %23 = vector.multi_reduction <maximumf>, %18, %cst_18 [0] : vector<64x256xf32> to vector<256xf32>
    %24 = vector.shape_cast %23 : vector<256xf32> to vector<1x1x256xf32>
    %25 = arith.maximumf %22, %24 : vector<1x1x256xf32>
    %c0_19 = arith.constant 0 : index
    %c0_20 = arith.constant 0 : index
    %c0_21 = arith.constant 0 : index
    %26 = vector.load %arg8[%c0_19, %c0_20, %c0_21] : memref<1x1x256xf32, #tpu.memory_space<vmem>>, vector<1x1x256xf32>
    tpu.vector_store %arg8[%c0_19, %c0_20, %c0_21], %25 {strides = array<i32>} : memref<1x1x256xf32, #tpu.memory_space<vmem>>, vector<1x1x256xf32>,
    return
  }
  func.func @transform_0(%arg0: i32, %arg1: i32) -> (i32, i32, i32) {
    %c0_i32 = arith.constant 0 : i32
    %c0_i32_0 = arith.constant 0 : i32
    return %arg0, %arg1, %c0_i32 : i32, i32, i32
  }
  func.func @transform_1(%arg0: i32, %arg1: i32) -> (i32, i32) {
    %c0_i32 = arith.constant 0 : i32
    %c0_i32_0 = arith.constant 0 : i32
    %c0_i32_1 = arith.constant 0 : i32
    return %c0_i32, %c0_i32_0 : i32, i32
  }
  func.func @transform_2(%arg0: i32, %arg1: i32) -> (i32, i32) {
    %c0_i32 = arith.constant 0 : i32
    %c0_i32_0 = arith.constant 0 : i32
    %c0_i32_1 = arith.constant 0 : i32
    return %c0_i32, %c0_i32_0 : i32, i32
  }
  func.func @transform_3(%arg0: i32, %arg1: i32) -> (i32, i32) {
    %c0_i32 = arith.constant 0 : i32
    %c0_i32_0 = arith.constant 0 : i32
    %c0_i32_1 = arith.constant 0 : i32
    return %c0_i32, %c0_i32_0 : i32, i32
  }
  func.func @transform_4(%arg0: i32, %arg1: i32) -> (i32, i32) {
    %c0_i32 = arith.constant 0 : i32
    %c0_i32_0 = arith.constant 0 : i32
    %c0_i32_1 = arith.constant 0 : i32
    return %c0_i32, %c0_i32_0 : i32, i32
  }
  func.func @transform_5(%arg0: i32, %arg1: i32) -> (i32, i32) {
    %c0_i32 = arith.constant 0 : i32
    %c0_i32_0 = arith.constant 0 : i32
    %c0_i32_1 = arith.constant 0 : i32
    return %c0_i32, %c0_i32_0 : i32, i32
  }
  func.func @transform_6(%arg0: i32, %arg1: i32) -> (i32, i32, i32) {
    %c0_i32 = arith.constant 0 : i32
    %c0_i32_0 = arith.constant 0 : i32
    %c0_i32_1 = arith.constant 0 : i32
    return %arg0, %c0_i32, %c0_i32_0 : i32, i32, i32
  }
}

module attributes {stable_mosaic.version = 11 : i64} {
  func.func @_enc2_kernel(%arg0: i32, %arg1: i32, %arg2: memref<1x64x8xf32, #tpu.memory_space<vmem>>, %arg3: memref<1x1x256xf32, #tpu.memory_space<vmem>>, %arg4: memref<8x128xbf16, #tpu.memory_space<vmem>>, %arg5: memref<1x128xf32, #tpu.memory_space<vmem>>, %arg6: memref<1x128xf32, #tpu.memory_space<vmem>>, %arg7: memref<128x256xbf16, #tpu.memory_space<vmem>>, %arg8: memref<1x256xf32, #tpu.memory_space<vmem>>, %arg9: memref<256x512xbf16, #tpu.memory_space<vmem>>, %arg10: memref<256x512xbf16, #tpu.memory_space<vmem>>, %arg11: memref<1x512xf32, #tpu.memory_space<vmem>>, %arg12: memref<1x512xf32, #tpu.memory_space<vmem>>, %arg13: memref<512x256xbf16, #tpu.memory_space<vmem>>, %arg14: memref<1x256xf32, #tpu.memory_space<vmem>>, %arg15: memref<1x1x256xf32, #tpu.memory_space<vmem>>) attributes {dimension_semantics = [#tpu.dimension_semantics<parallel>, #tpu.dimension_semantics<arbitrary>], iteration_bounds = array<i64: 2, 1>, scalar_prefetch = 0 : i64, scratch_operands = 0 : i64, tpu.core_type = #tpu.core_type<tc>, window_params = [{transform_indices = @transform_0, window_bounds = array<i64: 1, 64, 8>}, {transform_indices = @transform_1, window_bounds = array<i64: 1, 1, 256>}, {pipeline_mode = #tpu.pipeline_mode<synchronous>, transform_indices = @transform_2, window_bounds = array<i64: 8, 128>}, {pipeline_mode = #tpu.pipeline_mode<synchronous>, transform_indices = @transform_3, window_bounds = array<i64: 1, 128>}, {pipeline_mode = #tpu.pipeline_mode<synchronous>, transform_indices = @transform_4, window_bounds = array<i64: 1, 128>}, {pipeline_mode = #tpu.pipeline_mode<synchronous>, transform_indices = @transform_5, window_bounds = array<i64: 128, 256>}, {pipeline_mode = #tpu.pipeline_mode<synchronous>, transform_indices = @transform_6, window_bounds = array<i64: 1, 256>}, {pipeline_mode = #tpu.pipeline_mode<synchronous>, transform_indices = @transform_7, window_bounds = array<i64: 256, 512>}, {pipeline_mode = #tpu.pipeline_mode<synchronous>, transform_indices = @transform_8, window_bounds = array<i64: 256, 512>}, {pipeline_mode = #tpu.pipeline_mode<synchronous>, transform_indices = @transform_9, window_bounds = array<i64: 1, 512>}, {pipeline_mode = #tpu.pipeline_mode<synchronous>, transform_indices = @transform_10, window_bounds = array<i64: 1, 512>}, {pipeline_mode = #tpu.pipeline_mode<synchronous>, transform_indices = @transform_11, window_bounds = array<i64: 512, 256>}, {pipeline_mode = #tpu.pipeline_mode<synchronous>, transform_indices = @transform_12, window_bounds = array<i64: 1, 256>}, {transform_indices = @transform_13, window_bounds = array<i64: 1, 1, 256>}]} {
    %c0 = arith.constant 0 : index
    %c0_0 = arith.constant 0 : index
    %c0_1 = arith.constant 0 : index
    %0 = vector.load %arg2[%c0, %c0_0, %c0_1] : memref<1x64x8xf32, #tpu.memory_space<vmem>>, vector<1x64x8xf32>
    %1 = vector.shape_cast %0 : vector<1x64x8xf32> to vector<64x8xf32>
    %2 = arith.truncf %1 : vector<64x8xf32> to vector<64x8xbf16>
    %c0_2 = arith.constant 0 : index
    %c0_3 = arith.constant 0 : index
    %3 = vector.load %arg4[%c0_2, %c0_3] : memref<8x128xbf16, #tpu.memory_space<vmem>>, vector<8x128xbf16>
    %cst = arith.constant dense<0.000000e+00> : vector<64x128xf32>
    %4 = tpu.matmul %2, %3, %cst {dimension_numbers = #tpu.dot_dimension_numbers<[1], [0], [0], [1], [0, 0, 1, 1], [], []>} : vector<64x8xbf16>, vector<8x128xbf16>, vector<64x128xf32> -> vector<64x128xf32>
    %c0_4 = arith.constant 0 : index
    %c0_5 = arith.constant 0 : index
    %5 = vector.load %arg5[%c0_4, %c0_5] : memref<1x128xf32, #tpu.memory_space<vmem>>, vector<1x128xf32>
    %6 = vector.broadcast %5 : vector<1x128xf32> to vector<64x128xf32>
    %7 = arith.mulf %4, %6 : vector<64x128xf32>
    %c0_6 = arith.constant 0 : index
    %c0_7 = arith.constant 0 : index
    %8 = vector.load %arg6[%c0_6, %c0_7] : memref<1x128xf32, #tpu.memory_space<vmem>>, vector<1x128xf32>
    %9 = vector.broadcast %8 : vector<1x128xf32> to vector<64x128xf32>
    %10 = arith.addf %7, %9 : vector<64x128xf32>
    %cst_8 = arith.constant 0.000000e+00 : f32
    %11 = vector.broadcast %cst_8 : f32 to vector<64x128xf32>
    %12 = arith.maximumf %10, %11 : vector<64x128xf32>
    %13 = arith.truncf %12 : vector<64x128xf32> to vector<64x128xbf16>
    %c0_9 = arith.constant 0 : index
    %c0_10 = arith.constant 0 : index
    %14 = vector.load %arg7[%c0_9, %c0_10] : memref<128x256xbf16, #tpu.memory_space<vmem>>, vector<128x256xbf16>
    %cst_11 = arith.constant dense<0.000000e+00> : vector<64x256xf32>
    %15 = tpu.matmul %13, %14, %cst_11 {dimension_numbers = #tpu.dot_dimension_numbers<[1], [0], [0], [1], [0, 0, 1, 1], [], []>} : vector<64x128xbf16>, vector<128x256xbf16>, vector<64x256xf32> -> vector<64x256xf32>
    %c0_12 = arith.constant 0 : index
    %c0_13 = arith.constant 0 : index
    %16 = vector.load %arg8[%c0_12, %c0_13] : memref<1x256xf32, #tpu.memory_space<vmem>>, vector<1x256xf32>
    %17 = vector.broadcast %16 : vector<1x256xf32> to vector<64x256xf32>
    %18 = arith.addf %15, %17 : vector<64x256xf32>
    %19 = arith.truncf %18 : vector<64x256xf32> to vector<64x256xbf16>
    %c0_14 = arith.constant 0 : index
    %c0_15 = arith.constant 0 : index
    %c0_16 = arith.constant 0 : index
    %20 = vector.load %arg3[%c0_14, %c0_15, %c0_16] : memref<1x1x256xf32, #tpu.memory_space<vmem>>, vector<1x1x256xf32>
    %21 = vector.shape_cast %20 : vector<1x1x256xf32> to vector<1x256xf32>
    %22 = arith.truncf %21 : vector<1x256xf32> to vector<1x256xbf16>
    %c0_17 = arith.constant 0 : index
    %c0_18 = arith.constant 0 : index
    %23 = vector.load %arg9[%c0_17, %c0_18] : memref<256x512xbf16, #tpu.memory_space<vmem>>, vector<256x512xbf16>
    %cst_19 = arith.constant dense<0.000000e+00> : vector<1x512xf32>
    %24 = tpu.matmul %22, %23, %cst_19 {dimension_numbers = #tpu.dot_dimension_numbers<[1], [0], [0], [1], [0, 0, 1, 1], [], []>} : vector<1x256xbf16>, vector<256x512xbf16>, vector<1x512xf32> -> vector<1x512xf32>
    %c0_20 = arith.constant 0 : index
    %c0_21 = arith.constant 0 : index
    %25 = vector.load %arg10[%c0_20, %c0_21] : memref<256x512xbf16, #tpu.memory_space<vmem>>, vector<256x512xbf16>
    %cst_22 = arith.constant dense<0.000000e+00> : vector<64x512xf32>
    %26 = tpu.matmul %19, %25, %cst_22 {dimension_numbers = #tpu.dot_dimension_numbers<[1], [0], [0], [1], [0, 0, 1, 1], [], []>} : vector<64x256xbf16>, vector<256x512xbf16>, vector<64x512xf32> -> vector<64x512xf32>
    %27 = vector.broadcast %24 : vector<1x512xf32> to vector<64x512xf32>
    %28 = arith.addf %26, %27 : vector<64x512xf32>
    %c0_23 = arith.constant 0 : index
    %c0_24 = arith.constant 0 : index
    %29 = vector.load %arg11[%c0_23, %c0_24] : memref<1x512xf32, #tpu.memory_space<vmem>>, vector<1x512xf32>
    %30 = vector.broadcast %29 : vector<1x512xf32> to vector<64x512xf32>
    %31 = arith.mulf %28, %30 : vector<64x512xf32>
    %c0_25 = arith.constant 0 : index
    %c0_26 = arith.constant 0 : index
    %32 = vector.load %arg12[%c0_25, %c0_26] : memref<1x512xf32, #tpu.memory_space<vmem>>, vector<1x512xf32>
    %33 = vector.broadcast %32 : vector<1x512xf32> to vector<64x512xf32>
    %34 = arith.addf %31, %33 : vector<64x512xf32>
    %cst_27 = arith.constant 0.000000e+00 : f32
    %35 = vector.broadcast %cst_27 : f32 to vector<64x512xf32>
    %36 = arith.maximumf %34, %35 : vector<64x512xf32>
    %37 = arith.truncf %36 : vector<64x512xf32> to vector<64x512xbf16>
    %c0_28 = arith.constant 0 : index
    %c0_29 = arith.constant 0 : index
    %38 = vector.load %arg13[%c0_28, %c0_29] : memref<512x256xbf16, #tpu.memory_space<vmem>>, vector<512x256xbf16>
    %cst_30 = arith.constant dense<0.000000e+00> : vector<64x256xf32>
    %39 = tpu.matmul %37, %38, %cst_30 {dimension_numbers = #tpu.dot_dimension_numbers<[1], [0], [0], [1], [0, 0, 1, 1], [], []>} : vector<64x512xbf16>, vector<512x256xbf16>, vector<64x256xf32> -> vector<64x256xf32>
    %c0_31 = arith.constant 0 : index
    %c0_32 = arith.constant 0 : index
    %40 = vector.load %arg14[%c0_31, %c0_32] : memref<1x256xf32, #tpu.memory_space<vmem>>, vector<1x256xf32>
    %41 = vector.broadcast %40 : vector<1x256xf32> to vector<64x256xf32>
    %42 = arith.addf %39, %41 : vector<64x256xf32>
    %c0_i32 = arith.constant 0 : i32
    %43 = arith.cmpi eq, %arg1, %c0_i32 : i32
    %44 = arith.extui %43 : i1 to i32
    %c0_i32_33 = arith.constant 0 : i32
    %45 = arith.cmpi ne, %44, %c0_i32_33 : i32
    scf.if %45 {
      %cst_41 = arith.constant 0xFF800000 : f32
      %51 = vector.broadcast %cst_41 : f32 to vector<1x1x256xf32>
      %c0_42 = arith.constant 0 : index
      %c0_43 = arith.constant 0 : index
      %c0_44 = arith.constant 0 : index
      %52 = vector.load %arg15[%c0_42, %c0_43, %c0_44] : memref<1x1x256xf32, #tpu.memory_space<vmem>>, vector<1x1x256xf32>
      tpu.vector_store %arg15[%c0_42, %c0_43, %c0_44], %51 {strides = array<i32>} : memref<1x1x256xf32, #tpu.memory_space<vmem>>, vector<1x1x256xf32>,
    } else {
    }
    %c0_34 = arith.constant 0 : index
    %c0_35 = arith.constant 0 : index
    %c0_36 = arith.constant 0 : index
    %46 = vector.load %arg15[%c0_34, %c0_35, %c0_36] : memref<1x1x256xf32, #tpu.memory_space<vmem>>, vector<1x1x256xf32>
    %cst_37 = arith.constant dense<0xFF800000> : vector<256xf32>
    %47 = vector.multi_reduction <maximumf>, %42, %cst_37 [0] : vector<64x256xf32> to vector<256xf32>
    %48 = vector.shape_cast %47 : vector<256xf32> to vector<1x1x256xf32>
    %49 = arith.maximumf %46, %48 : vector<1x1x256xf32>
    %c0_38 = arith.constant 0 : index
    %c0_39 = arith.constant 0 : index
    %c0_40 = arith.constant 0 : index
    %50 = vector.load %arg15[%c0_38, %c0_39, %c0_40] : memref<1x1x256xf32, #tpu.memory_space<vmem>>, vector<1x1x256xf32>
    tpu.vector_store %arg15[%c0_38, %c0_39, %c0_40], %49 {strides = array<i32>} : memref<1x1x256xf32, #tpu.memory_space<vmem>>, vector<1x1x256xf32>,
    return
  }
  func.func @transform_0(%arg0: i32, %arg1: i32) -> (i32, i32, i32) {
    %c0_i32 = arith.constant 0 : i32
    %c0_i32_0 = arith.constant 0 : i32
    return %arg0, %arg1, %c0_i32 : i32, i32, i32
  }
  func.func @transform_1(%arg0: i32, %arg1: i32) -> (i32, i32, i32) {
    %c0_i32 = arith.constant 0 : i32
    %c0_i32_0 = arith.constant 0 : i32
    %c0_i32_1 = arith.constant 0 : i32
    return %arg0, %c0_i32, %c0_i32_0 : i32, i32, i32
  }
  func.func @transform_2(%arg0: i32, %arg1: i32) -> (i32, i32) {
    %c0_i32 = arith.constant 0 : i32
    %c0_i32_0 = arith.constant 0 : i32
    %c0_i32_1 = arith.constant 0 : i32
    return %c0_i32, %c0_i32_0 : i32, i32
  }
  func.func @transform_3(%arg0: i32, %arg1: i32) -> (i32, i32) {
    %c0_i32 = arith.constant 0 : i32
    %c0_i32_0 = arith.constant 0 : i32
    %c0_i32_1 = arith.constant 0 : i32
    return %c0_i32, %c0_i32_0 : i32, i32
  }
  func.func @transform_4(%arg0: i32, %arg1: i32) -> (i32, i32) {
    %c0_i32 = arith.constant 0 : i32
    %c0_i32_0 = arith.constant 0 : i32
    %c0_i32_1 = arith.constant 0 : i32
    return %c0_i32, %c0_i32_0 : i32, i32
  }
  func.func @transform_5(%arg0: i32, %arg1: i32) -> (i32, i32) {
    %c0_i32 = arith.constant 0 : i32
    %c0_i32_0 = arith.constant 0 : i32
    %c0_i32_1 = arith.constant 0 : i32
    return %c0_i32, %c0_i32_0 : i32, i32
  }
  func.func @transform_6(%arg0: i32, %arg1: i32) -> (i32, i32) {
    %c0_i32 = arith.constant 0 : i32
    %c0_i32_0 = arith.constant 0 : i32
    %c0_i32_1 = arith.constant 0 : i32
    return %c0_i32, %c0_i32_0 : i32, i32
  }
  func.func @transform_7(%arg0: i32, %arg1: i32) -> (i32, i32) {
    %c0_i32 = arith.constant 0 : i32
    %c0_i32_0 = arith.constant 0 : i32
    %c0_i32_1 = arith.constant 0 : i32
    return %c0_i32, %c0_i32_0 : i32, i32
  }
  func.func @transform_8(%arg0: i32, %arg1: i32) -> (i32, i32) {
    %c0_i32 = arith.constant 0 : i32
    %c0_i32_0 = arith.constant 0 : i32
    %c0_i32_1 = arith.constant 0 : i32
    return %c0_i32, %c0_i32_0 : i32, i32
  }
  func.func @transform_9(%arg0: i32, %arg1: i32) -> (i32, i32) {
    %c0_i32 = arith.constant 0 : i32
    %c0_i32_0 = arith.constant 0 : i32
    %c0_i32_1 = arith.constant 0 : i32
    return %c0_i32, %c0_i32_0 : i32, i32
  }
  func.func @transform_10(%arg0: i32, %arg1: i32) -> (i32, i32) {
    %c0_i32 = arith.constant 0 : i32
    %c0_i32_0 = arith.constant 0 : i32
    %c0_i32_1 = arith.constant 0 : i32
    return %c0_i32, %c0_i32_0 : i32, i32
  }
  func.func @transform_11(%arg0: i32, %arg1: i32) -> (i32, i32) {
    %c0_i32 = arith.constant 0 : i32
    %c0_i32_0 = arith.constant 0 : i32
    %c0_i32_1 = arith.constant 0 : i32
    return %c0_i32, %c0_i32_0 : i32, i32
  }
  func.func @transform_12(%arg0: i32, %arg1: i32) -> (i32, i32) {
    %c0_i32 = arith.constant 0 : i32
    %c0_i32_0 = arith.constant 0 : i32
    %c0_i32_1 = arith.constant 0 : i32
    return %c0_i32, %c0_i32_0 : i32, i32
  }
  func.func @transform_13(%arg0: i32, %arg1: i32) -> (i32, i32, i32) {
    %c0_i32 = arith.constant 0 : i32
    %c0_i32_0 = arith.constant 0 : i32
    %c0_i32_1 = arith.constant 0 : i32
    return %arg0, %c0_i32, %c0_i32_0 : i32, i32, i32
  }
}

module attributes {stable_mosaic.version = 11 : i64} {
  func.func @_coarse_mlp_kernel(%arg0: i32, %arg1: memref<2x256xf32, #tpu.memory_space<vmem>>, %arg2: memref<256x1024xbf16, #tpu.memory_space<vmem>>, %arg3: memref<1x1024xf32, #tpu.memory_space<vmem>>, %arg4: memref<1024x1024xbf16, #tpu.memory_space<vmem>>, %arg5: memref<1x1024xf32, #tpu.memory_space<vmem>>, %arg6: memref<1024x48xbf16, #tpu.memory_space<vmem>>, %arg7: memref<1x48xf32, #tpu.memory_space<vmem>>, %arg8: memref<2x48xf32, #tpu.memory_space<vmem>>) attributes {dimension_semantics = [#tpu.dimension_semantics<parallel>], iteration_bounds = array<i64: 1>, scalar_prefetch = 0 : i64, scratch_operands = 0 : i64, tpu.core_type = #tpu.core_type<tc>, window_params = [{pipeline_mode = #tpu.pipeline_mode<synchronous>, transform_indices = @transform_0, window_bounds = array<i64: 2, 256>}, {pipeline_mode = #tpu.pipeline_mode<synchronous>, transform_indices = @transform_1, window_bounds = array<i64: 256, 1024>}, {pipeline_mode = #tpu.pipeline_mode<synchronous>, transform_indices = @transform_2, window_bounds = array<i64: 1, 1024>}, {pipeline_mode = #tpu.pipeline_mode<synchronous>, transform_indices = @transform_3, window_bounds = array<i64: 1024, 1024>}, {pipeline_mode = #tpu.pipeline_mode<synchronous>, transform_indices = @transform_4, window_bounds = array<i64: 1, 1024>}, {transform_indices = @transform_5, window_bounds = array<i64: 1024, 48>}, {transform_indices = @transform_6, window_bounds = array<i64: 1, 48>}, {transform_indices = @transform_7, window_bounds = array<i64: 2, 48>}]} {
    %c0 = arith.constant 0 : index
    %c0_0 = arith.constant 0 : index
    %0 = vector.load %arg1[%c0, %c0_0] : memref<2x256xf32, #tpu.memory_space<vmem>>, vector<2x256xf32>
    %1 = arith.truncf %0 : vector<2x256xf32> to vector<2x256xbf16>
    %c0_1 = arith.constant 0 : index
    %c0_2 = arith.constant 0 : index
    %2 = vector.load %arg2[%c0_1, %c0_2] : memref<256x1024xbf16, #tpu.memory_space<vmem>>, vector<256x1024xbf16>
    %cst = arith.constant dense<0.000000e+00> : vector<2x1024xf32>
    %3 = tpu.matmul %1, %2, %cst {dimension_numbers = #tpu.dot_dimension_numbers<[1], [0], [0], [1], [0, 0, 1, 1], [], []>} : vector<2x256xbf16>, vector<256x1024xbf16>, vector<2x1024xf32> -> vector<2x1024xf32>
    %c0_3 = arith.constant 0 : index
    %c0_4 = arith.constant 0 : index
    %4 = vector.load %arg3[%c0_3, %c0_4] : memref<1x1024xf32, #tpu.memory_space<vmem>>, vector<1x1024xf32>
    %5 = vector.broadcast %4 : vector<1x1024xf32> to vector<2x1024xf32>
    %6 = arith.addf %3, %5 : vector<2x1024xf32>
    %cst_5 = arith.constant 0.000000e+00 : f32
    %7 = vector.broadcast %cst_5 : f32 to vector<2x1024xf32>
    %8 = arith.maximumf %6, %7 : vector<2x1024xf32>
    %9 = arith.truncf %8 : vector<2x1024xf32> to vector<2x1024xbf16>
    %c0_6 = arith.constant 0 : index
    %c0_7 = arith.constant 0 : index
    %10 = vector.load %arg4[%c0_6, %c0_7] : memref<1024x1024xbf16, #tpu.memory_space<vmem>>, vector<1024x1024xbf16>
    %cst_8 = arith.constant dense<0.000000e+00> : vector<2x1024xf32>
    %11 = tpu.matmul %9, %10, %cst_8 {dimension_numbers = #tpu.dot_dimension_numbers<[1], [0], [0], [1], [0, 0, 1, 1], [], []>} : vector<2x1024xbf16>, vector<1024x1024xbf16>, vector<2x1024xf32> -> vector<2x1024xf32>
    %c0_9 = arith.constant 0 : index
    %c0_10 = arith.constant 0 : index
    %12 = vector.load %arg5[%c0_9, %c0_10] : memref<1x1024xf32, #tpu.memory_space<vmem>>, vector<1x1024xf32>
    %13 = vector.broadcast %12 : vector<1x1024xf32> to vector<2x1024xf32>
    %14 = arith.addf %11, %13 : vector<2x1024xf32>
    %cst_11 = arith.constant 0.000000e+00 : f32
    %15 = vector.broadcast %cst_11 : f32 to vector<2x1024xf32>
    %16 = arith.maximumf %14, %15 : vector<2x1024xf32>
    %17 = arith.truncf %16 : vector<2x1024xf32> to vector<2x1024xbf16>
    %c0_12 = arith.constant 0 : index
    %c0_13 = arith.constant 0 : index
    %18 = vector.load %arg6[%c0_12, %c0_13] : memref<1024x48xbf16, #tpu.memory_space<vmem>>, vector<1024x48xbf16>
    %cst_14 = arith.constant dense<0.000000e+00> : vector<2x48xf32>
    %19 = tpu.matmul %17, %18, %cst_14 {dimension_numbers = #tpu.dot_dimension_numbers<[1], [0], [0], [1], [0, 0, 1, 1], [], []>} : vector<2x1024xbf16>, vector<1024x48xbf16>, vector<2x48xf32> -> vector<2x48xf32>
    %c0_15 = arith.constant 0 : index
    %c0_16 = arith.constant 0 : index
    %20 = vector.load %arg7[%c0_15, %c0_16] : memref<1x48xf32, #tpu.memory_space<vmem>>, vector<1x48xf32>
    %21 = vector.broadcast %20 : vector<1x48xf32> to vector<2x48xf32>
    %22 = arith.addf %19, %21 : vector<2x48xf32>
    %c0_17 = arith.constant 0 : index
    %c0_18 = arith.constant 0 : index
    %23 = vector.load %arg8[%c0_17, %c0_18] : memref<2x48xf32, #tpu.memory_space<vmem>>, vector<2x48xf32>
    tpu.vector_store %arg8[%c0_17, %c0_18], %22 {strides = array<i32>} : memref<2x48xf32, #tpu.memory_space<vmem>>, vector<2x48xf32>,
    return
  }
  func.func @transform_0(%arg0: i32) -> (i32, i32) {
    %c0_i32 = arith.constant 0 : i32
    %c0_i32_0 = arith.constant 0 : i32
    %c0_i32_1 = arith.constant 0 : i32
    return %c0_i32, %c0_i32_0 : i32, i32
  }
  func.func @transform_1(%arg0: i32) -> (i32, i32) {
    %c0_i32 = arith.constant 0 : i32
    %c0_i32_0 = arith.constant 0 : i32
    %c0_i32_1 = arith.constant 0 : i32
    return %c0_i32, %c0_i32_0 : i32, i32
  }
  func.func @transform_2(%arg0: i32) -> (i32, i32) {
    %c0_i32 = arith.constant 0 : i32
    %c0_i32_0 = arith.constant 0 : i32
    %c0_i32_1 = arith.constant 0 : i32
    return %c0_i32, %c0_i32_0 : i32, i32
  }
  func.func @transform_3(%arg0: i32) -> (i32, i32) {
    %c0_i32 = arith.constant 0 : i32
    %c0_i32_0 = arith.constant 0 : i32
    %c0_i32_1 = arith.constant 0 : i32
    return %c0_i32, %c0_i32_0 : i32, i32
  }
  func.func @transform_4(%arg0: i32) -> (i32, i32) {
    %c0_i32 = arith.constant 0 : i32
    %c0_i32_0 = arith.constant 0 : i32
    %c0_i32_1 = arith.constant 0 : i32
    return %c0_i32, %c0_i32_0 : i32, i32
  }
  func.func @transform_5(%arg0: i32) -> (i32, i32) {
    %c0_i32 = arith.constant 0 : i32
    %c0_i32_0 = arith.constant 0 : i32
    return %c0_i32, %arg0 : i32, i32
  }
  func.func @transform_6(%arg0: i32) -> (i32, i32) {
    %c0_i32 = arith.constant 0 : i32
    %c0_i32_0 = arith.constant 0 : i32
    return %c0_i32, %arg0 : i32, i32
  }
  func.func @transform_7(%arg0: i32) -> (i32, i32) {
    %c0_i32 = arith.constant 0 : i32
    %c0_i32_0 = arith.constant 0 : i32
    return %c0_i32, %arg0 : i32, i32
  }
}

module attributes {stable_mosaic.version = 11 : i64} {
  func.func @_decoder_kernel(%arg0: i32, %arg1: i32, %arg2: memref<1x256x8xf32, #tpu.memory_space<vmem>>, %arg3: memref<1x1x256xf32, #tpu.memory_space<vmem>>, %arg4: memref<256x512xbf16, #tpu.memory_space<vmem>>, %arg5: memref<8x512xbf16, #tpu.memory_space<vmem>>, %arg6: memref<1x512xf32, #tpu.memory_space<vmem>>, %arg7: memref<1x512xf32, #tpu.memory_space<vmem>>, %arg8: memref<512x512xbf16, #tpu.memory_space<vmem>>, %arg9: memref<1x512xf32, #tpu.memory_space<vmem>>, %arg10: memref<1x512xf32, #tpu.memory_space<vmem>>, %arg11: memref<512x3xbf16, #tpu.memory_space<vmem>>, %arg12: memref<1x3xf32, #tpu.memory_space<vmem>>, %arg13: memref<1x256x3xf32, #tpu.memory_space<vmem>>) attributes {dimension_semantics = [#tpu.dimension_semantics<parallel>, #tpu.dimension_semantics<parallel>], iteration_bounds = array<i64: 2, 1>, scalar_prefetch = 0 : i64, scratch_operands = 0 : i64, tpu.core_type = #tpu.core_type<tc>, window_params = [{transform_indices = @transform_0, window_bounds = array<i64: 1, 256, 8>}, {transform_indices = @transform_1, window_bounds = array<i64: 1, 1, 256>}, {pipeline_mode = #tpu.pipeline_mode<synchronous>, transform_indices = @transform_2, window_bounds = array<i64: 256, 512>}, {pipeline_mode = #tpu.pipeline_mode<synchronous>, transform_indices = @transform_3, window_bounds = array<i64: 8, 512>}, {pipeline_mode = #tpu.pipeline_mode<synchronous>, transform_indices = @transform_4, window_bounds = array<i64: 1, 512>}, {pipeline_mode = #tpu.pipeline_mode<synchronous>, transform_indices = @transform_5, window_bounds = array<i64: 1, 512>}, {pipeline_mode = #tpu.pipeline_mode<synchronous>, transform_indices = @transform_6, window_bounds = array<i64: 512, 512>}, {pipeline_mode = #tpu.pipeline_mode<synchronous>, transform_indices = @transform_7, window_bounds = array<i64: 1, 512>}, {pipeline_mode = #tpu.pipeline_mode<synchronous>, transform_indices = @transform_8, window_bounds = array<i64: 1, 512>}, {pipeline_mode = #tpu.pipeline_mode<synchronous>, transform_indices = @transform_9, window_bounds = array<i64: 512, 3>}, {pipeline_mode = #tpu.pipeline_mode<synchronous>, transform_indices = @transform_10, window_bounds = array<i64: 1, 3>}, {transform_indices = @transform_11, window_bounds = array<i64: 1, 256, 3>}]} {
    %c0 = arith.constant 0 : index
    %c0_0 = arith.constant 0 : index
    %c0_1 = arith.constant 0 : index
    %0 = vector.load %arg2[%c0, %c0_0, %c0_1] : memref<1x256x8xf32, #tpu.memory_space<vmem>>, vector<1x256x8xf32>
    %1 = vector.shape_cast %0 : vector<1x256x8xf32> to vector<256x8xf32>
    %c0_2 = arith.constant 0 : index
    %c0_3 = arith.constant 0 : index
    %c0_4 = arith.constant 0 : index
    %2 = vector.load %arg3[%c0_2, %c0_3, %c0_4] : memref<1x1x256xf32, #tpu.memory_space<vmem>>, vector<1x1x256xf32>
    %3 = vector.shape_cast %2 : vector<1x1x256xf32> to vector<1x256xf32>
    %4 = arith.truncf %3 : vector<1x256xf32> to vector<1x256xbf16>
    %c0_5 = arith.constant 0 : index
    %c0_6 = arith.constant 0 : index
    %5 = vector.load %arg4[%c0_5, %c0_6] : memref<256x512xbf16, #tpu.memory_space<vmem>>, vector<256x512xbf16>
    %cst = arith.constant dense<0.000000e+00> : vector<1x512xf32>
    %6 = tpu.matmul %4, %5, %cst {dimension_numbers = #tpu.dot_dimension_numbers<[1], [0], [0], [1], [0, 0, 1, 1], [], []>} : vector<1x256xbf16>, vector<256x512xbf16>, vector<1x512xf32> -> vector<1x512xf32>
    %7 = arith.truncf %1 : vector<256x8xf32> to vector<256x8xbf16>
    %c0_7 = arith.constant 0 : index
    %c0_8 = arith.constant 0 : index
    %8 = vector.load %arg5[%c0_7, %c0_8] : memref<8x512xbf16, #tpu.memory_space<vmem>>, vector<8x512xbf16>
    %cst_9 = arith.constant dense<0.000000e+00> : vector<256x512xf32>
    %9 = tpu.matmul %7, %8, %cst_9 {dimension_numbers = #tpu.dot_dimension_numbers<[1], [0], [0], [1], [0, 0, 1, 1], [], []>} : vector<256x8xbf16>, vector<8x512xbf16>, vector<256x512xf32> -> vector<256x512xf32>
    %10 = vector.broadcast %6 : vector<1x512xf32> to vector<256x512xf32>
    %11 = arith.addf %9, %10 : vector<256x512xf32>
    %c0_10 = arith.constant 0 : index
    %c0_11 = arith.constant 0 : index
    %12 = vector.load %arg6[%c0_10, %c0_11] : memref<1x512xf32, #tpu.memory_space<vmem>>, vector<1x512xf32>
    %13 = vector.broadcast %12 : vector<1x512xf32> to vector<256x512xf32>
    %14 = arith.mulf %11, %13 : vector<256x512xf32>
    %c0_12 = arith.constant 0 : index
    %c0_13 = arith.constant 0 : index
    %15 = vector.load %arg7[%c0_12, %c0_13] : memref<1x512xf32, #tpu.memory_space<vmem>>, vector<1x512xf32>
    %16 = vector.broadcast %15 : vector<1x512xf32> to vector<256x512xf32>
    %17 = arith.addf %14, %16 : vector<256x512xf32>
    %cst_14 = arith.constant 0.000000e+00 : f32
    %18 = vector.broadcast %cst_14 : f32 to vector<256x512xf32>
    %19 = arith.maximumf %17, %18 : vector<256x512xf32>
    %20 = arith.truncf %19 : vector<256x512xf32> to vector<256x512xbf16>
    %c0_15 = arith.constant 0 : index
    %c0_16 = arith.constant 0 : index
    %21 = vector.load %arg8[%c0_15, %c0_16] : memref<512x512xbf16, #tpu.memory_space<vmem>>, vector<512x512xbf16>
    %cst_17 = arith.constant dense<0.000000e+00> : vector<256x512xf32>
    %22 = tpu.matmul %20, %21, %cst_17 {dimension_numbers = #tpu.dot_dimension_numbers<[1], [0], [0], [1], [0, 0, 1, 1], [], []>} : vector<256x512xbf16>, vector<512x512xbf16>, vector<256x512xf32> -> vector<256x512xf32>
    %c0_18 = arith.constant 0 : index
    %c0_19 = arith.constant 0 : index
    %23 = vector.load %arg9[%c0_18, %c0_19] : memref<1x512xf32, #tpu.memory_space<vmem>>, vector<1x512xf32>
    %24 = vector.broadcast %23 : vector<1x512xf32> to vector<256x512xf32>
    %25 = arith.mulf %22, %24 : vector<256x512xf32>
    %c0_20 = arith.constant 0 : index
    %c0_21 = arith.constant 0 : index
    %26 = vector.load %arg10[%c0_20, %c0_21] : memref<1x512xf32, #tpu.memory_space<vmem>>, vector<1x512xf32>
    %27 = vector.broadcast %26 : vector<1x512xf32> to vector<256x512xf32>
    %28 = arith.addf %25, %27 : vector<256x512xf32>
    %cst_22 = arith.constant 0.000000e+00 : f32
    %29 = vector.broadcast %cst_22 : f32 to vector<256x512xf32>
    %30 = arith.maximumf %28, %29 : vector<256x512xf32>
    %31 = arith.truncf %30 : vector<256x512xf32> to vector<256x512xbf16>
    %c0_23 = arith.constant 0 : index
    %c0_24 = arith.constant 0 : index
    %32 = vector.load %arg11[%c0_23, %c0_24] : memref<512x3xbf16, #tpu.memory_space<vmem>>, vector<512x3xbf16>
    %cst_25 = arith.constant dense<0.000000e+00> : vector<256x3xf32>
    %33 = tpu.matmul %31, %32, %cst_25 {dimension_numbers = #tpu.dot_dimension_numbers<[1], [0], [0], [1], [0, 0, 1, 1], [], []>} : vector<256x512xbf16>, vector<512x3xbf16>, vector<256x3xf32> -> vector<256x3xf32>
    %c0_26 = arith.constant 0 : index
    %c0_27 = arith.constant 0 : index
    %34 = vector.load %arg12[%c0_26, %c0_27] : memref<1x3xf32, #tpu.memory_space<vmem>>, vector<1x3xf32>
    %35 = vector.broadcast %34 : vector<1x3xf32> to vector<256x3xf32>
    %36 = arith.addf %33, %35 : vector<256x3xf32>
    %37 = vector.extract_strided_slice %1 {offsets = [0, 0], sizes = [256, 3], strides = [1, 1]} : vector<256x8xf32> to vector<256x3xf32>
    %38 = arith.addf %36, %37 : vector<256x3xf32>
    %c0_28 = arith.constant 0 : index
    %c0_29 = arith.constant 0 : index
    %c0_30 = arith.constant 0 : index
    %39 = vector.load %arg13[%c0_28, %c0_29, %c0_30] : memref<1x256x3xf32, #tpu.memory_space<vmem>>, vector<1x256x3xf32>
    %40 = vector.shape_cast %39 : vector<1x256x3xf32> to vector<256x3xf32>
    %41 = vector.shape_cast %38 : vector<256x3xf32> to vector<1x256x3xf32>
    tpu.vector_store %arg13[%c0_28, %c0_29, %c0_30], %41 {strides = array<i32>} : memref<1x256x3xf32, #tpu.memory_space<vmem>>, vector<1x256x3xf32>,
    return
  }
  func.func @transform_0(%arg0: i32, %arg1: i32) -> (i32, i32, i32) {
    %c0_i32 = arith.constant 0 : i32
    %c0_i32_0 = arith.constant 0 : i32
    return %arg0, %arg1, %c0_i32 : i32, i32, i32
  }
  func.func @transform_1(%arg0: i32, %arg1: i32) -> (i32, i32, i32) {
    %c0_i32 = arith.constant 0 : i32
    %c0_i32_0 = arith.constant 0 : i32
    %c0_i32_1 = arith.constant 0 : i32
    return %arg0, %c0_i32, %c0_i32_0 : i32, i32, i32
  }
  func.func @transform_2(%arg0: i32, %arg1: i32) -> (i32, i32) {
    %c0_i32 = arith.constant 0 : i32
    %c0_i32_0 = arith.constant 0 : i32
    %c0_i32_1 = arith.constant 0 : i32
    return %c0_i32, %c0_i32_0 : i32, i32
  }
  func.func @transform_3(%arg0: i32, %arg1: i32) -> (i32, i32) {
    %c0_i32 = arith.constant 0 : i32
    %c0_i32_0 = arith.constant 0 : i32
    %c0_i32_1 = arith.constant 0 : i32
    return %c0_i32, %c0_i32_0 : i32, i32
  }
  func.func @transform_4(%arg0: i32, %arg1: i32) -> (i32, i32) {
    %c0_i32 = arith.constant 0 : i32
    %c0_i32_0 = arith.constant 0 : i32
    %c0_i32_1 = arith.constant 0 : i32
    return %c0_i32, %c0_i32_0 : i32, i32
  }
  func.func @transform_5(%arg0: i32, %arg1: i32) -> (i32, i32) {
    %c0_i32 = arith.constant 0 : i32
    %c0_i32_0 = arith.constant 0 : i32
    %c0_i32_1 = arith.constant 0 : i32
    return %c0_i32, %c0_i32_0 : i32, i32
  }
  func.func @transform_6(%arg0: i32, %arg1: i32) -> (i32, i32) {
    %c0_i32 = arith.constant 0 : i32
    %c0_i32_0 = arith.constant 0 : i32
    %c0_i32_1 = arith.constant 0 : i32
    return %c0_i32, %c0_i32_0 : i32, i32
  }
  func.func @transform_7(%arg0: i32, %arg1: i32) -> (i32, i32) {
    %c0_i32 = arith.constant 0 : i32
    %c0_i32_0 = arith.constant 0 : i32
    %c0_i32_1 = arith.constant 0 : i32
    return %c0_i32, %c0_i32_0 : i32, i32
  }
  func.func @transform_8(%arg0: i32, %arg1: i32) -> (i32, i32) {
    %c0_i32 = arith.constant 0 : i32
    %c0_i32_0 = arith.constant 0 : i32
    %c0_i32_1 = arith.constant 0 : i32
    return %c0_i32, %c0_i32_0 : i32, i32
  }
  func.func @transform_9(%arg0: i32, %arg1: i32) -> (i32, i32) {
    %c0_i32 = arith.constant 0 : i32
    %c0_i32_0 = arith.constant 0 : i32
    %c0_i32_1 = arith.constant 0 : i32
    return %c0_i32, %c0_i32_0 : i32, i32
  }
  func.func @transform_10(%arg0: i32, %arg1: i32) -> (i32, i32) {
    %c0_i32 = arith.constant 0 : i32
    %c0_i32_0 = arith.constant 0 : i32
    %c0_i32_1 = arith.constant 0 : i32
    return %c0_i32, %c0_i32_0 : i32, i32
  }
  func.func @transform_11(%arg0: i32, %arg1: i32) -> (i32, i32, i32) {
    %c0_i32 = arith.constant 0 : i32
    %c0_i32_0 = arith.constant 0 : i32
    return %arg0, %arg1, %c0_i32 : i32, i32, i32
  }
}

</mosaic_0001>

<bundles_post_ra>
// kernel: pcn_forward.4
= control target key start
LH: loop header
LB: loop body
LE: loop exit
PB: predicated region body
PF: predicated region fallthrough
CT: control target
= control target key end

     0   :  { %11 = vsyncpa [#allocation3], 0  ;;  %s1235_s0 = inlined_call_operand.vmem [shape: f32[2,64,8], index: 0, kind: input, shape index: {}]   ;;  %s1236_s1 = inlined_call_operand.vmem [shape: bf16[8,128], index: 1, kind: input, shape index: {}]   ;;  %s1237_s2 = inlined_call_operand.hbm [shape: f32[1,128], index: 2, kind: input, shape index: {}]   ;;  %s1238_s3 = inlined_call_operand.vmem [shape: f32[1,128], index: 3, kind: input, shape index: {}]   ;;  %s1239_s4 = inlined_call_operand.vmem [shape: bf16[128,256], index: 4, kind: input, shape index: {}]   ;;  %s1240_s5 = inlined_call_operand.hbm [shape: f32[1,256], index: 5, kind: input, shape index: {}]   ;;  %s1241_s6 = inlined_call_operand.vmem [shape: f32[2,1,256], index: 6, kind: output, shape index: {}]  }
   0x1   :  { %12 = vsyncpa [#allocation5], 0  ;;  %s1042_s21 = smov 0   ;;  %s1044_s22 = smov 0  }
   0x2   :  { %s1046_s23 = smov 0  }
   0x3 LB: > { %s773_s24 = sadd.s32 4294967295, %s1000_s23   ;;  %s30_s25 = sadd.s32 1, %s996_s22  ;;  %s1000_s23 = sphi %s1046_s23, %s18_s23   ;;  %s996_s22 = sphi %s1044_s22, %s1253_s22   ;;  %s992_s21 = sphi %s1042_s21, %s1252_s21  }
   0x4   : > { %p32_p0 = scmp.ge.s32.totalorder %s30_s25, 2  ;;  %p775_p1 = scmp.ge.s32.totalorder %s1000_s23, 1 }
   0x5   : > { %p194_p2 = scmp.lt.s32.totalorder %s1000_s23, 3  ;;  %p1067_p4 = scmp.eq.s32.totalorder %s773_s24, 0 }
   0x6   : > { %s1255_s25 = smov (%p32_p0, %s30_s25), 0  ;;  %s1002_s28 = smov [#allocation2]  }
   0x7   : > { %p1063_p3 = pnand %p775_p1, %p194_p2  ;;  %s210_s29 = sshll.u32 %s1002_s28, 4  ;;  %s211_s29 = int_to_ptr.vmem [resolvable:$true] %s210_s29 }
   0x8   : > { %s1246_s27 = scalar_select %p1067_p4, 1, 0 }
   0x9   : > { %s1245_s26 = scalar_select %p1063_p3, 1, 0 }
   0xa   : > { %p850_p5 = pneg %p1063_p3  ;;  %s1003_s30 = smov [#allocation4]  }
   0xb   : > { %s227_s7 = sshll.u32 %s1003_s30, 4  ;;  %s914_s11 = scalar_lea.hbm %s1237_s2, 16  ;;  %s1079_s7 = int_to_ptr.vmem [resolvable:$true] %s227_s7 }
   0xc   : > { %p1075_p6 = pnand %p1067_p4, %p850_p5  ;;  %p915_p7 = scmp.ne.s32.totalorder %s1237_s2, %s914_s11 }
   0xd   : > { %p921_p11 = scmp.lt.u32.totalorder %s914_s11, %s1237_s2 }
   0xe   : > { %p916_p8 = pneg %p1075_p6 }
  0x10   : > { %p917_p9 = pnand %p916_p8, %p915_p7 }
  0x12   : > { %p918_p10 = pneg %p917_p9 }
  0x14   : > { %p923_p12 = pnand %p921_p11, %p918_p10 }
  0x16   : > { %926 = shalt.err (!%p923_p12)
}
  0x17   : > { %s927_s16 = scalar_lea.vmem %s211_s29, 16  ;;  %s934_s17 = scalar_lea.vmem %s211_s29, 32 }
  0x18   : > { %p928_p13 = scmp.ne.s32.totalorder %s211_s29, %s927_s16  ;;  %p935_p2 = scmp.lt.s32.totalorder %s211_s29, %s211_s29 }
  0x19   : > { %p936_p5 = scmp.lt.s32.totalorder %s934_s17, %s927_s16 }
  0x1a   : > { %p930_p0 = pnand %p928_p13, %p916_p8 }
  0x1b   : > { %p937_p4 = por %p936_p5, %p935_p2 }
  0x1c   : > { %p931_p1 = pneg %p930_p0 }
  0x1e   : > { %p938_p3 = pnand %p937_p4, %p931_p1 }
  0x20   : > { %941 = shalt.err (!%p938_p3)
}
  0x21   : > { %853 = dma.hbm_to_vmem [thread:$0]  (!%p1075_p6), %s1237_s2, 16, %s211_s29, [#allocation3]  }
  0x22   : > { %s942_s28 = scalar_lea.hbm %s1240_s5, 32 }
  0x23   : > { %p943_p7 = scmp.ne.s32.totalorder %s1240_s5, %s942_s28  ;;  %p949_p3 = scmp.lt.u32.totalorder %s942_s28, %s1240_s5 }
  0x25   : > { %p945_p9 = pnand %p943_p7, %p916_p8 }
  0x27   : > { %p946_p4 = pneg %p945_p9 }
  0x29   : > { %p951_p10 = pnand %p949_p3, %p946_p4 }
  0x2b   : > { %954 = shalt.err (!%p951_p10)
}
  0x2c   : > { %s955_s29 = scalar_lea.vmem %s1079_s7, 32  ;;  %p963_p0 = scmp.lt.s32.totalorder %s1079_s7, %s1079_s7 }
  0x2d   : > { %p956_p11 = scmp.ne.s32.totalorder %s1079_s7, %s955_s29  ;;  %p964_p1 = scmp.lt.s32.totalorder %s955_s29, %s955_s29 }
  0x2f   : > { %p958_p12 = pnand %p956_p11, %p916_p8  ;;  %p965_p2 = por %p964_p1, %p963_p0 }
  0x31   : > { %p959_p13 = pneg %p958_p12 }
  0x33   : > { %p966_p5 = pnand %p965_p2, %p959_p13 }
  0x35   : > { %969 = shalt.err (!%p966_p5)
}
  0x36   : > { %856 = dma.hbm_to_vmem [thread:$0]  (!%p1075_p6), %s1240_s5, 32, %s1079_s7, [#allocation5]  }
  0x37   : > { %p1248_p7 = scmp.ne.s32.totalorder %s1245_s26, 0 }
  0x38   : > { %p1249_p9 = scmp.ne.s32.totalorder (!%p1248_p7), %s1246_s27, 0 }
  0x39   : > { %253 = sbr.rel (%p1248_p7) target bundleno = 557 (0x22d), region = 44 }
  0x40   : > { %983 = dma.done.wait (%p1249_p9), [#allocation3], 16  }
  0x41   : > { %985 = vsyncadd (%p1249_p9), [#allocation3], 4294967280 }
  0x42   : > { %987 = dma.done.wait (%p1249_p9), [#allocation5], 32  }
  0x43   : > { %989 = vsyncadd (%p1249_p9), [#allocation5], 4294967264  ;;  %p291_p8 = scmp.lt.s32.totalorder %s992_s21, 1  ;;  %vm331_vm0 = vcmask 1043456   ;;  %v317_v0 = vld [vmem:[%s1236_s1] sm:$0xf] }
  0x44   : > { %vm318_vm1 = vcmask 64512   ;;  %841 = vmatprep.subr.msk.bf16.mxu0 %vm331_vm0, %v317_v0  ;;  %v333_v3 = vsel %vm331_vm0, %v317_v0, 0  ;;  %v890_v11 = vld [vmem:[%s1239_s4 + $0x4] ss:$8 sps:$4 sm:$0xff]   ;;  %v892_v12 = vld [vmem:[%s1239_s4] ss:$8 sps:$4 sm:$0xff]  }
  0x45   : > { %s1257_s21 = smov (!%p291_p8, %s992_s21), 1  ;;  %816 = vmatpush3.bf16.msra.mxu0 %v333_v3  ;;  %825 = vmatprep.subr.bf16.mxu1 %v890_v11  ;;  %v893_v13 = vld [vmem:[%s1239_s4 + $0x14] ss:$8 sps:$4 sm:$0xff]   ;;  %v895_v16 = vld [vmem:[%s1239_s4 + $0x10] ss:$8 sps:$4 sm:$0xff]   ;;  %v1004_v30 = vmov 0  }
  0x46   : > { %s809_s26 = sshll.u32 %s1257_s21, 6  ;;  %550 = vmatprep.subr.bf16.mxu0 %v890_v11  ;;  %833 = vmatpush1.bf16.msra.mxu1 %v892_v12  ;;  %v896_v17 = vld [vmem:[%s1239_s4 + $0x24] ss:$8 sps:$4 sm:$0xff]   ;;  %v898_v19 = vld [vmem:[%s1239_s4 + $0x20] ss:$8 sps:$4 sm:$0xff]  }
  0x47   : > { %s298_s14 = scalar_lea.vmem %s1235_s0, %s809_s26  ;;  %826 = vmatprep.subr.bf16.mxu1 %v893_v13  ;;  %v899_v20 = vld [vmem:[%s1239_s4 + $0x34] ss:$8 sps:$4 sm:$0xff]   ;;  %v901_v21 = vld [vmem:[%s1239_s4 + $0x30] ss:$8 sps:$4 sm:$0xff]   ;;  %v902_v22 = vld [vmem:[%s1239_s4 + $0x44] ss:$8 sps:$4 sm:$0xff]   ;;  %592 = vmatprep.mubr.bf16.mxu1 %v1004_v30 }
  0x48   : > { %v305_v1 = vld [vmem:[%s298_s14] sm:$0xff]  ;;  %v306_v2 = vld [vmem:[%s298_s14 + $0x8] sm:$0xff]  ;;  %v307_v5 = vld [vmem:[%s298_s14 + $0x10] sm:$0xff]  ;;  %s784_s26 = sshll.u32 %s1257_s21, 1 }
  0x49   : > { %v313_v4 = vpack.c.bf16 %v306_v2, %v305_v1  ;;  %v308_v6 = vld [vmem:[%s298_s14 + $0x18] sm:$0xff]  ;;  %v309_v7 = vld [vmem:[%s298_s14 + $0x20] sm:$0xff]  ;;  %v310_v9 = vld [vmem:[%s298_s14 + $0x28] sm:$0xff] }
  0x4a   : > { %v314_v8 = vpack.c.bf16 %v308_v6, %v307_v5  ;;  %v315_v10 = vpack.c.bf16 %v310_v9, %v309_v7  ;;  %v311_v14 = vld [vmem:[%s298_s14 + $0x30] sm:$0xff]  ;;  %v312_v15 = vld [vmem:[%s298_s14 + $0x38] sm:$0xff]  ;;  %834 = vmatpush1.bf16.msra.mxu1 %v895_v16  ;;  %v904_v23 = vld [vmem:[%s1239_s4 + $0x40] ss:$8 sps:$4 sm:$0xff]   ;;  %v460_v5 = vlaneseq  ;;  %s1208_s14 = scalar_lea.vmem %s1241_s6, %s784_s26  ;;  %v1005_v7 = vmov -inf  }
  0x4b   : > { %817 = vmatprep.mubr.msk.bf16.mxu0 %vm318_vm1, %v313_v4  ;;  %v316_v18 = vpack.c.bf16 %v312_v15, %v311_v14  ;;  %827 = vmatprep.subr.bf16.mxu1 %v896_v17  ;;  %v905_v24 = vld [vmem:[%s1239_s4 + $0x54] ss:$8 sps:$4 sm:$0xff]   ;;  %v907_v25 = vld [vmem:[%s1239_s4 + $0x50] ss:$8 sps:$4 sm:$0xff]   ;;  %v908_v26 = vld [vmem:[%s1239_s4 + $0x64] ss:$8 sps:$4 sm:$0xff]  }
  0x4c   : > { %818 = vmatmul.mubr.msk.bf16.vlgmr.msra.gmra.mrb[0].mxu0 %vm318_vm1, %v314_v8  ;;  %v910_v27 = vld [vmem:[%s1239_s4 + $0x60] ss:$8 sps:$4 sm:$0xff]   ;;  %v911_v28 = vld [vmem:[%s1239_s4 + $0x74] ss:$8 sps:$4 sm:$0xff]   ;;  %v913_v29 = vld [vmem:[%s1239_s4 + $0x70] ss:$8 sps:$4 sm:$0xff]  }
  0x4d   : > { %821 = vmatprep.mubr.msk.bf16.mxu0 %vm318_vm1, %v315_v10  ;;  %551 = vmatpush1.bf16.msra.mxu0 %v892_v12  ;;  %v789_v31 = vld [vmem:[#allocation2] ss:$0 sm:$0xff]  ;;  %vm1210_vm2 = vcmp.lt.s32.totalorder %v460_v5, 256  ;;  %v1217_v8 = vshrl.u32 %v460_v5, 7  ;;  %v458_v10 = vld [vmem:[#allocation4] sm:$0x3] }
  0x4e   : > { %552 = vmatprep.subr.bf16.mxu0 %v893_v13  ;;  %835 = vmatpush1.bf16.msra.mxu1 %v898_v19  ;;  %v790_v33 = vld [vmem:[%s1238_s3] ss:$0 sm:$0xff]  ;;  %631 = vst.msk [vmem:[%s1208_s14] sm:$0x3] %vm1210_vm2, %v1005_v7 }
  0x4f   : > { %828 = vmatprep.subr.bf16.mxu1 %v899_v20  ;;  %v462_v9 = vsub.s32 0, %v1217_v8  ;;  %v466_v11 = vsub.s32 1, %v1217_v8 }
  0x51   : > { %553 = vmatpush1.bf16.msra.mxu0 %v895_v16  ;;  %v463_v12 = vrot.slane %v458_v10, %v462_v9  ;;  %v467_v13 = vrot.slane %v458_v10, %v466_v11 }
  0x52   : > { %554 = vmatprep.subr.bf16.mxu0 %v896_v17  ;;  %836 = vmatpush1.bf16.msra.mxu1 %v901_v21 }
  0x53   : > { %829 = vmatprep.subr.bf16.mxu1 %v902_v22 }
  0x54   : > { %822 = vmatmul.mubr.msk.bf16.gmra.mrb[4].mxu0 %vm318_vm1, %v316_v18 }
  0x55   : > { %555 = vmatpush1.bf16.msra.mxu0 %v898_v19  ;;  %582 = vmatprep.mubr.bf16.mxu0 %v1004_v30 }
  0x56   : > { %556 = vmatprep.subr.bf16.mxu0 %v899_v20  ;;  %837 = vmatpush1.bf16.msra.mxu1 %v904_v23 }
  0x57   : > { %830 = vmatprep.subr.bf16.mxu1 %v905_v24 }
  0x59   : > { %557 = vmatpush1.bf16.msra.mxu0 %v901_v21 }
  0x5a   : > { %558 = vmatprep.subr.bf16.mxu0 %v902_v22  ;;  %838 = vmatpush1.bf16.msra.mxu1 %v907_v25 }
  0x5b   : > { %831 = vmatprep.subr.bf16.mxu1 %v908_v26 }
  0x5d   : > { %559 = vmatpush1.bf16.msra.mxu0 %v904_v23 }
  0x5e   : > { %560 = vmatprep.subr.bf16.mxu0 %v905_v24  ;;  %839 = vmatpush1.bf16.msra.mxu1 %v910_v27 }
  0x5f   : > { %832 = vmatprep.subr.bf16.mxu1 %v911_v28 }
  0x61   : > { %561 = vmatpush1.bf16.msra.mxu0 %v907_v25 }
  0x62   : > { %562 = vmatprep.subr.bf16.mxu0 %v908_v26  ;;  %840 = vmatpush1.bf16.msra.mxu1 %v913_v29 }
  0x65   : > { %563 = vmatpush1.bf16.msra.mxu0 %v910_v27 }
  0x66   : > { %564 = vmatprep.subr.bf16.mxu0 %v911_v28 }
  0x69   : > { %565 = vmatpush1.bf16.msra.mxu0 %v913_v29 }
 0x11f   : > { %v819_v32 = vpop.f32.mrb[0].mxu0 }
 0x120   : > { %v409_v34 = vmul.f32 %v819_v32, %v789_v31  ;;  %v369_v35 = vpop.f32.mrb[1].mxu0 }
 0x121   : > { %v407_v36 = vmul.f32 %v789_v31, %v369_v35  ;;  %v820_v37 = vpop.f32.mrb[2].mxu0 }
 0x122   : > { %v424_v38 = vadd.f32 %v790_v33, %v409_v34  ;;  %v410_v39 = vmul.f32 %v820_v37, %v789_v31  ;;  %v372_v40 = vpop.f32.mrb[3].mxu0 }
 0x123   : > { %v422_v41 = vadd.f32 %v790_v33, %v407_v36  ;;  %v408_v42 = vmul.f32 %v789_v31, %v372_v40 }
 0x124   : > { %v425_v43 = vadd.f32 %v790_v33, %v410_v39  ;;  %v432_v45 = vmax.f32 %v424_v38, 0.0 }
 0x125   : > { %v423_v44 = vadd.f32 %v790_v33, %v408_v42  ;;  %v430_v47 = vmax.f32 %v422_v41, 0.0 }
 0x126   : > { %v433_v46 = vmax.f32 %v425_v43, 0.0 }
 0x127   : > { %v431_v48 = vmax.f32 %v423_v44, 0.0  ;;  %v823_v49 = vpop.f32.mrb[4].mxu0 }
 0x128   : > { %v413_v50 = vmul.f32 %v823_v49, %v789_v31  ;;  %v385_v51 = vpop.f32.mrb[5].mxu0  ;;  %v439_v52 = vpack.c.bf16 %v433_v46, %v432_v45 }
 0x129   : > { %v438_v53 = vpack.c.bf16 %v431_v48, %v430_v47  ;;  %v411_v54 = vmul.f32 %v789_v31, %v385_v51  ;;  %v824_v55 = vpop.f32.mrb[6].mxu0 }
 0x12a   : > { %v428_v56 = vadd.f32 %v790_v33, %v413_v50  ;;  %v414_v57 = vmul.f32 %v824_v55, %v789_v31  ;;  %v388_v58 = vpop.f32.mrb[7].mxu0  ;;  %593 = vmatmul.mubr.bf16.vlgmr.msra.gmra.mrb[0].mxu1 %v439_v52 }
 0x12b   : > { %v426_v59 = vadd.f32 %v790_v33, %v411_v54  ;;  %v412_v60 = vmul.f32 %v789_v31, %v388_v58  ;;  %583 = vmatmul.mubr.bf16.vlgmr.msra.gmra.mrb[8].mxu0 %v438_v53  ;;  %602 = vmatprep.mubr.bf16.mxu1 %v1004_v30 }
 0x12c   : > { %v429_v61 = vadd.f32 %v790_v33, %v414_v57  ;;  %v436_v63 = vmax.f32 %v428_v56, 0.0 }
 0x12d   : > { %v427_v62 = vadd.f32 %v790_v33, %v412_v60  ;;  %v434_v1 = vmax.f32 %v426_v59, 0.0 }
 0x12e   : > { %v437_v0 = vmax.f32 %v429_v61, 0.0 }
 0x12f   : > { %v435_v2 = vmax.f32 %v427_v62, 0.0 }
 0x130   : > { %v441_v3 = vpack.c.bf16 %v437_v0, %v436_v63  ;;  %v1006_v0 = vmov 1966171168  }
 0x131   : > { %v440_v4 = vpack.c.bf16 %v435_v2, %v434_v1  ;;  %v663_v1 = vunpack.c.l.s4 %v1006_v0 }
 0x133   : > { %603 = vmatmul.mubr.bf16.gmra.mrb[4].mxu1 %v440_v4  ;;  %v664_v7 = vunpack.c.0.s8 %v663_v1 }
 0x134   : > { %612 = vmatprep.mubr.bf16.mxu1 %v1004_v30 }
 0x13b   : > { %613 = vmatmul.mubr.bf16.gmra.mrb[8].mxu1 %v441_v3 }
 0x1fd   : > { %v594_v14 = vpop.f32.mrb[0].mxu1 }
 0x1fe   : > { %v595_v15 = vadd.f32 %v594_v14, %v463_v12  ;;  %v584_v16 = vpop.f32.mrb[8].mxu0  ;;  %v596_v17 = vpop.f32.mrb[1].mxu1 }
 0x1ff   : > { %v585_v18 = vadd.f32 %v584_v16, %v463_v12  ;;  %v597_v19 = vadd.f32 %v596_v17, %v467_v13  ;;  %v586_v20 = vpop.f32.mrb[9].mxu0  ;;  %v598_v21 = vpop.f32.mrb[2].mxu1  ;;  %v632_v16 = vld [vmem:[%s1208_s14] sm:$0x3] }
 0x200   : > { %v587_v22 = vadd.f32 %v586_v20, %v467_v13  ;;  %v599_v23 = vadd.f32 %v598_v21, %v463_v12  ;;  %v588_v24 = vpop.f32.mrb[10].mxu0  ;;  %v600_v25 = vpop.f32.mrb[3].mxu1 }
 0x201   : > { %v633_v26 = vmax.f32 %v585_v18, %v595_v15  ;;  %v589_v27 = vadd.f32 %v588_v24, %v463_v12  ;;  %v601_v28 = vadd.f32 %v600_v25, %v467_v13  ;;  %v590_v29 = vpop.f32.mrb[11].mxu0 }
 0x202   : > { %v646_v30 = vmax.f32 %v587_v22, %v597_v19  ;;  %v591_v31 = vadd.f32 %v590_v29, %v467_v13 }
 0x203   : > { %v634_v32 = vmax.f32 %v589_v27, %v599_v23 }
 0x204   : > { %v647_v33 = vmax.f32 %v591_v31, %v601_v28 }
 0x206   : > { %v604_v34 = vpop.f32.mrb[4].mxu1 }
 0x207   : > { %v605_v35 = vadd.f32 %v604_v34, %v463_v12  ;;  %v606_v36 = vpop.f32.mrb[5].mxu1 }
 0x208   : > { %v607_v37 = vadd.f32 %v606_v36, %v467_v13  ;;  %v608_v38 = vpop.f32.mrb[6].mxu1 }
 0x209   : > { %v635_v39 = vmax.f32 %v633_v26, %v605_v35  ;;  %v609_v40 = vadd.f32 %v608_v38, %v463_v12  ;;  %v610_v41 = vpop.f32.mrb[7].mxu1 }
 0x20a   : > { %v648_v42 = vmax.f32 %v646_v30, %v607_v37  ;;  %v611_v43 = vadd.f32 %v610_v41, %v467_v13 }
 0x20b   : > { %v636_v44 = vmax.f32 %v634_v32, %v609_v40 }
 0x20c   : > { %v649_v45 = vmax.f32 %v647_v33, %v611_v43 }
 0x20e   : > { %v614_v46 = vpop.f32.mrb[8].mxu1 }
 0x20f   : > { %v615_v47 = vadd.f32 %v614_v46, %v463_v12  ;;  %v616_v48 = vpop.f32.mrb[9].mxu1 }
 0x210   : > { %v617_v49 = vadd.f32 %v616_v48, %v467_v13  ;;  %v618_v50 = vpop.f32.mrb[10].mxu1 }
 0x211   : > { %v637_v51 = vmax.f32 %v635_v39, %v615_v47  ;;  %v619_v52 = vadd.f32 %v618_v50, %v463_v12  ;;  %v620_v53 = vpop.f32.mrb[11].mxu1 }
 0x212   : > { %v650_v54 = vmax.f32 %v648_v42, %v617_v49  ;;  %v621_v55 = vadd.f32 %v620_v53, %v467_v13  ;;  %v667_v13 = vsub.s32 %v664_v7, %v1217_v8 }
 0x213   : > { %v638_v56 = vmax.f32 %v636_v44, %v619_v52 }
 0x214   : > { %v651_v57 = vmax.f32 %v649_v45, %v621_v55 }
 0x215   : > { %v639_v58 = vmax.f32 %v637_v51, %v638_v56 }
 0x216   : > { %v652_v59 = vmax.f32 %v650_v54, %v651_v57 }
 0x217   : > { %v640_v60 = vrot.slane %v639_v58, 4 }
 0x218   : > { %v653_v61 = vrot.slane %v652_v59, 4 }
 0x219   : > { %v641_v62 = vmax.f32 %v639_v58, %v640_v60 }
 0x21a   : > { %v654_v63 = vmax.f32 %v652_v59, %v653_v61 }
 0x21b   : > { %v642_v2 = vrot.slane %v641_v62, 2 }
 0x21c   : > { %v655_v3 = vrot.slane %v654_v63, 2 }
 0x21d   : > { %v643_v4 = vmax.f32 %v641_v62, %v642_v2 }
 0x21e   : > { %v656_v5 = vmax.f32 %v654_v63, %v655_v3 }
 0x21f   : > { %v644_v9 = vrot.slane %v643_v4, 1 }
 0x220   : > { %v657_v10 = vrot.slane %v656_v5, 1 }
 0x221   : > { %v645_v11 = vmax.f32 %v643_v4, %v644_v9 }
 0x222   : > { %v658_v12 = vmax.f32 %v656_v5, %v657_v10 }
 0x224   : > { %v661_v14 = vcombine.low %v645_v11, %v658_v12 }
 0x226   : > { %v668_v15 = vrot.slane %v661_v14, %v667_v13 }
 0x228   : > { %v675_v17 = vrot.slane %v668_v15, %v667_v13 }
 0x22a   : > { %v677_v18 = vmax.f32 %v632_v16, %v675_v17 }
 0x22c   : > { %682 = vst.msk [vmem:[%s1208_s14] sm:$0x3] %vm1210_vm2, %v677_v18 }
 0x22d PF: > { %s18_s23 = sadd.s32 1, %s1000_s23   ;;  %s1252_s21 = smov %s996_s22 }
 0x22e   : > { %p15_p6 = scmp.ge.s32.totalorder %s18_s23, 4   ;;  %s1253_s22 = smov %s1255_s25 }
 0x230   :  { %17 = sbr.rel (!%p15_p6) target bundleno = 3 (0x3), region = 87 }
 0x237   :  { %702 = vsyncpa [#allocation3], 1 }
 0x238   :  { %704 = vsyncpa [#allocation3 + $0x1], 1 }
 0x239   :  { %705 = vsyncpa [#allocation5], 1 }

// kernel: pcn_forward.5
= control target key start
LH: loop header
LB: loop body
LE: loop exit
PB: predicated region body
PF: predicated region fallthrough
CT: control target
= control target key end

     0   :  { %s4729_s0 = inlined_call_operand.vmem [shape: f32[2,64,8], index: 0, kind: input, shape index: {}]   ;;  %s4730_s1 = inlined_call_operand.vmem [shape: f32[2,1,256], index: 1, kind: input, shape index: {}]   ;;  %s4731_s2 = inlined_call_operand.vmem [shape: bf16[8,128], index: 2, kind: input, shape index: {}]   ;;  %s4732_s3 = inlined_call_operand.hbm [shape: f32[1,128], index: 3, kind: input, shape index: {}]   ;;  %s4733_s4 = inlined_call_operand.vmem [shape: f32[1,128], index: 4, kind: input, shape index: {}]   ;;  %s4734_s5 = inlined_call_operand.vmem [shape: bf16[128,256], index: 5, kind: input, shape index: {}]   ;;  %s4735_s6 = inlined_call_operand.hbm [shape: f32[1,256], index: 6, kind: input, shape index: {}]   ;;  %s4736_s7 = inlined_call_operand.vmem [shape: bf16[256,512], index: 7, kind: input, shape index: {}]   ;;  %s4737_s8 = inlined_call_operand.vmem [shape: bf16[256,512], index: 8, kind: input, shape index: {}]   ;;  %s4738_s9 = inlined_call_operand.hbm [shape: f32[1,512], index: 9, kind: input, shape index: {}]   ;;  %s4739_s10 = inlined_call_operand.vmem [shape: f32[1,512], index: 10, kind: input, shape index: {}]   ;;  %s4740_s11 = inlined_call_operand.vmem [shape: bf16[512,256], index: 11, kind: input, shape index: {}]   ;;  %s4741_s12 = inlined_call_operand.hbm [shape: f32[1,256], index: 12, kind: input, shape index: {}]   ;;  %s4742_s13 = inlined_call_operand.vmem [shape: f32[2,1,256], index: 13, kind: output, shape index: {}]  }
   0x1   :  { %4748 = sst [smem:[#allocation14_spill]] %s4735_s6 }
   0x2   :  { %4749 = sst [smem:[#allocation15_spill]] %s4739_s10 }
   0x3   :  { %18 = vsyncpa [#allocation3], 0 }
   0x4   :  { %19 = vsyncpa [#allocation5], 0 }
   0x5   :  { %20 = vsyncpa [#allocation8], 0  ;;  %s3654_s25 = smov 0   ;;  %s3656_s26 = smov 0  }
   0x6   :  { %s3658_s27 = smov 0  }
   0x7 LB: > { %4750 = sst [smem:[#allocation12_spill]] %s3571_s26  ;;  %s3577_s28 = smov [#allocation4]   ;;  %s3575_s27 = sphi %s3658_s27, %s26_s27   ;;  %s3571_s26 = sphi %s3656_s26, %s4766_s26   ;;  %s3567_s25 = sphi %s3654_s25, %s4765_s25  }
   0x8   : > { %4751 = sst [smem:[#allocation13_spill]] %s3575_s27  ;;  %s387_s29 = sshll.u32 %s3577_s28, 4  ;;  %s388_s29 = int_to_ptr.vmem [resolvable:$true] %s387_s29 }
   0x9   : > { %s2767_s30 = sadd.s32 4294967295, %s3575_s27   ;;  %p2769_p0 = scmp.ge.s32.totalorder %s3575_s27, 1 }
   0xa   : > { %p354_p1 = scmp.lt.s32.totalorder %s3575_s27, 3  ;;  %p3672_p2 = scmp.eq.s32.totalorder %s2767_s30, 0 }
   0xb   : > { %s38_s16 = sadd.s32 1, %s3571_s26  ;;  %s3578_s19 = smov [#allocation2]  }
   0xc   : > { %s4752_s14 = scalar_select %p3672_p2, 1, 0 }
   0xd   : > { %p3676_p3 = pnand %p2769_p0, %p354_p1  ;;  %p3689_p6 = scmp.ge.s32.totalorder %s38_s16, 2 }
   0xe   : > { %s370_s20 = sshll.u32 %s3578_s19, 4  ;;  %s4756_s6 = sld [smem:[#allocation14_spill]]  ;;  %s3693_s20 = int_to_ptr.vmem [resolvable:$true] %s370_s20 }
   0xf   : > { %s4753_s15 = scalar_select %p3676_p3, 1, 0 }
  0x10   : > { %p3065_p4 = pneg %p3676_p3 }
  0x11   : > { %s4755_s18 = scalar_select %p3689_p6, 1, 0 }
  0x12   : > { %p3685_p5 = pnand %p3672_p2, %p3065_p4 }
  0x14   : > { %s3429_s23 = scalar_lea.hbm %s4756_s6, 32  ;;  %p3703_p8 = pneg %p3685_p5 }
  0x15   : > { %p3430_p7 = scmp.ne.s32.totalorder %s4756_s6, %s3429_s23  ;;  %p3436_p11 = scmp.lt.u32.totalorder %s3429_s23, %s4756_s6 }
  0x17   : > { %p3432_p9 = pnand %p3703_p8, %p3430_p7 }
  0x19   : > { %p3433_p10 = pneg %p3432_p9 }
  0x1b   : > { %p3438_p12 = pnand %p3436_p11, %p3433_p10 }
  0x1d   : > { %3441 = shalt.err (!%p3438_p12)
}
  0x1e   : > { %s3442_s21 = scalar_lea.vmem %s388_s29, 32  ;;  %p3450_p4 = scmp.lt.s32.totalorder %s388_s29, %s388_s29 }
  0x1f   : > { %p3443_p13 = scmp.ne.s32.totalorder %s388_s29, %s3442_s21  ;;  %p3451_p2 = scmp.lt.s32.totalorder %s3442_s21, %s3442_s21 }
  0x21   : > { %p3445_p0 = pnand %p3443_p13, %p3703_p8  ;;  %p3452_p3 = por %p3451_p2, %p3450_p4 }
  0x23   : > { %p3446_p1 = pneg %p3445_p0 }
  0x25   : > { %p3453_p6 = pnand %p3452_p3, %p3446_p1 }
  0x27   : > { %3456 = shalt.err (!%p3453_p6)
}
  0x28   : > { %3071 = dma.hbm_to_vmem [thread:$0]  (!%p3685_p5), %s4756_s6, 32, %s388_s29, [#allocation5]  }
  0x29   : > { %p4758_p7 = scmp.ne.s32.totalorder %s4755_s18, 0  ;;  %s3457_s28 = scalar_lea.hbm %s4732_s3, 16 }
  0x2a   : > { %p3458_p2 = scmp.ne.s32.totalorder %s4732_s3, %s3457_s28  ;;  %p3464_p9 = scmp.lt.u32.totalorder %s3457_s28, %s4732_s3 }
  0x2b   : > { %s4768_s16 = smov (%p4758_p7, %s38_s16), 0 }
  0x2c   : > { %p3460_p3 = pnand %p3458_p2, %p3703_p8 }
  0x2e   : > { %p3461_p6 = pneg %p3460_p3 }
  0x30   : > { %p3466_p10 = pnand %p3464_p9, %p3461_p6 }
  0x32   : > { %3469 = shalt.err (!%p3466_p10)
}
  0x33   : > { %s3470_s29 = scalar_lea.vmem %s3693_s20, 16  ;;  %s3477_s18 = scalar_lea.vmem %s3693_s20, 32 }
  0x34   : > { %p3471_p11 = scmp.ne.s32.totalorder %s3693_s20, %s3470_s29  ;;  %p3478_p0 = scmp.lt.s32.totalorder %s3693_s20, %s3693_s20 }
  0x35   : > { %p3479_p1 = scmp.lt.s32.totalorder %s3477_s18, %s3470_s29 }
  0x36   : > { %p3473_p12 = pnand %p3471_p11, %p3703_p8 }
  0x37   : > { %p3480_p4 = por %p3479_p1, %p3478_p0 }
  0x38   : > { %p3474_p13 = pneg %p3473_p12 }
  0x3a   : > { %p3481_p7 = pnand %p3480_p4, %p3474_p13 }
  0x3c   : > { %3484 = shalt.err (!%p3481_p7)
}
  0x3d   : > { %3068 = dma.hbm_to_vmem [thread:$0]  (!%p3685_p5), %s4732_s3, 16, %s3693_s20, [#allocation3]  }
  0x3e   : > { %s3579_s22 = smov [#allocation6]   ;;  %s3580_s26 = smov [#allocation7]  }
  0x3f   : > { %s404_s24 = sshll.u32 %s3579_s22, 4  ;;  %s421_s23 = sshll.u32 %s3580_s26, 4  ;;  %s405_s24 = int_to_ptr.vmem [resolvable:$true] %s404_s24  ;;  %s422_s23 = int_to_ptr.vmem [resolvable:$true] %s421_s23 }
  0x40   : > { %s3485_s21 = scalar_lea.hbm %s4738_s9, 64 }
  0x41   : > { %p3486_p2 = scmp.ne.s32.totalorder %s4738_s9, %s3485_s21  ;;  %p3492_p9 = scmp.lt.u32.totalorder %s3485_s21, %s4738_s9 }
  0x43   : > { %p3488_p3 = pnand %p3486_p2, %p3703_p8 }
  0x45   : > { %p3489_p6 = pneg %p3488_p3 }
  0x47   : > { %p3494_p10 = pnand %p3492_p9, %p3489_p6 }
  0x49   : > { %3497 = shalt.err (!%p3494_p10)
}
  0x4a   : > { %s3498_s20 = scalar_lea.vmem %s405_s24, 64  ;;  %p3506_p0 = scmp.lt.s32.totalorder %s405_s24, %s405_s24 }
  0x4b   : > { %p3499_p11 = scmp.ne.s32.totalorder %s405_s24, %s3498_s20  ;;  %p3507_p1 = scmp.lt.s32.totalorder %s3498_s20, %s3498_s20 }
  0x4d   : > { %p3501_p12 = pnand %p3499_p11, %p3703_p8  ;;  %p3508_p4 = por %p3507_p1, %p3506_p0 }
  0x4f   : > { %p3502_p13 = pneg %p3501_p12 }
  0x51   : > { %p3509_p7 = pnand %p3508_p4, %p3502_p13 }
  0x53   : > { %3512 = shalt.err (!%p3509_p7)
}
  0x54   : > { %3074 = dma.hbm_to_vmem [thread:$0]  (!%p3685_p5), %s4738_s9, 64, %s405_s24, [#allocation5]  }
  0x55   : > { %s3513_s28 = scalar_lea.hbm %s4741_s12, 32 }
  0x56   : > { %p3514_p2 = scmp.ne.s32.totalorder %s4741_s12, %s3513_s28  ;;  %p3520_p9 = scmp.lt.u32.totalorder %s3513_s28, %s4741_s12 }
  0x58   : > { %p3516_p3 = pnand %p3514_p2, %p3703_p8 }
  0x5a   : > { %p3517_p6 = pneg %p3516_p3 }
  0x5c   : > { %p3522_p10 = pnand %p3520_p9, %p3517_p6 }
  0x5e   : > { %3525 = shalt.err (!%p3522_p10)
}
  0x5f   : > { %s3526_s10 = scalar_lea.vmem %s422_s23, 32  ;;  %p3534_p0 = scmp.lt.s32.totalorder %s422_s23, %s422_s23 }
  0x60   : > { %p3527_p11 = scmp.ne.s32.totalorder %s422_s23, %s3526_s10  ;;  %p3535_p1 = scmp.lt.s32.totalorder %s3526_s10, %s3526_s10 }
  0x62   : > { %p3529_p12 = pnand %p3527_p11, %p3703_p8  ;;  %p3536_p4 = por %p3535_p1, %p3534_p0 }
  0x64   : > { %p3530_p13 = pneg %p3529_p12 }
  0x66   : > { %p3537_p7 = pnand %p3536_p4, %p3530_p13 }
  0x68   : > { %3540 = shalt.err (!%p3537_p7)
}
  0x69   : > { %3077 = dma.hbm_to_vmem [thread:$0]  (!%p3685_p5), %s4741_s12, 32, %s422_s23, [#allocation8]  }
  0x6a   : > { %p4759_p2 = scmp.ne.s32.totalorder %s4753_s15, 0 }
  0x6b   : > { %p4760_p3 = scmp.ne.s32.totalorder (!%p4759_p2), %s4752_s14, 0 }
  0x6c   : > { %454 = sbr.rel (%p4759_p2) target bundleno = 1134 (0x46e), region = 72 }
  0x73   : > { %3554 = dma.done.wait (%p4760_p3), [#allocation3], 16  }
  0x74   : > { %3556 = vsyncadd (%p4760_p3), [#allocation3], 4294967280 }
  0x75   : > { %3558 = dma.done.wait (%p4760_p3), [#allocation5], 96  }
  0x76   : > { %3560 = vsyncadd (%p4760_p3), [#allocation5], 4294967200 }
  0x77   : > { %3562 = dma.done.wait (%p4760_p3), [#allocation8], 32  }
  0x78   : > { %3564 = vsyncadd (%p4760_p3), [#allocation8], 4294967264  ;;  %p518_p5 = scmp.lt.s32.totalorder %s3567_s25, 1  ;;  %vm562_vm0 = vcmask 1043456   ;;  %v548_v0 = vld [vmem:[%s4731_s2] sm:$0xf]  ;;  %v691_v32 = vlaneseq }
  0x79   : > { %vm549_vm1 = vcmask 64512   ;;  %3048 = vmatprep.subr.msk.bf16.mxu0 %vm562_vm0, %v548_v0  ;;  %v564_v3 = vsel %vm562_vm0, %v548_v0, 0  ;;  %v3117_v11 = vld [vmem:[%s4734_s5 + $0x4] ss:$8 sps:$4 sm:$0xff]   ;;  %v3119_v12 = vld [vmem:[%s4734_s5] ss:$8 sps:$4 sm:$0xff]  }
  0x7a   : > { %s4770_s25 = smov (!%p518_p5, %s3567_s25), 1  ;;  %3007 = vmatpush3.bf16.msra.mxu0 %v564_v3  ;;  %781 = vmatprep.subr.bf16.mxu1 %v3117_v11  ;;  %v3120_v14 = vld [vmem:[%s4734_s5 + $0x14] ss:$8 sps:$4 sm:$0xff]   ;;  %v3122_v16 = vld [vmem:[%s4734_s5 + $0x10] ss:$8 sps:$4 sm:$0xff]   ;;  %v3581_v30 = vmov 0  }
  0x7b   : > { %s3000_s15 = sshll.u32 %s4770_s25, 6  ;;  %782 = vmatpush1.bf16.msra.mxu1 %v3119_v12  ;;  %v3123_v17 = vld [vmem:[%s4734_s5 + $0x24] ss:$8 sps:$4 sm:$0xff]   ;;  %v3125_v19 = vld [vmem:[%s4734_s5 + $0x20] ss:$8 sps:$4 sm:$0xff]   ;;  %813 = vmatprep.mubr.bf16.mxu1 %v3581_v30  ;;  %s2782_s14 = sshll.u32 %s4770_s25, 1 }
  0x7c   : > { %s525_s23 = scalar_lea.vmem %s4729_s0, %s3000_s15  ;;  %783 = vmatprep.subr.bf16.mxu1 %v3120_v14  ;;  %v3126_v20 = vld [vmem:[%s4734_s5 + $0x34] ss:$8 sps:$4 sm:$0xff]   ;;  %v3128_v21 = vld [vmem:[%s4734_s5 + $0x30] ss:$8 sps:$4 sm:$0xff]   ;;  %v3129_v22 = vld [vmem:[%s4734_s5 + $0x44] ss:$8 sps:$4 sm:$0xff]   ;;  %s3870_s28 = scalar_lea.vmem %s4742_s13, %s2782_s14 }
  0x7d   : > { %v536_v1 = vld [vmem:[%s525_s23] sm:$0xff]  ;;  %v537_v2 = vld [vmem:[%s525_s23 + $0x8] sm:$0xff]  ;;  %v538_v5 = vld [vmem:[%s525_s23 + $0x10] sm:$0xff]  ;;  %vm3873_vm2 = vcmp.lt.s32.totalorder %v691_v32, 256  ;;  %v3582_v34 = vmov -inf   ;;  %s530_s20 = scalar_lea.vmem %s4730_s1, %s2782_s14  ;;  %s4763_s17 = sld [smem:[#allocation15_spill]] }
  0x7e   : > { %v544_v4 = vpack.c.bf16 %v537_v2, %v536_v1  ;;  %v539_v6 = vld [vmem:[%s525_s23 + $0x18] sm:$0xff]  ;;  %v540_v7 = vld [vmem:[%s525_s23 + $0x20] sm:$0xff]  ;;  %v541_v9 = vld [vmem:[%s525_s23 + $0x28] sm:$0xff]  ;;  %2594 = vst.msk [vmem:[%s3870_s28] sm:$0x3] %vm3873_vm2, %v3582_v34 }
  0x7f   : > { %v545_v8 = vpack.c.bf16 %v539_v6, %v538_v5  ;;  %v546_v10 = vpack.c.bf16 %v541_v9, %v540_v7  ;;  %v542_v13 = vld [vmem:[%s525_s23 + $0x30] sm:$0xff]  ;;  %v543_v15 = vld [vmem:[%s525_s23 + $0x38] sm:$0xff]  ;;  %784 = vmatpush1.bf16.msra.mxu1 %v3122_v16  ;;  %v3131_v23 = vld [vmem:[%s4734_s5 + $0x40] ss:$8 sps:$4 sm:$0xff]  }
  0x80   : > { %3008 = vmatprep.mubr.msk.bf16.mxu0 %vm549_vm1, %v544_v4  ;;  %v547_v18 = vpack.c.bf16 %v543_v15, %v542_v13  ;;  %785 = vmatprep.subr.bf16.mxu1 %v3123_v17  ;;  %v3132_v24 = vld [vmem:[%s4734_s5 + $0x54] ss:$8 sps:$4 sm:$0xff]   ;;  %v3134_v25 = vld [vmem:[%s4734_s5 + $0x50] ss:$8 sps:$4 sm:$0xff]   ;;  %v3135_v26 = vld [vmem:[%s4734_s5 + $0x64] ss:$8 sps:$4 sm:$0xff]  }
  0x81   : > { %3009 = vmatmul.mubr.msk.bf16.vlgmr.msra.gmra.mrb[0].mxu0 %vm549_vm1, %v545_v8  ;;  %v3137_v27 = vld [vmem:[%s4734_s5 + $0x60] ss:$8 sps:$4 sm:$0xff]   ;;  %v3138_v28 = vld [vmem:[%s4734_s5 + $0x74] ss:$8 sps:$4 sm:$0xff]   ;;  %v3140_v29 = vld [vmem:[%s4734_s5 + $0x70] ss:$8 sps:$4 sm:$0xff]  }
  0x82   : > { %3012 = vmatprep.mubr.msk.bf16.mxu0 %vm549_vm1, %v546_v10  ;;  %v3143_v31 = vld [vmem:[%s4736_s7 + $0x4] ss:$16 sps:$4 sm:$0xff]   ;;  %v2788_v35 = vld [vmem:[#allocation2] ss:$0 sm:$0xff] }
  0x83   : > { %786 = vmatpush1.bf16.msra.mxu1 %v3125_v19  ;;  %v2789_v37 = vld [vmem:[%s4733_s4] ss:$0 sm:$0xff]  ;;  %v3239_v59 = vld [vmem:[%s4737_s8 + $0x4] ss:$16 sps:$4 sm:$0xff]  }
  0x84   : > { %787 = vmatprep.subr.bf16.mxu1 %v3126_v20  ;;  %v3141_v54 = vld [vmem:[%s4736_s7] ss:$16 sps:$4 sm:$0xff]   ;;  %v3146_v63 = vld [vmem:[%s4736_s7 + $0x24] ss:$16 sps:$4 sm:$0xff]   ;;  %1742 = vmatprep.subr.bf16.mxu0 %v3239_v59 }
  0x85   : > { %v3237_v58 = vld [vmem:[%s4737_s8] ss:$16 sps:$4 sm:$0xff]   ;;  %v3245_v9 = vld [vmem:[%s4737_s8 + $0x24] ss:$16 sps:$4 sm:$0xff]  }
  0x86   : > { %v3144_v5 = vld [vmem:[%s4736_s7 + $0x20] ss:$16 sps:$4 sm:$0xff]   ;;  %1743 = vmatpush1.bf16.msra.mxu0 %v3237_v58  ;;  %v3149_v12 = vld [vmem:[%s4736_s7 + $0x44] ss:$16 sps:$4 sm:$0xff]  }
  0x87   : > { %788 = vmatpush1.bf16.msra.mxu1 %v3128_v21  ;;  %v3243_v8 = vld [vmem:[%s4737_s8 + $0x20] ss:$16 sps:$4 sm:$0xff]   ;;  %1744 = vmatprep.subr.bf16.mxu0 %v3245_v9  ;;  %v3152_v20 = vld [vmem:[%s4736_s7 + $0x64] ss:$16 sps:$4 sm:$0xff]  }
  0x88   : > { %789 = vmatprep.subr.bf16.mxu1 %v3129_v22  ;;  %v3147_v16 = vld [vmem:[%s4736_s7 + $0x40] ss:$16 sps:$4 sm:$0xff]   ;;  %v3925_v22 = vshrl.u32 %v691_v32, 7  ;;  %v3176_v58 = vld [vmem:[%s4736_s7 + $0x164] ss:$16 sps:$4 sm:$0xff]  }
  0x89   : > { %3013 = vmatmul.mubr.msk.bf16.gmra.mrb[4].mxu0 %vm549_vm1, %v547_v18  ;;  %v3249_v17 = vld [vmem:[%s4737_s8 + $0x40] ss:$16 sps:$4 sm:$0xff]   ;;  %v3251_v18 = vld [vmem:[%s4737_s8 + $0x44] ss:$16 sps:$4 sm:$0xff]  }
  0x8a   : > { %1745 = vmatpush1.bf16.msra.mxu0 %v3243_v8  ;;  %v3150_v21 = vld [vmem:[%s4736_s7 + $0x60] ss:$16 sps:$4 sm:$0xff]   ;;  %v3188_v9 = vld [vmem:[%s4736_s7 + $0x1e4] ss:$16 sps:$4 sm:$0xff]  }
  0x8b   : > { %790 = vmatpush1.bf16.msra.mxu1 %v3131_v23  ;;  %1746 = vmatprep.subr.bf16.mxu0 %v3251_v18  ;;  %v3255_v23 = vld [vmem:[%s4737_s8 + $0x60] ss:$16 sps:$4 sm:$0xff]   ;;  %v3195_v18 = vld [vmem:[%s4736_s7 + $0x48] ss:$16 sps:$4 sm:$0xff]  }
  0x8c   : > { %791 = vmatprep.subr.bf16.mxu1 %v3132_v24  ;;  %v3257_v24 = vld [vmem:[%s4737_s8 + $0x64] ss:$16 sps:$4 sm:$0xff]   ;;  %v3956_v32 = vld [vmem:[%s530_s20] sm:$0x3] }
  0x8d   : > { %v3156_v34 = vld [vmem:[%s4736_s7 + $0xa0] ss:$16 sps:$4 sm:$0xff]  }
  0x8e   : > { %1747 = vmatpush1.bf16.msra.mxu0 %v3249_v17  ;;  %v3174_v59 = vld [vmem:[%s4736_s7 + $0x160] ss:$16 sps:$4 sm:$0xff]   ;;  %v3197_v17 = vld [vmem:[%s4736_s7 + $0x4c] ss:$16 sps:$4 sm:$0xff]  }
  0x8f   : > { %792 = vmatpush1.bf16.msra.mxu1 %v3134_v25  ;;  %v3155_v25 = vld [vmem:[%s4736_s7 + $0x84] ss:$16 sps:$4 sm:$0xff]   ;;  %1748 = vmatprep.subr.bf16.mxu0 %v3257_v24  ;;  %v3183_v8 = vld [vmem:[%s4736_s7 + $0x1c0] ss:$16 sps:$4 sm:$0xff]   ;;  %v3206_v24 = vld [vmem:[%s4736_s7 + $0xac] ss:$16 sps:$4 sm:$0xff]  }
  0x90   : > { %793 = vmatprep.subr.bf16.mxu1 %v3135_v26  ;;  %v3153_v26 = vld [vmem:[%s4736_s7 + $0x80] ss:$16 sps:$4 sm:$0xff]  }
  0x92   : > { %1749 = vmatpush1.bf16.msra.mxu0 %v3255_v23  ;;  %v3201_v23 = vld [vmem:[%s4736_s7 + $0x88] ss:$16 sps:$4 sm:$0xff]  }
  0x93   : > { %794 = vmatpush1.bf16.msra.mxu1 %v3137_v27  ;;  %v3945_v27 = vsub.s32 1, %v3925_v22 }
  0x94   : > { %795 = vmatprep.subr.bf16.mxu1 %v3138_v28  ;;  %v3261_v28 = vld [vmem:[%s4737_s8 + $0x80] ss:$16 sps:$4 sm:$0xff]  }
  0x97   : > { %796 = vmatpush1.bf16.msra.mxu1 %v3140_v29  ;;  %v3263_v29 = vld [vmem:[%s4737_s8 + $0x84] ss:$16 sps:$4 sm:$0xff]  }
  0x98   : > { %1260 = vmatprep.subr.bf16.mxu1 %v3143_v31  ;;  %v3158_v31 = vld [vmem:[%s4736_s7 + $0xa4] ss:$16 sps:$4 sm:$0xff]   ;;  %1750 = vmatprep.subr.bf16.mxu0 %v3263_v29  ;;  %v3321_v29 = vld [vmem:[%s4737_s8 + $0x1c0] ss:$16 sps:$4 sm:$0xff]  }
  0x99   : > { %1751 = vmatpush1.bf16.msra.mxu0 %v3261_v28  ;;  %v3323_v28 = vld [vmem:[%s4737_s8 + $0x1c4] ss:$16 sps:$4 sm:$0xff]  }
 0x154   : > { %v3010_v36 = vpop.f32.mrb[0].mxu0 }
 0x155   : > { %v640_v38 = vmul.f32 %v3010_v36, %v2788_v35  ;;  %v600_v39 = vpop.f32.mrb[1].mxu0  ;;  %v3267_v36 = vld [vmem:[%s4737_s8 + $0xa0] ss:$16 sps:$4 sm:$0xff]  }
 0x156   : > { %v638_v40 = vmul.f32 %v2788_v35, %v600_v39  ;;  %v3011_v41 = vpop.f32.mrb[2].mxu0 }
 0x157   : > { %v655_v42 = vadd.f32 %v2789_v37, %v640_v38  ;;  %v641_v43 = vmul.f32 %v3011_v41, %v2788_v35  ;;  %v603_v44 = vpop.f32.mrb[3].mxu0  ;;  %v3159_v38 = vld [vmem:[%s4736_s7 + $0xc0] ss:$16 sps:$4 sm:$0xff]   ;;  %v3275_v41 = vld [vmem:[%s4737_s8 + $0xc4] ss:$16 sps:$4 sm:$0xff]  }
 0x158   : > { %v653_v45 = vadd.f32 %v2789_v37, %v638_v40  ;;  %v639_v46 = vmul.f32 %v2788_v35, %v603_v44  ;;  %v3273_v40 = vld [vmem:[%s4737_s8 + $0xc0] ss:$16 sps:$4 sm:$0xff]  }
 0x159   : > { %v656_v47 = vadd.f32 %v2789_v37, %v641_v43  ;;  %v663_v49 = vmax.f32 %v655_v42, 0.0  ;;  %v3164_v42 = vld [vmem:[%s4736_s7 + $0xe4] ss:$16 sps:$4 sm:$0xff]   ;;  %v3162_v43 = vld [vmem:[%s4736_s7 + $0xe0] ss:$16 sps:$4 sm:$0xff]  }
 0x15a   : > { %v654_v48 = vadd.f32 %v2789_v37, %v639_v46  ;;  %v661_v51 = vmax.f32 %v653_v45, 0.0  ;;  %v3279_v44 = vld [vmem:[%s4737_s8 + $0xe0] ss:$16 sps:$4 sm:$0xff]   ;;  %v3281_v45 = vld [vmem:[%s4737_s8 + $0xe4] ss:$16 sps:$4 sm:$0xff]  }
 0x15b   : > { %v664_v50 = vmax.f32 %v656_v47, 0.0  ;;  %v3167_v46 = vld [vmem:[%s4736_s7 + $0x104] ss:$16 sps:$4 sm:$0xff]   ;;  %v3165_v47 = vld [vmem:[%s4736_s7 + $0x100] ss:$16 sps:$4 sm:$0xff]  }
 0x15c   : > { %v662_v52 = vmax.f32 %v654_v48, 0.0  ;;  %v3014_v53 = vpop.f32.mrb[4].mxu0  ;;  %v3285_v48 = vld [vmem:[%s4737_s8 + $0x100] ss:$16 sps:$4 sm:$0xff]  }
 0x15d   : > { %v644_v55 = vmul.f32 %v3014_v53, %v2788_v35  ;;  %v616_v56 = vpop.f32.mrb[5].mxu0  ;;  %v670_v57 = vpack.c.bf16 %v664_v50, %v663_v49  ;;  %v3287_v49 = vld [vmem:[%s4737_s8 + $0x104] ss:$16 sps:$4 sm:$0xff]  }
 0x15e   : > { %v669_v60 = vpack.c.bf16 %v662_v52, %v661_v51  ;;  %v642_v61 = vmul.f32 %v2788_v35, %v616_v56  ;;  %v3015_v62 = vpop.f32.mrb[6].mxu0  ;;  %v3170_v50 = vld [vmem:[%s4736_s7 + $0x124] ss:$16 sps:$4 sm:$0xff]   ;;  %v3168_v51 = vld [vmem:[%s4736_s7 + $0x120] ss:$16 sps:$4 sm:$0xff]  }
 0x15f   : > { %v659_v0 = vadd.f32 %v2789_v37, %v644_v55  ;;  %v645_v1 = vmul.f32 %v3015_v62, %v2788_v35  ;;  %v619_v2 = vpop.f32.mrb[7].mxu0  ;;  %v3291_v52 = vld [vmem:[%s4737_s8 + $0x120] ss:$16 sps:$4 sm:$0xff]   ;;  %v3293_v53 = vld [vmem:[%s4737_s8 + $0x124] ss:$16 sps:$4 sm:$0xff]  }
 0x160   : > { %814 = vmatmul.mubr.bf16.vlgmr.msra.gmra.mrb[0].mxu1 %v669_v60  ;;  %v657_v3 = vadd.f32 %v2789_v37, %v642_v61  ;;  %v643_v4 = vmul.f32 %v2788_v35, %v619_v2  ;;  %v871_v35 = vrot.slane %v3956_v32, %v3945_v27  ;;  %v3171_v55 = vld [vmem:[%s4736_s7 + $0x140] ss:$16 sps:$4 sm:$0xff]   ;;  %v3305_v61 = vld [vmem:[%s4737_s8 + $0x164] ss:$16 sps:$4 sm:$0xff]  }
 0x161   : > { %v667_v6 = vmax.f32 %v659_v0, 0.0  ;;  %v660_v7 = vadd.f32 %v2789_v37, %v645_v1  ;;  %823 = vmatprep.mubr.bf16.mxu1 %v3581_v30  ;;  %1261 = vmatpush1.bf16.msra.mxu1 %v3141_v54  ;;  %v3173_v54 = vld [vmem:[%s4736_s7 + $0x144] ss:$16 sps:$4 sm:$0xff]   ;;  %v3297_v56 = vld [vmem:[%s4737_s8 + $0x140] ss:$16 sps:$4 sm:$0xff]  }
 0x162   : > { %v665_v10 = vmax.f32 %v657_v3, 0.0  ;;  %v658_v11 = vadd.f32 %v2789_v37, %v643_v4  ;;  %1262 = vmatprep.subr.bf16.mxu1 %v3146_v63  ;;  %v3269_v37 = vld [vmem:[%s4737_s8 + $0xa4] ss:$16 sps:$4 sm:$0xff]   ;;  %v3976_v39 = vpack.c.bf16 %v871_v35, %v871_v35  ;;  %v3303_v60 = vld [vmem:[%s4737_s8 + $0x160] ss:$16 sps:$4 sm:$0xff]  }
 0x163   : > { %v668_v13 = vmax.f32 %v660_v7, 0.0  ;;  %1752 = vmatprep.subr.bf16.mxu0 %v3269_v37  ;;  %v3179_v62 = vld [vmem:[%s4736_s7 + $0x184] ss:$16 sps:$4 sm:$0xff]   ;;  %v3177_v63 = vld [vmem:[%s4736_s7 + $0x180] ss:$16 sps:$4 sm:$0xff]   ;;  %v4073_v7 = vsub.s32 0, %v3925_v22 }
 0x164   : > { %v666_v14 = vmax.f32 %v658_v11, 0.0  ;;  %1753 = vmatpush1.bf16.msra.mxu0 %v3267_v36  ;;  %v3309_v0 = vld [vmem:[%s4737_s8 + $0x180] ss:$16 sps:$4 sm:$0xff]   ;;  %v3311_v1 = vld [vmem:[%s4737_s8 + $0x184] ss:$16 sps:$4 sm:$0xff]  }
 0x165   : > { %v672_v15 = vpack.c.bf16 %v668_v13, %v667_v6  ;;  %1263 = vmatpush1.bf16.msra.mxu1 %v3144_v5  ;;  %1754 = vmatprep.subr.bf16.mxu0 %v3275_v41  ;;  %v3182_v2 = vld [vmem:[%s4736_s7 + $0x1a4] ss:$16 sps:$4 sm:$0xff]   ;;  %v3180_v3 = vld [vmem:[%s4736_s7 + $0x1a0] ss:$16 sps:$4 sm:$0xff]   ;;  %v3210_v36 = vld [vmem:[%s4736_s7 + $0xe8] ss:$16 sps:$4 sm:$0xff]  }
 0x166   : > { %v671_v19 = vpack.c.bf16 %v666_v14, %v665_v10  ;;  %1264 = vmatprep.subr.bf16.mxu1 %v3149_v12  ;;  %v3315_v4 = vld [vmem:[%s4737_s8 + $0x1a0] ss:$16 sps:$4 sm:$0xff]   ;;  %v3317_v5 = vld [vmem:[%s4737_s8 + $0x1a4] ss:$16 sps:$4 sm:$0xff]   ;;  %v867_v10 = vrot.slane %v3956_v32, %v4073_v7  ;;  %v3191_v12 = vld [vmem:[%s4736_s7 + $0xc] ss:$16 sps:$4 sm:$0xff]  }
 0x167   : > { %v3185_v6 = vld [vmem:[%s4736_s7 + $0x1c4] ss:$16 sps:$4 sm:$0xff]   ;;  %v3186_v11 = vld [vmem:[%s4736_s7 + $0x1e0] ss:$16 sps:$4 sm:$0xff]   ;;  %v3189_v14 = vld [vmem:[%s4736_s7 + $0x8] ss:$16 sps:$4 sm:$0xff]  }
 0x168   : > { %824 = vmatmul.mubr.bf16.gmra.mrb[4].mxu1 %v670_v57  ;;  %1755 = vmatpush1.bf16.msra.mxu0 %v3273_v40  ;;  %v3299_v57 = vld [vmem:[%s4737_s8 + $0x144] ss:$16 sps:$4 sm:$0xff]   ;;  %v4089_v13 = vpack.c.bf16 %v867_v10, %v867_v10  ;;  %v3212_v32 = vld [vmem:[%s4736_s7 + $0xec] ss:$16 sps:$4 sm:$0xff]   ;;  %v3327_v35 = vld [vmem:[%s4737_s8 + $0x1e0] ss:$16 sps:$4 sm:$0xff]  }
 0x169   : > { %833 = vmatprep.mubr.bf16.mxu1 %v3581_v30  ;;  %1265 = vmatpush1.bf16.msra.mxu1 %v3147_v16  ;;  %v3192_v16 = vld [vmem:[%s4736_s7 + $0x28] ss:$16 sps:$4 sm:$0xff]   ;;  %v3215_v37 = vld [vmem:[%s4736_s7 + $0x10c] ss:$16 sps:$4 sm:$0xff]  }
 0x16a   : > { %1266 = vmatprep.subr.bf16.mxu1 %v3152_v20  ;;  %1756 = vmatprep.subr.bf16.mxu0 %v3281_v45  ;;  %v3198_v20 = vld [vmem:[%s4736_s7 + $0x68] ss:$16 sps:$4 sm:$0xff]   ;;  %v3221_v40 = vld [vmem:[%s4736_s7 + $0x14c] ss:$16 sps:$4 sm:$0xff]  }
 0x16b   : > { %v3219_v41 = vld [vmem:[%s4736_s7 + $0x148] ss:$16 sps:$4 sm:$0xff]   ;;  %v3302_v10 = vld [vmem:[%s4737_s8 + $0x14c] ss:$16 sps:$4 sm:$0xff]  }
 0x16c   : > { %1757 = vmatpush1.bf16.msra.mxu0 %v3279_v44  ;;  %v3227_v44 = vld [vmem:[%s4736_s7 + $0x18c] ss:$16 sps:$4 sm:$0xff]   ;;  %v3225_v45 = vld [vmem:[%s4736_s7 + $0x188] ss:$16 sps:$4 sm:$0xff]  }
 0x16d   : > { %1267 = vmatpush1.bf16.msra.mxu1 %v3150_v21  ;;  %1758 = vmatprep.subr.bf16.mxu0 %v3287_v49  ;;  %v3203_v21 = vld [vmem:[%s4736_s7 + $0x8c] ss:$16 sps:$4 sm:$0xff]   ;;  %v3231_v49 = vld [vmem:[%s4736_s7 + $0x1c8] ss:$16 sps:$4 sm:$0xff]  }
 0x16e   : > { %1268 = vmatprep.subr.bf16.mxu1 %v3155_v25  ;;  %v3204_v25 = vld [vmem:[%s4736_s7 + $0xa8] ss:$16 sps:$4 sm:$0xff]  }
 0x170   : > { %834 = vmatmul.mubr.bf16.gmra.mrb[8].mxu1 %v671_v19  ;;  %1759 = vmatpush1.bf16.msra.mxu0 %v3285_v48  ;;  %v3200_v19 = vld [vmem:[%s4736_s7 + $0x6c] ss:$16 sps:$4 sm:$0xff]  }
 0x171   : > { %843 = vmatprep.mubr.bf16.mxu1 %v3581_v30  ;;  %1269 = vmatpush1.bf16.msra.mxu1 %v3153_v26  ;;  %v3161_v30 = vld [vmem:[%s4736_s7 + $0xc4] ss:$16 sps:$4 sm:$0xff]   ;;  %v3209_v26 = vld [vmem:[%s4736_s7 + $0xcc] ss:$16 sps:$4 sm:$0xff]  }
 0x172   : > { %1270 = vmatprep.subr.bf16.mxu1 %v3158_v31  ;;  %1760 = vmatprep.subr.bf16.mxu0 %v3293_v53  ;;  %v3207_v31 = vld [vmem:[%s4736_s7 + $0xc8] ss:$16 sps:$4 sm:$0xff]   ;;  %v3233_v48 = vld [vmem:[%s4736_s7 + $0x1cc] ss:$16 sps:$4 sm:$0xff]  }
 0x173   : > { %v3240_v53 = vld [vmem:[%s4737_s8 + $0x8] ss:$16 sps:$4 sm:$0xff]  }
 0x174   : > { %1761 = vmatpush1.bf16.msra.mxu0 %v3291_v52  ;;  %v3242_v52 = vld [vmem:[%s4737_s8 + $0xc] ss:$16 sps:$4 sm:$0xff]  }
 0x175   : > { %1271 = vmatpush1.bf16.msra.mxu1 %v3156_v34  ;;  %1762 = vmatprep.subr.bf16.mxu0 %v3299_v57  ;;  %v3329_v34 = vld [vmem:[%s4737_s8 + $0x1e4] ss:$16 sps:$4 sm:$0xff]   ;;  %v3252_v57 = vld [vmem:[%s4737_s8 + $0x48] ss:$16 sps:$4 sm:$0xff]  }
 0x176   : > { %1272 = vmatprep.subr.bf16.mxu1 %v3161_v30  ;;  %v3213_v30 = vld [vmem:[%s4736_s7 + $0x108] ss:$16 sps:$4 sm:$0xff]  }
 0x178   : > { %844 = vmatmul.mubr.bf16.gmra.mrb[12].mxu1 %v672_v15  ;;  %1763 = vmatpush1.bf16.msra.mxu0 %v3297_v56  ;;  %v3194_v15 = vld [vmem:[%s4736_s7 + $0x2c] ss:$16 sps:$4 sm:$0xff]  }
 0x179   : > { %1273 = vmatpush1.bf16.msra.mxu1 %v3159_v38  ;;  %1292 = vmatprep.mubr.bf16.mxu1 %v3976_v39  ;;  %v3218_v38 = vld [vmem:[%s4736_s7 + $0x12c] ss:$16 sps:$4 sm:$0xff]  }
 0x17a   : > { %1274 = vmatprep.subr.bf16.mxu1 %v3164_v42  ;;  %1764 = vmatprep.subr.bf16.mxu0 %v3305_v61  ;;  %v3224_v42 = vld [vmem:[%s4736_s7 + $0x16c] ss:$16 sps:$4 sm:$0xff]   ;;  %v3264_v61 = vld [vmem:[%s4737_s8 + $0x88] ss:$16 sps:$4 sm:$0xff]  }
 0x17b   : > { %v3254_v56 = vld [vmem:[%s4737_s8 + $0x4c] ss:$16 sps:$4 sm:$0xff]  }
 0x17c   : > { %1765 = vmatpush1.bf16.msra.mxu0 %v3303_v60  ;;  %v3266_v60 = vld [vmem:[%s4737_s8 + $0x8c] ss:$16 sps:$4 sm:$0xff]  }
 0x17d   : > { %1275 = vmatpush1.bf16.msra.mxu1 %v3162_v43  ;;  %1766 = vmatprep.subr.bf16.mxu0 %v3311_v1  ;;  %v3222_v43 = vld [vmem:[%s4736_s7 + $0x168] ss:$16 sps:$4 sm:$0xff]  }
 0x17e   : > { %1276 = vmatprep.subr.bf16.mxu1 %v3167_v46  ;;  %v3230_v46 = vld [vmem:[%s4736_s7 + $0x1ac] ss:$16 sps:$4 sm:$0xff]   ;;  %v3276_v1 = vld [vmem:[%s4737_s8 + $0xc8] ss:$16 sps:$4 sm:$0xff]  }
 0x180   : > { %1767 = vmatpush1.bf16.msra.mxu0 %v3309_v0  ;;  %v3278_v0 = vld [vmem:[%s4737_s8 + $0xcc] ss:$16 sps:$4 sm:$0xff]  }
 0x181   : > { %1277 = vmatpush1.bf16.msra.mxu1 %v3165_v47  ;;  %1768 = vmatprep.subr.bf16.mxu0 %v3317_v5  ;;  %v3228_v47 = vld [vmem:[%s4736_s7 + $0x1a8] ss:$16 sps:$4 sm:$0xff]   ;;  %v3290_v5 = vld [vmem:[%s4737_s8 + $0x10c] ss:$16 sps:$4 sm:$0xff]  }
 0x182   : > { %1278 = vmatprep.subr.bf16.mxu1 %v3170_v50  ;;  %v3236_v50 = vld [vmem:[%s4736_s7 + $0x1ec] ss:$16 sps:$4 sm:$0xff]  }
 0x184   : > { %1769 = vmatpush1.bf16.msra.mxu0 %v3315_v4  ;;  %v3282_v4 = vld [vmem:[%s4737_s8 + $0xe8] ss:$16 sps:$4 sm:$0xff]  }
 0x185   : > { %1279 = vmatpush1.bf16.msra.mxu1 %v3168_v51  ;;  %1770 = vmatprep.subr.bf16.mxu0 %v3323_v28  ;;  %v3234_v51 = vld [vmem:[%s4736_s7 + $0x1e8] ss:$16 sps:$4 sm:$0xff]  }
 0x186   : > { %1280 = vmatprep.subr.bf16.mxu1 %v3173_v54  ;;  %v3248_v54 = vld [vmem:[%s4737_s8 + $0x2c] ss:$16 sps:$4 sm:$0xff]  }
 0x188   : > { %1771 = vmatpush1.bf16.msra.mxu0 %v3321_v29 }
 0x189   : > { %1281 = vmatpush1.bf16.msra.mxu1 %v3171_v55  ;;  %1772 = vmatprep.subr.bf16.mxu0 %v3329_v34  ;;  %v3246_v55 = vld [vmem:[%s4737_s8 + $0x28] ss:$16 sps:$4 sm:$0xff]  }
 0x18a   : > { %1282 = vmatprep.subr.bf16.mxu1 %v3176_v58  ;;  %v3260_v58 = vld [vmem:[%s4737_s8 + $0x6c] ss:$16 sps:$4 sm:$0xff]  }
 0x18c   : > { %1773 = vmatpush1.bf16.msra.mxu0 %v3327_v35 }
 0x18d   : > { %1283 = vmatpush1.bf16.msra.mxu1 %v3174_v59  ;;  %v3258_v59 = vld [vmem:[%s4737_s8 + $0x68] ss:$16 sps:$4 sm:$0xff]  }
 0x18e   : > { %1284 = vmatprep.subr.bf16.mxu1 %v3179_v62  ;;  %v3272_v62 = vld [vmem:[%s4737_s8 + $0xac] ss:$16 sps:$4 sm:$0xff]  }
 0x191   : > { %1285 = vmatpush1.bf16.msra.mxu1 %v3177_v63  ;;  %v3270_v63 = vld [vmem:[%s4737_s8 + $0xa8] ss:$16 sps:$4 sm:$0xff]  }
 0x192   : > { %1286 = vmatprep.subr.bf16.mxu1 %v3182_v2  ;;  %v3284_v2 = vld [vmem:[%s4737_s8 + $0xec] ss:$16 sps:$4 sm:$0xff]  }
 0x195   : > { %1287 = vmatpush1.bf16.msra.mxu1 %v3180_v3  ;;  %v3335_v3 = vld [vmem:[%s4740_s11 + $0x4] ss:$8 sps:$4 sm:$0xff]  }
 0x196   : > { %1288 = vmatprep.subr.bf16.mxu1 %v3185_v6  ;;  %2440 = vmatprep.subr.bf16.mxu0 %v3335_v3  ;;  %v3288_v6 = vld [vmem:[%s4737_s8 + $0x108] ss:$16 sps:$4 sm:$0xff]   ;;  %v3350_v3 = vld [vmem:[%s4740_s11 + $0x54] ss:$8 sps:$4 sm:$0xff]  }
 0x199   : > { %1289 = vmatpush1.bf16.msra.mxu1 %v3183_v8  ;;  %v3296_v8 = vld [vmem:[%s4737_s8 + $0x12c] ss:$16 sps:$4 sm:$0xff]  }
 0x19a   : > { %1290 = vmatprep.subr.bf16.mxu1 %v3188_v9  ;;  %v3294_v9 = vld [vmem:[%s4737_s8 + $0x128] ss:$16 sps:$4 sm:$0xff]  }
 0x19d   : > { %1291 = vmatpush1.bf16.msra.mxu1 %v3186_v11  ;;  %v3300_v11 = vld [vmem:[%s4737_s8 + $0x148] ss:$16 sps:$4 sm:$0xff]  }
 0x19e   : > { %1301 = vmatprep.subr.bf16.mxu1 %v3191_v12  ;;  %v3308_v12 = vld [vmem:[%s4737_s8 + $0x16c] ss:$16 sps:$4 sm:$0xff]  }
 0x1a0   : > { %1293 = vmatmul.mubr.bf16.vlgmr.msra.gmra.mrb[16].mxu1 %v4089_v13 }
 0x1a1   : > { %1302 = vmatpush1.bf16.msra.mxu1 %v3189_v14  ;;  %1333 = vmatprep.mubr.bf16.mxu1 %v3976_v39  ;;  %v3216_v39 = vld [vmem:[%s4736_s7 + $0x128] ss:$16 sps:$4 sm:$0xff]   ;;  %v3314_v14 = vld [vmem:[%s4737_s8 + $0x18c] ss:$16 sps:$4 sm:$0xff]  }
 0x1a2   : > { %1303 = vmatprep.subr.bf16.mxu1 %v3194_v15  ;;  %v3312_v15 = vld [vmem:[%s4737_s8 + $0x188] ss:$16 sps:$4 sm:$0xff]  }
 0x1a5   : > { %1304 = vmatpush1.bf16.msra.mxu1 %v3192_v16  ;;  %v3320_v16 = vld [vmem:[%s4737_s8 + $0x1ac] ss:$16 sps:$4 sm:$0xff]  }
 0x1a6   : > { %1305 = vmatprep.subr.bf16.mxu1 %v3197_v17  ;;  %v3318_v17 = vld [vmem:[%s4737_s8 + $0x1a8] ss:$16 sps:$4 sm:$0xff]  }
 0x1a9   : > { %1306 = vmatpush1.bf16.msra.mxu1 %v3195_v18  ;;  %v3326_v18 = vld [vmem:[%s4737_s8 + $0x1cc] ss:$16 sps:$4 sm:$0xff]  }
 0x1aa   : > { %1307 = vmatprep.subr.bf16.mxu1 %v3200_v19  ;;  %v3324_v19 = vld [vmem:[%s4737_s8 + $0x1c8] ss:$16 sps:$4 sm:$0xff]  }
 0x1ad   : > { %1308 = vmatpush1.bf16.msra.mxu1 %v3198_v20  ;;  %v3332_v20 = vld [vmem:[%s4737_s8 + $0x1ec] ss:$16 sps:$4 sm:$0xff]  }
 0x1ae   : > { %1309 = vmatprep.subr.bf16.mxu1 %v3203_v21  ;;  %v3330_v21 = vld [vmem:[%s4737_s8 + $0x1e8] ss:$16 sps:$4 sm:$0xff]  }
 0x1b1   : > { %1310 = vmatpush1.bf16.msra.mxu1 %v3201_v23  ;;  %v689_v23 = vld [vmem:[#allocation4] sm:$0x3] }
 0x1b2   : > { %1311 = vmatprep.subr.bf16.mxu1 %v3206_v24  ;;  %v4299_v24 = vrot.slane %v689_v23, %v3945_v27 }
 0x1b5   : > { %1312 = vmatpush1.bf16.msra.mxu1 %v3204_v25  ;;  %v4302_v25 = vrot.slane %v689_v23, %v4073_v7  ;;  %v3362_v23 = vld [vmem:[%s4740_s11 + $0x94] ss:$8 sps:$4 sm:$0xff]  }
 0x1b6   : > { %1313 = vmatprep.subr.bf16.mxu1 %v3209_v26 }
 0x1b9   : > { %1314 = vmatpush1.bf16.msra.mxu1 %v3207_v31 }
 0x1ba   : > { %1315 = vmatprep.subr.bf16.mxu1 %v3212_v32 }
 0x1bd   : > { %1316 = vmatpush1.bf16.msra.mxu1 %v3210_v36 }
 0x1be   : > { %1317 = vmatprep.subr.bf16.mxu1 %v3215_v37 }
 0x1c1   : > { %1318 = vmatpush1.bf16.msra.mxu1 %v3213_v30 }
 0x1c2   : > { %1319 = vmatprep.subr.bf16.mxu1 %v3218_v38  ;;  %v3333_v38 = vld [vmem:[%s4740_s11] ss:$8 sps:$4 sm:$0xff]  }
 0x1c5   : > { %1320 = vmatpush1.bf16.msra.mxu1 %v3216_v39  ;;  %v3338_v39 = vld [vmem:[%s4740_s11 + $0x14] ss:$8 sps:$4 sm:$0xff]  }
 0x1c6   : > { %1321 = vmatprep.subr.bf16.mxu1 %v3221_v40 }
 0x1c9   : > { %1322 = vmatpush1.bf16.msra.mxu1 %v3219_v41 }
 0x1ca   : > { %1323 = vmatprep.subr.bf16.mxu1 %v3224_v42 }
 0x1cd   : > { %1324 = vmatpush1.bf16.msra.mxu1 %v3222_v43 }
 0x1ce   : > { %1325 = vmatprep.subr.bf16.mxu1 %v3227_v44  ;;  %v3336_v44 = vld [vmem:[%s4740_s11 + $0x10] ss:$8 sps:$4 sm:$0xff]  }
 0x1d1   : > { %1326 = vmatpush1.bf16.msra.mxu1 %v3225_v45 }
 0x1d2   : > { %1327 = vmatprep.subr.bf16.mxu1 %v3230_v46 }
 0x1d5   : > { %1328 = vmatpush1.bf16.msra.mxu1 %v3228_v47 }
 0x1d6   : > { %1329 = vmatprep.subr.bf16.mxu1 %v3233_v48  ;;  %v3341_v48 = vld [vmem:[%s4740_s11 + $0x24] ss:$8 sps:$4 sm:$0xff]  }
 0x1d9   : > { %1330 = vmatpush1.bf16.msra.mxu1 %v3231_v49 }
 0x1da   : > { %1331 = vmatprep.subr.bf16.mxu1 %v3236_v50 }
 0x1dd   : > { %1332 = vmatpush1.bf16.msra.mxu1 %v3234_v51 }
 0x1de   : > { %1815 = vmatprep.subr.bf16.mxu1 %v3242_v52  ;;  %v3339_v52 = vld [vmem:[%s4740_s11 + $0x20] ss:$8 sps:$4 sm:$0xff]  }
 0x1e0   : > { %1334 = vmatmul.mubr.bf16.vlgmr.msra.gmra.mrb[20].mxu1 %v4089_v13  ;;  %v3306_v13 = vld [vmem:[%s4737_s8 + $0x168] ss:$16 sps:$4 sm:$0xff]  }
 0x1e1   : > { %1816 = vmatpush1.bf16.msra.mxu1 %v3240_v53  ;;  %v3344_v53 = vld [vmem:[%s4740_s11 + $0x34] ss:$8 sps:$4 sm:$0xff]  }
 0x1e2   : > { %1817 = vmatprep.subr.bf16.mxu1 %v3248_v54 }
 0x1e5   : > { %1818 = vmatpush1.bf16.msra.mxu1 %v3246_v55 }
 0x1e6   : > { %1819 = vmatprep.subr.bf16.mxu1 %v3254_v56 }
 0x1e9   : > { %1820 = vmatpush1.bf16.msra.mxu1 %v3252_v57 }
 0x1ea   : > { %1821 = vmatprep.subr.bf16.mxu1 %v3260_v58 }
 0x1ed   : > { %1822 = vmatpush1.bf16.msra.mxu1 %v3258_v59  ;;  %v3342_v59 = vld [vmem:[%s4740_s11 + $0x30] ss:$8 sps:$4 sm:$0xff]  }
 0x1ee   : > { %1823 = vmatprep.subr.bf16.mxu1 %v3266_v60 }
 0x1f1   : > { %1824 = vmatpush1.bf16.msra.mxu1 %v3264_v61 }
 0x1f2   : > { %1825 = vmatprep.subr.bf16.mxu1 %v3272_v62  ;;  %v3347_v62 = vld [vmem:[%s4740_s11 + $0x44] ss:$8 sps:$4 sm:$0xff]  }
 0x1f5   : > { %1826 = vmatpush1.bf16.msra.mxu1 %v3270_v63 }
 0x1f6   : > { %1827 = vmatprep.subr.bf16.mxu1 %v3278_v0 }
 0x1f9   : > { %1828 = vmatpush1.bf16.msra.mxu1 %v3276_v1 }
 0x1fa   : > { %1829 = vmatprep.subr.bf16.mxu1 %v3284_v2  ;;  %v3345_v2 = vld [vmem:[%s4740_s11 + $0x40] ss:$8 sps:$4 sm:$0xff]  }
 0x1fd   : > { %1830 = vmatpush1.bf16.msra.mxu1 %v3282_v4 }
 0x1fe   : > { %1831 = vmatprep.subr.bf16.mxu1 %v3290_v5 }
 0x201   : > { %1832 = vmatpush1.bf16.msra.mxu1 %v3288_v6 }
 0x202   : > { %1833 = vmatprep.subr.bf16.mxu1 %v3296_v8 }
 0x205   : > { %1834 = vmatpush1.bf16.msra.mxu1 %v3294_v9 }
 0x206   : > { %1835 = vmatprep.subr.bf16.mxu1 %v3302_v10  ;;  %v3348_v10 = vld [vmem:[%s4740_s11 + $0x50] ss:$8 sps:$4 sm:$0xff]  }
 0x209   : > { %1836 = vmatpush1.bf16.msra.mxu1 %v3300_v11 }
 0x20a   : > { %1837 = vmatprep.subr.bf16.mxu1 %v3308_v12 }
 0x20d   : > { %1838 = vmatpush1.bf16.msra.mxu1 %v3306_v13  ;;  %v3353_v13 = vld [vmem:[%s4740_s11 + $0x64] ss:$8 sps:$4 sm:$0xff]  }
 0x20e   : > { %1839 = vmatprep.subr.bf16.mxu1 %v3314_v14 }
 0x211   : > { %1840 = vmatpush1.bf16.msra.mxu1 %v3312_v15 }
 0x212   : > { %1841 = vmatprep.subr.bf16.mxu1 %v3320_v16 }
 0x215   : > { %1842 = vmatpush1.bf16.msra.mxu1 %v3318_v17  ;;  %v3351_v17 = vld [vmem:[%s4740_s11 + $0x60] ss:$8 sps:$4 sm:$0xff]  }
 0x216   : > { %1843 = vmatprep.subr.bf16.mxu1 %v3326_v18  ;;  %v3356_v18 = vld [vmem:[%s4740_s11 + $0x74] ss:$8 sps:$4 sm:$0xff]  }
 0x219   : > { %1844 = vmatpush1.bf16.msra.mxu1 %v3324_v19  ;;  %v3354_v19 = vld [vmem:[%s4740_s11 + $0x70] ss:$8 sps:$4 sm:$0xff]  }
 0x21a   : > { %1845 = vmatprep.subr.bf16.mxu1 %v3332_v20  ;;  %v3359_v20 = vld [vmem:[%s4740_s11 + $0x84] ss:$8 sps:$4 sm:$0xff]  }
 0x21d   : > { %1846 = vmatpush1.bf16.msra.mxu1 %v3330_v21  ;;  %v3357_v21 = vld [vmem:[%s4740_s11 + $0x80] ss:$8 sps:$4 sm:$0xff]  }
 0x233   : > { %v815_v26 = vpop.f32.mrb[0].mxu1 }
 0x234   : > { %v817_v28 = vpop.f32.mrb[1].mxu1  ;;  %v816_v32 = vadd.f32 %v815_v26, %v4302_v25  ;;  %v3363_v26 = vld [vmem:[%s4740_s11 + $0xa0] ss:$8 sps:$4 sm:$0xff]  }
 0x235   : > { %v818_v29 = vadd.f32 %v817_v28, %v4299_v24  ;;  %v819_v31 = vpop.f32.mrb[2].mxu1  ;;  %v3368_v28 = vld [vmem:[%s4740_s11 + $0xb4] ss:$8 sps:$4 sm:$0xff]  }
 0x236   : > { %v820_v34 = vadd.f32 %v819_v31, %v4302_v25  ;;  %v821_v35 = vpop.f32.mrb[3].mxu1  ;;  %v3371_v31 = vld [vmem:[%s4740_s11 + $0xc4] ss:$8 sps:$4 sm:$0xff]  }
 0x237   : > { %v822_v36 = vadd.f32 %v821_v35, %v4299_v24 }
 0x238   : > { %v854_v37 = vpack.c.bf16 %v820_v34, %v816_v32  ;;  %v3369_v32 = vld [vmem:[%s4740_s11 + $0xc0] ss:$8 sps:$4 sm:$0xff]  }
 0x239   : > { %v855_v30 = vpack.c.bf16 %v822_v36, %v818_v29  ;;  %v3366_v29 = vld [vmem:[%s4740_s11 + $0xb0] ss:$8 sps:$4 sm:$0xff]  }
 0x23b   : > { %v825_v40 = vpop.f32.mrb[4].mxu1  ;;  %1774 = vmatprep.mubr.bf16.mxu0 %v855_v30  ;;  %1847 = vmatprep.mubr.bf16.mxu1 %v855_v30  ;;  %v3374_v30 = vld [vmem:[%s4740_s11 + $0xd4] ss:$8 sps:$4 sm:$0xff]  }
 0x23c   : > { %v827_v41 = vpop.f32.mrb[5].mxu1  ;;  %1775 = vmatmul.mubr.bf16.vlgmr.msra.gmra.mrb[8].mxu0 %v854_v37  ;;  %1848 = vmatmul.mubr.bf16.vlgmr.msra.gmra.mrb[24].mxu1 %v854_v37  ;;  %v826_v45 = vadd.f32 %v825_v40, %v4302_v25  ;;  %v3375_v40 = vld [vmem:[%s4740_s11 + $0xe0] ss:$8 sps:$4 sm:$0xff]  }
 0x23d   : > { %v828_v42 = vadd.f32 %v827_v41, %v4299_v24  ;;  %v829_v43 = vpop.f32.mrb[6].mxu1  ;;  %2441 = vmatpush1.bf16.msra.mxu0 %v3333_v38  ;;  %v3372_v38 = vld [vmem:[%s4740_s11 + $0xd0] ss:$8 sps:$4 sm:$0xff]   ;;  %v3380_v41 = vld [vmem:[%s4740_s11 + $0xf4] ss:$8 sps:$4 sm:$0xff]  }
 0x23e   : > { %v830_v46 = vadd.f32 %v829_v43, %v4302_v25  ;;  %v831_v47 = vpop.f32.mrb[7].mxu1  ;;  %2442 = vmatprep.subr.bf16.mxu0 %v3338_v39  ;;  %v3377_v39 = vld [vmem:[%s4740_s11 + $0xe4] ss:$8 sps:$4 sm:$0xff]  }
 0x23f   : > { %v832_v49 = vadd.f32 %v831_v47, %v4299_v24  ;;  %v3383_v43 = vld [vmem:[%s4740_s11 + $0x104] ss:$8 sps:$4 sm:$0xff]  }
 0x240   : > { %v856_v50 = vpack.c.bf16 %v830_v46, %v826_v45 }
 0x241   : > { %v857_v51 = vpack.c.bf16 %v832_v49, %v828_v42  ;;  %2443 = vmatpush1.bf16.msra.mxu0 %v3336_v44  ;;  %v3378_v42 = vld [vmem:[%s4740_s11 + $0xf0] ss:$8 sps:$4 sm:$0xff]   ;;  %v1888_v49 = vld [vmem:[#allocation6] sm:$0xf] }
 0x242   : > { %2444 = vmatprep.subr.bf16.mxu0 %v3341_v48  ;;  %v1900_v48 = vsub.s32 2, %v3925_v22 }
 0x243   : > { %v835_v54 = vpop.f32.mrb[8].mxu1  ;;  %1784 = vmatprep.mubr.bf16.mxu0 %v857_v51  ;;  %1857 = vmatprep.mubr.bf16.mxu1 %v857_v51 }
 0x244   : > { %v836_v55 = vadd.f32 %v835_v54, %v4302_v25  ;;  %v837_v56 = vpop.f32.mrb[9].mxu1  ;;  %1785 = vmatmul.mubr.bf16.gmra.mrb[12].mxu0 %v856_v50  ;;  %1858 = vmatmul.mubr.bf16.gmra.mrb[28].mxu1 %v856_v50  ;;  %v1904_v50 = vsub.s32 3, %v3925_v22 }
 0x245   : > { %v838_v57 = vadd.f32 %v837_v56, %v4299_v24  ;;  %v839_v58 = vpop.f32.mrb[10].mxu1  ;;  %2445 = vmatpush1.bf16.msra.mxu0 %v3339_v52  ;;  %v1942_v52 = vld [vmem:[%s4763_s17] sm:$0xf]  ;;  %v4433_v56 = vrot.slane %v1888_v49, %v1900_v48 }
 0x246   : > { %v840_v60 = vadd.f32 %v839_v58, %v4302_v25  ;;  %v841_v61 = vpop.f32.mrb[11].mxu1  ;;  %2446 = vmatprep.subr.bf16.mxu0 %v3344_v53 }
 0x247   : > { %v842_v63 = vadd.f32 %v841_v61, %v4299_v24  ;;  %v4441_v61 = vrot.slane %v1888_v49, %v1904_v50 }
 0x248   : > { %v858_v0 = vpack.c.bf16 %v840_v60, %v836_v55  ;;  %v4431_v55 = vrot.slane %v1888_v49, %v4073_v7 }
 0x249   : > { %v859_v1 = vpack.c.bf16 %v842_v63, %v838_v57  ;;  %2447 = vmatpush1.bf16.msra.mxu0 %v3342_v59  ;;  %v4436_v57 = vrot.slane %v1888_v49, %v3945_v27 }
 0x24a   : > { %2448 = vmatprep.subr.bf16.mxu0 %v3347_v62  ;;  %v4443_v62 = vrot.slane %v1942_v52, %v1900_v48 }
 0x24b   : > { %v845_v4 = vpop.f32.mrb[12].mxu1  ;;  %1794 = vmatprep.mubr.bf16.mxu0 %v859_v1  ;;  %1867 = vmatprep.mubr.bf16.mxu1 %v859_v1 }
 0x24c   : > { %v846_v5 = vadd.f32 %v845_v4, %v4302_v25  ;;  %v847_v6 = vpop.f32.mrb[13].mxu1  ;;  %1795 = vmatmul.mubr.bf16.gmra.mrb[16].mxu0 %v858_v0  ;;  %1868 = vmatmul.mubr.bf16.gmra.mrb[32].mxu1 %v858_v0  ;;  %v4447_v0 = vrot.slane %v1942_v52, %v4073_v7  ;;  %v4451_v4 = vrot.slane %v1942_v52, %v3945_v27 }
 0x24d   : > { %v848_v8 = vadd.f32 %v847_v6, %v4299_v24  ;;  %v849_v9 = vpop.f32.mrb[14].mxu1  ;;  %2449 = vmatpush1.bf16.msra.mxu0 %v3345_v2 }
 0x24e   : > { %v850_v11 = vadd.f32 %v849_v9, %v4302_v25  ;;  %v851_v12 = vpop.f32.mrb[15].mxu1  ;;  %2450 = vmatprep.subr.bf16.mxu0 %v3350_v3  ;;  %v3365_v25 = vld [vmem:[%s4740_s11 + $0xa4] ss:$8 sps:$4 sm:$0xff]  }
 0x24f   : > { %v852_v14 = vadd.f32 %v851_v12, %v4299_v24  ;;  %v3360_v24 = vld [vmem:[%s4740_s11 + $0x90] ss:$8 sps:$4 sm:$0xff]  }
 0x250   : > { %v860_v15 = vpack.c.bf16 %v850_v11, %v846_v5  ;;  %v4453_v5 = vrot.slane %v1942_v52, %v1904_v50 }
 0x251   : > { %v861_v16 = vpack.c.bf16 %v852_v14, %v848_v8  ;;  %2451 = vmatpush1.bf16.msra.mxu0 %v3348_v10 }
 0x252   : > { %2452 = vmatprep.subr.bf16.mxu0 %v3353_v13 }
 0x253   : > { %1804 = vmatprep.mubr.bf16.mxu0 %v861_v16  ;;  %1877 = vmatprep.mubr.bf16.mxu1 %v861_v16 }
 0x254   : > { %1805 = vmatmul.mubr.bf16.gmra.mrb[20].mxu0 %v860_v15  ;;  %1878 = vmatmul.mubr.bf16.gmra.mrb[36].mxu1 %v860_v15 }
 0x255   : > { %2453 = vmatpush1.bf16.msra.mxu0 %v3351_v17 }
 0x256   : > { %2454 = vmatprep.subr.bf16.mxu0 %v3356_v18 }
 0x259   : > { %2455 = vmatpush1.bf16.msra.mxu0 %v3354_v19 }
 0x25a   : > { %2456 = vmatprep.subr.bf16.mxu0 %v3359_v20 }
 0x25d   : > { %2457 = vmatpush1.bf16.msra.mxu0 %v3357_v21 }
 0x25e   : > { %2458 = vmatprep.subr.bf16.mxu0 %v3362_v23 }
 0x261   : > { %2459 = vmatpush1.bf16.msra.mxu0 %v3360_v24 }
 0x262   : > { %2460 = vmatprep.subr.bf16.mxu0 %v3365_v25 }
 0x265   : > { %2461 = vmatpush1.bf16.msra.mxu0 %v3363_v26 }
 0x266   : > { %2462 = vmatprep.subr.bf16.mxu0 %v3368_v28 }
 0x269   : > { %2463 = vmatpush1.bf16.msra.mxu0 %v3366_v29 }
 0x26a   : > { %2464 = vmatprep.subr.bf16.mxu0 %v3371_v31 }
 0x26d   : > { %2465 = vmatpush1.bf16.msra.mxu0 %v3369_v32 }
 0x26e   : > { %2466 = vmatprep.subr.bf16.mxu0 %v3374_v30 }
 0x271   : > { %2467 = vmatpush1.bf16.msra.mxu0 %v3372_v38 }
 0x272   : > { %2468 = vmatprep.subr.bf16.mxu0 %v3377_v39 }
 0x273   : > { %v1294_v34 = vpop.f32.mrb[16].mxu1 }
 0x274   : > { %v1296_v35 = vpop.f32.mrb[17].mxu1  ;;  %v4428_v54 = vrot.slane %v1294_v34, %v4073_v7 }
 0x275   : > { %v1298_v36 = vpop.f32.mrb[18].mxu1  ;;  %2469 = vmatpush1.bf16.msra.mxu0 %v3375_v40  ;;  %v4439_v58 = vrot.slane %v1296_v35, %v4073_v7 }
 0x276   : > { %v1299_v37 = vpop.f32.mrb[19].mxu1  ;;  %2470 = vmatprep.subr.bf16.mxu0 %v3380_v41 }
 0x279   : > { %2471 = vmatpush1.bf16.msra.mxu0 %v3378_v42 }
 0x27a   : > { %2513 = vmatprep.subr.bf16.mxu0 %v3383_v43 }
 0x2b3   : > { %v1335_v44 = vpop.f32.mrb[20].mxu1 }
 0x2b4   : > { %v1337_v45 = vpop.f32.mrb[21].mxu1  ;;  %v4419_v51 = vrot.slane %v1335_v44, %v4073_v7 }
 0x2b5   : > { %v1339_v46 = vpop.f32.mrb[22].mxu1  ;;  %v4425_v53 = vrot.slane %v1337_v45, %v4073_v7 }
 0x2b6   : > { %v1340_v47 = vpop.f32.mrb[23].mxu1 }
 0x30f   : > { %v1776_v59 = vpop.f32.mrb[8].mxu0  ;;  %v1849_v60 = vpop.f32.mrb[24].mxu1 }
 0x310   : > { %v1777_v63 = vadd.f32 %v1776_v59, %v4428_v54  ;;  %v1850_v1 = vadd.f32 %v1849_v60, %v4419_v51  ;;  %v1778_v2 = vpop.f32.mrb[9].mxu0  ;;  %v1851_v3 = vpop.f32.mrb[25].mxu1 }
 0x311   : > { %v1779_v6 = vadd.f32 %v1778_v2, %v4439_v58  ;;  %v1852_v8 = vadd.f32 %v1851_v3, %v4425_v53  ;;  %v1780_v9 = vpop.f32.mrb[10].mxu0  ;;  %v1853_v10 = vpop.f32.mrb[26].mxu1 }
 0x312   : > { %v1910_v11 = vmul.f32 %v4431_v55, %v1777_v63  ;;  %v1912_v12 = vmul.f32 %v4433_v56, %v1850_v1  ;;  %v1781_v13 = vadd.f32 %v1780_v9, %v4428_v54  ;;  %v1854_v14 = vadd.f32 %v1853_v10, %v4419_v51  ;;  %v1782_v15 = vpop.f32.mrb[11].mxu0  ;;  %v1855_v16 = vpop.f32.mrb[27].mxu1 }
 0x313   : > { %v1911_v17 = vmul.f32 %v4436_v57, %v1779_v6  ;;  %v1913_v18 = vmul.f32 %v4441_v61, %v1852_v8  ;;  %v1783_v19 = vadd.f32 %v1782_v15, %v4439_v58  ;;  %v1856_v20 = vadd.f32 %v1855_v16, %v4425_v53 }
 0x314   : > { %v1964_v21 = vadd.f32 %v4447_v0, %v1910_v11  ;;  %v1966_v23 = vadd.f32 %v4443_v62, %v1912_v12  ;;  %v1914_v24 = vmul.f32 %v4431_v55, %v1781_v13  ;;  %v1916_v25 = vmul.f32 %v4433_v56, %v1854_v14 }
 0x315   : > { %v1965_v26 = vadd.f32 %v4451_v4, %v1911_v17  ;;  %v4471_v28 = vadd.f32 %v4453_v5, %v1913_v18  ;;  %v1915_v29 = vmul.f32 %v4436_v57, %v1783_v19  ;;  %v1917_v31 = vmul.f32 %v4441_v61, %v1856_v20 }
 0x316   : > { %v1996_v32 = vmax.f32 %v1964_v21, 0.0  ;;  %v1998_v34 = vmax.f32 %v1966_v23, 0.0  ;;  %v1968_v35 = vadd.f32 %v4447_v0, %v1914_v24  ;;  %v1970_v36 = vadd.f32 %v4443_v62, %v1916_v25 }
 0x317   : > { %v1997_v37 = vmax.f32 %v1965_v26, 0.0  ;;  %v1999_v30 = vmax.f32 %v4471_v28, 0.0  ;;  %v1969_v38 = vadd.f32 %v4451_v4, %v1915_v29  ;;  %v4480_v39 = vadd.f32 %v4453_v5, %v1917_v31  ;;  %v1786_v40 = vpop.f32.mrb[12].mxu0  ;;  %v1859_v41 = vpop.f32.mrb[28].mxu1 }
 0x318   : > { %v2000_v42 = vmax.f32 %v1968_v35, 0.0  ;;  %v2002_v43 = vmax.f32 %v1970_v36, 0.0  ;;  %v1787_v44 = vadd.f32 %v1786_v40, %v4428_v54  ;;  %v1860_v45 = vadd.f32 %v1859_v41, %v4419_v51  ;;  %v1788_v46 = vpop.f32.mrb[13].mxu0  ;;  %v1861_v47 = vpop.f32.mrb[29].mxu1  ;;  %v3381_v41 = vld [vmem:[%s4740_s11 + $0x100] ss:$8 sps:$4 sm:$0xff]  }
 0x319   : > { %v2001_v48 = vmax.f32 %v1969_v38, 0.0  ;;  %v2003_v49 = vmax.f32 %v4480_v39, 0.0  ;;  %v1789_v50 = vadd.f32 %v1788_v46, %v4439_v58  ;;  %v1862_v52 = vadd.f32 %v1861_v47, %v4425_v53  ;;  %v1790_v59 = vpop.f32.mrb[14].mxu0  ;;  %v1863_v60 = vpop.f32.mrb[30].mxu1 }
 0x31a   : > { %v2028_v63 = vpack.c.bf16 %v2000_v42, %v1996_v32  ;;  %v4487_v1 = vpack.c.bf16 %v2002_v43, %v1998_v34  ;;  %v1918_v2 = vmul.f32 %v4431_v55, %v1787_v44  ;;  %v1920_v3 = vmul.f32 %v4433_v56, %v1860_v45  ;;  %v1792_v6 = vpop.f32.mrb[15].mxu0  ;;  %v1865_v8 = vpop.f32.mrb[31].mxu1 }
 0x31b   : > { %v1919_v9 = vmul.f32 %v4436_v57, %v1789_v50  ;;  %v1921_v10 = vmul.f32 %v4441_v61, %v1862_v52  ;;  %v1791_v11 = vadd.f32 %v1790_v59, %v4428_v54  ;;  %v1864_v12 = vadd.f32 %v1863_v60, %v4419_v51 }
 0x31c   : > { %v4496_v13 = vadd.f32 %v4447_v0, %v1918_v2  ;;  %v4499_v14 = vadd.f32 %v4443_v62, %v1920_v3  ;;  %v1793_v15 = vadd.f32 %v1792_v6, %v4439_v58  ;;  %v1866_v16 = vadd.f32 %v1865_v8, %v4425_v53 }
 0x31d   : > { %v4504_v17 = vadd.f32 %v4451_v4, %v1919_v9  ;;  %v4507_v18 = vadd.f32 %v4453_v5, %v1921_v10  ;;  %v1922_v19 = vmul.f32 %v4431_v55, %v1791_v11  ;;  %v1924_v20 = vmul.f32 %v4433_v56, %v1864_v12 }
 0x31e   : > { %v2004_v21 = vmax.f32 %v4496_v13, 0.0  ;;  %v2006_v23 = vmax.f32 %v4499_v14, 0.0  ;;  %v1923_v24 = vmul.f32 %v4436_v57, %v1793_v15  ;;  %v1925_v25 = vmul.f32 %v4441_v61, %v1866_v16  ;;  %v3401_v14 = vld [vmem:[%s4740_s11 + $0x164] ss:$8 sps:$4 sm:$0xff]  }
 0x31f   : > { %v2005_v26 = vmax.f32 %v4504_v17, 0.0  ;;  %v2007_v29 = vmax.f32 %v4507_v18, 0.0  ;;  %v4518_v31 = vadd.f32 %v4447_v0, %v1922_v19  ;;  %v4521_v32 = vadd.f32 %v4443_v62, %v1924_v20  ;;  %v1796_v34 = vpop.f32.mrb[16].mxu0  ;;  %v1869_v35 = vpop.f32.mrb[32].mxu1  ;;  %v3384_v17 = vld [vmem:[%s4740_s11 + $0x110] ss:$8 sps:$4 sm:$0xff]  }
 0x320   : > { %v1977_v36 = vadd.f32 %v4451_v4, %v1923_v24  ;;  %v4525_v38 = vadd.f32 %v4453_v5, %v1925_v25  ;;  %v2029_v40 = vpack.c.bf16 %v2001_v48, %v1997_v37  ;;  %v1797_v42 = vadd.f32 %v1796_v34, %v4428_v54  ;;  %v1798_v43 = vpop.f32.mrb[17].mxu0  ;;  %v1871_v44 = vpop.f32.mrb[33].mxu1  ;;  %v3386_v37 = vld [vmem:[%s4740_s11 + $0x114] ss:$8 sps:$4 sm:$0xff]   ;;  %v3389_v34 = vld [vmem:[%s4740_s11 + $0x124] ss:$8 sps:$4 sm:$0xff]  }
 0x321   : > { %v2008_v45 = vmax.f32 %v4518_v31, 0.0  ;;  %v2010_v46 = vmax.f32 %v4521_v32, 0.0  ;;  %v1870_v47 = vadd.f32 %v1869_v35, %v4419_v51  ;;  %v1799_v50 = vadd.f32 %v1798_v43, %v4439_v58  ;;  %v1800_v52 = vpop.f32.mrb[18].mxu0  ;;  %v1873_v59 = vpop.f32.mrb[34].mxu1  ;;  %v3396_v18 = vld [vmem:[%s4740_s11 + $0x150] ss:$8 sps:$4 sm:$0xff]  }
 0x322   : > { %v2009_v48 = vmax.f32 %v1977_v36, 0.0  ;;  %v2011_v60 = vmax.f32 %v4525_v38, 0.0  ;;  %2472 = vmatprep.mubr.bf16.mxu0 %v2029_v40  ;;  %v1926_v2 = vmul.f32 %v4431_v55, %v1797_v42  ;;  %v1872_v3 = vadd.f32 %v1871_v44, %v4425_v53  ;;  %v1802_v6 = vpop.f32.mrb[19].mxu0  ;;  %v1875_v8 = vpop.f32.mrb[35].mxu1  ;;  %v3402_v32 = vld [vmem:[%s4740_s11 + $0x170] ss:$8 sps:$4 sm:$0xff]  }
 0x323   : > { %2473 = vmatmul.mubr.bf16.vlgmr.msra.gmra.mrb[24].mxu0 %v2028_v63  ;;  %v1928_v9 = vmul.f32 %v4433_v56, %v1870_v47  ;;  %v1927_v10 = vmul.f32 %v4436_v57, %v1799_v50  ;;  %v1801_v11 = vadd.f32 %v1800_v52, %v4428_v54  ;;  %v1874_v12 = vadd.f32 %v1873_v59, %v4419_v51  ;;  %v3407_v38 = vld [vmem:[%s4740_s11 + $0x184] ss:$8 sps:$4 sm:$0xff]  }
 0x324   : > { %2514 = vmatpush1.bf16.msra.mxu0 %v3381_v41  ;;  %v4546_v15 = vadd.f32 %v4447_v0, %v1926_v2  ;;  %v1929_v16 = vmul.f32 %v4441_v61, %v1872_v3  ;;  %v1803_v63 = vadd.f32 %v1802_v6, %v4439_v58  ;;  %v1876_v19 = vadd.f32 %v1875_v8, %v4425_v53  ;;  %v3387_v6 = vld [vmem:[%s4740_s11 + $0x120] ss:$8 sps:$4 sm:$0xff]  }
 0x325   : > { %v4555_v20 = vadd.f32 %v4443_v62, %v1928_v9  ;;  %v4558_v24 = vadd.f32 %v4451_v4, %v1927_v10  ;;  %v1930_v25 = vmul.f32 %v4431_v55, %v1801_v11  ;;  %v1932_v31 = vmul.f32 %v4433_v56, %v1874_v12  ;;  %2515 = vmatprep.subr.bf16.mxu0 %v3386_v37 }
 0x326   : > { %v2012_v35 = vmax.f32 %v4546_v15, 0.0  ;;  %v4567_v36 = vadd.f32 %v4453_v5, %v1929_v16  ;;  %v1931_v40 = vmul.f32 %v4436_v57, %v1803_v63  ;;  %v1933_v41 = vmul.f32 %v4441_v61, %v1876_v19 }
 0x327   : > { %v2014_v42 = vmax.f32 %v4555_v20, 0.0  ;;  %v2013_v43 = vmax.f32 %v4558_v24, 0.0  ;;  %v4574_v44 = vadd.f32 %v4447_v0, %v1930_v25  ;;  %v4577_v47 = vadd.f32 %v4443_v62, %v1932_v31  ;;  %v1806_v50 = vpop.f32.mrb[20].mxu0  ;;  %v1879_v52 = vpop.f32.mrb[36].mxu1  ;;  %v3408_v20 = vld [vmem:[%s4740_s11 + $0x190] ss:$8 sps:$4 sm:$0xff]  }
 0x328   : > { %v2015_v59 = vmax.f32 %v4567_v36, 0.0  ;;  %v1985_v37 = vadd.f32 %v4451_v4, %v1931_v40  ;;  %v4582_v2 = vadd.f32 %v4453_v5, %v1933_v41  ;;  %2516 = vmatpush1.bf16.msra.mxu0 %v3384_v17  ;;  %v2033_v3 = vpack.c.bf16 %v2009_v48, %v2005_v26  ;;  %v1808_v8 = vpop.f32.mrb[21].mxu0  ;;  %v1881_v9 = vpop.f32.mrb[37].mxu1  ;;  %v3392_v26 = vld [vmem:[%s4740_s11 + $0x134] ss:$8 sps:$4 sm:$0xff]  }
 0x329   : > { %v2016_v10 = vmax.f32 %v4574_v44, 0.0  ;;  %v2018_v11 = vmax.f32 %v4577_v47, 0.0  ;;  %2517 = vmatprep.subr.bf16.mxu0 %v3389_v34  ;;  %v2032_v12 = vpack.c.bf16 %v2008_v45, %v2004_v21  ;;  %v1807_v16 = vadd.f32 %v1806_v50, %v4428_v54  ;;  %v1810_v63 = vpop.f32.mrb[22].mxu0  ;;  %v1883_v19 = vpop.f32.mrb[38].mxu1  ;;  %v3390_v47 = vld [vmem:[%s4740_s11 + $0x130] ss:$8 sps:$4 sm:$0xff]  }
 0x32a   : > { %v2017_v48 = vmax.f32 %v1985_v37, 0.0  ;;  %v2019_v17 = vmax.f32 %v4582_v2, 0.0  ;;  %2482 = vmatprep.mubr.bf16.mxu0 %v2033_v3  ;;  %v1880_v24 = vadd.f32 %v1879_v52, %v4419_v51  ;;  %v1809_v25 = vadd.f32 %v1808_v8, %v4439_v58  ;;  %v1812_v31 = vpop.f32.mrb[23].mxu0  ;;  %v1885_v34 = vpop.f32.mrb[39].mxu1  ;;  %v3395_v3 = vld [vmem:[%s4740_s11 + $0x144] ss:$8 sps:$4 sm:$0xff]  }
 0x32b   : > { %2483 = vmatmul.mubr.bf16.gmra.mrb[28].mxu0 %v2032_v12  ;;  %v1934_v13 = vmul.f32 %v4431_v55, %v1807_v16  ;;  %v1882_v21 = vadd.f32 %v1881_v9, %v4425_v53  ;;  %v1811_v45 = vadd.f32 %v1810_v63, %v4428_v54  ;;  %v1884_v40 = vadd.f32 %v1883_v19, %v4419_v51  ;;  %v3413_v36 = vld [vmem:[%s4740_s11 + $0x1a4] ss:$8 sps:$4 sm:$0xff]  }
 0x32c   : > { %2518 = vmatpush1.bf16.msra.mxu0 %v3387_v6  ;;  %v1936_v41 = vmul.f32 %v4433_v56, %v1880_v24  ;;  %v1935_v44 = vmul.f32 %v4436_v57, %v1809_v25  ;;  %v1813_v50 = vadd.f32 %v1812_v31, %v4439_v58  ;;  %v1886_v52 = vadd.f32 %v1885_v34, %v4425_v53 }
 0x32d   : > { %v1988_v37 = vadd.f32 %v4447_v0, %v1934_v13  ;;  %v1937_v2 = vmul.f32 %v4441_v61, %v1882_v21  ;;  %v1938_v54 = vmul.f32 %v4431_v55, %v1811_v45  ;;  %v1940_v51 = vmul.f32 %v4433_v56, %v1884_v40  ;;  %2519 = vmatprep.subr.bf16.mxu0 %v3392_v26  ;;  %v3422_v13 = vld [vmem:[%s4740_s11 + $0x1d4] ss:$8 sps:$4 sm:$0xff]   ;;  %v3420_v21 = vld [vmem:[%s4740_s11 + $0x1d0] ss:$8 sps:$4 sm:$0xff]   ;;  %v3425_v45 = vld [vmem:[%s4740_s11 + $0x1e4] ss:$8 sps:$4 sm:$0xff]  }
 0x32e   : > { %v1990_v6 = vadd.f32 %v4443_v62, %v1936_v41  ;;  %v1989_v8 = vadd.f32 %v4451_v4, %v1935_v44  ;;  %v1939_v58 = vmul.f32 %v4436_v57, %v1813_v50  ;;  %v1941_v53 = vmul.f32 %v4441_v61, %v1886_v52  ;;  %v3393_v61 = vld [vmem:[%s4740_s11 + $0x140] ss:$8 sps:$4 sm:$0xff]   ;;  %v3428_v41 = vld [vmem:[%s4740_s11 + $0x1f4] ss:$8 sps:$4 sm:$0xff]   ;;  %v3426_v44 = vld [vmem:[%s4740_s11 + $0x1f0] ss:$8 sps:$4 sm:$0xff]  }
 0x32f   : > { %v2020_v9 = vmax.f32 %v1988_v37, 0.0  ;;  %v1991_v12 = vadd.f32 %v4453_v5, %v1937_v2  ;;  %v1992_v55 = vadd.f32 %v4447_v0, %v1938_v54  ;;  %v1994_v56 = vadd.f32 %v4443_v62, %v1940_v51  ;;  %v3423_v40 = vld [vmem:[%s4740_s11 + $0x1e0] ss:$8 sps:$4 sm:$0xff]  }
 0x330   : > { %v2022_v16 = vmax.f32 %v1990_v6, 0.0  ;;  %v2021_v63 = vmax.f32 %v1989_v8, 0.0  ;;  %v1993_v19 = vadd.f32 %v4451_v4, %v1939_v58  ;;  %v1995_v26 = vadd.f32 %v4453_v5, %v1941_v53  ;;  %2520 = vmatpush1.bf16.msra.mxu0 %v3390_v47  ;;  %v3398_v4 = vld [vmem:[%s4740_s11 + $0x154] ss:$8 sps:$4 sm:$0xff]   ;;  %v2108_v47 = vld [vmem:[#allocation7] sm:$0x3] }
 0x331   : > { %v2023_v24 = vmax.f32 %v1991_v12, 0.0  ;;  %v2024_v25 = vmax.f32 %v1992_v55, 0.0  ;;  %v2026_v31 = vmax.f32 %v1994_v56, 0.0  ;;  %v2037_v57 = vpack.c.bf16 %v2017_v48, %v2013_v43  ;;  %2521 = vmatprep.subr.bf16.mxu0 %v3395_v3 }
 0x332   : > { %v2025_v34 = vmax.f32 %v1993_v19, 0.0  ;;  %v2027_v0 = vmax.f32 %v1995_v26, 0.0  ;;  %v2036_v62 = vpack.c.bf16 %v2016_v10, %v2012_v35  ;;  %v2031_v5 = vpack.c.bf16 %v2003_v49, %v1999_v30  ;;  %v3414_v10 = vld [vmem:[%s4740_s11 + $0x1b0] ss:$8 sps:$4 sm:$0xff]  }
 0x333   : > { %2492 = vmatprep.mubr.bf16.mxu0 %v2037_v57  ;;  %v2040_v43 = vpack.c.bf16 %v2024_v25, %v2020_v9  ;;  %v2035_v48 = vpack.c.bf16 %v2011_v60, %v2007_v29  ;;  %v2034_v15 = vpack.c.bf16 %v2010_v46, %v2006_v23  ;;  %v2039_v35 = vpack.c.bf16 %v2019_v17, %v2015_v59  ;;  %v3399_v23 = vld [vmem:[%s4740_s11 + $0x160] ss:$8 sps:$4 sm:$0xff]   ;;  %v3404_v29 = vld [vmem:[%s4740_s11 + $0x174] ss:$8 sps:$4 sm:$0xff]  }
 0x334   : > { %2493 = vmatmul.mubr.bf16.gmra.mrb[32].mxu0 %v2036_v62  ;;  %v2041_v28 = vpack.c.bf16 %v2025_v34, %v2021_v63  ;;  %v2038_v30 = vpack.c.bf16 %v2018_v11, %v2014_v42  ;;  %v2043_v39 = vpack.c.bf16 %v2027_v0, %v2023_v24  ;;  %v2042_v49 = vpack.c.bf16 %v2026_v31, %v2022_v16  ;;  %v3405_v46 = vld [vmem:[%s4740_s11 + $0x180] ss:$8 sps:$4 sm:$0xff]   ;;  %v3410_v60 = vld [vmem:[%s4740_s11 + $0x194] ss:$8 sps:$4 sm:$0xff]   ;;  %v3419_v11 = vld [vmem:[%s4740_s11 + $0x1c4] ss:$8 sps:$4 sm:$0xff]  }
 0x335   : > { %2522 = vmatpush1.bf16.msra.mxu0 %v3393_v61  ;;  %v3411_v42 = vld [vmem:[%s4740_s11 + $0x1a0] ss:$8 sps:$4 sm:$0xff]   ;;  %v3416_v59 = vld [vmem:[%s4740_s11 + $0x1b4] ss:$8 sps:$4 sm:$0xff]   ;;  %v2117_v50 = vrot.slane %v2108_v47, %v3945_v27  ;;  %v2113_v6 = vrot.slane %v2108_v47, %v4073_v7 }
 0x336   : > { %2523 = vmatprep.subr.bf16.mxu0 %v3398_v4  ;;  %2502 = vmatprep.mubr.bf16.mxu0 %v2041_v28  ;;  %v3417_v17 = vld [vmem:[%s4740_s11 + $0x1c0] ss:$8 sps:$4 sm:$0xff]  }
 0x339   : > { %2524 = vmatpush1.bf16.msra.mxu0 %v3396_v18 }
 0x33a   : > { %2525 = vmatprep.subr.bf16.mxu0 %v3401_v14 }
 0x33c   : > { %2503 = vmatmul.mubr.bf16.gmra.mrb[36].mxu0 %v2040_v43 }
 0x33d   : > { %2526 = vmatpush1.bf16.msra.mxu0 %v3399_v23  ;;  %2545 = vmatprep.mubr.bf16.mxu0 %v2031_v5 }
 0x33e   : > { %2527 = vmatprep.subr.bf16.mxu0 %v3404_v29 }
 0x341   : > { %2528 = vmatpush1.bf16.msra.mxu0 %v3402_v32 }
 0x342   : > { %2529 = vmatprep.subr.bf16.mxu0 %v3407_v38 }
 0x345   : > { %2530 = vmatpush1.bf16.msra.mxu0 %v3405_v46 }
 0x346   : > { %2531 = vmatprep.subr.bf16.mxu0 %v3410_v60 }
 0x349   : > { %2532 = vmatpush1.bf16.msra.mxu0 %v3408_v20 }
 0x34a   : > { %2533 = vmatprep.subr.bf16.mxu0 %v3413_v36 }
 0x34d   : > { %2534 = vmatpush1.bf16.msra.mxu0 %v3411_v42 }
 0x34e   : > { %2535 = vmatprep.subr.bf16.mxu0 %v3416_v59 }
 0x351   : > { %2536 = vmatpush1.bf16.msra.mxu0 %v3414_v10  ;;  %v3583_v10 = vmov 1966171168  }
 0x352   : > { %2537 = vmatprep.subr.bf16.mxu0 %v3419_v11  ;;  %v2626_v11 = vunpack.c.l.s4 %v3583_v10 }
 0x355   : > { %2538 = vmatpush1.bf16.msra.mxu0 %v3417_v17 }
 0x356   : > { %2539 = vmatprep.subr.bf16.mxu0 %v3422_v13 }
 0x359   : > { %2540 = vmatpush1.bf16.msra.mxu0 %v3420_v21 }
 0x35a   : > { %2541 = vmatprep.subr.bf16.mxu0 %v3425_v45 }
 0x35d   : > { %2542 = vmatpush1.bf16.msra.mxu0 %v3423_v40  ;;  %v2627_v40 = vunpack.c.0.s8 %v2626_v11 }
 0x35e   : > { %2543 = vmatprep.subr.bf16.mxu0 %v3428_v41 }
 0x361   : > { %2544 = vmatpush1.bf16.msra.mxu0 %v3426_v44 }
 0x364   : > { %2546 = vmatmul.mubr.bf16.vlgmr.msra.gmra.mrb[24].mxu0 %v4487_v1 }
 0x365   : > { %2555 = vmatprep.mubr.bf16.mxu0 %v2035_v48 }
 0x36c   : > { %2556 = vmatmul.mubr.bf16.gmra.mrb[28].mxu0 %v2034_v15 }
 0x36d   : > { %2565 = vmatprep.mubr.bf16.mxu0 %v2039_v35 }
 0x374   : > { %2566 = vmatmul.mubr.bf16.gmra.mrb[32].mxu0 %v2038_v30 }
 0x375   : > { %2575 = vmatprep.mubr.bf16.mxu0 %v2043_v39 }
 0x37c   : > { %2576 = vmatmul.mubr.bf16.gmra.mrb[36].mxu0 %v2042_v49 }
 0x437   : > { %v2547_v52 = vpop.f32.mrb[24].mxu0 }
 0x438   : > { %v2549_v37 = vpop.f32.mrb[25].mxu0  ;;  %v3016_v58 = vadd.f32 %v2547_v52, %v2113_v6  ;;  %v2630_v52 = vsub.s32 %v2627_v40, %v3925_v22 }
 0x439   : > { %v3017_v2 = vadd.f32 %v2549_v37, %v2117_v50  ;;  %v2551_v54 = vpop.f32.mrb[26].mxu0 }
 0x43a   : > { %v2553_v51 = vpop.f32.mrb[27].mxu0  ;;  %v3018_v55 = vadd.f32 %v2551_v54, %v2113_v6  ;;  %v2595_v54 = vld [vmem:[%s3870_s28] sm:$0x3] }
 0x43b   : > { %v3019_v3 = vadd.f32 %v2553_v51, %v2117_v50 }
 0x43f   : > { %v2557_v8 = vpop.f32.mrb[28].mxu0 }
 0x440   : > { %v3020_v1 = vadd.f32 %v2557_v8, %v2113_v6  ;;  %v2559_v53 = vpop.f32.mrb[29].mxu0 }
 0x441   : > { %v3021_v9 = vadd.f32 %v2559_v53, %v2117_v50  ;;  %v2561_v12 = vpop.f32.mrb[30].mxu0 }
 0x442   : > { %v2596_v56 = vmax.f32 %v3016_v58, %v3020_v1  ;;  %v3022_v16 = vadd.f32 %v2561_v12, %v2113_v6  ;;  %v2563_v63 = vpop.f32.mrb[31].mxu0 }
 0x443   : > { %v2609_v19 = vmax.f32 %v3017_v2, %v3021_v9  ;;  %v3023_v27 = vadd.f32 %v2563_v63, %v2117_v50 }
 0x444   : > { %v2597_v26 = vmax.f32 %v3018_v55, %v3022_v16 }
 0x445   : > { %v2610_v24 = vmax.f32 %v3019_v3, %v3023_v27 }
 0x447   : > { %v2567_v25 = vpop.f32.mrb[32].mxu0 }
 0x448   : > { %v3024_v31 = vadd.f32 %v2567_v25, %v2113_v6  ;;  %v2569_v57 = vpop.f32.mrb[33].mxu0 }
 0x449   : > { %v3025_v61 = vadd.f32 %v2569_v57, %v2117_v50  ;;  %v2571_v34 = vpop.f32.mrb[34].mxu0 }
 0x44a   : > { %v2598_v7 = vmax.f32 %v2596_v56, %v3024_v31  ;;  %v3026_v0 = vadd.f32 %v2571_v34, %v2113_v6  ;;  %v2573_v62 = vpop.f32.mrb[35].mxu0 }
 0x44b   : > { %v2611_v4 = vmax.f32 %v2609_v19, %v3025_v61  ;;  %v3027_v5 = vadd.f32 %v2573_v62, %v2117_v50 }
 0x44c   : > { %v2599_v43 = vmax.f32 %v2597_v26, %v3026_v0 }
 0x44d   : > { %v2612_v48 = vmax.f32 %v2610_v24, %v3027_v5 }
 0x44f   : > { %v2577_v15 = vpop.f32.mrb[36].mxu0 }
 0x450   : > { %v3028_v35 = vadd.f32 %v2577_v15, %v2113_v6  ;;  %v2579_v28 = vpop.f32.mrb[37].mxu0 }
 0x451   : > { %v3029_v30 = vadd.f32 %v2579_v28, %v2117_v50  ;;  %v2581_v39 = vpop.f32.mrb[38].mxu0 }
 0x452   : > { %v2600_v49 = vmax.f32 %v2598_v7, %v3028_v35  ;;  %v3030_v18 = vadd.f32 %v2581_v39, %v2113_v6  ;;  %v2583_v14 = vpop.f32.mrb[39].mxu0 }
 0x453   : > { %v2613_v23 = vmax.f32 %v2611_v4, %v3029_v30  ;;  %v3031_v29 = vadd.f32 %v2583_v14, %v2117_v50 }
 0x454   : > { %v2601_v32 = vmax.f32 %v2599_v43, %v3030_v18 }
 0x455   : > { %v2614_v38 = vmax.f32 %v2612_v48, %v3031_v29 }
 0x456   : > { %v2602_v46 = vmax.f32 %v2600_v49, %v2601_v32 }
 0x457   : > { %v2615_v60 = vmax.f32 %v2613_v23, %v2614_v38 }
 0x458   : > { %v2603_v20 = vrot.slane %v2602_v46, 4 }
 0x459   : > { %v2616_v36 = vrot.slane %v2615_v60, 4 }
 0x45a   : > { %v2604_v42 = vmax.f32 %v2602_v46, %v2603_v20 }
 0x45b   : > { %v2617_v59 = vmax.f32 %v2615_v60, %v2616_v36 }
 0x45c   : > { %v2605_v17 = vrot.slane %v2604_v42, 2 }
 0x45d   : > { %v2618_v13 = vrot.slane %v2617_v59, 2 }
 0x45e   : > { %v2606_v21 = vmax.f32 %v2604_v42, %v2605_v17 }
 0x45f   : > { %v2619_v45 = vmax.f32 %v2617_v59, %v2618_v13 }
 0x460   : > { %v2607_v41 = vrot.slane %v2606_v21, 1 }
 0x461   : > { %v2620_v44 = vrot.slane %v2619_v45, 1 }
 0x462   : > { %v2608_v47 = vmax.f32 %v2606_v21, %v2607_v41 }
 0x463   : > { %v2621_v50 = vmax.f32 %v2619_v45, %v2620_v44 }
 0x465   : > { %v2624_v37 = vcombine.low %v2608_v47, %v2621_v50 }
 0x467   : > { %v2631_v2 = vrot.slane %v2624_v37, %v2630_v52 }
 0x469   : > { %v2638_v51 = vrot.slane %v2631_v2, %v2630_v52 }
 0x46b   : > { %v2640_v3 = vmax.f32 %v2595_v54, %v2638_v51 }
 0x46d   : > { %2645 = vst.msk [vmem:[%s3870_s28] sm:$0x3] %vm3873_vm2, %v2640_v3 }
 0x46e PF: > { %s4764_s18 = sld [smem:[#allocation13_spill]]  ;;  %s4765_s25 = sld [smem:[#allocation12_spill]] }
 0x46f   : > { %s4766_s26 = smov %s4768_s16 }
 0x474   : > { %s26_s27 = sadd.s32 1, %s4764_s18  }
 0x475   : > { %p23_p8 = scmp.ge.s32.totalorder %s26_s27, 4  }
 0x477   :  { %25 = sbr.rel (!%p23_p8) target bundleno = 7 (0x7), region = 126 }
 0x47e   :  { %2665 = vsyncpa [#allocation3], 1 }
 0x47f   :  { %2667 = vsyncpa [#allocation3 + $0x1], 1 }
 0x480   :  { %2668 = vsyncpa [#allocation5], 1 }
 0x481   :  { %2669 = vsyncpa [#allocation8], 1 }

// kernel: tile.13
= control target key start
LH: loop header
LB: loop body
LE: loop exit
PB: predicated region body
PF: predicated region fallthrough
CT: control target
= control target key end

     0   :  { %s22_s0 = inlined_call_operand.vmem [shape: f32[4], index: 0, kind: input, shape index: {}]   ;;  %s23_s1 = inlined_call_operand.vmem [shape: f32[4,4], index: 1, kind: output, shape index: {}]  }
   0x1   :  { %v4_v0 = vld [vmem:[%s22_s0] ss:$0 sm:$0xff] }
   0x2   :  { %5 = vst [vmem:[%s23_s1] sm:$0xf] %v4_v0 }

// kernel: pcn_forward.7
= control target key start
LH: loop header
LB: loop body
LE: loop exit
PB: predicated region body
PF: predicated region fallthrough
CT: control target
= control target key end

     0   :  { %s5818_s17 = smov 0   ;;  %s5820_s18 = smov 0   ;;  %s8040_s0 = inlined_call_operand.vmem [shape: f32[2,256,8], index: 0, kind: input, shape index: {}]   ;;  %s8041_s1 = inlined_call_operand.vmem [shape: f32[2,1,256], index: 1, kind: input, shape index: {}]   ;;  %s8042_s2 = inlined_call_operand.vmem [shape: bf16[256,512], index: 2, kind: input, shape index: {}]   ;;  %s8043_s3 = inlined_call_operand.vmem [shape: bf16[8,512], index: 3, kind: input, shape index: {}]   ;;  %s8044_s4 = inlined_call_operand.vmem [shape: f32[1,512], index: 4, kind: input, shape index: {}]   ;;  %s8045_s5 = inlined_call_operand.vmem [shape: f32[1,512], index: 5, kind: input, shape index: {}]   ;;  %s8046_s6 = inlined_call_operand.vmem [shape: bf16[512,512], index: 6, kind: input, shape index: {}]   ;;  %s8047_s7 = inlined_call_operand.vmem [shape: f32[1,512], index: 7, kind: input, shape index: {}]   ;;  %s8048_s8 = inlined_call_operand.vmem [shape: f32[1,512], index: 8, kind: input, shape index: {}]   ;;  %s8049_s9 = inlined_call_operand.vmem [shape: bf16[512,3], index: 9, kind: input, shape index: {}]   ;;  %s8050_s10 = inlined_call_operand.vmem [shape: f32[1,3], index: 10, kind: input, shape index: {}]   ;;  %s8051_s11 = inlined_call_operand.vmem [shape: f32[2,256,3], index: 11, kind: output, shape index: {}]  }
   0x1   :  { %s5822_s19 = smov 0  }
   0x2 LB: > { %s33_s20 = sadd.s32 1, %s5751_s18  ;;  %p4725_p0 = scmp.ge.s32.totalorder %s5755_s19, 1  ;;  %s5755_s19 = sphi %s5822_s19, %s21_s19   ;;  %s5751_s18 = sphi %s5820_s18, %s8231_s18   ;;  %s5747_s17 = sphi %s5818_s17, %s8230_s17  }
   0x3   : > { %p35_p1 = scmp.ge.s32.totalorder %s33_s20, 2  ;;  %p367_p2 = scmp.lt.s32.totalorder %s5755_s19, 3 }
   0x5   : > { %s8233_s20 = smov (%p35_p1, %s33_s20), 0  ;;  %p368_p3 = pnand %p4725_p0, %p367_p2 }
   0x7   : > { %371 = sbr.rel (%p368_p3) target bundleno = 1019 (0x3fb), region = 64 }
   0xe   : > { %v5375_v0 = vld [vmem:[%s8042_s2 + $0x4] ss:$16 sps:$4 sm:$0xff]   ;;  %v5377_v1 = vld [vmem:[%s8042_s2 + $0xc] ss:$16 sps:$4 sm:$0xff]   ;;  %v5379_v2 = vld [vmem:[%s8042_s2] ss:$16 sps:$4 sm:$0xff]   ;;  %v478_v36 = vlaneseq }
   0xf   : > { %874 = vmatprep.subr.bf16.mxu0 %v5375_v0  ;;  %v5380_v3 = vld [vmem:[%s8042_s2 + $0x8] ss:$16 sps:$4 sm:$0xff]   ;;  %915 = vmatprep.subr.bf16.mxu1 %v5377_v1  ;;  %v5381_v4 = vld [vmem:[%s8042_s2 + $0x24] ss:$16 sps:$4 sm:$0xff]   ;;  %v5383_v5 = vld [vmem:[%s8042_s2 + $0x2c] ss:$16 sps:$4 sm:$0xff]  }
  0x10   : > { %875 = vmatpush1.bf16.msra.mxu0 %v5379_v2  ;;  %916 = vmatpush1.bf16.msra.mxu1 %v5380_v3  ;;  %v5385_v6 = vld [vmem:[%s8042_s2 + $0x20] ss:$16 sps:$4 sm:$0xff]   ;;  %v5386_v7 = vld [vmem:[%s8042_s2 + $0x28] ss:$16 sps:$4 sm:$0xff]   ;;  %v5387_v8 = vld [vmem:[%s8042_s2 + $0x44] ss:$16 sps:$4 sm:$0xff]  }
  0x11   : > { %876 = vmatprep.subr.bf16.mxu0 %v5381_v4  ;;  %917 = vmatprep.subr.bf16.mxu1 %v5383_v5  ;;  %v5389_v9 = vld [vmem:[%s8042_s2 + $0x4c] ss:$16 sps:$4 sm:$0xff]   ;;  %v5391_v10 = vld [vmem:[%s8042_s2 + $0x40] ss:$16 sps:$4 sm:$0xff]   ;;  %v5392_v11 = vld [vmem:[%s8042_s2 + $0x48] ss:$16 sps:$4 sm:$0xff]  }
  0x12   : > { %v5393_v12 = vld [vmem:[%s8042_s2 + $0x64] ss:$16 sps:$4 sm:$0xff]   ;;  %v5395_v13 = vld [vmem:[%s8042_s2 + $0x6c] ss:$16 sps:$4 sm:$0xff]   ;;  %v5397_v14 = vld [vmem:[%s8042_s2 + $0x60] ss:$16 sps:$4 sm:$0xff]  }
  0x13   : > { %v5398_v15 = vld [vmem:[%s8042_s2 + $0x68] ss:$16 sps:$4 sm:$0xff]   ;;  %v5399_v16 = vld [vmem:[%s8042_s2 + $0x84] ss:$16 sps:$4 sm:$0xff]   ;;  %v5401_v17 = vld [vmem:[%s8042_s2 + $0x8c] ss:$16 sps:$4 sm:$0xff]  }
  0x14   : > { %877 = vmatpush1.bf16.msra.mxu0 %v5385_v6  ;;  %918 = vmatpush1.bf16.msra.mxu1 %v5386_v7  ;;  %v5403_v18 = vld [vmem:[%s8042_s2 + $0x80] ss:$16 sps:$4 sm:$0xff]   ;;  %v5404_v19 = vld [vmem:[%s8042_s2 + $0x88] ss:$16 sps:$4 sm:$0xff]   ;;  %v5405_v20 = vld [vmem:[%s8042_s2 + $0xa4] ss:$16 sps:$4 sm:$0xff]  }
  0x15   : > { %878 = vmatprep.subr.bf16.mxu0 %v5387_v8  ;;  %919 = vmatprep.subr.bf16.mxu1 %v5389_v9  ;;  %v5407_v21 = vld [vmem:[%s8042_s2 + $0xac] ss:$16 sps:$4 sm:$0xff]   ;;  %v5409_v22 = vld [vmem:[%s8042_s2 + $0xa0] ss:$16 sps:$4 sm:$0xff]   ;;  %v5410_v23 = vld [vmem:[%s8042_s2 + $0xa8] ss:$16 sps:$4 sm:$0xff]  }
  0x16   : > { %v5411_v24 = vld [vmem:[%s8042_s2 + $0xc4] ss:$16 sps:$4 sm:$0xff]   ;;  %v5413_v25 = vld [vmem:[%s8042_s2 + $0xcc] ss:$16 sps:$4 sm:$0xff]   ;;  %v5415_v26 = vld [vmem:[%s8042_s2 + $0xc0] ss:$16 sps:$4 sm:$0xff]  }
  0x17   : > { %v5416_v27 = vld [vmem:[%s8042_s2 + $0xc8] ss:$16 sps:$4 sm:$0xff]   ;;  %v5417_v28 = vld [vmem:[%s8042_s2 + $0xe4] ss:$16 sps:$4 sm:$0xff]   ;;  %v5419_v29 = vld [vmem:[%s8042_s2 + $0xec] ss:$16 sps:$4 sm:$0xff]  }
  0x18   : > { %879 = vmatpush1.bf16.msra.mxu0 %v5391_v10  ;;  %920 = vmatpush1.bf16.msra.mxu1 %v5392_v11  ;;  %v5421_v30 = vld [vmem:[%s8042_s2 + $0xe0] ss:$16 sps:$4 sm:$0xff]   ;;  %v5422_v31 = vld [vmem:[%s8042_s2 + $0xe8] ss:$16 sps:$4 sm:$0xff]   ;;  %v5423_v32 = vld [vmem:[%s8042_s2 + $0x104] ss:$16 sps:$4 sm:$0xff]  }
  0x19   : > { %880 = vmatprep.subr.bf16.mxu0 %v5393_v12  ;;  %921 = vmatprep.subr.bf16.mxu1 %v5395_v13  ;;  %p420_p4 = scmp.lt.s32.totalorder %s5747_s17, 1  ;;  %v5425_v33 = vld [vmem:[%s8042_s2 + $0x10c] ss:$16 sps:$4 sm:$0xff]   ;;  %v5427_v34 = vld [vmem:[%s8042_s2 + $0x100] ss:$16 sps:$4 sm:$0xff]   ;;  %v479_v40 = vshrl.u32 %v478_v36, 7 }
  0x1a   : > { %v5428_v35 = vld [vmem:[%s8042_s2 + $0x108] ss:$16 sps:$4 sm:$0xff]   ;;  %v5429_v37 = vld [vmem:[%s8042_s2 + $0x124] ss:$16 sps:$4 sm:$0xff]   ;;  %v5431_v38 = vld [vmem:[%s8042_s2 + $0x12c] ss:$16 sps:$4 sm:$0xff]  }
  0x1b   : > { %s8235_s17 = smov (!%p420_p4, %s5747_s17), 1  ;;  %v5433_v39 = vld [vmem:[%s8042_s2 + $0x120] ss:$16 sps:$4 sm:$0xff]   ;;  %v5434_v41 = vld [vmem:[%s8042_s2 + $0x128] ss:$16 sps:$4 sm:$0xff]   ;;  %v5978_v46 = vsub.s32 1, %v479_v40 }
  0x1c   : > { %881 = vmatpush1.bf16.msra.mxu0 %v5397_v14  ;;  %922 = vmatpush1.bf16.msra.mxu1 %v5398_v15  ;;  %v5435_v42 = vld [vmem:[%s8042_s2 + $0x144] ss:$16 sps:$4 sm:$0xff]   ;;  %s4728_s28 = sshll.u32 %s8235_s17, 1  ;;  %v5437_v43 = vld [vmem:[%s8042_s2 + $0x14c] ss:$16 sps:$4 sm:$0xff]   ;;  %v5983_v48 = vsub.s32 2, %v479_v40 }
  0x1d   : > { %882 = vmatprep.subr.bf16.mxu0 %v5399_v16  ;;  %923 = vmatprep.subr.bf16.mxu1 %v5401_v17  ;;  %v5439_v44 = vld [vmem:[%s8042_s2 + $0x140] ss:$16 sps:$4 sm:$0xff]   ;;  %v5440_v45 = vld [vmem:[%s8042_s2 + $0x148] ss:$16 sps:$4 sm:$0xff]   ;;  %s432_s22 = scalar_lea.vmem %s8041_s1, %s4728_s28  ;;  %8095 = vst [vmem:[#allocation2_spill] sm:$0xff] %v5978_v46  ;;  %v5988_v50 = vsub.s32 3, %v479_v40 }
  0x1e   : > { %v5441_v47 = vld [vmem:[%s8042_s2 + $0x164] ss:$16 sps:$4 sm:$0xff]   ;;  %8096 = vst [vmem:[#allocation3_spill] sm:$0xff] %v5983_v48  ;;  %v5443_v49 = vld [vmem:[%s8042_s2 + $0x16c] ss:$16 sps:$4 sm:$0xff]   ;;  %v6052_v9 = vsub.s32 0, %v479_v40 }
  0x1f   : > { %8097 = vst [vmem:[#allocation4_spill] sm:$0xff] %v5988_v50  ;;  %v476_v51 = vld [vmem:[%s432_s22] sm:$0x3]  ;;  %v5446_v55 = vld [vmem:[%s8042_s2 + $0x168] ss:$16 sps:$4 sm:$0xff]   ;;  %s4996_s26 = sshll.u32 %s8235_s17, 8 }
  0x20   : > { %883 = vmatpush1.bf16.msra.mxu0 %v5403_v18  ;;  %924 = vmatpush1.bf16.msra.mxu1 %v5404_v19  ;;  %v485_v52 = vrot.slane %v476_v51, %v5978_v46  ;;  %v1448_v53 = vld [vmem:[%s8044_s4] sm:$0xf]  ;;  %v5447_v57 = vld [vmem:[%s8042_s2 + $0x184] ss:$16 sps:$4 sm:$0xff]   ;;  %v5449_v58 = vld [vmem:[%s8042_s2 + $0x18c] ss:$16 sps:$4 sm:$0xff]   ;;  %v481_v16 = vrot.slane %v476_v51, %v6052_v9  ;;  %s6088_s14 = scalar_lea.vmem %s8040_s0, %s4996_s26  ;;  %s7903_s22 = scalar_lea.vmem %s8051_s11, %s4996_s26 }
  0x21   : > { %884 = vmatprep.subr.bf16.mxu0 %v5405_v20  ;;  %925 = vmatprep.subr.bf16.mxu1 %v5407_v21  ;;  %v5445_v54 = vld [vmem:[%s8042_s2 + $0x160] ss:$16 sps:$4 sm:$0xff]   ;;  %v6001_v56 = vrot.slane %v1448_v53, %v5983_v48  ;;  %v6010_v60 = vrot.slane %v1448_v53, %v5988_v50  ;;  %v5452_v1 = vld [vmem:[%s8042_s2 + $0x188] ss:$16 sps:$4 sm:$0xff]   ;;  %v5453_v2 = vld [vmem:[%s8042_s2 + $0x1a4] ss:$16 sps:$4 sm:$0xff]  }
  0x22   : > { %v489_v59 = vpack.c.bf16 %v485_v52, %v485_v52  ;;  %v6015_v61 = vld [vmem:[%s8045_s5] sm:$0xf]  ;;  %v5455_v3 = vld [vmem:[%s8042_s2 + $0x1ac] ss:$16 sps:$4 sm:$0xff]   ;;  %v5458_v5 = vld [vmem:[%s8042_s2 + $0x1a8] ss:$16 sps:$4 sm:$0xff]  }
  0x23   : > { %v6019_v62 = vrot.slane %v6015_v61, %v5983_v48  ;;  %v6023_v63 = vrot.slane %v6015_v61, %v5988_v50  ;;  %v5451_v0 = vld [vmem:[%s8042_s2 + $0x180] ss:$16 sps:$4 sm:$0xff]   ;;  %v5459_v6 = vld [vmem:[%s8042_s2 + $0x1c4] ss:$16 sps:$4 sm:$0xff]   ;;  %v5461_v7 = vld [vmem:[%s8042_s2 + $0x1cc] ss:$16 sps:$4 sm:$0xff]  }
  0x24   : > { %885 = vmatpush1.bf16.msra.mxu0 %v5409_v22  ;;  %926 = vmatpush1.bf16.msra.mxu1 %v5410_v23  ;;  %v5457_v4 = vld [vmem:[%s8042_s2 + $0x1a0] ss:$16 sps:$4 sm:$0xff]   ;;  %8098 = vst [vmem:[#allocation5_spill] sm:$0xff] %v6052_v9  ;;  %v5464_v10 = vld [vmem:[%s8042_s2 + $0x1c8] ss:$16 sps:$4 sm:$0xff]   ;;  %vm1049_vm0 = vcmask 1043456   ;;  %v488_v22 = vpack.c.bf16 %v481_v16, %v481_v16 }
  0x25   : > { %886 = vmatprep.subr.bf16.mxu0 %v5411_v24  ;;  %927 = vmatprep.subr.bf16.mxu1 %v5413_v25  ;;  %v5463_v8 = vld [vmem:[%s8042_s2 + $0x1c0] ss:$16 sps:$4 sm:$0xff]   ;;  %v5465_v11 = vld [vmem:[%s8042_s2 + $0x1e4] ss:$16 sps:$4 sm:$0xff]   ;;  %v5467_v12 = vld [vmem:[%s8042_s2 + $0x1ec] ss:$16 sps:$4 sm:$0xff]  }
  0x26   : > { %906 = vmatprep.mubr.bf16.mxu0 %v489_v59  ;;  %947 = vmatprep.mubr.bf16.mxu1 %v489_v59  ;;  %v972_v13 = vld [vmem:[%s8043_s3] sm:$0xff]  ;;  %v973_v14 = vld [vmem:[%s8043_s3 + $0x8] sm:$0xff]  ;;  %vm1000_vm1 = vcmask 64512   ;;  %v447_v36 = vld [vmem:[%s6088_s14 + $0x18] sm:$0xff]  ;;  %vm4589_vm2 = vcmask 23552  }
  0x27   : > { %v5469_v15 = vld [vmem:[%s8042_s2 + $0x1e0] ss:$16 sps:$4 sm:$0xff]   ;;  %v5470_v17 = vld [vmem:[%s8042_s2 + $0x1e8] ss:$16 sps:$4 sm:$0xff]   ;;  %v4796_v18 = vcombine.high %v972_v13, %v972_v13  ;;  %v4795_v19 = vcombine.low %v972_v13, %v972_v13  ;;  %v4798_v20 = vcombine.high %v973_v14, %v973_v14  ;;  %v4797_v21 = vcombine.low %v973_v14, %v973_v14  ;;  %v5477_v23 = vld [vmem:[%s8046_s6 + $0x4] ss:$16 sps:$4 sm:$0xff]  }
  0x28   : > { %887 = vmatpush1.bf16.msra.mxu0 %v5415_v26  ;;  %928 = vmatpush1.bf16.msra.mxu1 %v5416_v27  ;;  %v5480_v24 = vld [vmem:[%s8046_s6 + $0xc] ss:$16 sps:$4 sm:$0xff]   ;;  %v444_v27 = vld [vmem:[%s6088_s14] sm:$0xff]  ;;  %v5496_v52 = vld [vmem:[%s8046_s6 + $0x68] ss:$16 sps:$4 sm:$0xff]  }
  0x29   : > { %888 = vmatprep.subr.bf16.mxu0 %v5417_v28  ;;  %929 = vmatprep.subr.bf16.mxu1 %v5419_v29  ;;  %v1051_v25 = vsel %vm1049_vm0, %v4795_v19, 0  ;;  %v1057_v26 = vsel %vm1049_vm0, %v4797_v21, 0  ;;  %v445_v28 = vld [vmem:[%s6088_s14 + $0x8] sm:$0xff]  ;;  %v5757_v29 = vmov 0   ;;  %v5493_v51 = vld [vmem:[%s8046_s6 + $0x60] ss:$16 sps:$4 sm:$0xff]  }
  0x2a   : > { %v5492_v40 = vld [vmem:[%s8046_s6 + $0x4c] ss:$16 sps:$4 sm:$0xff]   ;;  %v5501_v53 = vld [vmem:[%s8046_s6 + $0x84] ss:$16 sps:$4 sm:$0xff]   ;;  %v5520_v16 = vld [vmem:[%s8046_s6 + $0xe8] ss:$16 sps:$4 sm:$0xff]  }
  0x2b   : > { %v5507_v59 = vld [vmem:[%s8046_s6 + $0xa4] ss:$16 sps:$4 sm:$0xff]   ;;  %v453_v14 = vld [vmem:[%s6088_s14 + $0x48] sm:$0xff] }
  0x2c   : > { %889 = vmatpush1.bf16.msra.mxu0 %v5421_v30  ;;  %930 = vmatpush1.bf16.msra.mxu1 %v5422_v31  ;;  %v956_v30 = vpack.c.bf16 %v445_v28, %v444_v27  ;;  %v5475_v31 = vld [vmem:[%s8046_s6] ss:$16 sps:$4 sm:$0xff]   ;;  %v5526_v21 = vld [vmem:[%s8046_s6 + $0x108] ss:$16 sps:$4 sm:$0xff]   ;;  %v5537_v28 = vld [vmem:[%s8046_s6 + $0x144] ss:$16 sps:$4 sm:$0xff]  }
  0x2d   : > { %890 = vmatprep.subr.bf16.mxu0 %v5423_v32  ;;  %931 = vmatprep.subr.bf16.mxu1 %v5425_v33  ;;  %v5478_v32 = vld [vmem:[%s8046_s6 + $0x8] ss:$16 sps:$4 sm:$0xff]   ;;  %v5483_v33 = vld [vmem:[%s8046_s6 + $0x24] ss:$16 sps:$4 sm:$0xff]  }
  0x2e   : > { %v452_v13 = vld [vmem:[%s6088_s14 + $0x40] sm:$0xff]  ;;  %v5532_v27 = vld [vmem:[%s8046_s6 + $0x128] ss:$16 sps:$4 sm:$0xff]  }
  0x2f   : > { %v960_v19 = vpack.c.bf16 %v453_v14, %v452_v13  ;;  %v469_v13 = vld [vmem:[%s6088_s14 + $0xc8] sm:$0xff] }
  0x30   : > { %891 = vmatpush1.bf16.msra.mxu0 %v5427_v34  ;;  %932 = vmatpush1.bf16.msra.mxu1 %v5428_v35  ;;  %v5486_v34 = vld [vmem:[%s8046_s6 + $0x2c] ss:$16 sps:$4 sm:$0xff]   ;;  %v446_v35 = vld [vmem:[%s6088_s14 + $0x10] sm:$0xff]  ;;  %v5562_v14 = vld [vmem:[%s8046_s6 + $0x1c8] ss:$16 sps:$4 sm:$0xff]  }
  0x31   : > { %892 = vmatprep.subr.bf16.mxu0 %v5429_v37  ;;  %933 = vmatprep.subr.bf16.mxu1 %v5431_v38  ;;  %v5481_v37 = vld [vmem:[%s8046_s6 + $0x20] ss:$16 sps:$4 sm:$0xff]   ;;  %v5484_v38 = vld [vmem:[%s8046_s6 + $0x28] ss:$16 sps:$4 sm:$0xff]  }
  0x34   : > { %893 = vmatpush1.bf16.msra.mxu0 %v5433_v39  ;;  %934 = vmatpush1.bf16.msra.mxu1 %v5434_v41  ;;  %v5489_v39 = vld [vmem:[%s8046_s6 + $0x44] ss:$16 sps:$4 sm:$0xff]   ;;  %v957_v41 = vpack.c.bf16 %v447_v36, %v446_v35  ;;  %v5546_v35 = vld [vmem:[%s8046_s6 + $0x16c] ss:$16 sps:$4 sm:$0xff]  }
  0x35   : > { %894 = vmatprep.subr.bf16.mxu0 %v5435_v42  ;;  %935 = vmatprep.subr.bf16.mxu1 %v5437_v43  ;;  %v5487_v42 = vld [vmem:[%s8046_s6 + $0x40] ss:$16 sps:$4 sm:$0xff]   ;;  %v5490_v43 = vld [vmem:[%s8046_s6 + $0x48] ss:$16 sps:$4 sm:$0xff]  }
  0x36   : > { %v456_v36 = vld [vmem:[%s6088_s14 + $0x60] sm:$0xff] }
  0x38   : > { %895 = vmatpush1.bf16.msra.mxu0 %v5439_v44  ;;  %936 = vmatpush1.bf16.msra.mxu1 %v5440_v45  ;;  %v5495_v44 = vld [vmem:[%s8046_s6 + $0x64] ss:$16 sps:$4 sm:$0xff]   ;;  %v5498_v45 = vld [vmem:[%s8046_s6 + $0x6c] ss:$16 sps:$4 sm:$0xff]  }
  0x39   : > { %896 = vmatprep.subr.bf16.mxu0 %v5441_v47  ;;  %937 = vmatprep.subr.bf16.mxu1 %v5443_v49  ;;  %v448_v47 = vld [vmem:[%s6088_s14 + $0x20] sm:$0xff]  ;;  %v449_v49 = vld [vmem:[%s6088_s14 + $0x28] sm:$0xff] }
  0x3c   : > { %897 = vmatpush1.bf16.msra.mxu0 %v5445_v54  ;;  %938 = vmatpush1.bf16.msra.mxu1 %v5446_v55  ;;  %v5504_v54 = vld [vmem:[%s8046_s6 + $0x8c] ss:$16 sps:$4 sm:$0xff]   ;;  %v958_v55 = vpack.c.bf16 %v449_v49, %v448_v47  ;;  %v458_v47 = vld [vmem:[%s6088_s14 + $0x70] sm:$0xff] }
  0x3d   : > { %898 = vmatprep.subr.bf16.mxu0 %v5447_v57  ;;  %939 = vmatprep.subr.bf16.mxu1 %v5449_v58  ;;  %v5499_v57 = vld [vmem:[%s8046_s6 + $0x80] ss:$16 sps:$4 sm:$0xff]   ;;  %v5502_v58 = vld [vmem:[%s8046_s6 + $0x88] ss:$16 sps:$4 sm:$0xff]  }
  0x3e   : > { %v459_v49 = vld [vmem:[%s6088_s14 + $0x78] sm:$0xff] }
  0x40   : > { %899 = vmatpush1.bf16.msra.mxu0 %v5451_v0  ;;  %940 = vmatpush1.bf16.msra.mxu1 %v5452_v1  ;;  %v450_v0 = vld [vmem:[%s6088_s14 + $0x30] sm:$0xff]  ;;  %v451_v1 = vld [vmem:[%s6088_s14 + $0x38] sm:$0xff] }
  0x41   : > { %900 = vmatprep.subr.bf16.mxu0 %v5453_v2  ;;  %941 = vmatprep.subr.bf16.mxu1 %v5455_v3  ;;  %v5510_v2 = vld [vmem:[%s8046_s6 + $0xac] ss:$16 sps:$4 sm:$0xff]   ;;  %v5505_v3 = vld [vmem:[%s8046_s6 + $0xa0] ss:$16 sps:$4 sm:$0xff]  }
  0x44   : > { %901 = vmatpush1.bf16.msra.mxu0 %v5457_v4  ;;  %942 = vmatpush1.bf16.msra.mxu1 %v5458_v5  ;;  %v5508_v4 = vld [vmem:[%s8046_s6 + $0xa8] ss:$16 sps:$4 sm:$0xff]   ;;  %v5513_v5 = vld [vmem:[%s8046_s6 + $0xc4] ss:$16 sps:$4 sm:$0xff]  }
  0x45   : > { %902 = vmatprep.subr.bf16.mxu0 %v5459_v6  ;;  %943 = vmatprep.subr.bf16.mxu1 %v5461_v7  ;;  %v5516_v6 = vld [vmem:[%s8046_s6 + $0xcc] ss:$16 sps:$4 sm:$0xff]   ;;  %v959_v7 = vpack.c.bf16 %v451_v1, %v450_v0  ;;  %v464_v0 = vld [vmem:[%s6088_s14 + $0xa0] sm:$0xff] }
  0x46   : > { %v465_v1 = vld [vmem:[%s6088_s14 + $0xa8] sm:$0xff] }
  0x48   : > { %903 = vmatpush1.bf16.msra.mxu0 %v5463_v8  ;;  %944 = vmatpush1.bf16.msra.mxu1 %v5464_v10  ;;  %v5511_v8 = vld [vmem:[%s8046_s6 + $0xc0] ss:$16 sps:$4 sm:$0xff]   ;;  %v5514_v10 = vld [vmem:[%s8046_s6 + $0xc8] ss:$16 sps:$4 sm:$0xff]  }
  0x49   : > { %904 = vmatprep.subr.bf16.mxu0 %v5465_v11  ;;  %945 = vmatprep.subr.bf16.mxu1 %v5467_v12  ;;  %v5519_v11 = vld [vmem:[%s8046_s6 + $0xe4] ss:$16 sps:$4 sm:$0xff]   ;;  %v5522_v12 = vld [vmem:[%s8046_s6 + $0xec] ss:$16 sps:$4 sm:$0xff]  }
  0x4c   : > { %905 = vmatpush1.bf16.msra.mxu0 %v5469_v15  ;;  %946 = vmatpush1.bf16.msra.mxu1 %v5470_v17  ;;  %v5517_v15 = vld [vmem:[%s8046_s6 + $0xe0] ss:$16 sps:$4 sm:$0xff]   ;;  %v5525_v17 = vld [vmem:[%s8046_s6 + $0x104] ss:$16 sps:$4 sm:$0xff]  }
  0x4d   : > { %4799 = vmatprep.subr.msk.bf16.mxu0 %vm1049_vm0, %v4796_v18  ;;  %4816 = vmatprep.subr.msk.bf16.mxu1 %vm1049_vm0, %v4798_v20  ;;  %v5528_v18 = vld [vmem:[%s8046_s6 + $0x10c] ss:$16 sps:$4 sm:$0xff]   ;;  %v5523_v20 = vld [vmem:[%s8046_s6 + $0x100] ss:$16 sps:$4 sm:$0xff]  }
  0x4f   : > { %907 = vmatmul.mubr.bf16.vlgmr.msra.gmra.mrb[0].mxu0 %v488_v22  ;;  %948 = vmatmul.mubr.bf16.vlgmr.msra.gmra.mrb[0].mxu1 %v488_v22  ;;  %v5531_v22 = vld [vmem:[%s8046_s6 + $0x124] ss:$16 sps:$4 sm:$0xff]  }
  0x50   : > { %1063 = vmatpush1.bf16.msra.mxu0 %v1051_v25  ;;  %1256 = vmatpush1.bf16.msra.mxu1 %v1057_v26  ;;  %v455_v25 = vld [vmem:[%s6088_s14 + $0x58] sm:$0xff]  ;;  %v5529_v26 = vld [vmem:[%s8046_s6 + $0x120] ss:$16 sps:$4 sm:$0xff]  }
  0x51   : > { %1094 = vmatprep.mubr.bf16.mxu0 %v5757_v29  ;;  %1287 = vmatprep.mubr.bf16.mxu1 %v5757_v29 }
  0x52   : > { %2708 = vmatprep.subr.bf16.mxu0 %v5477_v23  ;;  %3094 = vmatprep.subr.bf16.mxu1 %v5480_v24  ;;  %v5534_v23 = vld [vmem:[%s8046_s6 + $0x12c] ss:$16 sps:$4 sm:$0xff]   ;;  %v454_v24 = vld [vmem:[%s6088_s14 + $0x50] sm:$0xff] }
  0x57   : > { %4800 = vmatmul.mubr.msk.bf16.vlgmr.msra.gmra.mrb[4].mxu0 %vm1000_vm1, %v956_v30  ;;  %4817 = vmatmul.mubr.msk.bf16.vlgmr.msra.gmra.mrb[4].mxu1 %vm1000_vm1, %v956_v30  ;;  %v5540_v30 = vld [vmem:[%s8046_s6 + $0x14c] ss:$16 sps:$4 sm:$0xff]  }
  0x58   : > { %1104 = vmatprep.mubr.bf16.mxu0 %v5757_v29  ;;  %1297 = vmatprep.mubr.bf16.mxu1 %v5757_v29 }
  0x59   : > { %2709 = vmatpush1.bf16.msra.mxu0 %v5475_v31  ;;  %3095 = vmatpush1.bf16.msra.mxu1 %v5478_v32  ;;  %v961_v31 = vpack.c.bf16 %v455_v25, %v454_v24  ;;  %v5535_v32 = vld [vmem:[%s8046_s6 + $0x140] ss:$16 sps:$4 sm:$0xff]   ;;  %v473_v25 = vld [vmem:[%s6088_s14 + $0xe8] sm:$0xff] }
  0x5a   : > { %2710 = vmatprep.subr.bf16.mxu0 %v5483_v33  ;;  %3096 = vmatprep.subr.bf16.mxu1 %v5486_v34  ;;  %v5538_v33 = vld [vmem:[%s8046_s6 + $0x148] ss:$16 sps:$4 sm:$0xff]   ;;  %v5543_v34 = vld [vmem:[%s8046_s6 + $0x164] ss:$16 sps:$4 sm:$0xff]  }
  0x5b   : > { %v472_v24 = vld [vmem:[%s6088_s14 + $0xe0] sm:$0xff] }
  0x5d   : > { %2711 = vmatpush1.bf16.msra.mxu0 %v5481_v37  ;;  %3097 = vmatpush1.bf16.msra.mxu1 %v5484_v38  ;;  %v457_v37 = vld [vmem:[%s6088_s14 + $0x68] sm:$0xff]  ;;  %v5541_v38 = vld [vmem:[%s8046_s6 + $0x160] ss:$16 sps:$4 sm:$0xff]  }
  0x5e   : > { %2712 = vmatprep.subr.bf16.mxu0 %v5489_v39  ;;  %3098 = vmatprep.subr.bf16.mxu1 %v5492_v40  ;;  %v5544_v39 = vld [vmem:[%s8046_s6 + $0x168] ss:$16 sps:$4 sm:$0xff]   ;;  %v5549_v40 = vld [vmem:[%s8046_s6 + $0x184] ss:$16 sps:$4 sm:$0xff]  }
  0x5f   : > { %4801 = vmatmul.mubr.msk.bf16.gmra.mrb[8].mxu0 %vm1000_vm1, %v957_v41  ;;  %4818 = vmatmul.mubr.msk.bf16.gmra.mrb[8].mxu1 %vm1000_vm1, %v957_v41  ;;  %v5552_v41 = vld [vmem:[%s8046_s6 + $0x18c] ss:$16 sps:$4 sm:$0xff]  }
  0x60   : > { %1114 = vmatprep.mubr.bf16.mxu0 %v5757_v29  ;;  %1307 = vmatprep.mubr.bf16.mxu1 %v5757_v29 }
  0x61   : > { %2713 = vmatpush1.bf16.msra.mxu0 %v5487_v42  ;;  %3099 = vmatpush1.bf16.msra.mxu1 %v5490_v43  ;;  %v962_v42 = vpack.c.bf16 %v457_v37, %v456_v36  ;;  %v5547_v43 = vld [vmem:[%s8046_s6 + $0x180] ss:$16 sps:$4 sm:$0xff]  }
  0x62   : > { %2714 = vmatprep.subr.bf16.mxu0 %v5495_v44  ;;  %3100 = vmatprep.subr.bf16.mxu1 %v5498_v45  ;;  %v5550_v44 = vld [vmem:[%s8046_s6 + $0x188] ss:$16 sps:$4 sm:$0xff]   ;;  %v5555_v45 = vld [vmem:[%s8046_s6 + $0x1a4] ss:$16 sps:$4 sm:$0xff]  }
  0x65   : > { %2715 = vmatpush1.bf16.msra.mxu0 %v5493_v51  ;;  %3101 = vmatpush1.bf16.msra.mxu1 %v5496_v52  ;;  %v5553_v51 = vld [vmem:[%s8046_s6 + $0x1a0] ss:$16 sps:$4 sm:$0xff]   ;;  %v963_v52 = vpack.c.bf16 %v459_v49, %v458_v47 }
  0x66   : > { %2716 = vmatprep.subr.bf16.mxu0 %v5501_v53  ;;  %3102 = vmatprep.subr.bf16.mxu1 %v5504_v54  ;;  %v460_v53 = vld [vmem:[%s6088_s14 + $0x80] sm:$0xff]  ;;  %v461_v54 = vld [vmem:[%s6088_s14 + $0x88] sm:$0xff] }
  0x67   : > { %4802 = vmatmul.mubr.msk.bf16.gmra.mrb[12].mxu0 %vm1000_vm1, %v958_v55  ;;  %4819 = vmatmul.mubr.msk.bf16.gmra.mrb[12].mxu1 %vm1000_vm1, %v958_v55  ;;  %v964_v55 = vpack.c.bf16 %v461_v54, %v460_v53 }
  0x68   : > { %1124 = vmatprep.mubr.bf16.mxu0 %v5757_v29  ;;  %1317 = vmatprep.mubr.bf16.mxu1 %v5757_v29 }
  0x69   : > { %2717 = vmatpush1.bf16.msra.mxu0 %v5499_v57  ;;  %3103 = vmatpush1.bf16.msra.mxu1 %v5502_v58  ;;  %v462_v57 = vld [vmem:[%s6088_s14 + $0x90] sm:$0xff]  ;;  %v463_v58 = vld [vmem:[%s6088_s14 + $0x98] sm:$0xff] }
  0x6a   : > { %2718 = vmatprep.subr.bf16.mxu0 %v5507_v59  ;;  %3104 = vmatprep.subr.bf16.mxu1 %v5510_v2  ;;  %v965_v59 = vpack.c.bf16 %v463_v58, %v462_v57  ;;  %v966_v2 = vpack.c.bf16 %v465_v1, %v464_v0  ;;  %v5700_v57 = vld [vmem:[%s8045_s5] sm:$0xf] }
  0x6b   : > { %v6409_v58 = vrot.slane %v5700_v57, %v5978_v46 }
  0x6d   : > { %2719 = vmatpush1.bf16.msra.mxu0 %v5505_v3  ;;  %3105 = vmatpush1.bf16.msra.mxu1 %v5508_v4  ;;  %v5558_v3 = vld [vmem:[%s8046_s6 + $0x1ac] ss:$16 sps:$4 sm:$0xff]   ;;  %v5556_v4 = vld [vmem:[%s8046_s6 + $0x1a8] ss:$16 sps:$4 sm:$0xff]  }
  0x6e   : > { %2720 = vmatprep.subr.bf16.mxu0 %v5513_v5  ;;  %3106 = vmatprep.subr.bf16.mxu1 %v5516_v6  ;;  %v5561_v5 = vld [vmem:[%s8046_s6 + $0x1c4] ss:$16 sps:$4 sm:$0xff]   ;;  %v5559_v6 = vld [vmem:[%s8046_s6 + $0x1c0] ss:$16 sps:$4 sm:$0xff]  }
  0x6f   : > { %4803 = vmatmul.mubr.msk.bf16.gmra.mrb[16].mxu0 %vm1000_vm1, %v959_v7  ;;  %4820 = vmatmul.mubr.msk.bf16.gmra.mrb[16].mxu1 %vm1000_vm1, %v959_v7  ;;  %v466_v7 = vld [vmem:[%s6088_s14 + $0xb0] sm:$0xff] }
  0x70   : > { %1134 = vmatprep.mubr.bf16.mxu0 %v5757_v29  ;;  %1327 = vmatprep.mubr.bf16.mxu1 %v5757_v29 }
  0x71   : > { %2721 = vmatpush1.bf16.msra.mxu0 %v5511_v8  ;;  %3107 = vmatpush1.bf16.msra.mxu1 %v5514_v10  ;;  %v467_v8 = vld [vmem:[%s6088_s14 + $0xb8] sm:$0xff] }
  0x72   : > { %2722 = vmatprep.subr.bf16.mxu0 %v5519_v11  ;;  %3108 = vmatprep.subr.bf16.mxu1 %v5522_v12  ;;  %v967_v10 = vpack.c.bf16 %v467_v8, %v466_v7  ;;  %v5564_v11 = vld [vmem:[%s8046_s6 + $0x1cc] ss:$16 sps:$4 sm:$0xff]   ;;  %v468_v12 = vld [vmem:[%s6088_s14 + $0xc0] sm:$0xff] }
  0x75   : > { %2723 = vmatpush1.bf16.msra.mxu0 %v5517_v15  ;;  %3109 = vmatpush1.bf16.msra.mxu1 %v5520_v16  ;;  %v968_v15 = vpack.c.bf16 %v469_v13, %v468_v12  ;;  %v5567_v16 = vld [vmem:[%s8046_s6 + $0x1e4] ss:$16 sps:$4 sm:$0xff]  }
  0x76   : > { %2724 = vmatprep.subr.bf16.mxu0 %v5525_v17  ;;  %3110 = vmatprep.subr.bf16.mxu1 %v5528_v18  ;;  %v5570_v17 = vld [vmem:[%s8046_s6 + $0x1ec] ss:$16 sps:$4 sm:$0xff]   ;;  %v5565_v18 = vld [vmem:[%s8046_s6 + $0x1e0] ss:$16 sps:$4 sm:$0xff]  }
  0x77   : > { %4804 = vmatmul.mubr.msk.bf16.gmra.mrb[20].mxu0 %vm1000_vm1, %v960_v19  ;;  %4821 = vmatmul.mubr.msk.bf16.gmra.mrb[20].mxu1 %vm1000_vm1, %v960_v19  ;;  %v5568_v19 = vld [vmem:[%s8046_s6 + $0x1e8] ss:$16 sps:$4 sm:$0xff]  }
  0x78   : > { %1144 = vmatprep.mubr.bf16.mxu0 %v5757_v29  ;;  %1337 = vmatprep.mubr.bf16.mxu1 %v5757_v29 }
  0x79   : > { %2725 = vmatpush1.bf16.msra.mxu0 %v5523_v20  ;;  %3111 = vmatpush1.bf16.msra.mxu1 %v5526_v21  ;;  %v470_v20 = vld [vmem:[%s6088_s14 + $0xd0] sm:$0xff]  ;;  %v471_v21 = vld [vmem:[%s6088_s14 + $0xd8] sm:$0xff] }
  0x7a   : > { %2726 = vmatprep.subr.bf16.mxu0 %v5531_v22  ;;  %3112 = vmatprep.subr.bf16.mxu1 %v5534_v23  ;;  %v969_v22 = vpack.c.bf16 %v471_v21, %v470_v20  ;;  %v5573_v23 = vld [vmem:[%s8046_s6 + $0x204] ss:$16 sps:$4 sm:$0xff]  }
  0x7d   : > { %2727 = vmatpush1.bf16.msra.mxu0 %v5529_v26  ;;  %3113 = vmatpush1.bf16.msra.mxu1 %v5532_v27  ;;  %v5576_v26 = vld [vmem:[%s8046_s6 + $0x20c] ss:$16 sps:$4 sm:$0xff]   ;;  %v970_v27 = vpack.c.bf16 %v473_v25, %v472_v24 }
  0x7e   : > { %2728 = vmatprep.subr.bf16.mxu0 %v5537_v28  ;;  %3114 = vmatprep.subr.bf16.mxu1 %v5540_v30  ;;  %v474_v28 = vld [vmem:[%s6088_s14 + $0xf0] sm:$0xff]  ;;  %v475_v30 = vld [vmem:[%s6088_s14 + $0xf8] sm:$0xff] }
  0x7f   : > { %4805 = vmatmul.mubr.msk.bf16.gmra.mrb[24].mxu0 %vm1000_vm1, %v961_v31  ;;  %4822 = vmatmul.mubr.msk.bf16.gmra.mrb[24].mxu1 %vm1000_vm1, %v961_v31  ;;  %v971_v31 = vpack.c.bf16 %v475_v30, %v474_v28 }
  0x80   : > { %1154 = vmatprep.mubr.bf16.mxu0 %v5757_v29  ;;  %1347 = vmatprep.mubr.bf16.mxu1 %v5757_v29 }
  0x81   : > { %2729 = vmatpush1.bf16.msra.mxu0 %v5535_v32  ;;  %3115 = vmatpush1.bf16.msra.mxu1 %v5538_v33 }
  0x82   : > { %2730 = vmatprep.subr.bf16.mxu0 %v5543_v34  ;;  %3116 = vmatprep.subr.bf16.mxu1 %v5546_v35 }
  0x85   : > { %2731 = vmatpush1.bf16.msra.mxu0 %v5541_v38  ;;  %3117 = vmatpush1.bf16.msra.mxu1 %v5544_v39 }
  0x86   : > { %2732 = vmatprep.subr.bf16.mxu0 %v5549_v40  ;;  %3118 = vmatprep.subr.bf16.mxu1 %v5552_v41 }
  0x87   : > { %4806 = vmatmul.mubr.msk.bf16.gmra.mrb[28].mxu0 %vm1000_vm1, %v962_v42  ;;  %4823 = vmatmul.mubr.msk.bf16.gmra.mrb[28].mxu1 %vm1000_vm1, %v962_v42 }
  0x88   : > { %1164 = vmatprep.mubr.bf16.mxu0 %v5757_v29  ;;  %1357 = vmatprep.mubr.bf16.mxu1 %v5757_v29 }
  0x89   : > { %2733 = vmatpush1.bf16.msra.mxu0 %v5547_v43  ;;  %3119 = vmatpush1.bf16.msra.mxu1 %v5550_v44 }
  0x8a   : > { %2734 = vmatprep.subr.bf16.mxu0 %v5555_v45  ;;  %3120 = vmatprep.subr.bf16.mxu1 %v5558_v3 }
  0x8d   : > { %2735 = vmatpush1.bf16.msra.mxu0 %v5553_v51  ;;  %3121 = vmatpush1.bf16.msra.mxu1 %v5556_v4  ;;  %v6401_v51 = vrot.slane %v6015_v61, %v6052_v9 }
  0x8e   : > { %2736 = vmatprep.subr.bf16.mxu0 %v5561_v5  ;;  %3122 = vmatprep.subr.bf16.mxu1 %v5564_v11 }
  0x8f   : > { %4807 = vmatmul.mubr.msk.bf16.gmra.mrb[32].mxu0 %vm1000_vm1, %v963_v52  ;;  %4824 = vmatmul.mubr.msk.bf16.gmra.mrb[32].mxu1 %vm1000_vm1, %v963_v52 }
  0x90   : > { %1174 = vmatprep.mubr.bf16.mxu0 %v5757_v29  ;;  %1367 = vmatprep.mubr.bf16.mxu1 %v5757_v29 }
  0x91   : > { %2737 = vmatpush1.bf16.msra.mxu0 %v5559_v6  ;;  %3123 = vmatpush1.bf16.msra.mxu1 %v5562_v14 }
  0x92   : > { %2738 = vmatprep.subr.bf16.mxu0 %v5567_v16  ;;  %3124 = vmatprep.subr.bf16.mxu1 %v5570_v17 }
  0x95   : > { %2739 = vmatpush1.bf16.msra.mxu0 %v5565_v18  ;;  %3125 = vmatpush1.bf16.msra.mxu1 %v5568_v19 }
  0x96   : > { %2901 = vmatprep.subr.bf16.mxu0 %v5573_v23  ;;  %3287 = vmatprep.subr.bf16.mxu1 %v5576_v26 }
  0x97   : > { %4808 = vmatmul.mubr.msk.bf16.gmra.mrb[36].mxu0 %vm1000_vm1, %v964_v55  ;;  %4825 = vmatmul.mubr.msk.bf16.gmra.mrb[36].mxu1 %vm1000_vm1, %v964_v55 }
  0x98   : > { %1184 = vmatprep.mubr.bf16.mxu0 %v5757_v29  ;;  %1377 = vmatprep.mubr.bf16.mxu1 %v5757_v29 }
  0x9f   : > { %4809 = vmatmul.mubr.msk.bf16.gmra.mrb[40].mxu0 %vm1000_vm1, %v965_v59  ;;  %4826 = vmatmul.mubr.msk.bf16.gmra.mrb[40].mxu1 %vm1000_vm1, %v965_v59 }
  0xa0   : > { %1194 = vmatprep.mubr.bf16.mxu0 %v5757_v29  ;;  %1387 = vmatprep.mubr.bf16.mxu1 %v5757_v29 }
  0xa7   : > { %4810 = vmatmul.mubr.msk.bf16.gmra.mrb[44].mxu0 %vm1000_vm1, %v966_v2  ;;  %4827 = vmatmul.mubr.msk.bf16.gmra.mrb[44].mxu1 %vm1000_vm1, %v966_v2 }
  0xa8   : > { %1204 = vmatprep.mubr.bf16.mxu0 %v5757_v29  ;;  %1397 = vmatprep.mubr.bf16.mxu1 %v5757_v29 }
  0xaf   : > { %4811 = vmatmul.mubr.msk.bf16.gmra.mrb[48].mxu0 %vm1000_vm1, %v967_v10  ;;  %4828 = vmatmul.mubr.msk.bf16.gmra.mrb[48].mxu1 %vm1000_vm1, %v967_v10 }
  0xb0   : > { %1214 = vmatprep.mubr.bf16.mxu0 %v5757_v29  ;;  %1407 = vmatprep.mubr.bf16.mxu1 %v5757_v29 }
  0xb7   : > { %4812 = vmatmul.mubr.msk.bf16.gmra.mrb[52].mxu0 %vm1000_vm1, %v968_v15  ;;  %4829 = vmatmul.mubr.msk.bf16.gmra.mrb[52].mxu1 %vm1000_vm1, %v968_v15 }
  0xb8   : > { %1224 = vmatprep.mubr.bf16.mxu0 %v5757_v29  ;;  %1417 = vmatprep.mubr.bf16.mxu1 %v5757_v29 }
  0xbf   : > { %4813 = vmatmul.mubr.msk.bf16.gmra.mrb[56].mxu0 %vm1000_vm1, %v969_v22  ;;  %4830 = vmatmul.mubr.msk.bf16.gmra.mrb[56].mxu1 %vm1000_vm1, %v969_v22 }
  0xc0   : > { %1234 = vmatprep.mubr.bf16.mxu0 %v5757_v29  ;;  %1427 = vmatprep.mubr.bf16.mxu1 %v5757_v29 }
  0xc7   : > { %4814 = vmatmul.mubr.msk.bf16.gmra.mrb[60].mxu0 %vm1000_vm1, %v970_v27  ;;  %4831 = vmatmul.mubr.msk.bf16.gmra.mrb[60].mxu1 %vm1000_vm1, %v970_v27 }
  0xc8   : > { %1244 = vmatprep.mubr.bf16.mxu0 %v5757_v29  ;;  %1437 = vmatprep.mubr.bf16.mxu1 %v5757_v29  ;;  %v5699_v29 = vld [vmem:[%s8044_s4] sm:$0xf] }
  0xc9   : > { %v6385_v41 = vrot.slane %v5699_v29, %v6052_v9  ;;  %v6391_v43 = vrot.slane %v5699_v29, %v5978_v46 }
  0xcf   : > { %4815 = vmatmul.mubr.msk.bf16.gmra.mrb[64].mxu0 %vm1000_vm1, %v971_v31  ;;  %4832 = vmatmul.mubr.msk.bf16.gmra.mrb[64].mxu1 %vm1000_vm1, %v971_v31 }
 0x122   : > { %v908_v32 = vpop.f32.mrb[0].mxu0  ;;  %v949_v33 = vpop.f32.mrb[0].mxu1 }
 0x123   : > { %v910_v34 = vpop.f32.mrb[1].mxu0  ;;  %v951_v35 = vpop.f32.mrb[1].mxu1  ;;  %v6379_v40 = vrot.slane %v949_v33, %v6052_v9  ;;  %v6388_v42 = vrot.slane %v908_v32, %v6052_v9 }
 0x124   : > { %v912_v36 = vpop.f32.mrb[2].mxu0  ;;  %v953_v37 = vpop.f32.mrb[2].mxu1  ;;  %v6394_v44 = vrot.slane %v910_v34, %v6052_v9  ;;  %v6397_v47 = vrot.slane %v951_v35, %v6052_v9 }
 0x125   : > { %v913_v38 = vpop.f32.mrb[3].mxu0  ;;  %v954_v39 = vpop.f32.mrb[3].mxu1 }
 0x12a   : > { %v1096_v45 = vpop.f32.mrb[4].mxu0  ;;  %v1289_v49 = vpop.f32.mrb[4].mxu1 }
 0x12b   : > { %v1097_v52 = vadd.f32 %v1096_v45, %v6388_v42  ;;  %v1098_v53 = vpop.f32.mrb[5].mxu0  ;;  %v1290_v54 = vadd.f32 %v1289_v49, %v6379_v40  ;;  %v1291_v55 = vpop.f32.mrb[5].mxu1 }
 0x12c   : > { %v1099_v59 = vadd.f32 %v1098_v53, %v6394_v44  ;;  %v1100_v0 = vpop.f32.mrb[6].mxu0  ;;  %v1293_v1 = vpop.f32.mrb[6].mxu1  ;;  %v1292_v10 = vadd.f32 %v1291_v55, %v6397_v47 }
 0x12d   : > { %v1470_v61 = vmul.f32 %v6385_v41, %v1097_v52  ;;  %v1101_v2 = vadd.f32 %v1100_v0, %v6388_v42  ;;  %v1102_v3 = vpop.f32.mrb[7].mxu0  ;;  %v1472_v4 = vmul.f32 %v6001_v56, %v1290_v54  ;;  %v1294_v5 = vadd.f32 %v1293_v1, %v6379_v40  ;;  %v1295_v6 = vpop.f32.mrb[7].mxu1  ;;  %v5571_v0 = vld [vmem:[%s8046_s6 + $0x200] ss:$16 sps:$4 sm:$0xff]   ;;  %v5574_v1 = vld [vmem:[%s8046_s6 + $0x208] ss:$16 sps:$4 sm:$0xff]  }
 0x12e   : > { %v1471_v7 = vmul.f32 %v6391_v43, %v1099_v59  ;;  %v1103_v8 = vadd.f32 %v1102_v3, %v6394_v44  ;;  %v1296_v11 = vadd.f32 %v1295_v6, %v6397_v47  ;;  %v1473_v24 = vmul.f32 %v6010_v60, %v1292_v10 }
 0x12f   : > { %v1620_v12 = vadd.f32 %v6401_v51, %v1470_v61  ;;  %v1474_v13 = vmul.f32 %v6385_v41, %v1101_v2  ;;  %v1622_v14 = vadd.f32 %v6019_v62, %v1472_v4  ;;  %v1476_v15 = vmul.f32 %v6001_v56, %v1294_v5  ;;  %v5579_v4 = vld [vmem:[%s8046_s6 + $0x224] ss:$16 sps:$4 sm:$0xff]   ;;  %v5582_v5 = vld [vmem:[%s8046_s6 + $0x22c] ss:$16 sps:$4 sm:$0xff]  }
 0x130   : > { %v1621_v16 = vadd.f32 %v6409_v58, %v1471_v7  ;;  %v1475_v17 = vmul.f32 %v6391_v43, %v1103_v8  ;;  %v1477_v25 = vmul.f32 %v6010_v60, %v1296_v11  ;;  %v6460_v10 = vadd.f32 %v6023_v63, %v1473_v24 }
 0x131   : > { %v1624_v18 = vadd.f32 %v6401_v51, %v1474_v13  ;;  %v1750_v19 = vmax.f32 %v1622_v14, 0.0  ;;  %v1626_v20 = vadd.f32 %v6019_v62, %v1476_v15  ;;  %v1748_v21 = vmax.f32 %v1620_v12, 0.0  ;;  %v5577_v12 = vld [vmem:[%s8046_s6 + $0x220] ss:$16 sps:$4 sm:$0xff]  }
 0x132   : > { %v1625_v22 = vadd.f32 %v6409_v58, %v1475_v17  ;;  %v1106_v23 = vpop.f32.mrb[8].mxu0  ;;  %v1299_v26 = vpop.f32.mrb[8].mxu1  ;;  %v1749_v34 = vmax.f32 %v1621_v16, 0.0  ;;  %v6467_v13 = vadd.f32 %v6023_v63, %v1477_v25  ;;  %v5580_v17 = vld [vmem:[%s8046_s6 + $0x228] ss:$16 sps:$4 sm:$0xff]  }
 0x133   : > { %v1752_v27 = vmax.f32 %v1624_v18, 0.0  ;;  %v1107_v28 = vadd.f32 %v1106_v23, %v6388_v42  ;;  %v1108_v30 = vpop.f32.mrb[9].mxu0  ;;  %v1754_v31 = vmax.f32 %v1626_v20, 0.0  ;;  %v1300_v32 = vadd.f32 %v1299_v26, %v6379_v40  ;;  %v1301_v33 = vpop.f32.mrb[9].mxu1  ;;  %v5585_v18 = vld [vmem:[%s8046_s6 + $0x244] ss:$16 sps:$4 sm:$0xff]  }
 0x134   : > { %v1753_v35 = vmax.f32 %v1625_v22, 0.0  ;;  %v1109_v36 = vadd.f32 %v1108_v30, %v6394_v44  ;;  %v1110_v37 = vpop.f32.mrb[10].mxu0  ;;  %v1302_v38 = vadd.f32 %v1301_v33, %v6397_v47  ;;  %v1303_v39 = vpop.f32.mrb[10].mxu1  ;;  %v5588_v26 = vld [vmem:[%s8046_s6 + $0x24c] ss:$16 sps:$4 sm:$0xff]  }
 0x135   : > { %v1876_v29 = vpack.c.bf16 %v1752_v27, %v1748_v21  ;;  %v1478_v45 = vmul.f32 %v6385_v41, %v1107_v28  ;;  %v1111_v49 = vadd.f32 %v1110_v37, %v6388_v42  ;;  %v1112_v52 = vpop.f32.mrb[11].mxu0  ;;  %v6437_v53 = vpack.c.bf16 %v1754_v31, %v1750_v19  ;;  %v1305_v54 = vpop.f32.mrb[11].mxu1 }
 0x136   : > { %v1479_v55 = vmul.f32 %v6391_v43, %v1109_v36  ;;  %v1113_v57 = vadd.f32 %v1112_v52, %v6394_v44  ;;  %v1877_v59 = vpack.c.bf16 %v1753_v35, %v1749_v34  ;;  %v1480_v61 = vmul.f32 %v6001_v56, %v1300_v32 }
 0x137   : > { %8099 = vst [vmem:[#allocation6_spill] sm:$0xff] %v6437_v53  ;;  %v1628_v2 = vadd.f32 %v6401_v51, %v1478_v45  ;;  %v1482_v3 = vmul.f32 %v6385_v41, %v1111_v49  ;;  %v1304_v6 = vadd.f32 %v1303_v39, %v6379_v40  ;;  %v1481_v14 = vmul.f32 %v6010_v60, %v1302_v38 }
 0x138   : > { %v1629_v7 = vadd.f32 %v6409_v58, %v1479_v55  ;;  %v1483_v8 = vmul.f32 %v6391_v43, %v1113_v57  ;;  %2740 = vmatprep.mubr.bf16.mxu0 %v1877_v59  ;;  %3126 = vmatprep.mubr.bf16.mxu1 %v1877_v59  ;;  %v6478_v19 = vadd.f32 %v6019_v62, %v1480_v61  ;;  %v5583_v55 = vld [vmem:[%s8046_s6 + $0x240] ss:$16 sps:$4 sm:$0xff]   ;;  %v5586_v57 = vld [vmem:[%s8046_s6 + $0x248] ss:$16 sps:$4 sm:$0xff]   ;;  %v5594_v61 = vld [vmem:[%s8046_s6 + $0x26c] ss:$16 sps:$4 sm:$0xff]  }
 0x139   : > { %v1632_v11 = vadd.f32 %v6401_v51, %v1482_v3  ;;  %2741 = vmatmul.mubr.bf16.vlgmr.msra.gmra.mrb[68].mxu0 %v1876_v29  ;;  %3127 = vmatmul.mubr.bf16.vlgmr.msra.gmra.mrb[68].mxu1 %v1876_v29  ;;  %v1306_v20 = vadd.f32 %v1305_v54, %v6397_v47  ;;  %v1756_v22 = vmax.f32 %v1628_v2, 0.0  ;;  %v1484_v27 = vmul.f32 %v6001_v56, %v1304_v6 }
 0x13a   : > { %v1633_v15 = vadd.f32 %v6409_v58, %v1483_v8  ;;  %v1116_v16 = vpop.f32.mrb[12].mxu0  ;;  %2902 = vmatpush1.bf16.msra.mxu0 %v5571_v0  ;;  %3288 = vmatpush1.bf16.msra.mxu1 %v5574_v1  ;;  %v1309_v21 = vpop.f32.mrb[12].mxu1  ;;  %v1757_v30 = vmax.f32 %v1629_v7, 0.0  ;;  %v5591_v1 = vld [vmem:[%s8046_s6 + $0x264] ss:$16 sps:$4 sm:$0xff]   ;;  %v6508_v2 = vadd.f32 %v6023_v63, %v1481_v14 }
 0x13b   : > { %v1760_v23 = vmax.f32 %v1632_v11, 0.0  ;;  %v1117_v24 = vadd.f32 %v1116_v16, %v6388_v42  ;;  %v1118_v25 = vpop.f32.mrb[13].mxu0  ;;  %2903 = vmatprep.subr.bf16.mxu0 %v5579_v4  ;;  %3289 = vmatprep.subr.bf16.mxu1 %v5582_v5  ;;  %v1311_v28 = vpop.f32.mrb[13].mxu1  ;;  %v1485_v34 = vmul.f32 %v6010_v60, %v1306_v20  ;;  %v1310_v29 = vadd.f32 %v1309_v21, %v6379_v40  ;;  %v5589_v7 = vld [vmem:[%s8046_s6 + $0x260] ss:$16 sps:$4 sm:$0xff]  }
 0x13c   : > { %v1761_v31 = vmax.f32 %v1633_v15, 0.0  ;;  %v1119_v32 = vadd.f32 %v1118_v25, %v6394_v44  ;;  %v1120_v33 = vpop.f32.mrb[14].mxu0  ;;  %v1313_v35 = vpop.f32.mrb[14].mxu1  ;;  %v6513_v5 = vadd.f32 %v6019_v62, %v1484_v27  ;;  %v5592_v8 = vld [vmem:[%s8046_s6 + $0x268] ss:$16 sps:$4 sm:$0xff]  }
 0x13d   : > { %v1486_v36 = vmul.f32 %v6385_v41, %v1117_v24  ;;  %v1121_v37 = vadd.f32 %v1120_v33, %v6388_v42  ;;  %v1122_v38 = vpop.f32.mrb[15].mxu0  ;;  %v1880_v39 = vpack.c.bf16 %v1760_v23, %v1756_v22  ;;  %v1315_v45 = vpop.f32.mrb[15].mxu1  ;;  %v6523_v11 = vadd.f32 %v6023_v63, %v1485_v34  ;;  %v5597_v16 = vld [vmem:[%s8046_s6 + $0x284] ss:$16 sps:$4 sm:$0xff]  }
 0x13e   : > { %v1487_v49 = vmul.f32 %v6391_v43, %v1119_v32  ;;  %v1123_v52 = vadd.f32 %v1122_v38, %v6394_v44  ;;  %v1881_v54 = vpack.c.bf16 %v1761_v31, %v1757_v30  ;;  %2904 = vmatpush1.bf16.msra.mxu0 %v5577_v12  ;;  %3290 = vmatpush1.bf16.msra.mxu1 %v5580_v17  ;;  %v5600_v17 = vld [vmem:[%s8046_s6 + $0x28c] ss:$16 sps:$4 sm:$0xff]  }
 0x13f   : > { %v1636_v59 = vadd.f32 %v6401_v51, %v1486_v36  ;;  %v1490_v0 = vmul.f32 %v6385_v41, %v1121_v37  ;;  %2905 = vmatprep.subr.bf16.mxu0 %v5585_v18  ;;  %3291 = vmatprep.subr.bf16.mxu1 %v5588_v26  ;;  %v1312_v12 = vadd.f32 %v1311_v28, %v6397_v47 }
 0x140   : > { %v1637_v3 = vadd.f32 %v6409_v58, %v1487_v49  ;;  %v1491_v4 = vmul.f32 %v6391_v43, %v1123_v52  ;;  %2750 = vmatprep.mubr.bf16.mxu0 %v1881_v54  ;;  %3136 = vmatprep.mubr.bf16.mxu1 %v1881_v54  ;;  %v1488_v18 = vmul.f32 %v6001_v56, %v1310_v29 }
 0x141   : > { %v1640_v6 = vadd.f32 %v6401_v51, %v1490_v0  ;;  %2751 = vmatmul.mubr.bf16.gmra.mrb[72].mxu0 %v1880_v39  ;;  %3137 = vmatmul.mubr.bf16.gmra.mrb[72].mxu1 %v1880_v39  ;;  %v1314_v20 = vadd.f32 %v1313_v35, %v6379_v40  ;;  %v1764_v22 = vmax.f32 %v1636_v59, 0.0  ;;  %v1489_v32 = vmul.f32 %v6010_v60, %v1312_v12  ;;  %v5603_v0 = vld [vmem:[%s8046_s6 + $0x2a4] ss:$16 sps:$4 sm:$0xff]  }
 0x142   : > { %v1641_v14 = vadd.f32 %v6409_v58, %v1491_v4  ;;  %v1126_v15 = vpop.f32.mrb[16].mxu0  ;;  %2906 = vmatpush1.bf16.msra.mxu0 %v5583_v55  ;;  %3292 = vmatpush1.bf16.msra.mxu1 %v5586_v57  ;;  %v1319_v21 = vpop.f32.mrb[16].mxu1  ;;  %v1765_v23 = vmax.f32 %v1637_v3, 0.0  ;;  %v1316_v33 = vadd.f32 %v1315_v45, %v6397_v47  ;;  %v5595_v45 = vld [vmem:[%s8046_s6 + $0x280] ss:$16 sps:$4 sm:$0xff]  }
 0x143   : > { %v1768_v24 = vmax.f32 %v1640_v6, 0.0  ;;  %v1127_v25 = vadd.f32 %v1126_v15, %v6388_v42  ;;  %v1128_v26 = vpop.f32.mrb[17].mxu0  ;;  %2907 = vmatprep.subr.bf16.mxu0 %v5591_v1  ;;  %3293 = vmatprep.subr.bf16.mxu1 %v5594_v61  ;;  %v1321_v27 = vpop.f32.mrb[17].mxu1  ;;  %v1492_v39 = vmul.f32 %v6001_v56, %v1314_v20  ;;  %v5598_v55 = vld [vmem:[%s8046_s6 + $0x288] ss:$16 sps:$4 sm:$0xff]   ;;  %v6558_v1 = vadd.f32 %v6019_v62, %v1488_v18 }
 0x144   : > { %v1769_v28 = vmax.f32 %v1641_v14, 0.0  ;;  %v1129_v30 = vadd.f32 %v1128_v26, %v6394_v44  ;;  %v1130_v31 = vpop.f32.mrb[18].mxu0  ;;  %v1323_v34 = vpop.f32.mrb[18].mxu1  ;;  %v5606_v61 = vld [vmem:[%s8046_s6 + $0x2ac] ss:$16 sps:$4 sm:$0xff]  }
 0x145   : > { %v1494_v35 = vmul.f32 %v6385_v41, %v1127_v25  ;;  %v1131_v36 = vadd.f32 %v1130_v31, %v6388_v42  ;;  %v1132_v37 = vpop.f32.mrb[19].mxu0  ;;  %v1884_v38 = vpack.c.bf16 %v1768_v24, %v1764_v22  ;;  %v6542_v29 = vpop.f32.mrb[19].mxu1  ;;  %v5601_v6 = vld [vmem:[%s8046_s6 + $0x2a0] ss:$16 sps:$4 sm:$0xff]   ;;  %v5604_v14 = vld [vmem:[%s8046_s6 + $0x2a8] ss:$16 sps:$4 sm:$0xff]   ;;  %v6577_v15 = vadd.f32 %v6019_v62, %v1492_v39 }
 0x146   : > { %v1495_v49 = vmul.f32 %v6391_v43, %v1129_v30  ;;  %v1133_v52 = vadd.f32 %v1132_v37, %v6394_v44  ;;  %v1885_v54 = vpack.c.bf16 %v1769_v28, %v1765_v23  ;;  %2908 = vmatpush1.bf16.msra.mxu0 %v5589_v7  ;;  %3294 = vmatpush1.bf16.msra.mxu1 %v5592_v8 }
 0x147   : > { %v1644_v57 = vadd.f32 %v6401_v51, %v1494_v35  ;;  %v1498_v59 = vmul.f32 %v6385_v41, %v1131_v36  ;;  %2909 = vmatprep.subr.bf16.mxu0 %v5597_v16  ;;  %3295 = vmatprep.subr.bf16.mxu1 %v5600_v17  ;;  %v6569_v7 = vadd.f32 %v6023_v63, %v1489_v32  ;;  %v5609_v17 = vld [vmem:[%s8046_s6 + $0x2c4] ss:$16 sps:$4 sm:$0xff]  }
 0x148   : > { %v1645_v3 = vadd.f32 %v6409_v58, %v1495_v49  ;;  %v1499_v4 = vmul.f32 %v6391_v43, %v1133_v52  ;;  %2760 = vmatprep.mubr.bf16.mxu0 %v1885_v54  ;;  %3146 = vmatprep.mubr.bf16.mxu1 %v1885_v54  ;;  %v1320_v16 = vadd.f32 %v1319_v21, %v6379_v40  ;;  %v5612_v21 = vld [vmem:[%s8046_s6 + $0x2cc] ss:$16 sps:$4 sm:$0xff]  }
 0x149   : > { %v1648_v8 = vadd.f32 %v6401_v51, %v1498_v59  ;;  %2761 = vmatmul.mubr.bf16.gmra.mrb[76].mxu0 %v1884_v38  ;;  %3147 = vmatmul.mubr.bf16.gmra.mrb[76].mxu1 %v1884_v38  ;;  %v1493_v23 = vmul.f32 %v6010_v60, %v1316_v33  ;;  %v1322_v24 = vadd.f32 %v1321_v27, %v6397_v47  ;;  %v1772_v26 = vmax.f32 %v1644_v57, 0.0 }
 0x14a   : > { %v1649_v18 = vadd.f32 %v6409_v58, %v1499_v4  ;;  %v1136_v20 = vpop.f32.mrb[20].mxu0  ;;  %2910 = vmatpush1.bf16.msra.mxu0 %v5595_v45  ;;  %3296 = vmatpush1.bf16.msra.mxu1 %v5598_v55  ;;  %v1329_v25 = vpop.f32.mrb[20].mxu1  ;;  %v1773_v28 = vmax.f32 %v1645_v3, 0.0  ;;  %v1496_v27 = vmul.f32 %v6001_v56, %v1320_v16  ;;  %v1324_v38 = vadd.f32 %v1323_v34, %v6379_v40  ;;  %v5607_v34 = vld [vmem:[%s8046_s6 + $0x2c0] ss:$16 sps:$4 sm:$0xff]  }
 0x14b   : > { %v1776_v30 = vmax.f32 %v1648_v8, 0.0  ;;  %v1137_v31 = vadd.f32 %v1136_v20, %v6388_v42  ;;  %v1138_v32 = vpop.f32.mrb[21].mxu0  ;;  %2911 = vmatprep.subr.bf16.mxu0 %v5603_v0  ;;  %3297 = vmatprep.subr.bf16.mxu1 %v5606_v61  ;;  %v1331_v35 = vpop.f32.mrb[21].mxu1  ;;  %v1497_v55 = vmul.f32 %v6010_v60, %v1322_v24  ;;  %v5610_v4 = vld [vmem:[%s8046_s6 + $0x2c8] ss:$16 sps:$4 sm:$0xff]   ;;  %v6614_v20 = vadd.f32 %v6023_v63, %v1493_v23 }
 0x14c   : > { %v1777_v36 = vmax.f32 %v1649_v18, 0.0  ;;  %v1139_v37 = vadd.f32 %v1138_v32, %v6394_v44  ;;  %v1140_v33 = vpop.f32.mrb[22].mxu0  ;;  %v6594_v39 = vpop.f32.mrb[22].mxu1  ;;  %v1500_v23 = vmul.f32 %v6001_v56, %v1324_v38  ;;  %v5613_v32 = vld [vmem:[%s8046_s6 + $0x2e0] ss:$16 sps:$4 sm:$0xff]  }
 0x14d   : > { %v1502_v49 = vmul.f32 %v6385_v41, %v1137_v31  ;;  %v1141_v52 = vadd.f32 %v1140_v33, %v6388_v42  ;;  %v1142_v54 = vpop.f32.mrb[23].mxu0  ;;  %v1888_v45 = vpack.c.bf16 %v1776_v30, %v1772_v26  ;;  %v6599_v57 = vpop.f32.mrb[23].mxu1  ;;  %v6629_v30 = vadd.f32 %v6019_v62, %v1496_v27 }
 0x14e   : > { %v1503_v59 = vmul.f32 %v6391_v43, %v1139_v37  ;;  %v1143_v0 = vadd.f32 %v1142_v54, %v6394_v44  ;;  %v1889_v61 = vpack.c.bf16 %v1777_v36, %v1773_v28  ;;  %2912 = vmatpush1.bf16.msra.mxu0 %v5601_v6  ;;  %3298 = vmatpush1.bf16.msra.mxu1 %v5604_v14  ;;  %v5615_v6 = vld [vmem:[%s8046_s6 + $0x2e4] ss:$16 sps:$4 sm:$0xff]   ;;  %v5618_v14 = vld [vmem:[%s8046_s6 + $0x2ec] ss:$16 sps:$4 sm:$0xff]  }
 0x14f   : > { %v1652_v8 = vadd.f32 %v6401_v51, %v1502_v49  ;;  %v1506_v16 = vmul.f32 %v6385_v41, %v1141_v52  ;;  %2913 = vmatprep.subr.bf16.mxu0 %v5609_v17  ;;  %3299 = vmatprep.subr.bf16.mxu1 %v5612_v21  ;;  %v1326_v31 = vadd.f32 %v6542_v29, %v6397_v47  ;;  %v5616_v29 = vld [vmem:[%s8046_s6 + $0x2e8] ss:$16 sps:$4 sm:$0xff]  }
 0x150   : > { %v1653_v24 = vadd.f32 %v6409_v58, %v1503_v59  ;;  %v1507_v26 = vmul.f32 %v6391_v43, %v1143_v0  ;;  %2770 = vmatprep.mubr.bf16.mxu0 %v1889_v61  ;;  %3156 = vmatprep.mubr.bf16.mxu1 %v1889_v61  ;;  %v6639_v38 = vadd.f32 %v6023_v63, %v1497_v55 }
 0x151   : > { %v1656_v17 = vadd.f32 %v6401_v51, %v1506_v16  ;;  %2771 = vmatmul.mubr.bf16.gmra.mrb[80].mxu0 %v1888_v45  ;;  %3157 = vmatmul.mubr.bf16.gmra.mrb[80].mxu1 %v1888_v45  ;;  %v1330_v49 = vadd.f32 %v1329_v25, %v6379_v40  ;;  %v1780_v52 = vmax.f32 %v1652_v8, 0.0  ;;  %v1332_v0 = vadd.f32 %v1331_v35, %v6397_v47  ;;  %v5621_v25 = vld [vmem:[%s8046_s6 + $0x304] ss:$16 sps:$4 sm:$0xff]  }
 0x152   : > { %v1657_v36 = vadd.f32 %v6409_v58, %v1507_v26  ;;  %v1146_v37 = vpop.f32.mrb[24].mxu0  ;;  %2914 = vmatpush1.bf16.msra.mxu0 %v5607_v34  ;;  %3300 = vmatpush1.bf16.msra.mxu1 %v5610_v4  ;;  %v1339_v27 = vpop.f32.mrb[24].mxu1  ;;  %v1781_v55 = vmax.f32 %v1653_v24, 0.0  ;;  %v6654_v8 = vadd.f32 %v6019_v62, %v1500_v23 }
 0x153   : > { %v1784_v54 = vmax.f32 %v1656_v17, 0.0  ;;  %v1147_v45 = vadd.f32 %v1146_v37, %v6388_v42  ;;  %v1148_v59 = vpop.f32.mrb[25].mxu0  ;;  %v6647_v61 = vpop.f32.mrb[25].mxu1  ;;  %2915 = vmatprep.subr.bf16.mxu0 %v5615_v6  ;;  %3301 = vmatprep.subr.bf16.mxu1 %v5618_v14  ;;  %v1501_v37 = vmul.f32 %v6010_v60, %v1326_v31  ;;  %v1504_v23 = vmul.f32 %v6001_v56, %v1330_v49  ;;  %v5627_v49 = vld [vmem:[%s8046_s6 + $0x324] ss:$16 sps:$4 sm:$0xff]  }
 0x154   : > { %v1785_v34 = vmax.f32 %v1657_v36, 0.0  ;;  %v1149_v4 = vadd.f32 %v1148_v59, %v6394_v44  ;;  %v1150_v16 = vpop.f32.mrb[26].mxu0  ;;  %v6656_v26 = vpop.f32.mrb[26].mxu1 }
 0x155   : > { %v1510_v35 = vmul.f32 %v6385_v41, %v1147_v45  ;;  %v1151_v17 = vadd.f32 %v1150_v16, %v6388_v42  ;;  %v1152_v6 = vpop.f32.mrb[27].mxu0  ;;  %v1892_v14 = vpack.c.bf16 %v1784_v54, %v1780_v52  ;;  %v6661_v33 = vpop.f32.mrb[27].mxu1  ;;  %v5619_v45 = vld [vmem:[%s8046_s6 + $0x300] ss:$16 sps:$4 sm:$0xff]   ;;  %v5624_v52 = vld [vmem:[%s8046_s6 + $0x30c] ss:$16 sps:$4 sm:$0xff]   ;;  %v1505_v16 = vmul.f32 %v6010_v60, %v1332_v0 }
 0x156   : > { %v1511_v24 = vmul.f32 %v6391_v43, %v1149_v4  ;;  %v1153_v36 = vadd.f32 %v1152_v6, %v6394_v44  ;;  %v1893_v59 = vpack.c.bf16 %v1785_v34, %v1781_v55  ;;  %2916 = vmatpush1.bf16.msra.mxu0 %v5613_v32  ;;  %3302 = vmatpush1.bf16.msra.mxu1 %v5616_v29  ;;  %v5622_v32 = vld [vmem:[%s8046_s6 + $0x308] ss:$16 sps:$4 sm:$0xff]   ;;  %v5630_v0 = vld [vmem:[%s8046_s6 + $0x32c] ss:$16 sps:$4 sm:$0xff]  }
 0x157   : > { %v1660_v31 = vadd.f32 %v6401_v51, %v1510_v35  ;;  %v1514_v54 = vmul.f32 %v6385_v41, %v1151_v17  ;;  %2917 = vmatprep.subr.bf16.mxu0 %v5621_v25  ;;  %v1334_v29 = vadd.f32 %v6594_v39, %v6379_v40  ;;  %v6693_v6 = vadd.f32 %v6023_v63, %v1501_v37  ;;  %v5625_v39 = vld [vmem:[%s8046_s6 + $0x320] ss:$16 sps:$4 sm:$0xff]  }
 0x158   : > { %v1661_v55 = vadd.f32 %v6409_v58, %v1511_v24  ;;  %v1515_v34 = vmul.f32 %v6391_v43, %v1153_v36  ;;  %2780 = vmatprep.mubr.bf16.mxu0 %v1893_v59  ;;  %3166 = vmatprep.mubr.bf16.mxu1 %v1893_v59  ;;  %v1336_v24 = vadd.f32 %v6599_v57, %v6397_v47  ;;  %v5628_v57 = vld [vmem:[%s8046_s6 + $0x328] ss:$16 sps:$4 sm:$0xff]  }
 0x159   : > { %v1664_v25 = vadd.f32 %v6401_v51, %v1514_v54  ;;  %2781 = vmatmul.mubr.bf16.gmra.mrb[84].mxu0 %v1892_v14  ;;  %3167 = vmatmul.mubr.bf16.gmra.mrb[84].mxu1 %v1892_v14  ;;  %v6703_v54 = vadd.f32 %v6019_v62, %v1504_v23  ;;  %v1340_v14 = vadd.f32 %v1339_v27, %v6379_v40  ;;  %v1788_v37 = vmax.f32 %v1660_v31, 0.0  ;;  %v5633_v27 = vld [vmem:[%s8046_s6 + $0x344] ss:$16 sps:$4 sm:$0xff]  }
 0x15a   : > { %v1665_v36 = vadd.f32 %v6409_v58, %v1515_v34  ;;  %v1156_v59 = vpop.f32.mrb[28].mxu0  ;;  %v6706_v17 = vpop.f32.mrb[28].mxu1  ;;  %2918 = vmatpush1.bf16.msra.mxu0 %v5619_v45  ;;  %3303 = vmatprep.subr.bf16.mxu1 %v5624_v52  ;;  %v1508_v35 = vmul.f32 %v6001_v56, %v1334_v29  ;;  %v1789_v23 = vmax.f32 %v1661_v55, 0.0  ;;  %v6720_v31 = vadd.f32 %v6023_v63, %v1505_v16 }
 0x15b   : > { %8100 = vst [vmem:[#allocation7_spill] sm:$0xff] %v6703_v54  ;;  %v1792_v4 = vmax.f32 %v1664_v25, 0.0  ;;  %v1157_v34 = vadd.f32 %v1156_v59, %v6388_v42  ;;  %v1158_v28 = vpop.f32.mrb[29].mxu0  ;;  %v6713_v3 = vpop.f32.mrb[29].mxu1  ;;  %3304 = vmatpush1.bf16.msra.mxu1 %v5622_v32  ;;  %2919 = vmatprep.subr.bf16.mxu0 %v5627_v49  ;;  %v1509_v18 = vmul.f32 %v6010_v60, %v1336_v24 }
 0x15c   : > { %v1793_v45 = vmax.f32 %v1665_v36, 0.0  ;;  %v1159_v52 = vadd.f32 %v1158_v28, %v6394_v44  ;;  %v1160_v21 = vpop.f32.mrb[30].mxu0  ;;  %v6722_v25 = vpop.f32.mrb[30].mxu1  ;;  %3305 = vmatprep.subr.bf16.mxu1 %v5630_v0  ;;  %v1512_v16 = vmul.f32 %v6001_v56, %v1340_v14  ;;  %v5631_v0 = vld [vmem:[%s8046_s6 + $0x340] ss:$16 sps:$4 sm:$0xff]   ;;  %v1350_v46 = vadd.f32 %v6706_v17, %v6379_v40 }
 0x15d   : > { %v1518_v29 = vmul.f32 %v6385_v41, %v1157_v34  ;;  %v1161_v32 = vadd.f32 %v1160_v21, %v6388_v42  ;;  %v1162_v49 = vpop.f32.mrb[31].mxu0  ;;  %v1896_v59 = vpack.c.bf16 %v1792_v4, %v1788_v37  ;;  %v6727_v22 = vpop.f32.mrb[31].mxu1  ;;  %v5636_v21 = vld [vmem:[%s8046_s6 + $0x34c] ss:$16 sps:$4 sm:$0xff]   ;;  %v6742_v34 = vadd.f32 %v6019_v62, %v1508_v35  ;;  %v5639_v14 = vld [vmem:[%s8046_s6 + $0x364] ss:$16 sps:$4 sm:$0xff]  }
 0x15e   : > { %v1519_v55 = vmul.f32 %v6391_v43, %v1159_v52  ;;  %v1163_v28 = vadd.f32 %v1162_v49, %v6394_v44  ;;  %v1897_v36 = vpack.c.bf16 %v1793_v45, %v1789_v23  ;;  %2920 = vmatpush1.bf16.msra.mxu0 %v5625_v39  ;;  %v5634_v39 = vld [vmem:[%s8046_s6 + $0x348] ss:$16 sps:$4 sm:$0xff]   ;;  %v1342_v35 = vadd.f32 %v6647_v61, %v6397_v47  ;;  %v5637_v61 = vld [vmem:[%s8046_s6 + $0x360] ss:$16 sps:$4 sm:$0xff]  }
 0x15f   : > { %v1668_v4 = vadd.f32 %v6401_v51, %v1518_v29  ;;  %v1522_v24 = vmul.f32 %v6385_v41, %v1161_v32  ;;  %8101 = vst [vmem:[#allocation8_spill] sm:$0xff] %v6742_v34  ;;  %3306 = vmatpush1.bf16.msra.mxu1 %v5628_v57  ;;  %2921 = vmatprep.subr.bf16.mxu0 %v5633_v27  ;;  %v5642_v57 = vld [vmem:[%s8046_s6 + $0x36c] ss:$16 sps:$4 sm:$0xff]  }
 0x160   : > { %v1669_v23 = vadd.f32 %v6409_v58, %v1519_v55  ;;  %v1523_v45 = vmul.f32 %v6391_v43, %v1163_v28  ;;  %2790 = vmatprep.mubr.bf16.mxu0 %v1897_v36  ;;  %3176 = vmatprep.mubr.bf16.mxu1 %v1897_v36  ;;  %v6761_v32 = vadd.f32 %v6023_v63, %v1509_v18 }
 0x161   : > { %v1672_v27 = vadd.f32 %v6401_v51, %v1522_v24  ;;  %2791 = vmatmul.mubr.bf16.gmra.mrb[88].mxu0 %v1896_v59  ;;  %3177 = vmatmul.mubr.bf16.gmra.mrb[88].mxu1 %v1896_v59  ;;  %v1344_v49 = vadd.f32 %v6656_v26, %v6379_v40  ;;  %v6771_v24 = vadd.f32 %v6019_v62, %v1512_v16  ;;  %v5640_v26 = vld [vmem:[%s8046_s6 + $0x368] ss:$16 sps:$4 sm:$0xff]   ;;  %v1796_v52 = vmax.f32 %v1668_v4, 0.0 }
 0x162   : > { %v1673_v55 = vadd.f32 %v6409_v58, %v1523_v45  ;;  %v1166_v28 = vpop.f32.mrb[32].mxu0  ;;  %v1346_v59 = vadd.f32 %v6661_v33, %v6397_v47  ;;  %v6775_v18 = vpop.f32.mrb[32].mxu1  ;;  %2922 = vmatpush1.bf16.msra.mxu0 %v5631_v0  ;;  %3307 = vmatprep.subr.bf16.mxu1 %v5636_v21  ;;  %v1513_v36 = vmul.f32 %v6010_v60, %v1342_v35  ;;  %v5645_v33 = vld [vmem:[%s8046_s6 + $0x384] ss:$16 sps:$4 sm:$0xff]   ;;  %v1797_v0 = vmax.f32 %v1669_v23, 0.0 }
 0x163   : > { %8102 = vst [vmem:[#allocation9_spill] sm:$0xff] %v6771_v24  ;;  %v1800_v29 = vmax.f32 %v1672_v27, 0.0  ;;  %v1167_v45 = vadd.f32 %v1166_v28, %v6388_v42  ;;  %v1168_v37 = vpop.f32.mrb[33].mxu0  ;;  %v6782_v16 = vpop.f32.mrb[33].mxu1  ;;  %3308 = vmatpush1.bf16.msra.mxu1 %v5634_v39  ;;  %2923 = vmatprep.subr.bf16.mxu0 %v5639_v14  ;;  %v1516_v4 = vmul.f32 %v6001_v56, %v1344_v49 }
 0x164   : > { %v1801_v21 = vmax.f32 %v1673_v55, 0.0  ;;  %v1169_v12 = vadd.f32 %v1168_v37, %v6394_v44  ;;  %v1170_v50 = vpop.f32.mrb[34].mxu0  ;;  %v6789_v27 = vpop.f32.mrb[34].mxu1  ;;  %3309 = vmatprep.subr.bf16.mxu1 %v5642_v57  ;;  %v1517_v49 = vmul.f32 %v6010_v60, %v1346_v59  ;;  %v5643_v57 = vld [vmem:[%s8046_s6 + $0x380] ss:$16 sps:$4 sm:$0xff]  }
 0x165   : > { %v1526_v35 = vmul.f32 %v6385_v41, %v1167_v45  ;;  %v1171_v28 = vadd.f32 %v1170_v50, %v6388_v42  ;;  %v1172_v39 = vpop.f32.mrb[35].mxu0  ;;  %v1900_v14 = vpack.c.bf16 %v1800_v29, %v1796_v52  ;;  %v6795_v48 = vpop.f32.mrb[35].mxu1  ;;  %v5648_v50 = vld [vmem:[%s8046_s6 + $0x38c] ss:$16 sps:$4 sm:$0xff]   ;;  %v6810_v29 = vadd.f32 %v6023_v63, %v1513_v36  ;;  %v5651_v59 = vld [vmem:[%s8046_s6 + $0x3a4] ss:$16 sps:$4 sm:$0xff]  }
 0x166   : > { %v1527_v23 = vmul.f32 %v6391_v43, %v1169_v12  ;;  %v1173_v37 = vadd.f32 %v1172_v39, %v6394_v44  ;;  %v1901_v55 = vpack.c.bf16 %v1801_v21, %v1797_v0  ;;  %2924 = vmatpush1.bf16.msra.mxu0 %v5637_v61  ;;  %v5646_v61 = vld [vmem:[%s8046_s6 + $0x388] ss:$16 sps:$4 sm:$0xff]   ;;  %v6822_v36 = vadd.f32 %v6019_v62, %v1516_v4  ;;  %v5649_v4 = vld [vmem:[%s8046_s6 + $0x3a0] ss:$16 sps:$4 sm:$0xff]  }
 0x167   : > { %v1676_v17 = vadd.f32 %v6401_v51, %v1526_v35  ;;  %v1530_v52 = vmul.f32 %v6385_v41, %v1171_v28  ;;  %8103 = vst [vmem:[#allocation10_spill] sm:$0xff] %v6810_v29  ;;  %3310 = vmatpush1.bf16.msra.mxu1 %v5640_v26  ;;  %2925 = vmatprep.subr.bf16.mxu0 %v5645_v33  ;;  %v5654_v26 = vld [vmem:[%s8046_s6 + $0x3ac] ss:$16 sps:$4 sm:$0xff]  }
 0x168   : > { %v1677_v45 = vadd.f32 %v6409_v58, %v1527_v23  ;;  %v1531_v0 = vmul.f32 %v6391_v43, %v1173_v37  ;;  %2800 = vmatprep.mubr.bf16.mxu0 %v1901_v55  ;;  %3186 = vmatprep.mubr.bf16.mxu1 %v1901_v55  ;;  %8104 = vst [vmem:[#allocation11_spill] sm:$0xff] %v6822_v36 }
 0x169   : > { %v1680_v33 = vadd.f32 %v6401_v51, %v1530_v52  ;;  %2801 = vmatmul.mubr.bf16.gmra.mrb[92].mxu0 %v1900_v14  ;;  %3187 = vmatmul.mubr.bf16.gmra.mrb[92].mxu1 %v1900_v14  ;;  %v1520_v28 = vmul.f32 %v6001_v56, %v1350_v46  ;;  %v1352_v39 = vadd.f32 %v6713_v3, %v6397_v47  ;;  %v1804_v23 = vmax.f32 %v1676_v17, 0.0  ;;  %v5652_v46 = vld [vmem:[%s8046_s6 + $0x3a8] ss:$16 sps:$4 sm:$0xff]  }
 0x16a   : > { %v1681_v37 = vadd.f32 %v6409_v58, %v1531_v0  ;;  %v1176_v55 = vpop.f32.mrb[36].mxu0  ;;  %v6837_v21 = vadd.f32 %v6023_v63, %v1517_v49  ;;  %v1354_v14 = vadd.f32 %v6722_v25, %v6379_v40  ;;  %v6841_v52 = vpop.f32.mrb[36].mxu1  ;;  %2926 = vmatpush1.bf16.msra.mxu0 %v5643_v57  ;;  %3311 = vmatprep.subr.bf16.mxu1 %v5648_v50  ;;  %v5657_v25 = vld [vmem:[%s8046_s6 + $0x3c4] ss:$16 sps:$4 sm:$0xff]   ;;  %v1805_v57 = vmax.f32 %v1677_v45, 0.0 }
 0x16b   : > { %v1808_v3 = vmax.f32 %v1680_v33, 0.0  ;;  %v1177_v17 = vadd.f32 %v1176_v55, %v6388_v42  ;;  %v1178_v35 = vpop.f32.mrb[37].mxu0  ;;  %v1521_v0 = vmul.f32 %v6010_v60, %v1352_v39  ;;  %v1356_v49 = vadd.f32 %v6727_v22, %v6397_v47  ;;  %v6850_v12 = vpop.f32.mrb[37].mxu1  ;;  %3312 = vmatpush1.bf16.msra.mxu1 %v5646_v61  ;;  %2927 = vmatprep.subr.bf16.mxu0 %v5651_v59 }
 0x16c   : > { %8105 = vst [vmem:[#allocation12_spill] sm:$0xff] %v6837_v21  ;;  %v1809_v50 = vmax.f32 %v1681_v37, 0.0  ;;  %v1179_v33 = vadd.f32 %v1178_v35, %v6394_v44  ;;  %v1180_v9 = vpop.f32.mrb[38].mxu0  ;;  %v1524_v55 = vmul.f32 %v6001_v56, %v1354_v14  ;;  %v6857_v53 = vpop.f32.mrb[38].mxu1  ;;  %3313 = vmatprep.subr.bf16.mxu1 %v5654_v26  ;;  %v6862_v34 = vadd.f32 %v6019_v62, %v1520_v28  ;;  %v5660_v26 = vld [vmem:[%s8046_s6 + $0x3cc] ss:$16 sps:$4 sm:$0xff]  }
 0x16d   : > { %v1534_v22 = vmul.f32 %v6385_v41, %v1177_v17  ;;  %v1181_v39 = vadd.f32 %v1180_v9, %v6388_v42  ;;  %v1182_v61 = vpop.f32.mrb[39].mxu0  ;;  %v1904_v59 = vpack.c.bf16 %v1808_v3, %v1804_v23  ;;  %v6864_v54 = vpop.f32.mrb[39].mxu1  ;;  %v6869_v14 = vadd.f32 %v6023_v63, %v1521_v0  ;;  %v5655_v9 = vld [vmem:[%s8046_s6 + $0x3c0] ss:$16 sps:$4 sm:$0xff]   ;;  %v5663_v0 = vld [vmem:[%s8046_s6 + $0x3e4] ss:$16 sps:$4 sm:$0xff]  }
 0x16e   : > { %8106 = vst [vmem:[#allocation13_spill] sm:$0xff] %v6862_v34  ;;  %v1535_v45 = vmul.f32 %v6391_v43, %v1179_v33  ;;  %v1183_v35 = vadd.f32 %v1182_v61, %v6394_v44  ;;  %v1905_v37 = vpack.c.bf16 %v1809_v50, %v1805_v57  ;;  %2928 = vmatpush1.bf16.msra.mxu0 %v5649_v4  ;;  %v5658_v4 = vld [vmem:[%s8046_s6 + $0x3c8] ss:$16 sps:$4 sm:$0xff]  }
 0x16f   : > { %8107 = vst [vmem:[#allocation14_spill] sm:$0xff] %v6869_v14  ;;  %v1538_v28 = vmul.f32 %v6385_v41, %v1181_v39  ;;  %v6880_v3 = vadd.f32 %v6019_v62, %v1524_v55  ;;  %v1525_v17 = vmul.f32 %v6010_v60, %v1356_v49  ;;  %3314 = vmatpush1.bf16.msra.mxu1 %v5652_v46  ;;  %v5666_v49 = vld [vmem:[%s8046_s6 + $0x3ec] ss:$16 sps:$4 sm:$0xff]  }
 0x170   : > { %2929 = vmatprep.subr.bf16.mxu0 %v5657_v25  ;;  %v1685_v57 = vadd.f32 %v6409_v58, %v1535_v45  ;;  %v1539_v50 = vmul.f32 %v6391_v43, %v1183_v35  ;;  %2810 = vmatprep.mubr.bf16.mxu0 %v1905_v37  ;;  %v1360_v46 = vadd.f32 %v6775_v18, %v6379_v40 }
 0x171   : > { %8108 = vst [vmem:[#allocation15_spill] sm:$0xff] %v6880_v3  ;;  %3196 = vmatprep.mubr.bf16.mxu1 %v1905_v37  ;;  %v1684_v25 = vadd.f32 %v6401_v51, %v1534_v22  ;;  %v1688_v55 = vadd.f32 %v6401_v51, %v1538_v28  ;;  %2811 = vmatmul.mubr.bf16.gmra.mrb[96].mxu0 %v1904_v59 }
 0x172   : > { %3197 = vmatmul.mubr.bf16.gmra.mrb[96].mxu1 %v1904_v59  ;;  %v1362_v61 = vadd.f32 %v6782_v16, %v6397_v47  ;;  %v1689_v45 = vadd.f32 %v6409_v58, %v1539_v50  ;;  %v1186_v18 = vpop.f32.mrb[40].mxu0  ;;  %v1528_v37 = vmul.f32 %v6001_v56, %v1360_v46  ;;  %v1364_v23 = vadd.f32 %v6789_v27, %v6379_v40  ;;  %v6907_v22 = vpop.f32.mrb[40].mxu1  ;;  %v5661_v59 = vld [vmem:[%s8046_s6 + $0x3e0] ss:$16 sps:$4 sm:$0xff]   ;;  %v5664_v27 = vld [vmem:[%s8046_s6 + $0x3e8] ss:$16 sps:$4 sm:$0xff]  }
 0x173   : > { %2930 = vmatpush1.bf16.msra.mxu0 %v5655_v9  ;;  %3315 = vmatprep.subr.bf16.mxu1 %v5660_v26  ;;  %v1187_v16 = vadd.f32 %v1186_v18, %v6388_v42  ;;  %v1188_v50 = vpop.f32.mrb[41].mxu0  ;;  %v6915_v39 = vadd.f32 %v6023_v63, %v1525_v17  ;;  %v6918_v35 = vpop.f32.mrb[41].mxu1  ;;  %v1813_v9 = vmax.f32 %v1685_v57, 0.0  ;;  %v1816_v26 = vmax.f32 %v1688_v55, 0.0 }
 0x174   : > { %v1529_v46 = vmul.f32 %v6010_v60, %v1362_v61  ;;  %3316 = vmatpush1.bf16.msra.mxu1 %v5658_v4  ;;  %2931 = vmatprep.subr.bf16.mxu0 %v5663_v0  ;;  %v1817_v33 = vmax.f32 %v1689_v45, 0.0  ;;  %v1189_v18 = vadd.f32 %v1188_v50, %v6394_v44  ;;  %v1190_v28 = vpop.f32.mrb[42].mxu0  ;;  %v6924_v34 = vpop.f32.mrb[42].mxu1  ;;  %v6928_v36 = vadd.f32 %v6019_v62, %v1528_v37 }
 0x175   : > { %8109 = vst [vmem:[#allocation16_spill] sm:$0xff] %v6915_v39  ;;  %3317 = vmatprep.subr.bf16.mxu1 %v5666_v49  ;;  %v1191_v17 = vadd.f32 %v1190_v28, %v6388_v42  ;;  %v1192_v61 = vpop.f32.mrb[43].mxu0  ;;  %v1532_v4 = vmul.f32 %v6001_v56, %v1364_v23  ;;  %v1366_v0 = vadd.f32 %v6795_v48, %v6397_v47  ;;  %v6933_v57 = vpop.f32.mrb[43].mxu1  ;;  %v1812_v28 = vmax.f32 %v1684_v25, 0.0 }
 0x176   : > { %8110 = vst [vmem:[#allocation17_spill] sm:$0xff] %v6928_v36  ;;  %v1542_v55 = vmul.f32 %v6385_v41, %v1187_v16  ;;  %v1543_v45 = vmul.f32 %v6391_v43, %v1189_v18  ;;  %v1193_v49 = vadd.f32 %v1192_v61, %v6394_v44  ;;  %v6941_v24 = vadd.f32 %v6023_v63, %v1529_v46 }
 0x177   : > { %2932 = vmatpush1.bf16.msra.mxu0 %v5661_v59  ;;  %v1909_v23 = vpack.c.bf16 %v1817_v33, %v1813_v9  ;;  %v1546_v48 = vmul.f32 %v6385_v41, %v1191_v17  ;;  %v1533_v18 = vmul.f32 %v6010_v60, %v1366_v0  ;;  %v6949_v59 = vadd.f32 %v6019_v62, %v1532_v4 }
 0x178   : > { %8111 = vst [vmem:[#allocation18_spill] sm:$0xff] %v6941_v24  ;;  %3318 = vmatpush1.bf16.msra.mxu1 %v5664_v27  ;;  %v1547_v21 = vmul.f32 %v6391_v43, %v1193_v49  ;;  %v1908_v25 = vpack.c.bf16 %v1816_v26, %v1812_v28  ;;  %v1370_v33 = vadd.f32 %v6841_v52, %v6379_v40 }
 0x179   : > { %8112 = vst [vmem:[#allocation19_spill] sm:$0xff] %v6949_v59  ;;  %2820 = vmatprep.mubr.bf16.mxu0 %v1909_v23  ;;  %3206 = vmatprep.mubr.bf16.mxu1 %v1909_v23  ;;  %v6954_v46 = vadd.f32 %v6401_v51, %v1542_v55  ;;  %v1693_v27 = vadd.f32 %v6409_v58, %v1543_v45 }
 0x17a   : > { %v1697_v9 = vadd.f32 %v6409_v58, %v1547_v21  ;;  %v1196_v17 = vpop.f32.mrb[44].mxu0  ;;  %v1372_v61 = vadd.f32 %v6850_v12, %v6397_v47  ;;  %v6960_v0 = vpop.f32.mrb[44].mxu1  ;;  %2821 = vmatmul.mubr.bf16.gmra.mrb[100].mxu0 %v1908_v25  ;;  %3207 = vmatmul.mubr.bf16.gmra.mrb[100].mxu1 %v1908_v25  ;;  %v1536_v52 = vmul.f32 %v6001_v56, %v1370_v33 }
 0x17b   : > { %v1197_v26 = vadd.f32 %v1196_v17, %v6388_v42  ;;  %v1198_v55 = vpop.f32.mrb[45].mxu0  ;;  %v1374_v45 = vadd.f32 %v6857_v53, %v6379_v40  ;;  %v6967_v49 = vpop.f32.mrb[45].mxu1  ;;  %v1696_v21 = vadd.f32 %v6401_v51, %v1546_v48  ;;  %v6971_v12 = vadd.f32 %v6023_v63, %v1533_v18 }
 0x17c   : > { %v1199_v28 = vadd.f32 %v1198_v55, %v6394_v44  ;;  %v1537_v23 = vmul.f32 %v6010_v60, %v1372_v61  ;;  %v1200_v25 = vpop.f32.mrb[46].mxu0  ;;  %v6975_v50 = vpop.f32.mrb[46].mxu1  ;;  %v6979_v17 = vadd.f32 %v6019_v62, %v1536_v52  ;;  %v1820_v52 = vmax.f32 %v6954_v46, 0.0 }
 0x17d   : > { %8113 = vst [vmem:[#allocation20_spill] sm:$0xff] %v6971_v12  ;;  %v1550_v33 = vmul.f32 %v6385_v41, %v1197_v26  ;;  %v1201_v53 = vadd.f32 %v1200_v25, %v6388_v42  ;;  %v1540_v4 = vmul.f32 %v6001_v56, %v1374_v45  ;;  %v1202_v48 = vpop.f32.mrb[47].mxu0  ;;  %v6983_v37 = vpop.f32.mrb[47].mxu1  ;;  %v1376_v26 = vadd.f32 %v6864_v54, %v6397_v47 }
 0x17e   : > { %8114 = vst [vmem:[#allocation21_spill] sm:$0xff] %v6979_v17  ;;  %v1551_v18 = vmul.f32 %v6391_v43, %v1199_v28  ;;  %v6987_v55 = vadd.f32 %v6023_v63, %v1537_v23  ;;  %v1203_v61 = vadd.f32 %v1202_v48, %v6394_v44  ;;  %v1825_v16 = vmax.f32 %v1697_v9, 0.0 }
 0x17f   : > { %v6995_v45 = vadd.f32 %v6401_v51, %v1550_v33  ;;  %v1821_v36 = vmax.f32 %v1693_v27, 0.0  ;;  %v1824_v24 = vmax.f32 %v1696_v21, 0.0  ;;  %v1554_v28 = vmul.f32 %v6385_v41, %v1201_v53 }
 0x180   : > { %8115 = vst [vmem:[#allocation22_spill] sm:$0xff] %v6987_v55  ;;  %v1555_v23 = vmul.f32 %v6391_v43, %v1203_v61  ;;  %v7001_v48 = vadd.f32 %v6019_v62, %v1540_v4  ;;  %v1541_v54 = vmul.f32 %v6010_v60, %v1376_v26  ;;  %v1380_v46 = vadd.f32 %v6907_v22, %v6379_v40 }
 0x181   : > { %v7008_v33 = vadd.f32 %v6409_v58, %v1551_v18  ;;  %v1382_v21 = vadd.f32 %v6918_v35, %v6397_v47  ;;  %v1384_v22 = vadd.f32 %v6924_v34, %v6379_v40  ;;  %v1913_v25 = vpack.c.bf16 %v1825_v16, %v1821_v36 }
 0x182   : > { %8116 = vst [vmem:[#allocation23_spill] sm:$0xff] %v7001_v48  ;;  %v1206_v53 = vpop.f32.mrb[48].mxu0  ;;  %v7013_v61 = vpop.f32.mrb[48].mxu1  ;;  %v1544_v26 = vmul.f32 %v6001_v56, %v1380_v46  ;;  %v7020_v18 = vadd.f32 %v6401_v51, %v1554_v28  ;;  %v7023_v27 = vadd.f32 %v6409_v58, %v1555_v23  ;;  %v1386_v17 = vadd.f32 %v6933_v57, %v6397_v47 }
 0x183   : > { %v1208_v9 = vpop.f32.mrb[49].mxu0  ;;  %v1401_v3 = vpop.f32.mrb[49].mxu1  ;;  %v1545_v35 = vmul.f32 %v6010_v60, %v1382_v21  ;;  %v7030_v34 = vadd.f32 %v6023_v63, %v1541_v54  ;;  %v1548_v36 = vmul.f32 %v6001_v56, %v1384_v22  ;;  %2830 = vmatprep.mubr.bf16.mxu0 %v1913_v25  ;;  %3216 = vmatprep.mubr.bf16.mxu1 %v1913_v25  ;;  %v1829_v54 = vmax.f32 %v7008_v33, 0.0 }
 0x184   : > { %v1210_v4 = vpop.f32.mrb[50].mxu0  ;;  %v1403_v55 = vpop.f32.mrb[50].mxu1  ;;  %v1912_v16 = vpack.c.bf16 %v1824_v24, %v1820_v52  ;;  %v7034_v59 = vadd.f32 %v6019_v62, %v1544_v26  ;;  %v1549_v21 = vmul.f32 %v6010_v60, %v1386_v17  ;;  %v1207_v57 = vadd.f32 %v1206_v53, %v6388_v42 }
 0x185   : > { %8117 = vst [vmem:[#allocation24_spill] sm:$0xff] %v7030_v34  ;;  %v1212_v28 = vpop.f32.mrb[51].mxu0  ;;  %v1405_v23 = vpop.f32.mrb[51].mxu1  ;;  %v1390_v46 = vadd.f32 %v6960_v0, %v6379_v40  ;;  %v7042_v48 = vadd.f32 %v6023_v63, %v1545_v35  ;;  %v1209_v24 = vadd.f32 %v1208_v9, %v6394_v44  ;;  %v1392_v52 = vadd.f32 %v6967_v49, %v6397_v47 }
 0x186   : > { %8118 = vst [vmem:[#allocation25_spill] sm:$0xff] %v7034_v59  ;;  %2831 = vmatmul.mubr.bf16.gmra.mrb[104].mxu0 %v1912_v16  ;;  %3217 = vmatmul.mubr.bf16.gmra.mrb[104].mxu1 %v1912_v16  ;;  %v1832_v25 = vmax.f32 %v7020_v18, 0.0  ;;  %v7049_v17 = vadd.f32 %v6019_v62, %v1548_v36  ;;  %v1558_v53 = vmul.f32 %v6385_v41, %v1207_v57  ;;  %v1833_v49 = vmax.f32 %v7023_v27, 0.0 }
 0x187   : > { %8119 = vst [vmem:[#allocation26_spill] sm:$0xff] %v7042_v48  ;;  %v1552_v0 = vmul.f32 %v6001_v56, %v1390_v46  ;;  %v7054_v33 = vadd.f32 %v6023_v63, %v1549_v21  ;;  %v1559_v26 = vmul.f32 %v6391_v43, %v1209_v24  ;;  %v1553_v22 = vmul.f32 %v6010_v60, %v1392_v52 }
 0x188   : > { %8120 = vst [vmem:[#allocation27_spill] sm:$0xff] %v7049_v17  ;;  %v1211_v9 = vadd.f32 %v1210_v4, %v6388_v42  ;;  %v1394_v36 = vadd.f32 %v6975_v50, %v6379_v40  ;;  %v7066_v57 = vadd.f32 %v6401_v51, %v1558_v53  ;;  %v1213_v4 = vadd.f32 %v1212_v28, %v6394_v44 }
 0x189   : > { %8121 = vst [vmem:[#allocation28_spill] sm:$0xff] %v7054_v33  ;;  %v7072_v35 = vadd.f32 %v6019_v62, %v1552_v0  ;;  %v1396_v59 = vadd.f32 %v6983_v37, %v6397_v47  ;;  %v7082_v28 = vadd.f32 %v6023_v63, %v1553_v22  ;;  %v1400_v37 = vadd.f32 %v7013_v61, %v6379_v40 }
 0x18a   : > { %v1216_v16 = vpop.f32.mrb[52].mxu0  ;;  %v1409_v46 = vpop.f32.mrb[52].mxu1  ;;  %v1562_v24 = vmul.f32 %v6385_v41, %v1211_v9  ;;  %v1556_v50 = vmul.f32 %v6001_v56, %v1394_v36  ;;  %v7079_v9 = vadd.f32 %v6409_v58, %v1559_v26  ;;  %v1563_v18 = vmul.f32 %v6391_v43, %v1213_v4 }
 0x18b   : > { %v1218_v52 = vpop.f32.mrb[53].mxu0  ;;  %v1411_v27 = vpop.f32.mrb[53].mxu1  ;;  %8122 = vst [vmem:[#allocation29_spill] sm:$0xff] %v7072_v35  ;;  %8123 = vst [vmem:[#allocation30_spill] sm:$0xff] %v7082_v28  ;;  %v1557_v36 = vmul.f32 %v6010_v60, %v1396_v59  ;;  %v1402_v53 = vadd.f32 %v1401_v3, %v6397_v47  ;;  %v1404_v22 = vadd.f32 %v1403_v55, %v6379_v40  ;;  %v8125_v26 = vmax.f32 %v6995_v45, 0.0 }
 0x18c   : > { %v1220_v21 = vpop.f32.mrb[54].mxu0  ;;  %v1413_v48 = vpop.f32.mrb[54].mxu1  ;;  %v7086_v34 = vadd.f32 %v6401_v51, %v1562_v24  ;;  %v7094_v33 = vadd.f32 %v6019_v62, %v1556_v50  ;;  %v1917_v4 = vpack.c.bf16 %v1833_v49, %v1829_v54  ;;  %v1713_v24 = vadd.f32 %v6409_v58, %v1563_v18 }
 0x18d   : > { %v1222_v17 = vpop.f32.mrb[55].mxu0  ;;  %v1415_v0 = vpop.f32.mrb[55].mxu1  ;;  %v1560_v39 = vmul.f32 %v6001_v56, %v1400_v37  ;;  %v1561_v59 = vmul.f32 %v6010_v60, %v1402_v53  ;;  %v1837_v61 = vmax.f32 %v7079_v9, 0.0  ;;  %v1564_v3 = vmul.f32 %v6001_v56, %v1404_v22 }
 0x18e   : > { %8124 = vst [vmem:[#allocation31_spill] sm:$0xff] %v7094_v33  ;;  %2840 = vmatprep.mubr.bf16.mxu0 %v1917_v4  ;;  %3226 = vmatprep.mubr.bf16.mxu1 %v1917_v4  ;;  %v1406_v50 = vadd.f32 %v1405_v23, %v6397_v47  ;;  %v1916_v55 = vpack.c.bf16 %v1832_v25, %v8125_v26  ;;  %v1840_v49 = vmax.f32 %v7086_v34, 0.0  ;;  %v1841_v26 = vmax.f32 %v1713_v24, 0.0 }
 0x18f   : > { %v7109_v18 = vadd.f32 %v6023_v63, %v1557_v36  ;;  %v1217_v53 = vadd.f32 %v1216_v16, %v6388_v42  ;;  %v7114_v4 = vadd.f32 %v6019_v62, %v1560_v39  ;;  %v1410_v45 = vadd.f32 %v1409_v46, %v6379_v40 }
 0x190   : > { %v1565_v23 = vmul.f32 %v6010_v60, %v1406_v50  ;;  %2841 = vmatmul.mubr.bf16.gmra.mrb[108].mxu0 %v1916_v55  ;;  %3227 = vmatmul.mubr.bf16.gmra.mrb[108].mxu1 %v1916_v55  ;;  %v7119_v36 = vadd.f32 %v6023_v63, %v1561_v59  ;;  %v1219_v12 = vadd.f32 %v1218_v52, %v6394_v44 }
 0x191   : > { %8126 = vst [vmem:[#allocation32_spill] sm:$0xff] %v7109_v18  ;;  %8127 = vst [vmem:[#allocation33_spill] sm:$0xff] %v7114_v4  ;;  %v1566_v16 = vmul.f32 %v6385_v41, %v1217_v53  ;;  %v7124_v39 = vadd.f32 %v6019_v62, %v1564_v3  ;;  %v1568_v46 = vmul.f32 %v6001_v56, %v1410_v45 }
 0x192   : > { %v1226_v37 = vpop.f32.mrb[56].mxu0  ;;  %v1419_v9 = vpop.f32.mrb[56].mxu1  ;;  %8128 = vst [vmem:[#allocation34_spill] sm:$0xff] %v7119_v36  ;;  %v7127_v50 = vadd.f32 %v6023_v63, %v1565_v23  ;;  %v1412_v55 = vadd.f32 %v1411_v27, %v6397_v47  ;;  %v1567_v53 = vmul.f32 %v6391_v43, %v1219_v12  ;;  %v1221_v52 = vadd.f32 %v1220_v21, %v6388_v42 }
 0x193   : > { %v1228_v25 = vpop.f32.mrb[57].mxu0  ;;  %v1421_v34 = vpop.f32.mrb[57].mxu1  ;;  %8129 = vst [vmem:[#allocation35_spill] sm:$0xff] %v7124_v39  ;;  %v7132_v59 = vadd.f32 %v6401_v51, %v1566_v16  ;;  %v1414_v35 = vadd.f32 %v1413_v48, %v6379_v40  ;;  %v1223_v45 = vadd.f32 %v1222_v17, %v6394_v44  ;;  %v7143_v14 = vadd.f32 %v6019_v62, %v1568_v46 }
 0x194   : > { %v1230_v22 = vpop.f32.mrb[58].mxu0  ;;  %v1423_v54 = vpop.f32.mrb[58].mxu1  ;;  %8130 = vst [vmem:[#allocation36_spill] sm:$0xff] %v7127_v50  ;;  %v1569_v28 = vmul.f32 %v6010_v60, %v1412_v55  ;;  %v1570_v16 = vmul.f32 %v6385_v41, %v1221_v52  ;;  %v1416_v23 = vadd.f32 %v1415_v0, %v6397_v47  ;;  %v1717_v17 = vadd.f32 %v6409_v58, %v1567_v53 }
 0x195   : > { %v1232_v24 = vpop.f32.mrb[59].mxu0  ;;  %v1425_v33 = vpop.f32.mrb[59].mxu1  ;;  %8131 = vst [vmem:[#allocation37_spill] sm:$0xff] %v7143_v14  ;;  %v1572_v12 = vmul.f32 %v6001_v56, %v1414_v35  ;;  %v1571_v3 = vmul.f32 %v6391_v43, %v1223_v45  ;;  %v1844_v55 = vmax.f32 %v7132_v59, 0.0  ;;  %v1921_v46 = vpack.c.bf16 %v1841_v26, %v1837_v61 }
 0x196   : > { %v1720_v27 = vadd.f32 %v6401_v51, %v1570_v16  ;;  %v7155_v52 = vadd.f32 %v6023_v63, %v1569_v28  ;;  %v1573_v21 = vmul.f32 %v6010_v60, %v1416_v23  ;;  %v8133_v45 = vmax.f32 %v7066_v57, 0.0 }
 0x197   : > { %v1721_v35 = vadd.f32 %v6409_v58, %v1571_v3  ;;  %v7163_v53 = vadd.f32 %v6019_v62, %v1572_v12  ;;  %2850 = vmatprep.mubr.bf16.mxu0 %v1921_v46  ;;  %3236 = vmatprep.mubr.bf16.mxu1 %v1921_v46  ;;  %v1227_v61 = vadd.f32 %v1226_v37, %v6388_v42 }
 0x198   : > { %8132 = vst [vmem:[#allocation38_spill] sm:$0xff] %v7155_v52  ;;  %v1920_v48 = vpack.c.bf16 %v1840_v49, %v8133_v45  ;;  %v1420_v28 = vadd.f32 %v1419_v9, %v6379_v40  ;;  %v1848_v16 = vmax.f32 %v1720_v27, 0.0  ;;  %v7168_v23 = vadd.f32 %v6023_v63, %v1573_v21 }
 0x199   : > { %8134 = vst [vmem:[#allocation39_spill] sm:$0xff] %v7163_v53  ;;  %v1229_v57 = vadd.f32 %v1228_v25, %v6394_v44  ;;  %v1422_v49 = vadd.f32 %v1421_v34, %v6397_v47  ;;  %v1574_v46 = vmul.f32 %v6385_v41, %v1227_v61  ;;  %v1231_v9 = vadd.f32 %v1230_v22, %v6388_v42 }
 0x19a   : > { %v1236_v4 = vpop.f32.mrb[60].mxu0  ;;  %v1429_v36 = vpop.f32.mrb[60].mxu1  ;;  %8135 = vst [vmem:[#allocation40_spill] sm:$0xff] %v7168_v23  ;;  %2851 = vmatmul.mubr.bf16.gmra.mrb[112].mxu0 %v1920_v48  ;;  %3237 = vmatmul.mubr.bf16.gmra.mrb[112].mxu1 %v1920_v48  ;;  %v1576_v37 = vmul.f32 %v6001_v56, %v1420_v28  ;;  %v1424_v59 = vadd.f32 %v1423_v54, %v6379_v40  ;;  %v1849_v27 = vmax.f32 %v1721_v35, 0.0  ;;  %v1845_v22 = vmax.f32 %v1717_v17, 0.0 }
 0x19b   : > { %v1238_v0 = vpop.f32.mrb[61].mxu0  ;;  %v1431_v39 = vpop.f32.mrb[61].mxu1  ;;  %v1575_v21 = vmul.f32 %v6391_v43, %v1229_v57  ;;  %v1577_v14 = vmul.f32 %v6010_v60, %v1422_v49  ;;  %v1233_v48 = vadd.f32 %v1232_v24, %v6394_v44  ;;  %v7180_v25 = vadd.f32 %v6401_v51, %v1574_v46 }
 0x19c   : > { %v1240_v26 = vpop.f32.mrb[62].mxu0  ;;  %v1433_v3 = vpop.f32.mrb[62].mxu1  ;;  %v7183_v34 = vadd.f32 %v6019_v62, %v1576_v37  ;;  %v1578_v61 = vmul.f32 %v6385_v41, %v1231_v9  ;;  %v1580_v28 = vmul.f32 %v6001_v56, %v1424_v59  ;;  %v1426_v57 = vadd.f32 %v1425_v33, %v6397_v47 }
 0x19d   : > { %v1242_v12 = vpop.f32.mrb[63].mxu0  ;;  %v1435_v45 = vpop.f32.mrb[63].mxu1  ;;  %v7188_v54 = vadd.f32 %v6409_v58, %v1575_v21  ;;  %v1579_v35 = vmul.f32 %v6391_v43, %v1233_v48  ;;  %v1852_v59 = vmax.f32 %v7180_v25, 0.0  ;;  %v7198_v17 = vadd.f32 %v6023_v63, %v1577_v14 }
 0x19e   : > { %v1728_v37 = vadd.f32 %v6401_v51, %v1578_v61  ;;  %v1581_v48 = vmul.f32 %v6010_v60, %v1426_v57  ;;  %v7204_v49 = vadd.f32 %v6019_v62, %v1580_v28  ;;  %v1925_v46 = vpack.c.bf16 %v1849_v27, %v1845_v22 }
 0x19f   : > { %v1729_v21 = vadd.f32 %v6409_v58, %v1579_v35  ;;  %v1924_v61 = vpack.c.bf16 %v1848_v16, %v1844_v55  ;;  %v1853_v25 = vmax.f32 %v7188_v54, 0.0  ;;  %v1237_v35 = vadd.f32 %v1236_v4, %v6388_v42 }
 0x1a0   : > { %v7208_v14 = vadd.f32 %v6023_v63, %v1581_v48  ;;  %v1430_v57 = vadd.f32 %v1429_v36, %v6379_v40  ;;  %v1856_v24 = vmax.f32 %v1728_v37, 0.0  ;;  %2860 = vmatprep.mubr.bf16.mxu0 %v1925_v46  ;;  %3246 = vmatprep.mubr.bf16.mxu1 %v1925_v46  ;;  %v1239_v27 = vadd.f32 %v1238_v0, %v6394_v44 }
 0x1a1   : > { %v1432_v55 = vadd.f32 %v1431_v39, %v6397_v47  ;;  %v1241_v16 = vadd.f32 %v1240_v26, %v6388_v42  ;;  %v1857_v28 = vmax.f32 %v1729_v21, 0.0  ;;  %v1582_v22 = vmul.f32 %v6385_v41, %v1237_v35 }
 0x1a2   : > { %v1246_v50 = vpop.f32.mrb[64].mxu0  ;;  %v1439_v9 = vpop.f32.mrb[64].mxu1  ;;  %2861 = vmatmul.mubr.bf16.gmra.mrb[116].mxu0 %v1924_v61  ;;  %3247 = vmatmul.mubr.bf16.gmra.mrb[116].mxu1 %v1924_v61  ;;  %v1584_v4 = vmul.f32 %v6001_v56, %v1430_v57  ;;  %v1434_v36 = vadd.f32 %v1433_v3, %v6379_v40  ;;  %v1583_v54 = vmul.f32 %v6391_v43, %v1239_v27  ;;  %v5667_v3 = vld [vmem:[%s8049_s9 + $0x40] sm:$0xff]  }
 0x1a3   : > { %v1248_v33 = vpop.f32.mrb[65].mxu0  ;;  %v1441_v18 = vpop.f32.mrb[65].mxu1  ;;  %v1585_v37 = vmul.f32 %v6010_v60, %v1432_v55  ;;  %v1586_v46 = vmul.f32 %v6385_v41, %v1241_v16  ;;  %v1243_v0 = vadd.f32 %v1242_v12, %v6394_v44  ;;  %v7225_v39 = vadd.f32 %v6401_v51, %v1582_v22  ;;  %v5669_v27 = vld [vmem:[%s8049_s9 + $0xc0] sm:$0xff]   ;;  %4998 = vmatprep.subr.bf16.mxu0 %v5667_v3 }
 0x1a4   : > { %v1250_v53 = vpop.f32.mrb[66].mxu0  ;;  %v1443_v23 = vpop.f32.mrb[66].mxu1  ;;  %v7228_v26 = vadd.f32 %v6019_v62, %v1584_v4  ;;  %v1588_v21 = vmul.f32 %v6001_v56, %v1434_v36  ;;  %v1436_v48 = vadd.f32 %v1435_v45, %v6397_v47  ;;  %v1733_v35 = vadd.f32 %v6409_v58, %v1583_v54  ;;  %5110 = vmatprep.subr.bf16.mxu1 %v5669_v27 }
 0x1a5   : > { %v1252_v52 = vpop.f32.mrb[67].mxu0  ;;  %v7212_v29 = vpop.f32.mrb[67].mxu1  ;;  %v7238_v12 = vadd.f32 %v6023_v63, %v1585_v37  ;;  %v1587_v57 = vmul.f32 %v6391_v43, %v1243_v0  ;;  %v1736_v16 = vadd.f32 %v6401_v51, %v1586_v46  ;;  %v1860_v4 = vmax.f32 %v7225_v39, 0.0 }
 0x1a6   : > { %v1589_v22 = vmul.f32 %v6010_v60, %v1436_v48  ;;  %v7251_v54 = vadd.f32 %v6019_v62, %v1588_v21  ;;  %v1861_v0 = vmax.f32 %v1733_v35, 0.0  ;;  %v1929_v61 = vpack.c.bf16 %v1857_v28, %v1853_v25 }
 0x1a7   : > { %v1737_v37 = vadd.f32 %v6409_v58, %v1587_v57  ;;  %v1863_v55 = vmax.f32 %v7238_v12, 0.0  ;;  %v1928_v45 = vpack.c.bf16 %v1856_v24, %v1852_v59  ;;  %v1247_v48 = vadd.f32 %v1246_v50, %v6388_v42  ;;  %v8225_v12 = vld [vmem:[#allocation6_spill] sm:$0xff] }
 0x1a8   : > { %v7256_v46 = vadd.f32 %v6023_v63, %v1589_v22  ;;  %v1440_v39 = vadd.f32 %v1439_v9, %v6379_v40  ;;  %v1249_v3 = vadd.f32 %v1248_v33, %v6394_v44  ;;  %v1864_v36 = vmax.f32 %v1736_v16, 0.0  ;;  %2870 = vmatprep.mubr.bf16.mxu0 %v1929_v61  ;;  %3256 = vmatprep.mubr.bf16.mxu1 %v1929_v61 }
 0x1a9   : > { %v1442_v21 = vadd.f32 %v1441_v18, %v6397_v47  ;;  %v1251_v35 = vadd.f32 %v1250_v53, %v6388_v42  ;;  %v1444_v57 = vadd.f32 %v1443_v23, %v6379_v40  ;;  %v1865_v25 = vmax.f32 %v1737_v37, 0.0 }
 0x1aa   : > { %2871 = vmatmul.mubr.bf16.gmra.mrb[120].mxu0 %v1928_v45  ;;  %3257 = vmatmul.mubr.bf16.gmra.mrb[120].mxu1 %v1928_v45  ;;  %v1590_v24 = vmul.f32 %v6385_v41, %v1247_v48  ;;  %v1592_v50 = vmul.f32 %v6001_v56, %v1440_v39  ;;  %v1591_v9 = vmul.f32 %v6391_v43, %v1249_v3  ;;  %v1866_v61 = vmax.f32 %v7251_v54, 0.0 }
 0x1ab   : > { %v1593_v59 = vmul.f32 %v6010_v60, %v1442_v21  ;;  %v1594_v33 = vmul.f32 %v6385_v41, %v1251_v35  ;;  %v1596_v28 = vmul.f32 %v6001_v56, %v1444_v57  ;;  %v1253_v18 = vadd.f32 %v1252_v52, %v6394_v44 }
 0x1ac   : > { %v1740_v42 = vadd.f32 %v6401_v51, %v1590_v24  ;;  %v1742_v40 = vadd.f32 %v6019_v62, %v1592_v50  ;;  %v1741_v53 = vadd.f32 %v6409_v58, %v1591_v9  ;;  %v1446_v23 = vadd.f32 %v7212_v29, %v6397_v47 }
 0x1ad   : > { %v1867_v27 = vmax.f32 %v7256_v46, 0.0  ;;  %v1744_v45 = vadd.f32 %v6401_v51, %v1594_v33  ;;  %v1595_v41 = vmul.f32 %v6391_v43, %v1253_v18  ;;  %v1743_v44 = vadd.f32 %v6023_v63, %v1593_v59  ;;  %v8154_v33 = vld [vmem:[#allocation8_spill] sm:$0xff] }
 0x1ae   : > { %v1868_v56 = vmax.f32 %v1740_v42, 0.0  ;;  %v1746_v52 = vadd.f32 %v6019_v62, %v1596_v28  ;;  %v1597_v16 = vmul.f32 %v6010_v60, %v1446_v23  ;;  %v1870_v22 = vmax.f32 %v1742_v40, 0.0  ;;  %v8156_v42 = vld [vmem:[#allocation10_spill] sm:$0xff] }
 0x1af   : > { %v1869_v37 = vmax.f32 %v1741_v53, 0.0  ;;  %v1872_v48 = vmax.f32 %v1744_v45, 0.0  ;;  %v1745_v47 = vadd.f32 %v6409_v58, %v1595_v41  ;;  %v1933_v54 = vpack.c.bf16 %v1865_v25, %v1861_v0  ;;  %v8158_v53 = vld [vmem:[#allocation12_spill] sm:$0xff]  ;;  %v8162_v41 = vld [vmem:[#allocation11_spill] sm:$0xff] }
 0x1b0   : > { %v1747_v29 = vadd.f32 %v6023_v63, %v1597_v16  ;;  %v1932_v46 = vpack.c.bf16 %v1864_v36, %v1860_v4  ;;  %v8136_v51 = vmax.f32 %v6460_v10, 0.0  ;;  %v8137_v43 = vmax.f32 %v6467_v13, 0.0 }
 0x1b1   : > { %v1873_v3 = vmax.f32 %v1745_v47, 0.0  ;;  %v1936_v21 = vpack.c.bf16 %v1872_v48, %v1868_v56  ;;  %v8138_v62 = vmax.f32 %v6508_v2, 0.0  ;;  %v8139_v60 = vmax.f32 %v6523_v11, 0.0  ;;  %2880 = vmatprep.mubr.bf16.mxu0 %v1933_v54  ;;  %3266 = vmatprep.mubr.bf16.mxu1 %v1933_v54  ;;  %v8168_v47 = vld [vmem:[#allocation13_spill] sm:$0xff] }
 0x1b2   : > { %v1879_v39 = vpack.c.bf16 %v8137_v43, %v8136_v51  ;;  %v8140_v57 = vmax.f32 %v6478_v19, 0.0  ;;  %v8141_v58 = vmax.f32 %v6513_v5, 0.0  ;;  %v1871_v63 = vmax.f32 %v1743_v44, 0.0  ;;  %2881 = vmatmul.mubr.bf16.gmra.mrb[124].mxu0 %v1932_v46  ;;  %3267 = vmatmul.mubr.bf16.gmra.mrb[124].mxu1 %v1932_v46  ;;  %v8170_v46 = vld [vmem:[#allocation15_spill] sm:$0xff] }
 0x1b3   : > { %v1883_v35 = vpack.c.bf16 %v8139_v60, %v8138_v62  ;;  %v8142_v10 = vmax.f32 %v6569_v7, 0.0  ;;  %v8143_v13 = vmax.f32 %v6614_v20, 0.0  ;;  %v8144_v2 = vmax.f32 %v6558_v1, 0.0  ;;  %v8174_v60 = vld [vmem:[#allocation20_spill] sm:$0xff] }
 0x1b4   : > { %v7297_v24 = vpack.c.bf16 %v8141_v58, %v8140_v57  ;;  %v8145_v11 = vmax.f32 %v6577_v15, 0.0  ;;  %v8146_v19 = vmax.f32 %v6639_v38, 0.0  ;;  %v8147_v5 = vmax.f32 %v6693_v6, 0.0  ;;  %v8152_v38 = vld [vmem:[#allocation7_spill] sm:$0xff] }
 0x1b5   : > { %v7303_v4 = vpack.c.bf16 %v8143_v13, %v8142_v10  ;;  %v1874_v25 = vmax.f32 %v1746_v52, 0.0  ;;  %v1937_v7 = vpack.c.bf16 %v1873_v3, %v1869_v37  ;;  %v8148_v20 = vmax.f32 %v6629_v30, 0.0  ;;  %v8166_v52 = vld [vmem:[#allocation16_spill] sm:$0xff]  ;;  %v8172_v3 = vld [vmem:[#allocation18_spill] sm:$0xff]  ;;  %v8176_v10 = vld [vmem:[#allocation17_spill] sm:$0xff] }
 0x1b6   : > { %v7309_v36 = vpack.c.bf16 %v8145_v11, %v8144_v2  ;;  %v7315_v0 = vpack.c.bf16 %v8147_v5, %v8146_v19  ;;  %v8149_v50 = vmax.f32 %v6654_v8, 0.0  ;;  %v8150_v1 = vmax.f32 %v6720_v31, 0.0  ;;  %v8160_v8 = vld [vmem:[#allocation9_spill] sm:$0xff]  ;;  %v8178_v2 = vld [vmem:[#allocation19_spill] sm:$0xff] }
 0x1b7   : > { %v8151_v15 = vmax.f32 %v6761_v32, 0.0  ;;  %v8153_v6 = vmax.f32 %v8152_v38, 0.0  ;;  %v8155_v28 = vmax.f32 %v8154_v33, 0.0  ;;  %v8157_v40 = vmax.f32 %v8156_v42, 0.0  ;;  %v8164_v32 = vld [vmem:[#allocation14_spill] sm:$0xff]  ;;  %2890 = vmatprep.mubr.bf16.mxu0 %v1937_v7  ;;  %3276 = vmatprep.mubr.bf16.mxu1 %v1937_v7  ;;  %v8182_v7 = vld [vmem:[#allocation24_spill] sm:$0xff] }
 0x1b8   : > { %v7321_v9 = vpack.c.bf16 %v8149_v50, %v8148_v20  ;;  %v8159_v30 = vmax.f32 %v8158_v53, 0.0  ;;  %v8161_v45 = vmax.f32 %v8160_v8, 0.0  ;;  %v8163_v31 = vmax.f32 %v8162_v41, 0.0  ;;  %v8186_v38 = vld [vmem:[#allocation23_spill] sm:$0xff]  ;;  %v8192_v8 = vld [vmem:[#allocation25_spill] sm:$0xff] }
 0x1b9   : > { %v7327_v59 = vpack.c.bf16 %v8151_v15, %v8150_v1  ;;  %v7333_v18 = vpack.c.bf16 %v8155_v28, %v8153_v6  ;;  %v8165_v44 = vmax.f32 %v8164_v32, 0.0  ;;  %v8167_v16 = vmax.f32 %v8166_v52, 0.0  ;;  %v8184_v1 = vld [vmem:[#allocation21_spill] sm:$0xff]  ;;  %v8188_v28 = vld [vmem:[#allocation26_spill] sm:$0xff]  ;;  %v8194_v41 = vld [vmem:[#allocation27_spill] sm:$0xff] }
 0x1ba   : > { %v7339_v23 = vpack.c.bf16 %v8159_v30, %v8157_v40  ;;  %v7345_v56 = vpack.c.bf16 %v8163_v31, %v8161_v45  ;;  %v1875_v48 = vmax.f32 %v1747_v29, 0.0  ;;  %v8169_v54 = vmax.f32 %v8168_v47, 0.0  ;;  %v8180_v29 = vld [vmem:[#allocation22_spill] sm:$0xff]  ;;  %v8190_v40 = vld [vmem:[#allocation28_spill] sm:$0xff]  ;;  %2891 = vmatmul.mubr.bf16.gmra.mrb[128].mxu0 %v1936_v21  ;;  %3277 = vmatmul.mubr.bf16.gmra.mrb[128].mxu1 %v1936_v21 }
 0x1bb   : > { %v7351_v37 = vpack.c.bf16 %v8167_v16, %v8165_v44  ;;  %v8171_v51 = vmax.f32 %v8170_v46, 0.0  ;;  %v8173_v62 = vmax.f32 %v8172_v3, 0.0  ;;  %v8175_v57 = vmax.f32 %v8174_v60, 0.0  ;;  %v8196_v44 = vld [vmem:[#allocation30_spill] sm:$0xff]  ;;  %v8198_v16 = vld [vmem:[#allocation32_spill] sm:$0xff]  ;;  %v8200_v46 = vld [vmem:[#allocation29_spill] sm:$0xff]  ;;  %2933 = vmatprep.mubr.bf16.mxu0 %v1879_v39  ;;  %3319 = vmatprep.mubr.bf16.mxu1 %v1879_v39 }
 0x1bc   : > { %v8177_v13 = vmax.f32 %v8176_v10, 0.0  ;;  %v8179_v11 = vmax.f32 %v8178_v2, 0.0  ;;  %v8181_v5 = vmax.f32 %v8180_v29, 0.0  ;;  %v8183_v20 = vmax.f32 %v8182_v7, 0.0  ;;  %v8202_v3 = vld [vmem:[#allocation31_spill] sm:$0xff]  ;;  %v8208_v29 = vld [vmem:[#allocation33_spill] sm:$0xff] }
 0x1bd   : > { %v7357_v43 = vpack.c.bf16 %v8171_v51, %v8169_v54  ;;  %v7363_v58 = vpack.c.bf16 %v8175_v57, %v8173_v62  ;;  %v8185_v15 = vmax.f32 %v8184_v1, 0.0  ;;  %v8187_v6 = vmax.f32 %v8186_v38, 0.0  ;;  %v8204_v57 = vld [vmem:[#allocation34_spill] sm:$0xff]  ;;  %v8210_v7 = vld [vmem:[#allocation35_spill] sm:$0xff]  ;;  %v5676_v39 = vld [vmem:[%s8049_s9 + $0x10] sm:$0xff]  }
 0x1be   : > { %v7369_v19 = vpack.c.bf16 %v8179_v11, %v8177_v13  ;;  %v7375_v50 = vpack.c.bf16 %v8183_v20, %v8181_v5  ;;  %v8189_v42 = vmax.f32 %v8188_v28, 0.0  ;;  %v8191_v53 = vmax.f32 %v8190_v40, 0.0  ;;  %v8206_v13 = vld [vmem:[#allocation36_spill] sm:$0xff]  ;;  %v8216_v40 = vld [vmem:[#allocation37_spill] sm:$0xff] }
 0x1bf   : > { %v7381_v33 = vpack.c.bf16 %v8187_v6, %v8185_v15  ;;  %v8193_v45 = vmax.f32 %v8192_v8, 0.0  ;;  %v8195_v31 = vmax.f32 %v8194_v41, 0.0  ;;  %v8197_v52 = vmax.f32 %v8196_v44, 0.0  ;;  %v8212_v15 = vld [vmem:[#allocation38_spill] sm:$0xff]  ;;  %v8214_v6 = vld [vmem:[#allocation40_spill] sm:$0xff]  ;;  %v8218_v8 = vld [vmem:[#allocation39_spill] sm:$0xff] }
 0x1c0   : > { %v7387_v30 = vpack.c.bf16 %v8191_v53, %v8189_v42  ;;  %v8199_v47 = vmax.f32 %v8198_v16, 0.0  ;;  %v8201_v51 = vmax.f32 %v8200_v46, 0.0  ;;  %v8203_v62 = vmax.f32 %v8202_v3, 0.0  ;;  %v5678_v21 = vld [vmem:[%s8049_s9 + $0x90] sm:$0xff]  }
 0x1c1   : > { %v7393_v32 = vpack.c.bf16 %v8195_v31, %v8193_v45  ;;  %v8205_v10 = vmax.f32 %v8204_v57, 0.0  ;;  %v8207_v2 = vmax.f32 %v8206_v13, 0.0  ;;  %v8209_v5 = vmax.f32 %v8208_v29, 0.0  ;;  %v5686_v13 = vld [vmem:[%s8049_s9 + $0xa0] sm:$0xff]   ;;  %v5689_v29 = vld [vmem:[%s8049_s9 + $0xe8] sm:$0xff]  }
 0x1c2   : > { %v7399_v54 = vpack.c.bf16 %v8199_v47, %v8197_v52  ;;  %v7405_v60 = vpack.c.bf16 %v8203_v62, %v8201_v51  ;;  %v8211_v20 = vmax.f32 %v8210_v7, 0.0  ;;  %v8213_v38 = vmax.f32 %v8212_v15, 0.0  ;;  %2934 = vmatmul.mubr.bf16.vlgmr.msra.gmra.mrb[68].mxu0 %v8225_v12  ;;  %3320 = vmatmul.mubr.bf16.vlgmr.msra.gmra.mrb[68].mxu1 %v8225_v12  ;;  %v5690_v7 = vld [vmem:[%s8049_s9 + $0xa8] sm:$0xff]   ;;  %v5694_v15 = vld [vmem:[%s8049_s9 + $0xb0] sm:$0xff]  }
 0x1c3   : > { %v7411_v11 = vpack.c.bf16 %v8207_v2, %v8205_v10  ;;  %v8215_v28 = vmax.f32 %v8214_v6, 0.0  ;;  %v8217_v53 = vmax.f32 %v8216_v40, 0.0  ;;  %v8219_v45 = vmax.f32 %v8218_v8, 0.0  ;;  %2943 = vmatprep.mubr.bf16.mxu0 %v1883_v35  ;;  %3329 = vmatprep.mubr.bf16.mxu1 %v1883_v35  ;;  %v5679_v35 = vld [vmem:[%s8049_s9 + $0x58] sm:$0xff]   ;;  %v5684_v10 = vld [vmem:[%s8049_s9 + $0x20] sm:$0xff]   ;;  %v5687_v2 = vld [vmem:[%s8049_s9 + $0x68] sm:$0xff]  }
 0x1c4   : > { %v7417_v1 = vpack.c.bf16 %v8211_v20, %v8209_v5  ;;  %v8220_v31 = vmax.f32 %v7198_v17, 0.0  ;;  %v8221_v44 = vmax.f32 %v7208_v14, 0.0  ;;  %v8222_v16 = vmax.f32 %v7183_v34, 0.0  ;;  %v5668_v34 = vld [vmem:[%s8049_s9] sm:$0xff]   ;;  %v5671_v14 = vld [vmem:[%s8049_s9 + $0x48] sm:$0xff]   ;;  %v5692_v20 = vld [vmem:[%s8049_s9 + $0x30] sm:$0xff]  }
 0x1c5   : > { %v7423_v42 = vpack.c.bf16 %v8215_v28, %v8213_v38  ;;  %v7429_v41 = vpack.c.bf16 %v8219_v45, %v8217_v53  ;;  %v8223_v47 = vmax.f32 %v7204_v49, 0.0  ;;  %v7445_v51 = vpack.c.bf16 %v1867_v27, %v1863_v55  ;;  %v5670_v49 = vld [vmem:[%s8049_s9 + $0x80] sm:$0xff]   ;;  %4999 = vmatpush3.bf16.msra.mxu0 %v5668_v34  ;;  %v5672_v55 = vld [vmem:[%s8049_s9 + $0x8] sm:$0xff]   ;;  %v5675_v27 = vld [vmem:[%s8049_s9 + $0x50] sm:$0xff]  }
 0x1c6   : > { %v7435_v52 = vpack.c.bf16 %v8221_v44, %v8220_v31  ;;  %v8224_v3 = vmax.f32 %v7228_v26, 0.0  ;;  %v7451_v57 = vpack.c.bf16 %v1875_v48, %v1871_v63  ;;  %v7453_v17 = vpack.c.bf16 %v1874_v25, %v1870_v22  ;;  %v5673_v26 = vld [vmem:[%s8049_s9 + $0xc8] sm:$0xff]   ;;  %5111 = vmatpush3.bf16.msra.mxu1 %v5670_v49  ;;  %5000 = vmatprep.subr.bf16.mxu0 %v5671_v14  ;;  %v5677_v22 = vld [vmem:[%s8049_s9 + $0xd0] sm:$0xff]   ;;  %v5681_v63 = vld [vmem:[%s8049_s9 + $0xd8] sm:$0xff]  }
 0x1c7   : > { %v7441_v46 = vpack.c.bf16 %v8223_v47, %v8222_v16  ;;  %5112 = vmatprep.subr.bf16.mxu1 %v5673_v26  ;;  %v5680_v25 = vld [vmem:[%s8049_s9 + $0x18] sm:$0xff]   ;;  %v5688_v5 = vld [vmem:[%s8049_s9 + $0x28] sm:$0xff]  }
 0x1c8   : > { %v7449_v62 = vpack.c.bf16 %v1866_v61, %v8224_v3  ;;  %v5674_v61 = vld [vmem:[%s8049_s9 + $0x88] sm:$0xff]   ;;  %v5682_v48 = vld [vmem:[%s8049_s9 + $0x98] sm:$0xff]  }
 0x1c9   : > { %5001 = vmatpush3.bf16.msra.mxu0 %v5672_v55  ;;  %v5695_v38 = vld [vmem:[%s8049_s9 + $0x78] sm:$0xff]  }
 0x1ca   : > { %5113 = vmatpush3.bf16.msra.mxu1 %v5674_v61  ;;  %5002 = vmatprep.subr.bf16.mxu0 %v5675_v27  ;;  %v5697_v6 = vld [vmem:[%s8049_s9 + $0xf8] sm:$0xff]  }
 0x1cb   : > { %5114 = vmatprep.subr.bf16.mxu1 %v5677_v22  ;;  %2944 = vmatmul.mubr.bf16.gmra.mrb[72].mxu0 %v7297_v24  ;;  %v5696_v28 = vld [vmem:[%s8049_s9 + $0x38] sm:$0xff]  }
 0x1cc   : > { %3330 = vmatmul.mubr.bf16.gmra.mrb[72].mxu1 %v7297_v24  ;;  %2953 = vmatprep.mubr.bf16.mxu0 %v7303_v4  ;;  %v5683_v24 = vld [vmem:[%s8049_s9 + $0x60] sm:$0xff]  }
 0x1cd   : > { %3339 = vmatprep.mubr.bf16.mxu1 %v7303_v4  ;;  %5003 = vmatpush3.bf16.msra.mxu0 %v5676_v39  ;;  %v5685_v4 = vld [vmem:[%s8049_s9 + $0xe0] sm:$0xff]  }
 0x1ce   : > { %5115 = vmatpush3.bf16.msra.mxu1 %v5678_v21  ;;  %5004 = vmatprep.subr.bf16.mxu0 %v5679_v35 }
 0x1cf   : > { %5116 = vmatprep.subr.bf16.mxu1 %v5681_v63 }
 0x1d1   : > { %5005 = vmatpush3.bf16.msra.mxu0 %v5680_v25 }
 0x1d2   : > { %5117 = vmatpush3.bf16.msra.mxu1 %v5682_v48  ;;  %5006 = vmatprep.subr.bf16.mxu0 %v5683_v24 }
 0x1d3   : > { %5118 = vmatprep.subr.bf16.mxu1 %v5685_v4  ;;  %2954 = vmatmul.mubr.bf16.gmra.mrb[76].mxu0 %v7309_v36 }
 0x1d4   : > { %3340 = vmatmul.mubr.bf16.gmra.mrb[76].mxu1 %v7309_v36  ;;  %2963 = vmatprep.mubr.bf16.mxu0 %v7315_v0  ;;  %v5691_v36 = vld [vmem:[%s8049_s9 + $0x70] sm:$0xff]  }
 0x1d5   : > { %3349 = vmatprep.mubr.bf16.mxu1 %v7315_v0  ;;  %5007 = vmatpush3.bf16.msra.mxu0 %v5684_v10  ;;  %v5693_v0 = vld [vmem:[%s8049_s9 + $0xf0] sm:$0xff]  }
 0x1d6   : > { %5119 = vmatpush3.bf16.msra.mxu1 %v5686_v13  ;;  %5008 = vmatprep.subr.bf16.mxu0 %v5687_v2 }
 0x1d7   : > { %5120 = vmatprep.subr.bf16.mxu1 %v5689_v29 }
 0x1d9   : > { %5009 = vmatpush3.bf16.msra.mxu0 %v5688_v5 }
 0x1da   : > { %5121 = vmatpush3.bf16.msra.mxu1 %v5690_v7  ;;  %5010 = vmatprep.subr.bf16.mxu0 %v5691_v36 }
 0x1db   : > { %5122 = vmatprep.subr.bf16.mxu1 %v5693_v0  ;;  %2964 = vmatmul.mubr.bf16.gmra.mrb[80].mxu0 %v7321_v9 }
 0x1dc   : > { %3350 = vmatmul.mubr.bf16.gmra.mrb[80].mxu1 %v7321_v9  ;;  %2973 = vmatprep.mubr.bf16.mxu0 %v7327_v59  ;;  %v5698_v9 = vld [vmem:[%s8049_s9 + $0xb8] sm:$0xff]  }
 0x1dd   : > { %3359 = vmatprep.mubr.bf16.mxu1 %v7327_v59  ;;  %5011 = vmatpush3.bf16.msra.mxu0 %v5692_v20  ;;  %v3480_v59 = vld [vmem:[%s8047_s7] sm:$0xf] }
 0x1de   : > { %5123 = vmatpush3.bf16.msra.mxu1 %v5694_v15  ;;  %5012 = vmatprep.subr.bf16.mxu0 %v5695_v38 }
 0x1df   : > { %5124 = vmatprep.subr.bf16.mxu1 %v5697_v6 }
 0x1e1   : > { %5013 = vmatpush3.bf16.msra.mxu0 %v5696_v28 }
 0x1e2   : > { %5125 = vmatpush3.bf16.msra.mxu1 %v5698_v9 }
 0x1e3   : > { %2974 = vmatmul.mubr.bf16.gmra.mrb[84].mxu0 %v7333_v18 }
 0x1e4   : > { %3360 = vmatmul.mubr.bf16.gmra.mrb[84].mxu1 %v7333_v18  ;;  %2983 = vmatprep.mubr.bf16.mxu0 %v7339_v23  ;;  %v3630_v18 = vld [vmem:[%s8048_s8] sm:$0xf] }
 0x1e5   : > { %3369 = vmatprep.mubr.bf16.mxu1 %v7339_v23  ;;  %v8226_v23 = vld [vmem:[#allocation5_spill] sm:$0xff] }
 0x1eb   : > { %2984 = vmatmul.mubr.bf16.gmra.mrb[88].mxu0 %v7345_v56 }
 0x1ec   : > { %3370 = vmatmul.mubr.bf16.gmra.mrb[88].mxu1 %v7345_v56  ;;  %2993 = vmatprep.mubr.bf16.mxu0 %v7351_v37  ;;  %v7612_v56 = vrot.slane %v3480_v59, %v8226_v23 }
 0x1ed   : > { %3379 = vmatprep.mubr.bf16.mxu1 %v7351_v37  ;;  %v8227_v37 = vld [vmem:[#allocation3_spill] sm:$0xff] }
 0x1f3   : > { %2994 = vmatmul.mubr.bf16.gmra.mrb[92].mxu0 %v7357_v43 }
 0x1f4   : > { %3380 = vmatmul.mubr.bf16.gmra.mrb[92].mxu1 %v7357_v43  ;;  %3003 = vmatprep.mubr.bf16.mxu0 %v7363_v58  ;;  %v7615_v43 = vrot.slane %v3480_v59, %v8227_v37 }
 0x1f5   : > { %3389 = vmatprep.mubr.bf16.mxu1 %v7363_v58  ;;  %v8228_v58 = vld [vmem:[#allocation2_spill] sm:$0xff] }
 0x1fb   : > { %3004 = vmatmul.mubr.bf16.gmra.mrb[96].mxu0 %v7369_v19 }
 0x1fc   : > { %3390 = vmatmul.mubr.bf16.gmra.mrb[96].mxu1 %v7369_v19  ;;  %3013 = vmatprep.mubr.bf16.mxu0 %v7375_v50  ;;  %v7618_v19 = vrot.slane %v3480_v59, %v8228_v58 }
 0x1fd   : > { %3399 = vmatprep.mubr.bf16.mxu1 %v7375_v50  ;;  %v8229_v50 = vld [vmem:[#allocation4_spill] sm:$0xff] }
 0x203   : > { %3014 = vmatmul.mubr.bf16.gmra.mrb[100].mxu0 %v7381_v33 }
 0x204   : > { %3400 = vmatmul.mubr.bf16.gmra.mrb[100].mxu1 %v7381_v33  ;;  %3023 = vmatprep.mubr.bf16.mxu0 %v7387_v30  ;;  %v7621_v33 = vrot.slane %v3480_v59, %v8229_v50 }
 0x205   : > { %3409 = vmatprep.mubr.bf16.mxu1 %v7387_v30  ;;  %v7624_v30 = vrot.slane %v3630_v18, %v8226_v23 }
 0x20b   : > { %3024 = vmatmul.mubr.bf16.gmra.mrb[104].mxu0 %v7393_v32 }
 0x20c   : > { %3410 = vmatmul.mubr.bf16.gmra.mrb[104].mxu1 %v7393_v32  ;;  %3033 = vmatprep.mubr.bf16.mxu0 %v7399_v54  ;;  %v7627_v32 = vrot.slane %v3630_v18, %v8227_v37 }
 0x20d   : > { %3419 = vmatprep.mubr.bf16.mxu1 %v7399_v54  ;;  %v7630_v54 = vrot.slane %v3630_v18, %v8228_v58 }
 0x213   : > { %3034 = vmatmul.mubr.bf16.gmra.mrb[108].mxu0 %v7405_v60 }
 0x214   : > { %3420 = vmatmul.mubr.bf16.gmra.mrb[108].mxu1 %v7405_v60  ;;  %3043 = vmatprep.mubr.bf16.mxu0 %v7411_v11  ;;  %v7633_v60 = vrot.slane %v3630_v18, %v8229_v50 }
 0x215   : > { %3429 = vmatprep.mubr.bf16.mxu1 %v7411_v11 }
 0x21b   : > { %3044 = vmatmul.mubr.bf16.gmra.mrb[112].mxu0 %v7417_v1 }
 0x21c   : > { %3430 = vmatmul.mubr.bf16.gmra.mrb[112].mxu1 %v7417_v1  ;;  %3053 = vmatprep.mubr.bf16.mxu0 %v7423_v42 }
 0x21d   : > { %3439 = vmatprep.mubr.bf16.mxu1 %v7423_v42 }
 0x223   : > { %3054 = vmatmul.mubr.bf16.gmra.mrb[116].mxu0 %v7429_v41 }
 0x224   : > { %3440 = vmatmul.mubr.bf16.gmra.mrb[116].mxu1 %v7429_v41  ;;  %3063 = vmatprep.mubr.bf16.mxu0 %v7435_v52 }
 0x225   : > { %3449 = vmatprep.mubr.bf16.mxu1 %v7435_v52 }
 0x22b   : > { %3064 = vmatmul.mubr.bf16.gmra.mrb[120].mxu0 %v7441_v46 }
 0x22c   : > { %3450 = vmatmul.mubr.bf16.gmra.mrb[120].mxu1 %v7441_v46  ;;  %3073 = vmatprep.mubr.bf16.mxu0 %v7445_v51 }
 0x22d   : > { %3459 = vmatprep.mubr.bf16.mxu1 %v7445_v51 }
 0x233   : > { %3074 = vmatmul.mubr.bf16.gmra.mrb[124].mxu0 %v7449_v62 }
 0x234   : > { %3460 = vmatmul.mubr.bf16.gmra.mrb[124].mxu1 %v7449_v62  ;;  %3083 = vmatprep.mubr.bf16.mxu0 %v7451_v57 }
 0x235   : > { %3469 = vmatprep.mubr.bf16.mxu1 %v7451_v57 }
 0x23b   : > { %3084 = vmatmul.mubr.bf16.gmra.mrb[128].mxu0 %v7453_v17 }
 0x23c   : > { %3470 = vmatmul.mubr.bf16.gmra.mrb[128].mxu1 %v7453_v17 }
 0x295   : > { %v2935_v11 = vpop.f32.mrb[68].mxu0  ;;  %v3321_v1 = vpop.f32.mrb[68].mxu1 }
 0x296   : > { %v3502_v42 = vmul.f32 %v7612_v56, %v2935_v11  ;;  %v3504_v40 = vmul.f32 %v7615_v43, %v3321_v1  ;;  %v2937_v53 = vpop.f32.mrb[69].mxu0  ;;  %v3323_v8 = vpop.f32.mrb[69].mxu1 }
 0x297   : > { %v3503_v45 = vmul.f32 %v7618_v19, %v2937_v53  ;;  %v3505_v41 = vmul.f32 %v7621_v33, %v3323_v8  ;;  %v2939_v31 = vpop.f32.mrb[70].mxu0  ;;  %v3325_v44 = vpop.f32.mrb[70].mxu1 }
 0x298   : > { %v3652_v52 = vadd.f32 %v7624_v30, %v3502_v42  ;;  %v3654_v16 = vadd.f32 %v7627_v32, %v3504_v40  ;;  %v3506_v47 = vmul.f32 %v7612_v56, %v2939_v31  ;;  %v3508_v46 = vmul.f32 %v7615_v43, %v3325_v44  ;;  %v2941_v51 = vpop.f32.mrb[71].mxu0  ;;  %v3327_v3 = vpop.f32.mrb[71].mxu1 }
 0x299   : > { %v3653_v62 = vadd.f32 %v7630_v54, %v3503_v45  ;;  %v3655_v57 = vadd.f32 %v7633_v60, %v3505_v41  ;;  %v3507_v17 = vmul.f32 %v7618_v19, %v2941_v51  ;;  %v3509_v34 = vmul.f32 %v7621_v33, %v3327_v3 }
 0x29a   : > { %v3656_v49 = vadd.f32 %v7624_v30, %v3506_v47  ;;  %v3658_v14 = vadd.f32 %v7627_v32, %v3508_v46  ;;  %v3780_v55 = vmax.f32 %v3652_v52, 0.0  ;;  %v3782_v61 = vmax.f32 %v3654_v16, 0.0 }
 0x29b   : > { %v3657_v26 = vadd.f32 %v7630_v54, %v3507_v17  ;;  %v3659_v12 = vadd.f32 %v7633_v60, %v3509_v34  ;;  %v3781_v39 = vmax.f32 %v3653_v62, 0.0  ;;  %v3783_v21 = vmax.f32 %v3655_v57, 0.0 }
 0x29c   : > { %v3784_v27 = vmax.f32 %v3656_v49, 0.0  ;;  %v3786_v22 = vmax.f32 %v3658_v14, 0.0 }
 0x29d   : > { %v3785_v35 = vmax.f32 %v3657_v26, 0.0  ;;  %v3787_v63 = vmax.f32 %v3659_v12, 0.0 }
 0x29e   : > { %v2945_v25 = vpop.f32.mrb[72].mxu0  ;;  %v3908_v24 = vpack.c.bf16 %v3784_v27, %v3780_v55  ;;  %v3910_v4 = vpack.c.bf16 %v3786_v22, %v3782_v61 }
 0x29f   : > { %v3331_v48 = vpop.f32.mrb[72].mxu1  ;;  %v3510_v10 = vmul.f32 %v7612_v56, %v2945_v25  ;;  %v2947_v2 = vpop.f32.mrb[73].mxu0  ;;  %v3909_v20 = vpack.c.bf16 %v3785_v35, %v3781_v39  ;;  %v3911_v15 = vpack.c.bf16 %v3787_v63, %v3783_v21 }
 0x2a0   : > { %v3512_v13 = vmul.f32 %v7615_v43, %v3331_v48  ;;  %v3333_v29 = vpop.f32.mrb[73].mxu1  ;;  %v3511_v5 = vmul.f32 %v7618_v19, %v2947_v2  ;;  %v2949_v36 = vpop.f32.mrb[74].mxu0 }
 0x2a1   : > { %v3513_v7 = vmul.f32 %v7621_v33, %v3333_v29  ;;  %v3335_v0 = vpop.f32.mrb[74].mxu1  ;;  %v3660_v38 = vadd.f32 %v7624_v30, %v3510_v10  ;;  %v3514_v28 = vmul.f32 %v7612_v56, %v2949_v36  ;;  %v2951_v59 = vpop.f32.mrb[75].mxu0  ;;  %4267 = vmatprep.mubr.bf16.mxu0 %v3909_v20  ;;  %4428 = vmatprep.mubr.bf16.mxu1 %v3911_v15 }
 0x2a2   : > { %v3662_v6 = vadd.f32 %v7627_v32, %v3512_v13  ;;  %v3516_v9 = vmul.f32 %v7615_v43, %v3335_v0  ;;  %v3337_v18 = vpop.f32.mrb[75].mxu1  ;;  %v3661_v23 = vadd.f32 %v7630_v54, %v3511_v5  ;;  %v3515_v58 = vmul.f32 %v7618_v19, %v2951_v59  ;;  %4268 = vmatmul.mubr.bf16.vlgmr.msra.gmra.mrb[132].mxu0 %v3908_v24 }
 0x2a3   : > { %v3663_v37 = vadd.f32 %v7633_v60, %v3513_v7  ;;  %v3517_v50 = vmul.f32 %v7621_v33, %v3337_v18  ;;  %v3664_v11 = vadd.f32 %v7624_v30, %v3514_v28  ;;  %4429 = vmatmul.mubr.bf16.vlgmr.msra.gmra.mrb[132].mxu1 %v3910_v4  ;;  %v3788_v53 = vmax.f32 %v3660_v38, 0.0 }
 0x2a4   : > { %v3666_v1 = vadd.f32 %v7627_v32, %v3516_v9  ;;  %v3665_v42 = vadd.f32 %v7630_v54, %v3515_v58  ;;  %v3790_v8 = vmax.f32 %v3662_v6, 0.0  ;;  %v3789_v31 = vmax.f32 %v3661_v23, 0.0 }
 0x2a5   : > { %v3667_v40 = vadd.f32 %v7633_v60, %v3517_v50  ;;  %v3792_v45 = vmax.f32 %v3664_v11, 0.0  ;;  %v3791_v44 = vmax.f32 %v3663_v37, 0.0 }
 0x2a6   : > { %v3794_v41 = vmax.f32 %v3666_v1, 0.0  ;;  %v3793_v52 = vmax.f32 %v3665_v42, 0.0  ;;  %v2955_v47 = vpop.f32.mrb[76].mxu0 }
 0x2a7   : > { %v3795_v16 = vmax.f32 %v3667_v40, 0.0  ;;  %v3341_v46 = vpop.f32.mrb[76].mxu1  ;;  %v3518_v51 = vmul.f32 %v7612_v56, %v2955_v47  ;;  %v2957_v62 = vpop.f32.mrb[77].mxu0  ;;  %v3912_v17 = vpack.c.bf16 %v3792_v45, %v3788_v53 }
 0x2a8   : > { %v3520_v3 = vmul.f32 %v7615_v43, %v3341_v46  ;;  %v3343_v57 = vpop.f32.mrb[77].mxu1  ;;  %v3914_v34 = vpack.c.bf16 %v3794_v41, %v3790_v8  ;;  %v3519_v49 = vmul.f32 %v7618_v19, %v2957_v62  ;;  %v2959_v26 = vpop.f32.mrb[78].mxu0  ;;  %v3913_v55 = vpack.c.bf16 %v3793_v52, %v3789_v31 }
 0x2a9   : > { %v3521_v14 = vmul.f32 %v7621_v33, %v3343_v57  ;;  %v3345_v12 = vpop.f32.mrb[78].mxu1  ;;  %v3915_v61 = vpack.c.bf16 %v3795_v16, %v3791_v44  ;;  %v3668_v27 = vadd.f32 %v7624_v30, %v3518_v51  ;;  %v3522_v39 = vmul.f32 %v7612_v56, %v2959_v26  ;;  %v2961_v35 = vpop.f32.mrb[79].mxu0 }
 0x2aa   : > { %v3670_v22 = vadd.f32 %v7627_v32, %v3520_v3  ;;  %v3524_v21 = vmul.f32 %v7615_v43, %v3345_v12  ;;  %v3347_v63 = vpop.f32.mrb[79].mxu1  ;;  %v3669_v25 = vadd.f32 %v7630_v54, %v3519_v49  ;;  %v3523_v24 = vmul.f32 %v7618_v19, %v2961_v35  ;;  %4275 = vmatprep.mubr.bf16.mxu0 %v3913_v55 }
 0x2ab   : > { %v3671_v48 = vadd.f32 %v7633_v60, %v3521_v14  ;;  %v3525_v4 = vmul.f32 %v7621_v33, %v3347_v63  ;;  %v3672_v10 = vadd.f32 %v7624_v30, %v3522_v39  ;;  %4436 = vmatprep.mubr.bf16.mxu1 %v3915_v61  ;;  %4276 = vmatmul.mubr.bf16.gmra.mrb[136].mxu0 %v3912_v17  ;;  %v3796_v5 = vmax.f32 %v3668_v27, 0.0 }
 0x2ac   : > { %v3674_v13 = vadd.f32 %v7627_v32, %v3524_v21  ;;  %v3673_v2 = vadd.f32 %v7630_v54, %v3523_v24  ;;  %4437 = vmatmul.mubr.bf16.gmra.mrb[136].mxu1 %v3914_v34  ;;  %v3798_v7 = vmax.f32 %v3670_v22, 0.0  ;;  %v3797_v20 = vmax.f32 %v3669_v25, 0.0 }
 0x2ad   : > { %v3675_v29 = vadd.f32 %v7633_v60, %v3525_v4  ;;  %v3800_v36 = vmax.f32 %v3672_v10, 0.0  ;;  %v3799_v15 = vmax.f32 %v3671_v48, 0.0 }
 0x2ae   : > { %v3802_v0 = vmax.f32 %v3674_v13, 0.0  ;;  %v3801_v38 = vmax.f32 %v3673_v2, 0.0  ;;  %v2965_v28 = vpop.f32.mrb[80].mxu0 }
 0x2af   : > { %v3803_v6 = vmax.f32 %v3675_v29, 0.0  ;;  %v3351_v9 = vpop.f32.mrb[80].mxu1  ;;  %v3526_v59 = vmul.f32 %v7612_v56, %v2965_v28  ;;  %v2967_v23 = vpop.f32.mrb[81].mxu0  ;;  %v3916_v58 = vpack.c.bf16 %v3800_v36, %v3796_v5 }
 0x2b0   : > { %v3528_v18 = vmul.f32 %v7615_v43, %v3351_v9  ;;  %v3353_v37 = vpop.f32.mrb[81].mxu1  ;;  %v3918_v50 = vpack.c.bf16 %v3802_v0, %v3798_v7  ;;  %v3527_v11 = vmul.f32 %v7618_v19, %v2967_v23  ;;  %v2969_v42 = vpop.f32.mrb[82].mxu0  ;;  %v3917_v53 = vpack.c.bf16 %v3801_v38, %v3797_v20 }
 0x2b1   : > { %v3529_v1 = vmul.f32 %v7621_v33, %v3353_v37  ;;  %v3355_v40 = vpop.f32.mrb[82].mxu1  ;;  %v3919_v8 = vpack.c.bf16 %v3803_v6, %v3799_v15  ;;  %v3676_v45 = vadd.f32 %v7624_v30, %v3526_v59  ;;  %v3530_v31 = vmul.f32 %v7612_v56, %v2969_v42  ;;  %v2971_v52 = vpop.f32.mrb[83].mxu0 }
 0x2b2   : > { %v3678_v41 = vadd.f32 %v7627_v32, %v3528_v18  ;;  %v3532_v44 = vmul.f32 %v7615_v43, %v3355_v40  ;;  %v3357_v16 = vpop.f32.mrb[83].mxu1  ;;  %v3677_v47 = vadd.f32 %v7630_v54, %v3527_v11  ;;  %v3531_v51 = vmul.f32 %v7618_v19, %v2971_v52  ;;  %4283 = vmatprep.mubr.bf16.mxu0 %v3917_v53 }
 0x2b3   : > { %v3679_v46 = vadd.f32 %v7633_v60, %v3529_v1  ;;  %v3533_v3 = vmul.f32 %v7621_v33, %v3357_v16  ;;  %v3680_v62 = vadd.f32 %v7624_v30, %v3530_v31  ;;  %4444 = vmatprep.mubr.bf16.mxu1 %v3919_v8  ;;  %4284 = vmatmul.mubr.bf16.gmra.mrb[140].mxu0 %v3916_v58  ;;  %v3804_v49 = vmax.f32 %v3676_v45, 0.0 }
 0x2b4   : > { %v3682_v57 = vadd.f32 %v7627_v32, %v3532_v44  ;;  %v3681_v17 = vadd.f32 %v7630_v54, %v3531_v51  ;;  %4445 = vmatmul.mubr.bf16.gmra.mrb[140].mxu1 %v3918_v50  ;;  %v3806_v14 = vmax.f32 %v3678_v41, 0.0  ;;  %v3805_v55 = vmax.f32 %v3677_v47, 0.0 }
 0x2b5   : > { %v3683_v34 = vadd.f32 %v7633_v60, %v3533_v3  ;;  %v3808_v26 = vmax.f32 %v3680_v62, 0.0  ;;  %v3807_v61 = vmax.f32 %v3679_v46, 0.0 }
 0x2b6   : > { %v3810_v12 = vmax.f32 %v3682_v57, 0.0  ;;  %v3809_v27 = vmax.f32 %v3681_v17, 0.0  ;;  %v2975_v39 = vpop.f32.mrb[84].mxu0 }
 0x2b7   : > { %v3811_v22 = vmax.f32 %v3683_v34, 0.0  ;;  %v3361_v21 = vpop.f32.mrb[84].mxu1  ;;  %v3534_v35 = vmul.f32 %v7612_v56, %v2975_v39  ;;  %v2977_v25 = vpop.f32.mrb[85].mxu0  ;;  %v3920_v24 = vpack.c.bf16 %v3808_v26, %v3804_v49 }
 0x2b8   : > { %v3536_v63 = vmul.f32 %v7615_v43, %v3361_v21  ;;  %v3363_v48 = vpop.f32.mrb[85].mxu1  ;;  %v3922_v4 = vpack.c.bf16 %v3810_v12, %v3806_v14  ;;  %v3535_v10 = vmul.f32 %v7618_v19, %v2977_v25  ;;  %v2979_v2 = vpop.f32.mrb[86].mxu0  ;;  %v3921_v5 = vpack.c.bf16 %v3809_v27, %v3805_v55 }
 0x2b9   : > { %v3537_v13 = vmul.f32 %v7621_v33, %v3363_v48  ;;  %v3365_v29 = vpop.f32.mrb[86].mxu1  ;;  %v3923_v7 = vpack.c.bf16 %v3811_v22, %v3807_v61  ;;  %v3684_v36 = vadd.f32 %v7624_v30, %v3534_v35  ;;  %v3538_v20 = vmul.f32 %v7612_v56, %v2979_v2  ;;  %v2981_v38 = vpop.f32.mrb[87].mxu0 }
 0x2ba   : > { %v3686_v0 = vadd.f32 %v7627_v32, %v3536_v63  ;;  %v3540_v15 = vmul.f32 %v7615_v43, %v3365_v29  ;;  %v3367_v6 = vpop.f32.mrb[87].mxu1  ;;  %v3685_v28 = vadd.f32 %v7630_v54, %v3535_v10  ;;  %v3539_v59 = vmul.f32 %v7618_v19, %v2981_v38  ;;  %4291 = vmatprep.mubr.bf16.mxu0 %v3921_v5 }
 0x2bb   : > { %v3687_v9 = vadd.f32 %v7633_v60, %v3537_v13  ;;  %v3541_v18 = vmul.f32 %v7621_v33, %v3367_v6  ;;  %v3688_v23 = vadd.f32 %v7624_v30, %v3538_v20  ;;  %4452 = vmatprep.mubr.bf16.mxu1 %v3923_v7  ;;  %4292 = vmatmul.mubr.bf16.gmra.mrb[144].mxu0 %v3920_v24  ;;  %v3812_v11 = vmax.f32 %v3684_v36, 0.0 }
 0x2bc   : > { %v3690_v37 = vadd.f32 %v7627_v32, %v3540_v15  ;;  %v3689_v58 = vadd.f32 %v7630_v54, %v3539_v59  ;;  %4453 = vmatmul.mubr.bf16.gmra.mrb[144].mxu1 %v3922_v4  ;;  %v3814_v1 = vmax.f32 %v3686_v0, 0.0  ;;  %v3813_v53 = vmax.f32 %v3685_v28, 0.0 }
 0x2bd   : > { %v3691_v50 = vadd.f32 %v7633_v60, %v3541_v18  ;;  %v3816_v42 = vmax.f32 %v3688_v23, 0.0  ;;  %v3815_v8 = vmax.f32 %v3687_v9, 0.0 }
 0x2be   : > { %v3818_v40 = vmax.f32 %v3690_v37, 0.0  ;;  %v3817_v45 = vmax.f32 %v3689_v58, 0.0  ;;  %v2985_v31 = vpop.f32.mrb[88].mxu0 }
 0x2bf   : > { %v3819_v41 = vmax.f32 %v3691_v50, 0.0  ;;  %v3371_v44 = vpop.f32.mrb[88].mxu1  ;;  %v3542_v52 = vmul.f32 %v7612_v56, %v2985_v31  ;;  %v2987_v47 = vpop.f32.mrb[89].mxu0  ;;  %v3924_v51 = vpack.c.bf16 %v3816_v42, %v3812_v11 }
 0x2c0   : > { %v3544_v16 = vmul.f32 %v7615_v43, %v3371_v44  ;;  %v3373_v46 = vpop.f32.mrb[89].mxu1  ;;  %v3926_v3 = vpack.c.bf16 %v3818_v40, %v3814_v1  ;;  %v3543_v62 = vmul.f32 %v7618_v19, %v2987_v47  ;;  %v2989_v17 = vpop.f32.mrb[90].mxu0  ;;  %v3925_v49 = vpack.c.bf16 %v3817_v45, %v3813_v53 }
 0x2c1   : > { %v3545_v57 = vmul.f32 %v7621_v33, %v3373_v46  ;;  %v3375_v34 = vpop.f32.mrb[90].mxu1  ;;  %v3927_v14 = vpack.c.bf16 %v3819_v41, %v3815_v8  ;;  %v3692_v26 = vadd.f32 %v7624_v30, %v3542_v52  ;;  %v3546_v55 = vmul.f32 %v7612_v56, %v2989_v17  ;;  %v2991_v27 = vpop.f32.mrb[91].mxu0 }
 0x2c2   : > { %v3694_v12 = vadd.f32 %v7627_v32, %v3544_v16  ;;  %v3548_v61 = vmul.f32 %v7615_v43, %v3375_v34  ;;  %v3377_v22 = vpop.f32.mrb[91].mxu1  ;;  %v3693_v39 = vadd.f32 %v7630_v54, %v3543_v62  ;;  %v3547_v35 = vmul.f32 %v7618_v19, %v2991_v27  ;;  %4299 = vmatprep.mubr.bf16.mxu0 %v3925_v49 }
 0x2c3   : > { %v3695_v21 = vadd.f32 %v7633_v60, %v3545_v57  ;;  %v3549_v63 = vmul.f32 %v7621_v33, %v3377_v22  ;;  %v3696_v25 = vadd.f32 %v7624_v30, %v3546_v55  ;;  %4460 = vmatprep.mubr.bf16.mxu1 %v3927_v14  ;;  %4300 = vmatmul.mubr.bf16.gmra.mrb[148].mxu0 %v3924_v51  ;;  %v3820_v10 = vmax.f32 %v3692_v26, 0.0 }
 0x2c4   : > { %v3698_v48 = vadd.f32 %v7627_v32, %v3548_v61  ;;  %v3697_v24 = vadd.f32 %v7630_v54, %v3547_v35  ;;  %4461 = vmatmul.mubr.bf16.gmra.mrb[148].mxu1 %v3926_v3  ;;  %v3822_v13 = vmax.f32 %v3694_v12, 0.0  ;;  %v3821_v5 = vmax.f32 %v3693_v39, 0.0 }
 0x2c5   : > { %v3699_v4 = vadd.f32 %v7633_v60, %v3549_v63  ;;  %v3824_v2 = vmax.f32 %v3696_v25, 0.0  ;;  %v3823_v7 = vmax.f32 %v3695_v21, 0.0 }
 0x2c6   : > { %v3826_v29 = vmax.f32 %v3698_v48, 0.0  ;;  %v3825_v36 = vmax.f32 %v3697_v24, 0.0  ;;  %v2995_v20 = vpop.f32.mrb[92].mxu0 }
 0x2c7   : > { %v3827_v0 = vmax.f32 %v3699_v4, 0.0  ;;  %v3381_v15 = vpop.f32.mrb[92].mxu1  ;;  %v3550_v38 = vmul.f32 %v7612_v56, %v2995_v20  ;;  %v2997_v28 = vpop.f32.mrb[93].mxu0  ;;  %v3928_v59 = vpack.c.bf16 %v3824_v2, %v3820_v10 }
 0x2c8   : > { %v3552_v6 = vmul.f32 %v7615_v43, %v3381_v15  ;;  %v3383_v9 = vpop.f32.mrb[93].mxu1  ;;  %v3930_v18 = vpack.c.bf16 %v3826_v29, %v3822_v13  ;;  %v3551_v23 = vmul.f32 %v7618_v19, %v2997_v28  ;;  %v2999_v58 = vpop.f32.mrb[94].mxu0  ;;  %v3929_v11 = vpack.c.bf16 %v3825_v36, %v3821_v5 }
 0x2c9   : > { %v3553_v37 = vmul.f32 %v7621_v33, %v3383_v9  ;;  %v3385_v50 = vpop.f32.mrb[94].mxu1  ;;  %v3931_v1 = vpack.c.bf16 %v3827_v0, %v3823_v7  ;;  %v3700_v42 = vadd.f32 %v7624_v30, %v3550_v38  ;;  %v3554_v53 = vmul.f32 %v7612_v56, %v2999_v58  ;;  %v3001_v45 = vpop.f32.mrb[95].mxu0 }
 0x2ca   : > { %v3702_v40 = vadd.f32 %v7627_v32, %v3552_v6  ;;  %v3556_v8 = vmul.f32 %v7615_v43, %v3385_v50  ;;  %v3387_v41 = vpop.f32.mrb[95].mxu1  ;;  %v3701_v31 = vadd.f32 %v7630_v54, %v3551_v23  ;;  %v3555_v52 = vmul.f32 %v7618_v19, %v3001_v45  ;;  %4307 = vmatprep.mubr.bf16.mxu0 %v3929_v11 }
 0x2cb   : > { %v3703_v44 = vadd.f32 %v7633_v60, %v3553_v37  ;;  %v3557_v16 = vmul.f32 %v7621_v33, %v3387_v41  ;;  %v3704_v47 = vadd.f32 %v7624_v30, %v3554_v53  ;;  %4468 = vmatprep.mubr.bf16.mxu1 %v3931_v1  ;;  %4308 = vmatmul.mubr.bf16.gmra.mrb[152].mxu0 %v3928_v59  ;;  %v3828_v62 = vmax.f32 %v3700_v42, 0.0 }
 0x2cc   : > { %v3706_v46 = vadd.f32 %v7627_v32, %v3556_v8  ;;  %v3705_v51 = vadd.f32 %v7630_v54, %v3555_v52  ;;  %4469 = vmatmul.mubr.bf16.gmra.mrb[152].mxu1 %v3930_v18  ;;  %v3830_v57 = vmax.f32 %v3702_v40, 0.0  ;;  %v3829_v49 = vmax.f32 %v3701_v31, 0.0 }
 0x2cd   : > { %v3707_v3 = vadd.f32 %v7633_v60, %v3557_v16  ;;  %v3832_v17 = vmax.f32 %v3704_v47, 0.0  ;;  %v3831_v14 = vmax.f32 %v3703_v44, 0.0 }
 0x2ce   : > { %v3834_v34 = vmax.f32 %v3706_v46, 0.0  ;;  %v3833_v26 = vmax.f32 %v3705_v51, 0.0  ;;  %v3005_v55 = vpop.f32.mrb[96].mxu0 }
 0x2cf   : > { %v3835_v12 = vmax.f32 %v3707_v3, 0.0  ;;  %v3391_v61 = vpop.f32.mrb[96].mxu1  ;;  %v3558_v27 = vmul.f32 %v7612_v56, %v3005_v55  ;;  %v3007_v39 = vpop.f32.mrb[97].mxu0  ;;  %v3932_v35 = vpack.c.bf16 %v3832_v17, %v3828_v62 }
 0x2d0   : > { %v3560_v22 = vmul.f32 %v7615_v43, %v3391_v61  ;;  %v3393_v21 = vpop.f32.mrb[97].mxu1  ;;  %v3934_v63 = vpack.c.bf16 %v3834_v34, %v3830_v57  ;;  %v3559_v25 = vmul.f32 %v7618_v19, %v3007_v39  ;;  %v3009_v24 = vpop.f32.mrb[98].mxu0  ;;  %v3933_v10 = vpack.c.bf16 %v3833_v26, %v3829_v49 }
 0x2d1   : > { %v3561_v48 = vmul.f32 %v7621_v33, %v3393_v21  ;;  %v3395_v4 = vpop.f32.mrb[98].mxu1  ;;  %v3935_v13 = vpack.c.bf16 %v3835_v12, %v3831_v14  ;;  %v3708_v2 = vadd.f32 %v7624_v30, %v3558_v27  ;;  %v3562_v5 = vmul.f32 %v7612_v56, %v3009_v24  ;;  %v3011_v36 = vpop.f32.mrb[99].mxu0 }
 0x2d2   : > { %v3710_v29 = vadd.f32 %v7627_v32, %v3560_v22  ;;  %v3564_v7 = vmul.f32 %v7615_v43, %v3395_v4  ;;  %v3397_v0 = vpop.f32.mrb[99].mxu1  ;;  %v3709_v20 = vadd.f32 %v7630_v54, %v3559_v25  ;;  %v3563_v38 = vmul.f32 %v7618_v19, %v3011_v36  ;;  %4315 = vmatprep.mubr.bf16.mxu0 %v3933_v10 }
 0x2d3   : > { %v3711_v15 = vadd.f32 %v7633_v60, %v3561_v48  ;;  %v3565_v6 = vmul.f32 %v7621_v33, %v3397_v0  ;;  %v3712_v28 = vadd.f32 %v7624_v30, %v3562_v5  ;;  %4476 = vmatprep.mubr.bf16.mxu1 %v3935_v13  ;;  %4316 = vmatmul.mubr.bf16.gmra.mrb[156].mxu0 %v3932_v35  ;;  %v3836_v23 = vmax.f32 %v3708_v2, 0.0 }
 0x2d4   : > { %v3714_v9 = vadd.f32 %v7627_v32, %v3564_v7  ;;  %v3713_v59 = vadd.f32 %v7630_v54, %v3563_v38  ;;  %4477 = vmatmul.mubr.bf16.gmra.mrb[156].mxu1 %v3934_v63  ;;  %v3838_v37 = vmax.f32 %v3710_v29, 0.0  ;;  %v3837_v11 = vmax.f32 %v3709_v20, 0.0 }
 0x2d5   : > { %v3715_v18 = vadd.f32 %v7633_v60, %v3565_v6  ;;  %v3840_v58 = vmax.f32 %v3712_v28, 0.0  ;;  %v3839_v1 = vmax.f32 %v3711_v15, 0.0 }
 0x2d6   : > { %v3842_v50 = vmax.f32 %v3714_v9, 0.0  ;;  %v3841_v42 = vmax.f32 %v3713_v59, 0.0  ;;  %v3015_v53 = vpop.f32.mrb[100].mxu0 }
 0x2d7   : > { %v3843_v40 = vmax.f32 %v3715_v18, 0.0  ;;  %v3401_v8 = vpop.f32.mrb[100].mxu1  ;;  %v3566_v45 = vmul.f32 %v7612_v56, %v3015_v53  ;;  %v3017_v31 = vpop.f32.mrb[101].mxu0  ;;  %v3936_v52 = vpack.c.bf16 %v3840_v58, %v3836_v23 }
 0x2d8   : > { %v3568_v41 = vmul.f32 %v7615_v43, %v3401_v8  ;;  %v3403_v44 = vpop.f32.mrb[101].mxu1  ;;  %v3938_v16 = vpack.c.bf16 %v3842_v50, %v3838_v37  ;;  %v3567_v47 = vmul.f32 %v7618_v19, %v3017_v31  ;;  %v3019_v51 = vpop.f32.mrb[102].mxu0  ;;  %v3937_v62 = vpack.c.bf16 %v3841_v42, %v3837_v11 }
 0x2d9   : > { %v3569_v46 = vmul.f32 %v7621_v33, %v3403_v44  ;;  %v3405_v3 = vpop.f32.mrb[102].mxu1  ;;  %v3939_v57 = vpack.c.bf16 %v3843_v40, %v3839_v1  ;;  %v3716_v17 = vadd.f32 %v7624_v30, %v3566_v45  ;;  %v3570_v49 = vmul.f32 %v7612_v56, %v3019_v51  ;;  %v3021_v26 = vpop.f32.mrb[103].mxu0 }
 0x2da   : > { %v3718_v34 = vadd.f32 %v7627_v32, %v3568_v41  ;;  %v3572_v14 = vmul.f32 %v7615_v43, %v3405_v3  ;;  %v3407_v12 = vpop.f32.mrb[103].mxu1  ;;  %v3717_v55 = vadd.f32 %v7630_v54, %v3567_v47  ;;  %v3571_v27 = vmul.f32 %v7618_v19, %v3021_v26  ;;  %4323 = vmatprep.mubr.bf16.mxu0 %v3937_v62 }
 0x2db   : > { %v3719_v61 = vadd.f32 %v7633_v60, %v3569_v46  ;;  %v3573_v22 = vmul.f32 %v7621_v33, %v3407_v12  ;;  %v3720_v39 = vadd.f32 %v7624_v30, %v3570_v49  ;;  %4484 = vmatprep.mubr.bf16.mxu1 %v3939_v57  ;;  %4324 = vmatmul.mubr.bf16.gmra.mrb[160].mxu0 %v3936_v52  ;;  %v3844_v25 = vmax.f32 %v3716_v17, 0.0 }
 0x2dc   : > { %v3722_v21 = vadd.f32 %v7627_v32, %v3572_v14  ;;  %v3721_v35 = vadd.f32 %v7630_v54, %v3571_v27  ;;  %4485 = vmatmul.mubr.bf16.gmra.mrb[160].mxu1 %v3938_v16  ;;  %v3846_v48 = vmax.f32 %v3718_v34, 0.0  ;;  %v3845_v10 = vmax.f32 %v3717_v55, 0.0 }
 0x2dd   : > { %v3723_v63 = vadd.f32 %v7633_v60, %v3573_v22  ;;  %v3848_v24 = vmax.f32 %v3720_v39, 0.0  ;;  %v3847_v13 = vmax.f32 %v3719_v61, 0.0 }
 0x2de   : > { %v3850_v4 = vmax.f32 %v3722_v21, 0.0  ;;  %v3849_v2 = vmax.f32 %v3721_v35, 0.0  ;;  %v3025_v5 = vpop.f32.mrb[104].mxu0 }
 0x2df   : > { %v3851_v29 = vmax.f32 %v3723_v63, 0.0  ;;  %v3411_v7 = vpop.f32.mrb[104].mxu1  ;;  %v3574_v36 = vmul.f32 %v7612_v56, %v3025_v5  ;;  %v3027_v20 = vpop.f32.mrb[105].mxu0  ;;  %v3940_v38 = vpack.c.bf16 %v3848_v24, %v3844_v25 }
 0x2e0   : > { %v3576_v0 = vmul.f32 %v7615_v43, %v3411_v7  ;;  %v3413_v15 = vpop.f32.mrb[105].mxu1  ;;  %v3942_v6 = vpack.c.bf16 %v3850_v4, %v3846_v48  ;;  %v3575_v28 = vmul.f32 %v7618_v19, %v3027_v20  ;;  %v3029_v59 = vpop.f32.mrb[106].mxu0  ;;  %v3941_v23 = vpack.c.bf16 %v3849_v2, %v3845_v10 }
 0x2e1   : > { %v3577_v9 = vmul.f32 %v7621_v33, %v3413_v15  ;;  %v3415_v18 = vpop.f32.mrb[106].mxu1  ;;  %v3943_v37 = vpack.c.bf16 %v3851_v29, %v3847_v13  ;;  %v3724_v58 = vadd.f32 %v7624_v30, %v3574_v36  ;;  %v3578_v11 = vmul.f32 %v7612_v56, %v3029_v59  ;;  %v3031_v42 = vpop.f32.mrb[107].mxu0 }
 0x2e2   : > { %v3726_v50 = vadd.f32 %v7627_v32, %v3576_v0  ;;  %v3580_v1 = vmul.f32 %v7615_v43, %v3415_v18  ;;  %v3417_v40 = vpop.f32.mrb[107].mxu1  ;;  %v3725_v53 = vadd.f32 %v7630_v54, %v3575_v28  ;;  %v3579_v45 = vmul.f32 %v7618_v19, %v3031_v42  ;;  %4331 = vmatprep.mubr.bf16.mxu0 %v3941_v23 }
 0x2e3   : > { %v3727_v8 = vadd.f32 %v7633_v60, %v3577_v9  ;;  %v3581_v41 = vmul.f32 %v7621_v33, %v3417_v40  ;;  %v3728_v31 = vadd.f32 %v7624_v30, %v3578_v11  ;;  %4492 = vmatprep.mubr.bf16.mxu1 %v3943_v37  ;;  %4332 = vmatmul.mubr.bf16.gmra.mrb[164].mxu0 %v3940_v38  ;;  %v3852_v47 = vmax.f32 %v3724_v58, 0.0 }
 0x2e4   : > { %v3730_v44 = vadd.f32 %v7627_v32, %v3580_v1  ;;  %v3729_v52 = vadd.f32 %v7630_v54, %v3579_v45  ;;  %4493 = vmatmul.mubr.bf16.gmra.mrb[164].mxu1 %v3942_v6  ;;  %v3854_v46 = vmax.f32 %v3726_v50, 0.0  ;;  %v3853_v62 = vmax.f32 %v3725_v53, 0.0 }
 0x2e5   : > { %v3731_v16 = vadd.f32 %v7633_v60, %v3581_v41  ;;  %v3856_v51 = vmax.f32 %v3728_v31, 0.0  ;;  %v3855_v57 = vmax.f32 %v3727_v8, 0.0 }
 0x2e6   : > { %v3858_v3 = vmax.f32 %v3730_v44, 0.0  ;;  %v3857_v17 = vmax.f32 %v3729_v52, 0.0  ;;  %v3035_v49 = vpop.f32.mrb[108].mxu0 }
 0x2e7   : > { %v3859_v34 = vmax.f32 %v3731_v16, 0.0  ;;  %v3421_v14 = vpop.f32.mrb[108].mxu1  ;;  %v3582_v26 = vmul.f32 %v7612_v56, %v3035_v49  ;;  %v3037_v55 = vpop.f32.mrb[109].mxu0  ;;  %v3944_v27 = vpack.c.bf16 %v3856_v51, %v3852_v47 }
 0x2e8   : > { %v3584_v12 = vmul.f32 %v7615_v43, %v3421_v14  ;;  %v3423_v61 = vpop.f32.mrb[109].mxu1  ;;  %v3946_v22 = vpack.c.bf16 %v3858_v3, %v3854_v46  ;;  %v3583_v39 = vmul.f32 %v7618_v19, %v3037_v55  ;;  %v3039_v35 = vpop.f32.mrb[110].mxu0  ;;  %v3945_v25 = vpack.c.bf16 %v3857_v17, %v3853_v62 }
 0x2e9   : > { %v3585_v21 = vmul.f32 %v7621_v33, %v3423_v61  ;;  %v3425_v63 = vpop.f32.mrb[110].mxu1  ;;  %v3947_v48 = vpack.c.bf16 %v3859_v34, %v3855_v57  ;;  %v3732_v24 = vadd.f32 %v7624_v30, %v3582_v26  ;;  %v3586_v10 = vmul.f32 %v7612_v56, %v3039_v35  ;;  %v3041_v2 = vpop.f32.mrb[111].mxu0 }
 0x2ea   : > { %v3734_v4 = vadd.f32 %v7627_v32, %v3584_v12  ;;  %v3588_v13 = vmul.f32 %v7615_v43, %v3425_v63  ;;  %v3427_v29 = vpop.f32.mrb[111].mxu1  ;;  %v3733_v5 = vadd.f32 %v7630_v54, %v3583_v39  ;;  %v3587_v36 = vmul.f32 %v7618_v19, %v3041_v2  ;;  %4339 = vmatprep.mubr.bf16.mxu0 %v3945_v25 }
 0x2eb   : > { %v3735_v7 = vadd.f32 %v7633_v60, %v3585_v21  ;;  %v3589_v0 = vmul.f32 %v7621_v33, %v3427_v29  ;;  %v3736_v20 = vadd.f32 %v7624_v30, %v3586_v10  ;;  %4500 = vmatprep.mubr.bf16.mxu1 %v3947_v48  ;;  %4340 = vmatmul.mubr.bf16.gmra.mrb[168].mxu0 %v3944_v27  ;;  %v3860_v28 = vmax.f32 %v3732_v24, 0.0 }
 0x2ec   : > { %v3738_v15 = vadd.f32 %v7627_v32, %v3588_v13  ;;  %v3737_v38 = vadd.f32 %v7630_v54, %v3587_v36  ;;  %4501 = vmatmul.mubr.bf16.gmra.mrb[168].mxu1 %v3946_v22  ;;  %v3862_v9 = vmax.f32 %v3734_v4, 0.0  ;;  %v3861_v23 = vmax.f32 %v3733_v5, 0.0 }
 0x2ed   : > { %v3739_v6 = vadd.f32 %v7633_v60, %v3589_v0  ;;  %v3864_v59 = vmax.f32 %v3736_v20, 0.0  ;;  %v3863_v37 = vmax.f32 %v3735_v7, 0.0 }
 0x2ee   : > { %v3866_v18 = vmax.f32 %v3738_v15, 0.0  ;;  %v3865_v58 = vmax.f32 %v3737_v38, 0.0  ;;  %v3045_v11 = vpop.f32.mrb[112].mxu0 }
 0x2ef   : > { %v3867_v50 = vmax.f32 %v3739_v6, 0.0  ;;  %v3431_v1 = vpop.f32.mrb[112].mxu1  ;;  %v3590_v42 = vmul.f32 %v7612_v56, %v3045_v11  ;;  %v3047_v53 = vpop.f32.mrb[113].mxu0  ;;  %v3948_v45 = vpack.c.bf16 %v3864_v59, %v3860_v28 }
 0x2f0   : > { %v3592_v40 = vmul.f32 %v7615_v43, %v3431_v1  ;;  %v3433_v8 = vpop.f32.mrb[113].mxu1  ;;  %v3950_v41 = vpack.c.bf16 %v3866_v18, %v3862_v9  ;;  %v3591_v31 = vmul.f32 %v7618_v19, %v3047_v53  ;;  %v3049_v52 = vpop.f32.mrb[114].mxu0  ;;  %v3949_v47 = vpack.c.bf16 %v3865_v58, %v3861_v23 }
 0x2f1   : > { %v3593_v44 = vmul.f32 %v7621_v33, %v3433_v8  ;;  %v3435_v16 = vpop.f32.mrb[114].mxu1  ;;  %v3951_v46 = vpack.c.bf16 %v3867_v50, %v3863_v37  ;;  %v3740_v51 = vadd.f32 %v7624_v30, %v3590_v42  ;;  %v3594_v62 = vmul.f32 %v7612_v56, %v3049_v52  ;;  %v3051_v17 = vpop.f32.mrb[115].mxu0 }
 0x2f2   : > { %v3742_v3 = vadd.f32 %v7627_v32, %v3592_v40  ;;  %v3596_v57 = vmul.f32 %v7615_v43, %v3435_v16  ;;  %v3437_v34 = vpop.f32.mrb[115].mxu1  ;;  %v3741_v49 = vadd.f32 %v7630_v54, %v3591_v31  ;;  %v3595_v26 = vmul.f32 %v7618_v19, %v3051_v17  ;;  %4347 = vmatprep.mubr.bf16.mxu0 %v3949_v47 }
 0x2f3   : > { %v3743_v14 = vadd.f32 %v7633_v60, %v3593_v44  ;;  %v3597_v12 = vmul.f32 %v7621_v33, %v3437_v34  ;;  %v3744_v55 = vadd.f32 %v7624_v30, %v3594_v62  ;;  %4508 = vmatprep.mubr.bf16.mxu1 %v3951_v46  ;;  %4348 = vmatmul.mubr.bf16.gmra.mrb[172].mxu0 %v3948_v45  ;;  %v3868_v39 = vmax.f32 %v3740_v51, 0.0 }
 0x2f4   : > { %v3746_v61 = vadd.f32 %v7627_v32, %v3596_v57  ;;  %v3745_v27 = vadd.f32 %v7630_v54, %v3595_v26  ;;  %4509 = vmatmul.mubr.bf16.gmra.mrb[172].mxu1 %v3950_v41  ;;  %v3870_v21 = vmax.f32 %v3742_v3, 0.0  ;;  %v3869_v25 = vmax.f32 %v3741_v49, 0.0 }
 0x2f5   : > { %v3747_v22 = vadd.f32 %v7633_v60, %v3597_v12  ;;  %v3872_v35 = vmax.f32 %v3744_v55, 0.0  ;;  %v3871_v48 = vmax.f32 %v3743_v14, 0.0 }
 0x2f6   : > { %v3874_v63 = vmax.f32 %v3746_v61, 0.0  ;;  %v3873_v24 = vmax.f32 %v3745_v27, 0.0  ;;  %v3055_v10 = vpop.f32.mrb[116].mxu0 }
 0x2f7   : > { %v3875_v4 = vmax.f32 %v3747_v22, 0.0  ;;  %v3441_v13 = vpop.f32.mrb[116].mxu1  ;;  %v3598_v2 = vmul.f32 %v7612_v56, %v3055_v10  ;;  %v3057_v5 = vpop.f32.mrb[117].mxu0  ;;  %v3952_v36 = vpack.c.bf16 %v3872_v35, %v3868_v39 }
 0x2f8   : > { %v3600_v29 = vmul.f32 %v7615_v43, %v3441_v13  ;;  %v3443_v7 = vpop.f32.mrb[117].mxu1  ;;  %v3954_v0 = vpack.c.bf16 %v3874_v63, %v3870_v21  ;;  %v3599_v20 = vmul.f32 %v7618_v19, %v3057_v5  ;;  %v3059_v38 = vpop.f32.mrb[118].mxu0  ;;  %v3953_v28 = vpack.c.bf16 %v3873_v24, %v3869_v25 }
 0x2f9   : > { %v3601_v15 = vmul.f32 %v7621_v33, %v3443_v7  ;;  %v3445_v6 = vpop.f32.mrb[118].mxu1  ;;  %v3955_v9 = vpack.c.bf16 %v3875_v4, %v3871_v48  ;;  %v3748_v59 = vadd.f32 %v7624_v30, %v3598_v2  ;;  %v3602_v23 = vmul.f32 %v7612_v56, %v3059_v38  ;;  %v3061_v58 = vpop.f32.mrb[119].mxu0 }
 0x2fa   : > { %v3750_v18 = vadd.f32 %v7627_v32, %v3600_v29  ;;  %v3604_v37 = vmul.f32 %v7615_v43, %v3445_v6  ;;  %v3447_v50 = vpop.f32.mrb[119].mxu1  ;;  %v3749_v11 = vadd.f32 %v7630_v54, %v3599_v20  ;;  %v3603_v42 = vmul.f32 %v7618_v19, %v3061_v58  ;;  %4355 = vmatprep.mubr.bf16.mxu0 %v3953_v28 }
 0x2fb   : > { %v3751_v1 = vadd.f32 %v7633_v60, %v3601_v15  ;;  %v3605_v40 = vmul.f32 %v7621_v33, %v3447_v50  ;;  %v3752_v53 = vadd.f32 %v7624_v30, %v3602_v23  ;;  %4516 = vmatprep.mubr.bf16.mxu1 %v3955_v9  ;;  %4356 = vmatmul.mubr.bf16.gmra.mrb[176].mxu0 %v3952_v36  ;;  %v3876_v31 = vmax.f32 %v3748_v59, 0.0 }
 0x2fc   : > { %v3754_v8 = vadd.f32 %v7627_v32, %v3604_v37  ;;  %v3753_v45 = vadd.f32 %v7630_v54, %v3603_v42  ;;  %4517 = vmatmul.mubr.bf16.gmra.mrb[176].mxu1 %v3954_v0  ;;  %v3878_v44 = vmax.f32 %v3750_v18, 0.0  ;;  %v3877_v47 = vmax.f32 %v3749_v11, 0.0 }
 0x2fd   : > { %v3755_v41 = vadd.f32 %v7633_v60, %v3605_v40  ;;  %v3880_v52 = vmax.f32 %v3752_v53, 0.0  ;;  %v3879_v46 = vmax.f32 %v3751_v1, 0.0 }
 0x2fe   : > { %v3882_v16 = vmax.f32 %v3754_v8, 0.0  ;;  %v3881_v51 = vmax.f32 %v3753_v45, 0.0  ;;  %v3065_v62 = vpop.f32.mrb[120].mxu0 }
 0x2ff   : > { %v3883_v3 = vmax.f32 %v3755_v41, 0.0  ;;  %v3451_v57 = vpop.f32.mrb[120].mxu1  ;;  %v3606_v17 = vmul.f32 %v7612_v56, %v3065_v62  ;;  %v3067_v49 = vpop.f32.mrb[121].mxu0  ;;  %v3956_v26 = vpack.c.bf16 %v3880_v52, %v3876_v31 }
 0x300   : > { %v3608_v34 = vmul.f32 %v7615_v43, %v3451_v57  ;;  %v3453_v14 = vpop.f32.mrb[121].mxu1  ;;  %v3958_v12 = vpack.c.bf16 %v3882_v16, %v3878_v44  ;;  %v3607_v55 = vmul.f32 %v7618_v19, %v3067_v49  ;;  %v3069_v27 = vpop.f32.mrb[122].mxu0  ;;  %v3957_v39 = vpack.c.bf16 %v3881_v51, %v3877_v47 }
 0x301   : > { %v3609_v61 = vmul.f32 %v7621_v33, %v3453_v14  ;;  %v3455_v22 = vpop.f32.mrb[122].mxu1  ;;  %v3959_v21 = vpack.c.bf16 %v3883_v3, %v3879_v46  ;;  %v3756_v35 = vadd.f32 %v7624_v30, %v3606_v17  ;;  %v3610_v25 = vmul.f32 %v7612_v56, %v3069_v27  ;;  %v3071_v24 = vpop.f32.mrb[123].mxu0 }
 0x302   : > { %v3758_v63 = vadd.f32 %v7627_v32, %v3608_v34  ;;  %v3612_v48 = vmul.f32 %v7615_v43, %v3455_v22  ;;  %v3457_v4 = vpop.f32.mrb[123].mxu1  ;;  %v3757_v10 = vadd.f32 %v7630_v54, %v3607_v55  ;;  %v3611_v2 = vmul.f32 %v7618_v19, %v3071_v24  ;;  %4363 = vmatprep.mubr.bf16.mxu0 %v3957_v39 }
 0x303   : > { %v3759_v13 = vadd.f32 %v7633_v60, %v3609_v61  ;;  %v3613_v29 = vmul.f32 %v7621_v33, %v3457_v4  ;;  %v3760_v5 = vadd.f32 %v7624_v30, %v3610_v25  ;;  %4524 = vmatprep.mubr.bf16.mxu1 %v3959_v21  ;;  %4364 = vmatmul.mubr.bf16.gmra.mrb[180].mxu0 %v3956_v26  ;;  %v3884_v20 = vmax.f32 %v3756_v35, 0.0 }
 0x304   : > { %v3762_v7 = vadd.f32 %v7627_v32, %v3612_v48  ;;  %v3761_v36 = vadd.f32 %v7630_v54, %v3611_v2  ;;  %4525 = vmatmul.mubr.bf16.gmra.mrb[180].mxu1 %v3958_v12  ;;  %v3886_v15 = vmax.f32 %v3758_v63, 0.0  ;;  %v3885_v28 = vmax.f32 %v3757_v10, 0.0 }
 0x305   : > { %v3763_v0 = vadd.f32 %v7633_v60, %v3613_v29  ;;  %v3888_v38 = vmax.f32 %v3760_v5, 0.0  ;;  %v3887_v9 = vmax.f32 %v3759_v13, 0.0 }
 0x306   : > { %v3890_v6 = vmax.f32 %v3762_v7, 0.0  ;;  %v3889_v59 = vmax.f32 %v3761_v36, 0.0  ;;  %v3075_v23 = vpop.f32.mrb[124].mxu0 }
 0x307   : > { %v3891_v18 = vmax.f32 %v3763_v0, 0.0  ;;  %v3461_v37 = vpop.f32.mrb[124].mxu1  ;;  %v3614_v58 = vmul.f32 %v7612_v56, %v3075_v23  ;;  %v3077_v11 = vpop.f32.mrb[125].mxu0  ;;  %v3960_v42 = vpack.c.bf16 %v3888_v38, %v3884_v20 }
 0x308   : > { %v3616_v50 = vmul.f32 %v7615_v43, %v3461_v37  ;;  %v3463_v1 = vpop.f32.mrb[125].mxu1  ;;  %v3962_v40 = vpack.c.bf16 %v3890_v6, %v3886_v15  ;;  %v3615_v53 = vmul.f32 %v7618_v19, %v3077_v11  ;;  %v3079_v45 = vpop.f32.mrb[126].mxu0  ;;  %v3961_v31 = vpack.c.bf16 %v3889_v59, %v3885_v28 }
 0x309   : > { %v3617_v8 = vmul.f32 %v7621_v33, %v3463_v1  ;;  %v3465_v41 = vpop.f32.mrb[126].mxu1  ;;  %v3963_v44 = vpack.c.bf16 %v3891_v18, %v3887_v9  ;;  %v3764_v52 = vadd.f32 %v7624_v30, %v3614_v58  ;;  %v3618_v47 = vmul.f32 %v7612_v56, %v3079_v45  ;;  %v3081_v51 = vpop.f32.mrb[127].mxu0 }
 0x30a   : > { %v3766_v16 = vadd.f32 %v7627_v32, %v3616_v50  ;;  %v3620_v46 = vmul.f32 %v7615_v43, %v3465_v41  ;;  %v3467_v3 = vpop.f32.mrb[127].mxu1  ;;  %v3765_v62 = vadd.f32 %v7630_v54, %v3615_v53  ;;  %v3619_v17 = vmul.f32 %v7618_v19, %v3081_v51  ;;  %4371 = vmatprep.mubr.bf16.mxu0 %v3961_v31 }
 0x30b   : > { %v3767_v57 = vadd.f32 %v7633_v60, %v3617_v8  ;;  %v3621_v34 = vmul.f32 %v7621_v33, %v3467_v3  ;;  %v3768_v49 = vadd.f32 %v7624_v30, %v3618_v47  ;;  %4532 = vmatprep.mubr.bf16.mxu1 %v3963_v44  ;;  %4372 = vmatmul.mubr.bf16.gmra.mrb[184].mxu0 %v3960_v42  ;;  %v3892_v55 = vmax.f32 %v3764_v52, 0.0 }
 0x30c   : > { %v3770_v14 = vadd.f32 %v7627_v32, %v3620_v46  ;;  %v3769_v26 = vadd.f32 %v7630_v54, %v3619_v17  ;;  %4533 = vmatmul.mubr.bf16.gmra.mrb[184].mxu1 %v3962_v40  ;;  %v3894_v61 = vmax.f32 %v3766_v16, 0.0  ;;  %v3893_v39 = vmax.f32 %v3765_v62, 0.0 }
 0x30d   : > { %v3771_v12 = vadd.f32 %v7633_v60, %v3621_v34  ;;  %v3896_v27 = vmax.f32 %v3768_v49, 0.0  ;;  %v3895_v21 = vmax.f32 %v3767_v57, 0.0 }
 0x30e   : > { %v3898_v22 = vmax.f32 %v3770_v14, 0.0  ;;  %v3897_v35 = vmax.f32 %v3769_v26, 0.0  ;;  %v3085_v25 = vpop.f32.mrb[128].mxu0 }
 0x30f   : > { %v3899_v63 = vmax.f32 %v3771_v12, 0.0  ;;  %v3471_v48 = vpop.f32.mrb[128].mxu1  ;;  %v3622_v24 = vmul.f32 %v7612_v56, %v3085_v25  ;;  %v3087_v10 = vpop.f32.mrb[129].mxu0  ;;  %v3964_v2 = vpack.c.bf16 %v3896_v27, %v3892_v55  ;;  %v5701_v55 = vld [vmem:[%s6088_s14] sm:$0xff] }
 0x310   : > { %v3624_v4 = vmul.f32 %v7615_v43, %v3471_v48  ;;  %v3473_v13 = vpop.f32.mrb[129].mxu1  ;;  %v3966_v29 = vpack.c.bf16 %v3898_v22, %v3894_v61  ;;  %v3623_v5 = vmul.f32 %v7618_v19, %v3087_v10  ;;  %v3089_v36 = vpop.f32.mrb[130].mxu0  ;;  %v3965_v20 = vpack.c.bf16 %v3897_v35, %v3893_v39  ;;  %v5702_v35 = vld [vmem:[%s6088_s14 + $0x8] sm:$0xff] }
 0x311   : > { %v3625_v7 = vmul.f32 %v7621_v33, %v3473_v13  ;;  %v3475_v0 = vpop.f32.mrb[130].mxu1  ;;  %v3967_v15 = vpack.c.bf16 %v3899_v63, %v3895_v21  ;;  %v3772_v38 = vadd.f32 %v7624_v30, %v3622_v24  ;;  %v3626_v28 = vmul.f32 %v7612_v56, %v3089_v36  ;;  %v3091_v59 = vpop.f32.mrb[131].mxu0 }
 0x312   : > { %v3774_v6 = vadd.f32 %v7627_v32, %v3624_v4  ;;  %v3628_v9 = vmul.f32 %v7615_v43, %v3475_v0  ;;  %v3477_v18 = vpop.f32.mrb[131].mxu1  ;;  %v3773_v23 = vadd.f32 %v7630_v54, %v3623_v5  ;;  %v3627_v58 = vmul.f32 %v7618_v19, %v3091_v59  ;;  %4379 = vmatprep.mubr.bf16.mxu0 %v3965_v20  ;;  %v5703_v20 = vld [vmem:[%s6088_s14 + $0x10] sm:$0xff]  ;;  %v5704_v59 = vld [vmem:[%s6088_s14 + $0x18] sm:$0xff] }
 0x313   : > { %v3775_v37 = vadd.f32 %v7633_v60, %v3625_v7  ;;  %v3629_v50 = vmul.f32 %v7621_v33, %v3477_v18  ;;  %v3776_v11 = vadd.f32 %v7624_v30, %v3626_v28  ;;  %4540 = vmatprep.mubr.bf16.mxu1 %v3967_v15  ;;  %4380 = vmatmul.mubr.bf16.gmra.mrb[188].mxu0 %v3964_v2  ;;  %v3900_v42 = vmax.f32 %v3772_v38, 0.0 }
 0x314   : > { %v3778_v1 = vadd.f32 %v7627_v32, %v3628_v9  ;;  %v3777_v56 = vadd.f32 %v7630_v54, %v3627_v58  ;;  %4541 = vmatmul.mubr.bf16.gmra.mrb[188].mxu1 %v3966_v29  ;;  %v3902_v40 = vmax.f32 %v3774_v6, 0.0  ;;  %v3901_v45 = vmax.f32 %v3773_v23, 0.0 }
 0x315   : > { %v3779_v43 = vadd.f32 %v7633_v60, %v3629_v50  ;;  %v3904_v53 = vmax.f32 %v3776_v11, 0.0  ;;  %v3903_v19 = vmax.f32 %v3775_v37, 0.0  ;;  %v7894_v60 = vld [vmem:[%s8050_s10] ss:$0 sm:$0xff] }
 0x316   : > { %v3906_v8 = vmax.f32 %v3778_v1, 0.0  ;;  %v3905_v41 = vmax.f32 %v3777_v56, 0.0 }
 0x317   : > { %v3907_v33 = vmax.f32 %v3779_v43, 0.0  ;;  %v3968_v31 = vpack.c.bf16 %v3904_v53, %v3900_v42 }
 0x318   : > { %v3970_v44 = vpack.c.bf16 %v3906_v8, %v3902_v40  ;;  %v3969_v30 = vpack.c.bf16 %v3905_v41, %v3901_v45  ;;  %v5705_v45 = vld [vmem:[%s6088_s14 + $0x20] sm:$0xff] }
 0x319   : > { %v3971_v52 = vpack.c.bf16 %v3907_v33, %v3903_v19 }
 0x31a   : > { %4387 = vmatprep.mubr.bf16.mxu0 %v3969_v30  ;;  %v5706_v30 = vld [vmem:[%s6088_s14 + $0x28] sm:$0xff] }
 0x31b   : > { %4548 = vmatprep.mubr.bf16.mxu1 %v3971_v52  ;;  %4388 = vmatmul.mubr.bf16.gmra.mrb[192].mxu0 %v3968_v31 }
 0x31c   : > { %4549 = vmatmul.mubr.bf16.gmra.mrb[192].mxu1 %v3970_v44 }
 0x375   : > { %v5014_v32 = vpop.f32.mrb[132].mxu0 }
 0x376   : > { %v5126_v54 = vpop.f32.mrb[132].mxu1  ;;  %v5015_v16 = vpop.f32.mrb[133].mxu0 }
 0x377   : > { %v5016_v47 = vadd.f32 %v5015_v16, %v5014_v32  ;;  %v5127_v46 = vpop.f32.mrb[133].mxu1  ;;  %v5017_v51 = vpop.f32.mrb[134].mxu0 }
 0x378   : > { %v5128_v3 = vadd.f32 %v5127_v46, %v5126_v54  ;;  %v5129_v62 = vpop.f32.mrb[134].mxu1  ;;  %v5018_v57 = vpop.f32.mrb[135].mxu0 }
 0x379   : > { %v4270_v17 = vadd.f32 %v5016_v47, %v7894_v60  ;;  %v5019_v34 = vadd.f32 %v5018_v57, %v5017_v51  ;;  %v5130_v49 = vpop.f32.mrb[135].mxu1 }
 0x37a   : > { %v5131_v14 = vadd.f32 %v5130_v49, %v5129_v62 }
 0x37b   : > { %v4431_v26 = vadd.f32 %v5128_v3, %v4270_v17  ;;  %v4273_v12 = vadd.f32 %v5019_v34, %v7894_v60 }
 0x37d   : > { %v4557_v61 = vadd.f32 %v5701_v55, %v4431_v26  ;;  %v4434_v27 = vadd.f32 %v5131_v14, %v4273_v12  ;;  %v5707_v14 = vld [vmem:[%s6088_s14 + $0x30] sm:$0xff] }
 0x37e   : > { %v5020_v22 = vpop.f32.mrb[136].mxu0 }
 0x37f   : > { %v5132_v39 = vpop.f32.mrb[136].mxu1  ;;  %v5021_v21 = vpop.f32.mrb[137].mxu0  ;;  %4590 = vst.msk [vmem:[%s7903_s22] sm:$0xff] %vm4589_vm2, %v4557_v61  ;;  %v4558_v63 = vadd.f32 %v5702_v35, %v4434_v27 }
 0x380   : > { %v5022_v25 = vadd.f32 %v5021_v21, %v5020_v22  ;;  %v5133_v48 = vpop.f32.mrb[137].mxu1  ;;  %v5023_v24 = vpop.f32.mrb[138].mxu0  ;;  %v5708_v22 = vld [vmem:[%s6088_s14 + $0x38] sm:$0xff] }
 0x381   : > { %v5134_v4 = vadd.f32 %v5133_v48, %v5132_v39  ;;  %v5135_v10 = vpop.f32.mrb[138].mxu1  ;;  %v5024_v13 = vpop.f32.mrb[139].mxu0  ;;  %4591 = vst.msk [vmem:[%s7903_s22 + $0x8] sm:$0xff] %vm4589_vm2, %v4558_v63 }
 0x382   : > { %v4278_v2 = vadd.f32 %v5022_v25, %v7894_v60  ;;  %v5025_v29 = vadd.f32 %v5024_v13, %v5023_v24  ;;  %v5136_v5 = vpop.f32.mrb[139].mxu1 }
 0x383   : > { %v5137_v7 = vadd.f32 %v5136_v5, %v5135_v10 }
 0x384   : > { %v4439_v36 = vadd.f32 %v5134_v4, %v4278_v2  ;;  %v4281_v0 = vadd.f32 %v5025_v29, %v7894_v60 }
 0x386   : > { %v4559_v15 = vadd.f32 %v5703_v20, %v4439_v36  ;;  %v4442_v38 = vadd.f32 %v5137_v7, %v4281_v0  ;;  %v5026_v6 = vpop.f32.mrb[140].mxu0  ;;  %v5709_v7 = vld [vmem:[%s6088_s14 + $0x40] sm:$0xff] }
 0x387   : > { %v5138_v28 = vpop.f32.mrb[140].mxu1  ;;  %v5027_v9 = vpop.f32.mrb[141].mxu0 }
 0x388   : > { %4592 = vst.msk [vmem:[%s7903_s22 + $0x10] sm:$0xff] %vm4589_vm2, %v4559_v15  ;;  %v4560_v18 = vadd.f32 %v5704_v59, %v4442_v38  ;;  %v5028_v23 = vadd.f32 %v5027_v9, %v5026_v6  ;;  %v5139_v37 = vpop.f32.mrb[141].mxu1  ;;  %v5029_v58 = vpop.f32.mrb[142].mxu0  ;;  %v5710_v6 = vld [vmem:[%s6088_s14 + $0x48] sm:$0xff] }
 0x389   : > { %v5140_v50 = vadd.f32 %v5139_v37, %v5138_v28  ;;  %v5141_v11 = vpop.f32.mrb[142].mxu1  ;;  %v5030_v1 = vpop.f32.mrb[143].mxu0 }
 0x38a   : > { %4593 = vst.msk [vmem:[%s7903_s22 + $0x18] sm:$0xff] %vm4589_vm2, %v4560_v18  ;;  %v4286_v56 = vadd.f32 %v5028_v23, %v7894_v60  ;;  %v5031_v43 = vadd.f32 %v5030_v1, %v5029_v58  ;;  %v5142_v42 = vpop.f32.mrb[143].mxu1 }
 0x38b   : > { %v5143_v40 = vadd.f32 %v5142_v42, %v5141_v11 }
 0x38c   : > { %v4447_v53 = vadd.f32 %v5140_v50, %v4286_v56  ;;  %v4289_v8 = vadd.f32 %v5031_v43, %v7894_v60 }
 0x38e   : > { %v4561_v19 = vadd.f32 %v5705_v45, %v4447_v53  ;;  %v4450_v41 = vadd.f32 %v5143_v40, %v4289_v8  ;;  %v5032_v33 = vpop.f32.mrb[144].mxu0  ;;  %v5711_v40 = vld [vmem:[%s6088_s14 + $0x50] sm:$0xff] }
 0x38f   : > { %v5144_v31 = vpop.f32.mrb[144].mxu1  ;;  %v5033_v44 = vpop.f32.mrb[145].mxu0 }
 0x390   : > { %4594 = vst.msk [vmem:[%s7903_s22 + $0x20] sm:$0xff] %vm4589_vm2, %v4561_v19  ;;  %v4562_v52 = vadd.f32 %v5706_v30, %v4450_v41  ;;  %v5034_v32 = vadd.f32 %v5033_v44, %v5032_v33  ;;  %v5145_v54 = vpop.f32.mrb[145].mxu1  ;;  %v5035_v16 = vpop.f32.mrb[146].mxu0  ;;  %v5712_v33 = vld [vmem:[%s6088_s14 + $0x58] sm:$0xff] }
 0x391   : > { %v5146_v47 = vadd.f32 %v5145_v54, %v5144_v31  ;;  %v5147_v46 = vpop.f32.mrb[146].mxu1  ;;  %v5036_v51 = vpop.f32.mrb[147].mxu0 }
 0x392   : > { %4595 = vst.msk [vmem:[%s7903_s22 + $0x28] sm:$0xff] %vm4589_vm2, %v4562_v52  ;;  %v4294_v3 = vadd.f32 %v5034_v32, %v7894_v60  ;;  %v5037_v62 = vadd.f32 %v5036_v51, %v5035_v16  ;;  %v5148_v57 = vpop.f32.mrb[147].mxu1 }
 0x393   : > { %v5149_v17 = vadd.f32 %v5148_v57, %v5147_v46 }
 0x394   : > { %v4455_v34 = vadd.f32 %v5146_v47, %v4294_v3  ;;  %v4297_v49 = vadd.f32 %v5037_v62, %v7894_v60 }
 0x396   : > { %v4563_v26 = vadd.f32 %v5707_v14, %v4455_v34  ;;  %v4458_v12 = vadd.f32 %v5149_v17, %v4297_v49  ;;  %v5038_v55 = vpop.f32.mrb[148].mxu0  ;;  %v5713_v17 = vld [vmem:[%s6088_s14 + $0x60] sm:$0xff] }
 0x397   : > { %v5150_v61 = vpop.f32.mrb[148].mxu1  ;;  %v5039_v27 = vpop.f32.mrb[149].mxu0 }
 0x398   : > { %4596 = vst.msk [vmem:[%s7903_s22 + $0x30] sm:$0xff] %vm4589_vm2, %v4563_v26  ;;  %v4564_v39 = vadd.f32 %v5708_v22, %v4458_v12  ;;  %v5040_v21 = vadd.f32 %v5039_v27, %v5038_v55  ;;  %v5151_v35 = vpop.f32.mrb[149].mxu1  ;;  %v5041_v63 = vpop.f32.mrb[150].mxu0  ;;  %v5714_v55 = vld [vmem:[%s6088_s14 + $0x68] sm:$0xff] }
 0x399   : > { %v5152_v25 = vadd.f32 %v5151_v35, %v5150_v61  ;;  %v5153_v48 = vpop.f32.mrb[150].mxu1  ;;  %v5042_v24 = vpop.f32.mrb[151].mxu0 }
 0x39a   : > { %4597 = vst.msk [vmem:[%s7903_s22 + $0x38] sm:$0xff] %vm4589_vm2, %v4564_v39  ;;  %v4302_v4 = vadd.f32 %v5040_v21, %v7894_v60  ;;  %v5043_v10 = vadd.f32 %v5042_v24, %v5041_v63  ;;  %v5154_v13 = vpop.f32.mrb[151].mxu1 }
 0x39b   : > { %v5155_v2 = vadd.f32 %v5154_v13, %v5153_v48 }
 0x39c   : > { %v4463_v29 = vadd.f32 %v5152_v25, %v4302_v4  ;;  %v4305_v5 = vadd.f32 %v5043_v10, %v7894_v60 }
 0x39e   : > { %v4565_v36 = vadd.f32 %v5709_v7, %v4463_v29  ;;  %v4466_v0 = vadd.f32 %v5155_v2, %v4305_v5  ;;  %v5044_v20 = vpop.f32.mrb[152].mxu0  ;;  %v5715_v2 = vld [vmem:[%s6088_s14 + $0x70] sm:$0xff] }
 0x39f   : > { %v5156_v15 = vpop.f32.mrb[152].mxu1  ;;  %v5045_v38 = vpop.f32.mrb[153].mxu0 }
 0x3a0   : > { %4598 = vst.msk [vmem:[%s7903_s22 + $0x40] sm:$0xff] %vm4589_vm2, %v4565_v36  ;;  %v4566_v28 = vadd.f32 %v5710_v6, %v4466_v0  ;;  %v5046_v9 = vadd.f32 %v5045_v38, %v5044_v20  ;;  %v5157_v59 = vpop.f32.mrb[153].mxu1  ;;  %v5047_v18 = vpop.f32.mrb[154].mxu0  ;;  %v5716_v20 = vld [vmem:[%s6088_s14 + $0x78] sm:$0xff] }
 0x3a1   : > { %v5158_v23 = vadd.f32 %v5157_v59, %v5156_v15  ;;  %v5159_v37 = vpop.f32.mrb[154].mxu1  ;;  %v5048_v58 = vpop.f32.mrb[155].mxu0 }
 0x3a2   : > { %4599 = vst.msk [vmem:[%s7903_s22 + $0x48] sm:$0xff] %vm4589_vm2, %v4566_v28  ;;  %v4310_v50 = vadd.f32 %v5046_v9, %v7894_v60  ;;  %v5049_v11 = vadd.f32 %v5048_v58, %v5047_v18  ;;  %v5160_v1 = vpop.f32.mrb[155].mxu1 }
 0x3a3   : > { %v5161_v56 = vadd.f32 %v5160_v1, %v5159_v37 }
 0x3a4   : > { %v4471_v43 = vadd.f32 %v5158_v23, %v4310_v50  ;;  %v4313_v42 = vadd.f32 %v5049_v11, %v7894_v60 }
 0x3a6   : > { %v4567_v53 = vadd.f32 %v5711_v40, %v4471_v43  ;;  %v4474_v8 = vadd.f32 %v5161_v56, %v4313_v42  ;;  %v5050_v45 = vpop.f32.mrb[156].mxu0  ;;  %v5717_v56 = vld [vmem:[%s6088_s14 + $0x80] sm:$0xff] }
 0x3a7   : > { %v5162_v19 = vpop.f32.mrb[156].mxu1  ;;  %v5051_v41 = vpop.f32.mrb[157].mxu0 }
 0x3a8   : > { %4600 = vst.msk [vmem:[%s7903_s22 + $0x50] sm:$0xff] %vm4589_vm2, %v4567_v53  ;;  %v4568_v31 = vadd.f32 %v5712_v33, %v4474_v8  ;;  %v5052_v44 = vadd.f32 %v5051_v41, %v5050_v45  ;;  %v5163_v30 = vpop.f32.mrb[157].mxu1  ;;  %v5053_v52 = vpop.f32.mrb[158].mxu0  ;;  %v5718_v45 = vld [vmem:[%s6088_s14 + $0x88] sm:$0xff] }
 0x3a9   : > { %v5164_v32 = vadd.f32 %v5163_v30, %v5162_v19  ;;  %v5165_v54 = vpop.f32.mrb[158].mxu1  ;;  %v5054_v16 = vpop.f32.mrb[159].mxu0 }
 0x3aa   : > { %4601 = vst.msk [vmem:[%s7903_s22 + $0x58] sm:$0xff] %vm4589_vm2, %v4568_v31  ;;  %v4318_v47 = vadd.f32 %v5052_v44, %v7894_v60  ;;  %v5055_v46 = vadd.f32 %v5054_v16, %v5053_v52  ;;  %v5166_v51 = vpop.f32.mrb[159].mxu1 }
 0x3ab   : > { %v5167_v3 = vadd.f32 %v5166_v51, %v5165_v54 }
 0x3ac   : > { %v4479_v62 = vadd.f32 %v5164_v32, %v4318_v47  ;;  %v4321_v57 = vadd.f32 %v5055_v46, %v7894_v60 }
 0x3ae   : > { %v4569_v34 = vadd.f32 %v5713_v17, %v4479_v62  ;;  %v4482_v49 = vadd.f32 %v5167_v3, %v4321_v57  ;;  %v5056_v14 = vpop.f32.mrb[160].mxu0  ;;  %v5719_v3 = vld [vmem:[%s6088_s14 + $0x90] sm:$0xff] }
 0x3af   : > { %v5168_v26 = vpop.f32.mrb[160].mxu1  ;;  %v5057_v12 = vpop.f32.mrb[161].mxu0 }
 0x3b0   : > { %4602 = vst.msk [vmem:[%s7903_s22 + $0x60] sm:$0xff] %vm4589_vm2, %v4569_v34  ;;  %v4570_v61 = vadd.f32 %v5714_v55, %v4482_v49  ;;  %v5058_v27 = vadd.f32 %v5057_v12, %v5056_v14  ;;  %v5169_v22 = vpop.f32.mrb[161].mxu1  ;;  %v5059_v39 = vpop.f32.mrb[162].mxu0  ;;  %v5720_v14 = vld [vmem:[%s6088_s14 + $0x98] sm:$0xff] }
 0x3b1   : > { %v5170_v21 = vadd.f32 %v5169_v22, %v5168_v26  ;;  %v5171_v35 = vpop.f32.mrb[162].mxu1  ;;  %v5060_v63 = vpop.f32.mrb[163].mxu0 }
 0x3b2   : > { %4603 = vst.msk [vmem:[%s7903_s22 + $0x68] sm:$0xff] %vm4589_vm2, %v4570_v61  ;;  %v4326_v25 = vadd.f32 %v5058_v27, %v7894_v60  ;;  %v5061_v48 = vadd.f32 %v5060_v63, %v5059_v39  ;;  %v5172_v24 = vpop.f32.mrb[163].mxu1 }
 0x3b3   : > { %v5173_v4 = vadd.f32 %v5172_v24, %v5171_v35 }
 0x3b4   : > { %v4487_v10 = vadd.f32 %v5170_v21, %v4326_v25  ;;  %v4329_v13 = vadd.f32 %v5061_v48, %v7894_v60 }
 0x3b6   : > { %v4571_v29 = vadd.f32 %v5715_v2, %v4487_v10  ;;  %v4490_v5 = vadd.f32 %v5173_v4, %v4329_v13  ;;  %v5062_v7 = vpop.f32.mrb[164].mxu0  ;;  %v5721_v4 = vld [vmem:[%s6088_s14 + $0xa0] sm:$0xff] }
 0x3b7   : > { %v5174_v36 = vpop.f32.mrb[164].mxu1  ;;  %v5063_v0 = vpop.f32.mrb[165].mxu0 }
 0x3b8   : > { %4604 = vst.msk [vmem:[%s7903_s22 + $0x70] sm:$0xff] %vm4589_vm2, %v4571_v29  ;;  %v4572_v15 = vadd.f32 %v5716_v20, %v4490_v5  ;;  %v5064_v38 = vadd.f32 %v5063_v0, %v5062_v7  ;;  %v5175_v6 = vpop.f32.mrb[165].mxu1  ;;  %v5065_v28 = vpop.f32.mrb[166].mxu0  ;;  %v5722_v7 = vld [vmem:[%s6088_s14 + $0xa8] sm:$0xff] }
 0x3b9   : > { %v5176_v9 = vadd.f32 %v5175_v6, %v5174_v36  ;;  %v5177_v59 = vpop.f32.mrb[166].mxu1  ;;  %v5066_v18 = vpop.f32.mrb[167].mxu0 }
 0x3ba   : > { %4605 = vst.msk [vmem:[%s7903_s22 + $0x78] sm:$0xff] %vm4589_vm2, %v4572_v15  ;;  %v4334_v23 = vadd.f32 %v5064_v38, %v7894_v60  ;;  %v5067_v37 = vadd.f32 %v5066_v18, %v5065_v28  ;;  %v5178_v58 = vpop.f32.mrb[167].mxu1 }
 0x3bb   : > { %v5179_v50 = vadd.f32 %v5178_v58, %v5177_v59 }
 0x3bc   : > { %v4495_v11 = vadd.f32 %v5176_v9, %v4334_v23  ;;  %v4337_v1 = vadd.f32 %v5067_v37, %v7894_v60 }
 0x3be   : > { %v4573_v43 = vadd.f32 %v5717_v56, %v4495_v11  ;;  %v4498_v42 = vadd.f32 %v5179_v50, %v4337_v1  ;;  %v5068_v40 = vpop.f32.mrb[168].mxu0  ;;  %v5723_v50 = vld [vmem:[%s6088_s14 + $0xb0] sm:$0xff] }
 0x3bf   : > { %v5180_v53 = vpop.f32.mrb[168].mxu1  ;;  %v5069_v8 = vpop.f32.mrb[169].mxu0 }
 0x3c0   : > { %4606 = vst.msk [vmem:[%s7903_s22 + $0x80] sm:$0xff] %vm4589_vm2, %v4573_v43  ;;  %v4574_v19 = vadd.f32 %v5718_v45, %v4498_v42  ;;  %v5070_v41 = vadd.f32 %v5069_v8, %v5068_v40  ;;  %v5181_v33 = vpop.f32.mrb[169].mxu1  ;;  %v5071_v31 = vpop.f32.mrb[170].mxu0  ;;  %v5724_v40 = vld [vmem:[%s6088_s14 + $0xb8] sm:$0xff] }
 0x3c1   : > { %v5182_v44 = vadd.f32 %v5181_v33, %v5180_v53  ;;  %v5183_v30 = vpop.f32.mrb[170].mxu1  ;;  %v5072_v52 = vpop.f32.mrb[171].mxu0 }
 0x3c2   : > { %4607 = vst.msk [vmem:[%s7903_s22 + $0x88] sm:$0xff] %vm4589_vm2, %v4574_v19  ;;  %v4342_v32 = vadd.f32 %v5070_v41, %v7894_v60  ;;  %v5073_v54 = vadd.f32 %v5072_v52, %v5071_v31  ;;  %v5184_v16 = vpop.f32.mrb[171].mxu1 }
 0x3c3   : > { %v5185_v47 = vadd.f32 %v5184_v16, %v5183_v30 }
 0x3c4   : > { %v4503_v46 = vadd.f32 %v5182_v44, %v4342_v32  ;;  %v4345_v51 = vadd.f32 %v5073_v54, %v7894_v60 }
 0x3c6   : > { %v4575_v62 = vadd.f32 %v5719_v3, %v4503_v46  ;;  %v4506_v57 = vadd.f32 %v5185_v47, %v4345_v51  ;;  %v5074_v17 = vpop.f32.mrb[172].mxu0  ;;  %v5725_v47 = vld [vmem:[%s6088_s14 + $0xc0] sm:$0xff] }
 0x3c7   : > { %v5186_v34 = vpop.f32.mrb[172].mxu1  ;;  %v5075_v49 = vpop.f32.mrb[173].mxu0 }
 0x3c8   : > { %4608 = vst.msk [vmem:[%s7903_s22 + $0x90] sm:$0xff] %vm4589_vm2, %v4575_v62  ;;  %v4576_v26 = vadd.f32 %v5720_v14, %v4506_v57  ;;  %v5076_v12 = vadd.f32 %v5075_v49, %v5074_v17  ;;  %v5187_v55 = vpop.f32.mrb[173].mxu1  ;;  %v5077_v61 = vpop.f32.mrb[174].mxu0  ;;  %v5726_v17 = vld [vmem:[%s6088_s14 + $0xc8] sm:$0xff] }
 0x3c9   : > { %v5188_v27 = vadd.f32 %v5187_v55, %v5186_v34  ;;  %v5189_v22 = vpop.f32.mrb[174].mxu1  ;;  %v5078_v39 = vpop.f32.mrb[175].mxu0 }
 0x3ca   : > { %4609 = vst.msk [vmem:[%s7903_s22 + $0x98] sm:$0xff] %vm4589_vm2, %v4576_v26  ;;  %v4350_v21 = vadd.f32 %v5076_v12, %v7894_v60  ;;  %v5079_v35 = vadd.f32 %v5078_v39, %v5077_v61  ;;  %v5190_v63 = vpop.f32.mrb[175].mxu1 }
 0x3cb   : > { %v5191_v25 = vadd.f32 %v5190_v63, %v5189_v22 }
 0x3cc   : > { %v4511_v48 = vadd.f32 %v5188_v27, %v4350_v21  ;;  %v4353_v24 = vadd.f32 %v5079_v35, %v7894_v60 }
 0x3ce   : > { %v4577_v10 = vadd.f32 %v5721_v4, %v4511_v48  ;;  %v4514_v13 = vadd.f32 %v5191_v25, %v4353_v24  ;;  %v5080_v2 = vpop.f32.mrb[176].mxu0  ;;  %v5727_v25 = vld [vmem:[%s6088_s14 + $0xd0] sm:$0xff] }
 0x3cf   : > { %v5192_v29 = vpop.f32.mrb[176].mxu1  ;;  %v5081_v5 = vpop.f32.mrb[177].mxu0 }
 0x3d0   : > { %4610 = vst.msk [vmem:[%s7903_s22 + $0xa0] sm:$0xff] %vm4589_vm2, %v4577_v10  ;;  %v4578_v36 = vadd.f32 %v5722_v7, %v4514_v13  ;;  %v5082_v0 = vadd.f32 %v5081_v5, %v5080_v2  ;;  %v5193_v20 = vpop.f32.mrb[177].mxu1  ;;  %v5083_v15 = vpop.f32.mrb[178].mxu0  ;;  %v5728_v2 = vld [vmem:[%s6088_s14 + $0xd8] sm:$0xff] }
 0x3d1   : > { %v5194_v38 = vadd.f32 %v5193_v20, %v5192_v29  ;;  %v5195_v6 = vpop.f32.mrb[178].mxu1  ;;  %v5084_v28 = vpop.f32.mrb[179].mxu0 }
 0x3d2   : > { %4611 = vst.msk [vmem:[%s7903_s22 + $0xa8] sm:$0xff] %vm4589_vm2, %v4578_v36  ;;  %v4358_v9 = vadd.f32 %v5082_v0, %v7894_v60  ;;  %v5085_v59 = vadd.f32 %v5084_v28, %v5083_v15  ;;  %v5196_v18 = vpop.f32.mrb[179].mxu1 }
 0x3d3   : > { %v5197_v23 = vadd.f32 %v5196_v18, %v5195_v6 }
 0x3d4   : > { %v4519_v37 = vadd.f32 %v5194_v38, %v4358_v9  ;;  %v4361_v58 = vadd.f32 %v5085_v59, %v7894_v60 }
 0x3d6   : > { %v4579_v11 = vadd.f32 %v5723_v50, %v4519_v37  ;;  %v4522_v1 = vadd.f32 %v5197_v23, %v4361_v58  ;;  %v5086_v56 = vpop.f32.mrb[180].mxu0  ;;  %v5729_v23 = vld [vmem:[%s6088_s14 + $0xe0] sm:$0xff] }
 0x3d7   : > { %v5198_v43 = vpop.f32.mrb[180].mxu1  ;;  %v5087_v42 = vpop.f32.mrb[181].mxu0 }
 0x3d8   : > { %4612 = vst.msk [vmem:[%s7903_s22 + $0xb0] sm:$0xff] %vm4589_vm2, %v4579_v11  ;;  %v4580_v53 = vadd.f32 %v5724_v40, %v4522_v1  ;;  %v5088_v8 = vadd.f32 %v5087_v42, %v5086_v56  ;;  %v5199_v45 = vpop.f32.mrb[181].mxu1  ;;  %v5089_v19 = vpop.f32.mrb[182].mxu0  ;;  %v5730_v56 = vld [vmem:[%s6088_s14 + $0xe8] sm:$0xff] }
 0x3d9   : > { %v5200_v41 = vadd.f32 %v5199_v45, %v5198_v43  ;;  %v5201_v33 = vpop.f32.mrb[182].mxu1  ;;  %v5090_v31 = vpop.f32.mrb[183].mxu0 }
 0x3da   : > { %4613 = vst.msk [vmem:[%s7903_s22 + $0xb8] sm:$0xff] %vm4589_vm2, %v4580_v53  ;;  %v4366_v44 = vadd.f32 %v5088_v8, %v7894_v60  ;;  %v5091_v30 = vadd.f32 %v5090_v31, %v5089_v19  ;;  %v5202_v52 = vpop.f32.mrb[183].mxu1 }
 0x3db   : > { %v5203_v32 = vadd.f32 %v5202_v52, %v5201_v33 }
 0x3dc   : > { %v4527_v54 = vadd.f32 %v5200_v41, %v4366_v44  ;;  %v4369_v16 = vadd.f32 %v5091_v30, %v7894_v60 }
 0x3de   : > { %v4581_v46 = vadd.f32 %v5725_v47, %v4527_v54  ;;  %v4530_v51 = vadd.f32 %v5203_v32, %v4369_v16  ;;  %v5092_v3 = vpop.f32.mrb[184].mxu0  ;;  %v5731_v32 = vld [vmem:[%s6088_s14 + $0xf0] sm:$0xff]  ;;  %v5732_v47 = vld [vmem:[%s6088_s14 + $0xf8] sm:$0xff] }
 0x3df   : > { %v5204_v62 = vpop.f32.mrb[184].mxu1  ;;  %v5093_v57 = vpop.f32.mrb[185].mxu0 }
 0x3e0   : > { %4614 = vst.msk [vmem:[%s7903_s22 + $0xc0] sm:$0xff] %vm4589_vm2, %v4581_v46  ;;  %v4582_v34 = vadd.f32 %v5726_v17, %v4530_v51  ;;  %v5094_v49 = vadd.f32 %v5093_v57, %v5092_v3  ;;  %v5205_v14 = vpop.f32.mrb[185].mxu1  ;;  %v5095_v26 = vpop.f32.mrb[186].mxu0 }
 0x3e1   : > { %v5206_v12 = vadd.f32 %v5205_v14, %v5204_v62  ;;  %v5207_v55 = vpop.f32.mrb[186].mxu1  ;;  %v5096_v61 = vpop.f32.mrb[187].mxu0 }
 0x3e2   : > { %4615 = vst.msk [vmem:[%s7903_s22 + $0xc8] sm:$0xff] %vm4589_vm2, %v4582_v34  ;;  %v4374_v27 = vadd.f32 %v5094_v49, %v7894_v60  ;;  %v5097_v22 = vadd.f32 %v5096_v61, %v5095_v26  ;;  %v5208_v39 = vpop.f32.mrb[187].mxu1 }
 0x3e3   : > { %v5209_v21 = vadd.f32 %v5208_v39, %v5207_v55 }
 0x3e4   : > { %v4535_v35 = vadd.f32 %v5206_v12, %v4374_v27  ;;  %v4377_v63 = vadd.f32 %v5097_v22, %v7894_v60 }
 0x3e6   : > { %v4583_v48 = vadd.f32 %v5727_v25, %v4535_v35  ;;  %v4538_v24 = vadd.f32 %v5209_v21, %v4377_v63  ;;  %v5098_v4 = vpop.f32.mrb[188].mxu0 }
 0x3e7   : > { %v5210_v10 = vpop.f32.mrb[188].mxu1  ;;  %v5099_v13 = vpop.f32.mrb[189].mxu0 }
 0x3e8   : > { %4616 = vst.msk [vmem:[%s7903_s22 + $0xd0] sm:$0xff] %vm4589_vm2, %v4583_v48  ;;  %v4584_v29 = vadd.f32 %v5728_v2, %v4538_v24  ;;  %v5100_v5 = vadd.f32 %v5099_v13, %v5098_v4  ;;  %v5211_v7 = vpop.f32.mrb[189].mxu1  ;;  %v5101_v36 = vpop.f32.mrb[190].mxu0 }
 0x3e9   : > { %v5212_v0 = vadd.f32 %v5211_v7, %v5210_v10  ;;  %v5213_v20 = vpop.f32.mrb[190].mxu1  ;;  %v5102_v15 = vpop.f32.mrb[191].mxu0 }
 0x3ea   : > { %4617 = vst.msk [vmem:[%s7903_s22 + $0xd8] sm:$0xff] %vm4589_vm2, %v4584_v29  ;;  %v4382_v38 = vadd.f32 %v5100_v5, %v7894_v60  ;;  %v5103_v6 = vadd.f32 %v5102_v15, %v5101_v36  ;;  %v5214_v28 = vpop.f32.mrb[191].mxu1 }
 0x3eb   : > { %v5215_v9 = vadd.f32 %v5214_v28, %v5213_v20 }
 0x3ec   : > { %v4543_v59 = vadd.f32 %v5212_v0, %v4382_v38  ;;  %v4385_v18 = vadd.f32 %v5103_v6, %v7894_v60 }
 0x3ee   : > { %v4585_v37 = vadd.f32 %v5729_v23, %v4543_v59  ;;  %v4546_v58 = vadd.f32 %v5215_v9, %v4385_v18  ;;  %v5104_v50 = vpop.f32.mrb[192].mxu0 }
 0x3ef   : > { %v5216_v11 = vpop.f32.mrb[192].mxu1  ;;  %v5105_v1 = vpop.f32.mrb[193].mxu0 }
 0x3f0   : > { %4618 = vst.msk [vmem:[%s7903_s22 + $0xe0] sm:$0xff] %vm4589_vm2, %v4585_v37  ;;  %v4586_v43 = vadd.f32 %v5730_v56, %v4546_v58  ;;  %v5106_v42 = vadd.f32 %v5105_v1, %v5104_v50  ;;  %v5217_v40 = vpop.f32.mrb[193].mxu1  ;;  %v5107_v53 = vpop.f32.mrb[194].mxu0 }
 0x3f1   : > { %v5218_v8 = vadd.f32 %v5217_v40, %v5216_v11  ;;  %v5219_v45 = vpop.f32.mrb[194].mxu1  ;;  %v5108_v19 = vpop.f32.mrb[195].mxu0 }
 0x3f2   : > { %4619 = vst.msk [vmem:[%s7903_s22 + $0xe8] sm:$0xff] %vm4589_vm2, %v4586_v43  ;;  %v4390_v41 = vadd.f32 %v5106_v42, %v7894_v60  ;;  %v5109_v33 = vadd.f32 %v5108_v19, %v5107_v53  ;;  %v5220_v31 = vpop.f32.mrb[195].mxu1 }
 0x3f3   : > { %v5221_v44 = vadd.f32 %v5220_v31, %v5219_v45 }
 0x3f4   : > { %v4551_v30 = vadd.f32 %v5218_v8, %v4390_v41  ;;  %v4393_v52 = vadd.f32 %v5109_v33, %v7894_v60 }
 0x3f6   : > { %v4587_v54 = vadd.f32 %v5731_v32, %v4551_v30  ;;  %v4554_v16 = vadd.f32 %v5221_v44, %v4393_v52 }
 0x3f8   : > { %4620 = vst.msk [vmem:[%s7903_s22 + $0xf0] sm:$0xff] %vm4589_vm2, %v4587_v54  ;;  %v4588_v46 = vadd.f32 %v5732_v47, %v4554_v16 }
 0x3fa   : > { %4621 = vst.msk [vmem:[%s7903_s22 + $0xf8] sm:$0xff] %vm4589_vm2, %v4588_v46 }
 0x3fb PF: > { %s21_s19 = sadd.s32 1, %s5755_s19   ;;  %s8230_s17 = smov %s5751_s18 }
 0x3fc   : > { %p18_p5 = scmp.ge.s32.totalorder %s21_s19, 4   ;;  %s8231_s18 = smov %s8233_s20 }
 0x3fe   :  { %20 = sbr.rel (!%p18_p5) target bundleno = 2 (0x2), region = 97 }

// kernel: pcn_forward.6
= control target key start
LH: loop header
LB: loop body
LE: loop exit
PB: predicated region body
PF: predicated region fallthrough
CT: control target
= control target key end

     0   :  { %vm5496_vm0 = vcmask 386048   ;;  %s8760_s1 = inlined_call_operand.vmem [shape: bf16[256,1024], index: 1, kind: input, shape index: {}]   ;;  %s8761_s0 = inlined_call_operand.vmem [shape: f32[2,256], index: 0, kind: input, shape index: {}]   ;;  %s8762_s3 = inlined_call_operand.vmem [shape: bf16[1024,1024], index: 3, kind: input, shape index: {}]   ;;  %s8763_s2 = inlined_call_operand.vmem [shape: f32[1,1024], index: 2, kind: input, shape index: {}]   ;;  %s8764_s5 = inlined_call_operand.vmem [shape: bf16[1024,48], index: 5, kind: input, shape index: {}]   ;;  %s8765_s4 = inlined_call_operand.vmem [shape: f32[1,1024], index: 4, kind: input, shape index: {}]   ;;  %s8766_s6 = inlined_call_operand.vmem [shape: f32[1,48], index: 6, kind: input, shape index: {}]   ;;  %s8767_s7 = inlined_call_operand.vmem [shape: f32[2,48], index: 7, kind: output, shape index: {}]  }
   0x1   :  { %v41_v0 = vld [vmem:[%s8760_s1] sm:$0xff]  ;;  %v42_v17 = vld [vmem:[%s8760_s1 + $0x8] sm:$0xff] }
   0x2   :  { %v45_v1 = vld [vmem:[%s8760_s1 + $0x20] sm:$0xff]  ;;  %v46_v18 = vld [vmem:[%s8760_s1 + $0x28] sm:$0xff] }
   0x3   :  { %v49_v2 = vld [vmem:[%s8760_s1 + $0x40] sm:$0xff]  ;;  %v5504_v3 = vcombine.high %v41_v0, %v45_v1  ;;  %v5503_v4 = vcombine.low %v41_v0, %v45_v1  ;;  %v50_v20 = vld [vmem:[%s8760_s1 + $0x48] sm:$0xff]  ;;  %v5506_v22 = vcombine.high %v42_v17, %v46_v18  ;;  %v5505_v23 = vcombine.low %v42_v17, %v46_v18 }
   0x4   :  { %v53_v5 = vld [vmem:[%s8760_s1 + $0x60] sm:$0xff]  ;;  %v54_v25 = vld [vmem:[%s8760_s1 + $0x68] sm:$0xff] }
   0x5   :  { %v5512_v6 = vcombine.high %v49_v2, %v53_v5  ;;  %v57_v7 = vld [vmem:[%s8760_s1 + $0x80] sm:$0xff]  ;;  %851 = vmatprep.subr.bf16.mxu0 %v5504_v3  ;;  %v5511_v9 = vcombine.low %v49_v2, %v53_v5  ;;  %v5514_v27 = vcombine.high %v50_v20, %v54_v25  ;;  %v58_v28 = vld [vmem:[%s8760_s1 + $0x88] sm:$0xff]  ;;  %892 = vmatprep.subr.bf16.mxu1 %v5506_v22 }
   0x6   :  { %v61_v8 = vld [vmem:[%s8760_s1 + $0xa0] sm:$0xff]  ;;  %852 = vmatpush1.bf16.msra.mxu0 %v5503_v4  ;;  %v62_v29 = vld [vmem:[%s8760_s1 + $0xa8] sm:$0xff]  ;;  %893 = vmatpush1.bf16.msra.mxu1 %v5505_v23  ;;  %v5513_v33 = vcombine.low %v50_v20, %v54_v25 }
   0x7   :  { %853 = vmatprep.subr.bf16.mxu0 %v5512_v6  ;;  %v5520_v10 = vcombine.high %v57_v7, %v61_v8  ;;  %v65_v11 = vld [vmem:[%s8760_s1 + $0xc0] sm:$0xff]  ;;  %v5519_v13 = vcombine.low %v57_v7, %v61_v8  ;;  %v5522_v35 = vcombine.high %v58_v28, %v62_v29  ;;  %894 = vmatprep.subr.bf16.mxu1 %v5514_v27  ;;  %v66_v37 = vld [vmem:[%s8760_s1 + $0xc8] sm:$0xff] }
   0x8   :  { %v69_v12 = vld [vmem:[%s8760_s1 + $0xe0] sm:$0xff]  ;;  %v70_v38 = vld [vmem:[%s8760_s1 + $0xe8] sm:$0xff]  ;;  %v5521_v41 = vcombine.low %v58_v28, %v62_v29 }
   0x9   :  { %v5528_v14 = vcombine.high %v65_v11, %v69_v12  ;;  %v73_v15 = vld [vmem:[%s8760_s1 + $0x100] sm:$0xff]  ;;  %v5527_v21 = vcombine.low %v65_v11, %v69_v12  ;;  %v5530_v43 = vcombine.high %v66_v37, %v70_v38  ;;  %v74_v45 = vld [vmem:[%s8760_s1 + $0x108] sm:$0xff]  ;;  %v5529_v49 = vcombine.low %v66_v37, %v70_v38 }
   0xa   :  { %854 = vmatpush1.bf16.msra.mxu0 %v5511_v9  ;;  %v77_v16 = vld [vmem:[%s8760_s1 + $0x120] sm:$0xff]  ;;  %895 = vmatpush1.bf16.msra.mxu1 %v5513_v33  ;;  %v78_v46 = vld [vmem:[%s8760_s1 + $0x128] sm:$0xff] }
   0xb   :  { %855 = vmatprep.subr.bf16.mxu0 %v5520_v10  ;;  %v6496_v19 = vld.sshfl [vmem:[%s8761_s0] sm:$0x33 pattern:$0x76325410]  ;;  %v5536_v26 = vcombine.high %v73_v15, %v77_v16  ;;  %v5535_v34 = vcombine.low %v73_v15, %v77_v16  ;;  %896 = vmatprep.subr.bf16.mxu1 %v5522_v35  ;;  %v5538_v51 = vcombine.high %v74_v45, %v78_v46  ;;  %v82_v53 = vld [vmem:[%s8760_s1 + $0x148] sm:$0xff] }
   0xc   :  { %v36_v24 = vcombine.high %v6496_v19, %v6496_v19  ;;  %v81_v30 = vld [vmem:[%s8760_s1 + $0x140] sm:$0xff]  ;;  %v86_v54 = vld [vmem:[%s8760_s1 + $0x168] sm:$0xff]  ;;  %v5537_v57 = vcombine.low %v74_v45, %v78_v46 }
   0xd   :  { %v85_v31 = vld [vmem:[%s8760_s1 + $0x160] sm:$0xff]  ;;  %v5546_v59 = vcombine.high %v82_v53, %v86_v54  ;;  %v90_v61 = vld [vmem:[%s8760_s1 + $0x188] sm:$0xff]  ;;  %v5545_v1 = vcombine.low %v82_v53, %v86_v54 }
   0xe   :  { %856 = vmatpush1.bf16.msra.mxu0 %v5519_v13  ;;  %v6518_v32 = vpack.c.bf16 %v36_v24, %v36_v24  ;;  %v5544_v36 = vcombine.high %v81_v30, %v85_v31  ;;  %v89_v39 = vld [vmem:[%s8760_s1 + $0x180] sm:$0xff]  ;;  %v5543_v42 = vcombine.low %v81_v30, %v85_v31  ;;  %897 = vmatpush1.bf16.msra.mxu1 %v5521_v41  ;;  %v94_v62 = vld [vmem:[%s8760_s1 + $0x1a8] sm:$0xff] }
   0xf   :  { %857 = vmatprep.subr.bf16.mxu0 %v5528_v14  ;;  %v93_v40 = vld [vmem:[%s8760_s1 + $0x1a0] sm:$0xff]  ;;  %898 = vmatprep.subr.bf16.mxu1 %v5530_v43  ;;  %v5554_v3 = vcombine.high %v90_v61, %v94_v62  ;;  %v98_v5 = vld [vmem:[%s8760_s1 + $0x1c8] sm:$0xff]  ;;  %v5553_v9 = vcombine.low %v90_v61, %v94_v62 }
  0x10   :  { %883 = vmatprep.mubr.bf16.mxu0 %v6518_v32  ;;  %924 = vmatprep.mubr.bf16.mxu1 %v6518_v32  ;;  %v5552_v44 = vcombine.high %v89_v39, %v93_v40  ;;  %v97_v47 = vld [vmem:[%s8760_s1 + $0x1c0] sm:$0xff]  ;;  %v5551_v50 = vcombine.low %v89_v39, %v93_v40  ;;  %v102_v6 = vld [vmem:[%s8760_s1 + $0x1e8] sm:$0xff] }
  0x11   :  { %v101_v48 = vld [vmem:[%s8760_s1 + $0x1e0] sm:$0xff]  ;;  %v5562_v11 = vcombine.high %v98_v5, %v102_v6  ;;  %v106_v13 = vld [vmem:[%s8760_s1 + $0x208] sm:$0xff]  ;;  %v5561_v17 = vcombine.low %v98_v5, %v102_v6 }
  0x12   :  { %858 = vmatpush1.bf16.msra.mxu0 %v5527_v21  ;;  %v5560_v52 = vcombine.high %v97_v47, %v101_v48  ;;  %v105_v55 = vld [vmem:[%s8760_s1 + $0x200] sm:$0xff]  ;;  %899 = vmatpush1.bf16.msra.mxu1 %v5529_v49  ;;  %v5559_v58 = vcombine.low %v97_v47, %v101_v48  ;;  %v110_v14 = vld [vmem:[%s8760_s1 + $0x228] sm:$0xff] }
  0x13   :  { %859 = vmatprep.subr.bf16.mxu0 %v5536_v26  ;;  %v109_v56 = vld [vmem:[%s8760_s1 + $0x220] sm:$0xff]  ;;  %900 = vmatprep.subr.bf16.mxu1 %v5538_v51  ;;  %v5570_v20 = vcombine.high %v106_v13, %v110_v14  ;;  %v114_v22 = vld [vmem:[%s8760_s1 + $0x248] sm:$0xff]  ;;  %v5569_v26 = vcombine.low %v106_v13, %v110_v14 }
  0x14   :  { %v5568_v60 = vcombine.high %v105_v55, %v109_v56  ;;  %v113_v63 = vld [vmem:[%s8760_s1 + $0x240] sm:$0xff]  ;;  %v5567_v2 = vcombine.low %v105_v55, %v109_v56  ;;  %v118_v23 = vld [vmem:[%s8760_s1 + $0x268] sm:$0xff] }
  0x15   :  { %v117_v0 = vld [vmem:[%s8760_s1 + $0x260] sm:$0xff]  ;;  %v5578_v28 = vcombine.high %v114_v22, %v118_v23  ;;  %v122_v30 = vld [vmem:[%s8760_s1 + $0x288] sm:$0xff]  ;;  %v5577_v35 = vcombine.low %v114_v22, %v118_v23 }
  0x16   :  { %860 = vmatpush1.bf16.msra.mxu0 %v5535_v34  ;;  %901 = vmatpush1.bf16.msra.mxu1 %v5537_v57  ;;  %v5576_v4 = vcombine.high %v113_v63, %v117_v0  ;;  %v121_v7 = vld [vmem:[%s8760_s1 + $0x280] sm:$0xff]  ;;  %v5575_v10 = vcombine.low %v113_v63, %v117_v0  ;;  %v126_v31 = vld [vmem:[%s8760_s1 + $0x2a8] sm:$0xff]  ;;  %v43_v57 = vld [vmem:[%s8760_s1 + $0x10] sm:$0xff] }
  0x17   :  { %861 = vmatprep.subr.bf16.mxu0 %v5544_v36  ;;  %902 = vmatprep.subr.bf16.mxu1 %v5546_v59  ;;  %v125_v8 = vld [vmem:[%s8760_s1 + $0x2a0] sm:$0xff]  ;;  %v5586_v37 = vcombine.high %v122_v30, %v126_v31  ;;  %v130_v39 = vld [vmem:[%s8760_s1 + $0x2c8] sm:$0xff]  ;;  %v5585_v43 = vcombine.low %v122_v30, %v126_v31 }
  0x18   :  { %v5584_v12 = vcombine.high %v121_v7, %v125_v8  ;;  %v129_v15 = vld [vmem:[%s8760_s1 + $0x2c0] sm:$0xff]  ;;  %v5583_v18 = vcombine.low %v121_v7, %v125_v8  ;;  %v134_v40 = vld [vmem:[%s8760_s1 + $0x2e8] sm:$0xff] }
  0x19   :  { %v133_v16 = vld [vmem:[%s8760_s1 + $0x2e0] sm:$0xff]  ;;  %v5594_v45 = vcombine.high %v130_v39, %v134_v40  ;;  %v138_v47 = vld [vmem:[%s8760_s1 + $0x308] sm:$0xff]  ;;  %v5593_v51 = vcombine.low %v130_v39, %v134_v40 }
  0x1a   :  { %862 = vmatpush1.bf16.msra.mxu0 %v5543_v42  ;;  %903 = vmatpush1.bf16.msra.mxu1 %v5545_v1  ;;  %v5592_v21 = vcombine.high %v129_v15, %v133_v16  ;;  %v137_v24 = vld [vmem:[%s8760_s1 + $0x300] sm:$0xff]  ;;  %v5591_v27 = vcombine.low %v129_v15, %v133_v16  ;;  %v142_v48 = vld [vmem:[%s8760_s1 + $0x328] sm:$0xff]  ;;  %v51_v1 = vld [vmem:[%s8760_s1 + $0x50] sm:$0xff] }
  0x1b   :  { %863 = vmatprep.subr.bf16.mxu0 %v5552_v44  ;;  %904 = vmatprep.subr.bf16.mxu1 %v5554_v3  ;;  %v141_v25 = vld [vmem:[%s8760_s1 + $0x320] sm:$0xff]  ;;  %v5602_v53 = vcombine.high %v138_v47, %v142_v48  ;;  %v146_v55 = vld [vmem:[%s8760_s1 + $0x348] sm:$0xff]  ;;  %v5601_v59 = vcombine.low %v138_v47, %v142_v48  ;;  %v6668_v3 = vpack.c.bf16 %v6496_v19, %v6496_v19  ;;  %v59_v19 = vld [vmem:[%s8760_s1 + $0x90] sm:$0xff] }
  0x1c   :  { %v5600_v29 = vcombine.high %v137_v24, %v141_v25  ;;  %v145_v33 = vld [vmem:[%s8760_s1 + $0x340] sm:$0xff]  ;;  %v5599_v36 = vcombine.low %v137_v24, %v141_v25  ;;  %v150_v56 = vld [vmem:[%s8760_s1 + $0x368] sm:$0xff]  ;;  %v44_v15 = vld [vmem:[%s8760_s1 + $0x18] sm:$0xff] }
  0x1d   :  { %v149_v34 = vld [vmem:[%s8760_s1 + $0x360] sm:$0xff]  ;;  %v5610_v61 = vcombine.high %v146_v55, %v150_v56  ;;  %v154_v62 = vld [vmem:[%s8760_s1 + $0x388] sm:$0xff]  ;;  %v48_v16 = vld [vmem:[%s8760_s1 + $0x38] sm:$0xff] }
  0x1e   :  { %864 = vmatpush1.bf16.msra.mxu0 %v5551_v50  ;;  %905 = vmatpush1.bf16.msra.mxu1 %v5553_v9  ;;  %v5608_v38 = vcombine.high %v145_v33, %v149_v34  ;;  %v153_v41 = vld [vmem:[%s8760_s1 + $0x380] sm:$0xff]  ;;  %v5607_v44 = vcombine.low %v145_v33, %v149_v34  ;;  %v158_v63 = vld [vmem:[%s8760_s1 + $0x3a8] sm:$0xff]  ;;  %v5510_v22 = vcombine.high %v44_v15, %v48_v16  ;;  %v52_v24 = vld [vmem:[%s8760_s1 + $0x58] sm:$0xff] }
  0x1f   :  { %865 = vmatprep.subr.bf16.mxu0 %v5560_v52  ;;  %906 = vmatprep.subr.bf16.mxu1 %v5562_v11  ;;  %v157_v42 = vld [vmem:[%s8760_s1 + $0x3a0] sm:$0xff]  ;;  %v5618_v5 = vcombine.high %v154_v62, %v158_v63  ;;  %v162_v7 = vld [vmem:[%s8760_s1 + $0x3c8] sm:$0xff]  ;;  %v5617_v11 = vcombine.low %v154_v62, %v158_v63  ;;  %v56_v25 = vld [vmem:[%s8760_s1 + $0x78] sm:$0xff] }
  0x20   :  { %v5616_v46 = vcombine.high %v153_v41, %v157_v42  ;;  %v161_v49 = vld [vmem:[%s8760_s1 + $0x3c0] sm:$0xff]  ;;  %v5615_v52 = vcombine.low %v153_v41, %v157_v42  ;;  %v166_v8 = vld [vmem:[%s8760_s1 + $0x3e8] sm:$0xff]  ;;  %v5518_v30 = vcombine.high %v52_v24, %v56_v25  ;;  %v60_v33 = vld [vmem:[%s8760_s1 + $0x98] sm:$0xff] }
  0x21   :  { %v165_v50 = vld [vmem:[%s8760_s1 + $0x3e0] sm:$0xff]  ;;  %v64_v34 = vld [vmem:[%s8760_s1 + $0xb8] sm:$0xff] }
  0x22   :  { %866 = vmatpush1.bf16.msra.mxu0 %v5559_v58  ;;  %907 = vmatpush1.bf16.msra.mxu1 %v5561_v17  ;;  %v5624_v54 = vcombine.high %v161_v49, %v165_v50  ;;  %v47_v58 = vld [vmem:[%s8760_s1 + $0x30] sm:$0xff]  ;;  %v5526_v39 = vcombine.high %v60_v33, %v64_v34  ;;  %v68_v41 = vld [vmem:[%s8760_s1 + $0xd8] sm:$0xff] }
  0x23   :  { %867 = vmatprep.subr.bf16.mxu0 %v5568_v60  ;;  %908 = vmatprep.subr.bf16.mxu1 %v5570_v20  ;;  %v5623_v60 = vcombine.low %v161_v49, %v165_v50  ;;  %v5508_v0 = vcombine.high %v43_v57, %v47_v58  ;;  %v5507_v6 = vcombine.low %v43_v57, %v47_v58  ;;  %v67_v17 = vld [vmem:[%s8760_s1 + $0xd0] sm:$0xff]  ;;  %v72_v42 = vld [vmem:[%s8760_s1 + $0xf8] sm:$0xff] }
  0x24   :  { %v5625_v20 = vcombine.low %v162_v7, %v166_v8  ;;  %v76_v48 = vld [vmem:[%s8760_s1 + $0x118] sm:$0xff]  ;;  %v99_v50 = vld [vmem:[%s8760_s1 + $0x1d0] sm:$0xff] }
  0x25   :  { %v80_v49 = vld [vmem:[%s8760_s1 + $0x138] sm:$0xff]  ;;  %v107_v58 = vld [vmem:[%s8760_s1 + $0x210] sm:$0xff] }
  0x26   :  { %868 = vmatpush1.bf16.msra.mxu0 %v5567_v2  ;;  %909 = vmatpush1.bf16.msra.mxu1 %v5569_v26  ;;  %v55_v2 = vld [vmem:[%s8760_s1 + $0x70] sm:$0xff]  ;;  %v88_v57 = vld [vmem:[%s8760_s1 + $0x178] sm:$0xff] }
  0x27   :  { %869 = vmatprep.subr.bf16.mxu0 %v5576_v4  ;;  %910 = vmatprep.subr.bf16.mxu1 %v5578_v28  ;;  %v5609_v4 = vcombine.low %v146_v55, %v150_v56  ;;  %v5516_v9 = vcombine.high %v51_v1, %v55_v2  ;;  %v5515_v13 = vcombine.low %v51_v1, %v55_v2  ;;  %v75_v26 = vld [vmem:[%s8760_s1 + $0x110] sm:$0xff]  ;;  %v84_v56 = vld [vmem:[%s8760_s1 + $0x158] sm:$0xff] }
  0x28   :  { %v5509_v28 = vcombine.low %v44_v15, %v48_v16  ;;  %v5550_v62 = vcombine.high %v84_v56, %v88_v57  ;;  %v96_v1 = vld [vmem:[%s8760_s1 + $0x1b8] sm:$0xff]  ;;  %v115_v2 = vld [vmem:[%s8760_s1 + $0x250] sm:$0xff] }
  0x29   :  { %v108_v16 = vld [vmem:[%s8760_s1 + $0x218] sm:$0xff] }
  0x2a   :  { %870 = vmatpush1.bf16.msra.mxu0 %v5575_v10  ;;  %911 = vmatpush1.bf16.msra.mxu1 %v5577_v35  ;;  %v63_v10 = vld [vmem:[%s8760_s1 + $0xb0] sm:$0xff] }
  0x2b   :  { %871 = vmatprep.subr.bf16.mxu0 %v5584_v12  ;;  %912 = vmatprep.subr.bf16.mxu1 %v5586_v37  ;;  %v5626_v12 = vcombine.high %v162_v7, %v166_v8  ;;  %v5524_v14 = vcombine.high %v59_v19, %v63_v10  ;;  %v83_v35 = vld [vmem:[%s8760_s1 + $0x150] sm:$0xff]  ;;  %v5517_v37 = vcombine.low %v52_v24, %v56_v25  ;;  %v116_v25 = vld [vmem:[%s8760_s1 + $0x258] sm:$0xff] }
  0x2e   :  { %872 = vmatpush1.bf16.msra.mxu0 %v5583_v18  ;;  %913 = vmatpush1.bf16.msra.mxu1 %v5585_v43  ;;  %v71_v18 = vld [vmem:[%s8760_s1 + $0xf0] sm:$0xff] }
  0x2f   :  { %873 = vmatprep.subr.bf16.mxu0 %v5592_v21  ;;  %914 = vmatprep.subr.bf16.mxu1 %v5594_v45  ;;  %v5523_v21 = vcombine.low %v59_v19, %v63_v10  ;;  %v5532_v23 = vcombine.high %v67_v17, %v71_v18  ;;  %v91_v43 = vld [vmem:[%s8760_s1 + $0x190] sm:$0xff]  ;;  %v104_v19 = vld [vmem:[%s8760_s1 + $0x1f8] sm:$0xff] }
  0x30   :  { %v123_v10 = vld [vmem:[%s8760_s1 + $0x290] sm:$0xff] }
  0x32   :  { %874 = vmatpush1.bf16.msra.mxu0 %v5591_v27  ;;  %915 = vmatpush1.bf16.msra.mxu1 %v5593_v51  ;;  %v79_v27 = vld [vmem:[%s8760_s1 + $0x130] sm:$0xff] }
  0x33   :  { %875 = vmatprep.subr.bf16.mxu0 %v5600_v29  ;;  %916 = vmatprep.subr.bf16.mxu1 %v5602_v53  ;;  %v5531_v29 = vcombine.low %v67_v17, %v71_v18  ;;  %v5540_v31 = vcombine.high %v75_v26, %v79_v27  ;;  %v103_v51 = vld [vmem:[%s8760_s1 + $0x1f0] sm:$0xff]  ;;  %v112_v17 = vld [vmem:[%s8760_s1 + $0x238] sm:$0xff] }
  0x34   :  { %v5564_v55 = vcombine.high %v99_v50, %v103_v51  ;;  %v131_v18 = vld [vmem:[%s8760_s1 + $0x2d0] sm:$0xff] }
  0x36   :  { %876 = vmatpush1.bf16.msra.mxu0 %v5599_v36  ;;  %917 = vmatpush1.bf16.msra.mxu1 %v5601_v59  ;;  %v87_v36 = vld [vmem:[%s8760_s1 + $0x170] sm:$0xff] }
  0x37   :  { %877 = vmatprep.subr.bf16.mxu0 %v5608_v38  ;;  %918 = vmatprep.subr.bf16.mxu1 %v5610_v61  ;;  %v5539_v38 = vcombine.low %v75_v26, %v79_v27  ;;  %v5548_v40 = vcombine.high %v83_v35, %v87_v36  ;;  %v5547_v45 = vcombine.low %v83_v35, %v87_v36  ;;  %v111_v59 = vld [vmem:[%s8760_s1 + $0x230] sm:$0xff]  ;;  %v120_v26 = vld [vmem:[%s8760_s1 + $0x278] sm:$0xff] }
  0x38   :  { %v5563_v61 = vcombine.low %v99_v50, %v103_v51  ;;  %v5572_v63 = vcombine.high %v107_v58, %v111_v59  ;;  %v139_v27 = vld [vmem:[%s8760_s1 + $0x310] sm:$0xff]  ;;  %v128_v35 = vld [vmem:[%s8760_s1 + $0x2b8] sm:$0xff] }
  0x39   :  { %v147_v36 = vld [vmem:[%s8760_s1 + $0x350] sm:$0xff]  ;;  %v144_v50 = vld [vmem:[%s8760_s1 + $0x338] sm:$0xff] }
  0x3a   :  { %878 = vmatpush1.bf16.msra.mxu0 %v5607_v44  ;;  %919 = vmatpush1.bf16.msra.mxu1 %v5609_v4  ;;  %v5525_v44 = vcombine.low %v60_v33, %v64_v34  ;;  %v119_v4 = vld [vmem:[%s8760_s1 + $0x270] sm:$0xff]  ;;  %v124_v34 = vld [vmem:[%s8760_s1 + $0x298] sm:$0xff] }
  0x3b   :  { %879 = vmatprep.subr.bf16.mxu0 %v5616_v46  ;;  %920 = vmatprep.subr.bf16.mxu1 %v5618_v5  ;;  %v5534_v46 = vcombine.high %v68_v41, %v72_v42  ;;  %v5549_v5 = vcombine.low %v84_v56, %v88_v57  ;;  %v5580_v8 = vcombine.high %v115_v2, %v119_v4  ;;  %v163_v51 = vld [vmem:[%s8760_s1 + $0x3d0] sm:$0xff]  ;;  %v148_v57 = vld [vmem:[%s8760_s1 + $0x358] sm:$0xff] }
  0x3e   :  { %880 = vmatpush1.bf16.msra.mxu0 %v5615_v52  ;;  %921 = vmatpush1.bf16.msra.mxu1 %v5617_v11  ;;  %v5533_v52 = vcombine.low %v68_v41, %v72_v42  ;;  %v127_v11 = vld [vmem:[%s8760_s1 + $0x2b0] sm:$0xff]  ;;  %v132_v42 = vld [vmem:[%s8760_s1 + $0x2d8] sm:$0xff] }
  0x3f   :  { %881 = vmatprep.subr.bf16.mxu0 %v5624_v54  ;;  %922 = vmatprep.subr.bf16.mxu1 %v5626_v12  ;;  %v5542_v54 = vcombine.high %v76_v48, %v80_v49  ;;  %v5588_v15 = vcombine.high %v123_v10, %v127_v11 }
  0x42   :  { %882 = vmatpush1.bf16.msra.mxu0 %v5623_v60  ;;  %923 = vmatpush1.bf16.msra.mxu1 %v5625_v20  ;;  %v5541_v60 = vcombine.low %v76_v48, %v80_v49  ;;  %v135_v20 = vld [vmem:[%s8760_s1 + $0x2f0] sm:$0xff]  ;;  %v140_v49 = vld [vmem:[%s8760_s1 + $0x318] sm:$0xff] }
  0x43   :  { %933 = vmatprep.subr.bf16.mxu0 %v5508_v0  ;;  %974 = vmatprep.subr.bf16.mxu1 %v5510_v22  ;;  %v92_v0 = vld [vmem:[%s8760_s1 + $0x198] sm:$0xff]  ;;  %v5587_v22 = vcombine.low %v123_v10, %v127_v11  ;;  %v5596_v24 = vcombine.high %v131_v18, %v135_v20  ;;  %v1047_v11 = vld [vmem:[%s8762_s3 + $0x80] sm:$0xff] }
  0x44   :  { %v5558_v7 = vcombine.high %v92_v0, %v96_v1  ;;  %v5557_v12 = vcombine.low %v92_v0, %v96_v1  ;;  %v156_v0 = vld [vmem:[%s8760_s1 + $0x398] sm:$0xff] }
  0x45   :  { %884 = vmatmul.mubr.bf16.vlgmr.msra.gmra.mrb[0].mxu0 %v6668_v3  ;;  %925 = vmatmul.mubr.bf16.vlgmr.msra.gmra.mrb[0].mxu1 %v6668_v3  ;;  %v160_v1 = vld [vmem:[%s8760_s1 + $0x3b8] sm:$0xff] }
  0x46   :  { %934 = vmatpush1.bf16.msra.mxu0 %v5507_v6  ;;  %965 = vmatprep.mubr.bf16.mxu0 %v6518_v32  ;;  %v5571_v6 = vcombine.low %v107_v58, %v111_v59  ;;  %v152_v58 = vld [vmem:[%s8760_s1 + $0x378] sm:$0xff]  ;;  %v1031_v59 = vld [vmem:[%s8762_s3] sm:$0xff] }
  0x47   :  { %935 = vmatprep.subr.bf16.mxu0 %v5516_v9  ;;  %975 = vmatpush1.bf16.msra.mxu1 %v5509_v28  ;;  %v100_v9 = vld [vmem:[%s8760_s1 + $0x1d8] sm:$0xff]  ;;  %v143_v28 = vld [vmem:[%s8760_s1 + $0x330] sm:$0xff] }
  0x48   :  { %1006 = vmatprep.mubr.bf16.mxu1 %v6518_v32  ;;  %976 = vmatprep.subr.bf16.mxu1 %v5518_v30  ;;  %v95_v32 = vld [vmem:[%s8760_s1 + $0x1b0] sm:$0xff]  ;;  %v5595_v30 = vcombine.low %v131_v18, %v135_v20  ;;  %v5604_v33 = vcombine.high %v139_v27, %v143_v28  ;;  %v1055_v20 = vld [vmem:[%s8762_s3 + $0xc0] sm:$0xff] }
  0x49   :  { %v5556_v47 = vcombine.high %v91_v43, %v95_v32  ;;  %v5555_v53 = vcombine.low %v91_v43, %v95_v32  ;;  %v136_v43 = vld [vmem:[%s8760_s1 + $0x2f8] sm:$0xff]  ;;  %v155_v32 = vld [vmem:[%s8760_s1 + $0x390] sm:$0xff] }
  0x4a   :  { %936 = vmatpush1.bf16.msra.mxu0 %v5515_v13  ;;  %v5579_v13 = vcombine.low %v115_v2, %v119_v4  ;;  %v1039_v4 = vld [vmem:[%s8762_s3 + $0x40] sm:$0xff] }
  0x4b   :  { %937 = vmatprep.subr.bf16.mxu0 %v5524_v14  ;;  %977 = vmatpush1.bf16.msra.mxu1 %v5517_v37  ;;  %v5566_v14 = vcombine.high %v100_v9, %v104_v19  ;;  %v151_v37 = vld [vmem:[%s8760_s1 + $0x370] sm:$0xff] }
  0x4c   :  { %978 = vmatprep.subr.bf16.mxu1 %v5526_v39  ;;  %v5603_v39 = vcombine.low %v139_v27, %v143_v28  ;;  %v5612_v41 = vcombine.high %v147_v36, %v151_v37  ;;  %v1063_v28 = vld [vmem:[%s8762_s3 + $0x100] sm:$0xff] }
  0x4e   :  { %938 = vmatpush1.bf16.msra.mxu0 %v5523_v21  ;;  %v5565_v21 = vcombine.low %v100_v9, %v104_v19  ;;  %v164_v9 = vld [vmem:[%s8760_s1 + $0x3d8] sm:$0xff] }
  0x4f   :  { %939 = vmatprep.subr.bf16.mxu0 %v5532_v23  ;;  %979 = vmatpush1.bf16.msra.mxu1 %v5525_v44  ;;  %v5574_v23 = vcombine.high %v108_v16, %v112_v17  ;;  %v159_v44 = vld [vmem:[%s8760_s1 + $0x3b0] sm:$0xff]  ;;  %v168_v19 = vld [vmem:[%s8760_s1 + $0x3f8] sm:$0xff] }
  0x50   :  { %980 = vmatprep.subr.bf16.mxu1 %v5534_v46  ;;  %v5611_v46 = vcombine.low %v147_v36, %v151_v37  ;;  %v5620_v48 = vcombine.high %v155_v32, %v159_v44  ;;  %v1071_v37 = vld [vmem:[%s8762_s3 + $0x140] sm:$0xff] }
  0x52   :  { %940 = vmatpush1.bf16.msra.mxu0 %v5531_v29  ;;  %v5573_v29 = vcombine.low %v108_v16, %v112_v17  ;;  %v1032_v16 = vld [vmem:[%s8762_s3 + $0x8] sm:$0xff] }
  0x53   :  { %941 = vmatprep.subr.bf16.mxu0 %v5540_v31  ;;  %981 = vmatpush1.bf16.msra.mxu1 %v5533_v52  ;;  %v5582_v31 = vcombine.high %v116_v25, %v120_v26  ;;  %v167_v52 = vld [vmem:[%s8760_s1 + $0x3f0] sm:$0xff]  ;;  %v1036_v17 = vld [vmem:[%s8762_s3 + $0x28] sm:$0xff] }
  0x54   :  { %982 = vmatprep.subr.bf16.mxu1 %v5542_v54  ;;  %v5619_v54 = vcombine.low %v155_v32, %v159_v44  ;;  %v5628_v56 = vcombine.high %v163_v51, %v167_v52  ;;  %v1079_v32 = vld [vmem:[%s8762_s3 + $0x180] sm:$0xff] }
  0x55   :  { %v1083_v44 = vld [vmem:[%s8762_s3 + $0x1a0] sm:$0xff] }
  0x56   :  { %942 = vmatpush1.bf16.msra.mxu0 %v5539_v38  ;;  %v5581_v38 = vcombine.low %v116_v25, %v120_v26  ;;  %v1040_v25 = vld [vmem:[%s8762_s3 + $0x48] sm:$0xff] }
  0x57   :  { %943 = vmatprep.subr.bf16.mxu0 %v5548_v40  ;;  %983 = vmatpush1.bf16.msra.mxu1 %v5541_v60  ;;  %v5590_v40 = vcombine.high %v124_v34, %v128_v35  ;;  %v1035_v60 = vld [vmem:[%s8762_s3 + $0x20] sm:$0xff]  ;;  %v1044_v26 = vld [vmem:[%s8762_s3 + $0x68] sm:$0xff] }
  0x58   :  { %984 = vmatprep.subr.bf16.mxu1 %v5550_v62  ;;  %v5627_v62 = vcombine.low %v163_v51, %v167_v52  ;;  %v5632_v2 = vcombine.high %v1031_v59, %v1035_v60  ;;  %v1087_v51 = vld [vmem:[%s8762_s3 + $0x1c0] sm:$0xff] }
  0x59   :  { %v1091_v52 = vld [vmem:[%s8762_s3 + $0x1e0] sm:$0xff] }
  0x5a   :  { %944 = vmatpush1.bf16.msra.mxu0 %v5547_v45  ;;  %v5589_v45 = vcombine.low %v124_v34, %v128_v35  ;;  %v1048_v34 = vld [vmem:[%s8762_s3 + $0x88] sm:$0xff] }
  0x5b   :  { %945 = vmatprep.subr.bf16.mxu0 %v5556_v47  ;;  %985 = vmatpush1.bf16.msra.mxu1 %v5549_v5  ;;  %v5598_v47 = vcombine.high %v132_v42, %v136_v43  ;;  %v1043_v5 = vld [vmem:[%s8762_s3 + $0x60] sm:$0xff]  ;;  %v1052_v35 = vld [vmem:[%s8762_s3 + $0xa8] sm:$0xff] }
  0x5c   :  { %986 = vmatprep.subr.bf16.mxu1 %v5558_v7  ;;  %v5622_v7 = vcombine.high %v156_v0, %v160_v1  ;;  %v5640_v10 = vcombine.high %v1039_v4, %v1043_v5 }
  0x5e   :  { %946 = vmatpush1.bf16.msra.mxu0 %v5555_v53  ;;  %v5597_v53 = vcombine.low %v132_v42, %v136_v43  ;;  %v1056_v42 = vld [vmem:[%s8762_s3 + $0xc8] sm:$0xff] }
  0x5f   :  { %947 = vmatprep.subr.bf16.mxu0 %v5564_v55  ;;  %987 = vmatpush1.bf16.msra.mxu1 %v5557_v12  ;;  %v5606_v55 = vcombine.high %v140_v49, %v144_v50  ;;  %v1051_v12 = vld [vmem:[%s8762_s3 + $0xa0] sm:$0xff] }
  0x60   :  { %988 = vmatprep.subr.bf16.mxu1 %v5566_v14  ;;  %v5630_v14 = vcombine.high %v164_v9, %v168_v19  ;;  %v5648_v18 = vcombine.high %v1047_v11, %v1051_v12 }
  0x62   :  { %948 = vmatpush1.bf16.msra.mxu0 %v5563_v61  ;;  %v5605_v61 = vcombine.low %v140_v49, %v144_v50  ;;  %v1068_v49 = vld [vmem:[%s8762_s3 + $0x128] sm:$0xff]  ;;  %v5680_v50 = vcombine.high %v1079_v32, %v1083_v44 }
  0x63   :  { %949 = vmatprep.subr.bf16.mxu0 %v5572_v63  ;;  %989 = vmatpush1.bf16.msra.mxu1 %v5565_v21  ;;  %v5614_v63 = vcombine.high %v148_v57, %v152_v58  ;;  %v1059_v21 = vld [vmem:[%s8762_s3 + $0xe0] sm:$0xff] }
  0x64   :  { %990 = vmatprep.subr.bf16.mxu1 %v5574_v23  ;;  %v5634_v23 = vcombine.high %v1032_v16, %v1036_v17  ;;  %v5656_v27 = vcombine.high %v1055_v20, %v1059_v21 }
  0x66   :  { %950 = vmatpush1.bf16.msra.mxu0 %v5571_v6  ;;  %v5613_v6 = vcombine.low %v148_v57, %v152_v58  ;;  %v1076_v57 = vld [vmem:[%s8762_s3 + $0x168] sm:$0xff]  ;;  %v5688_v58 = vcombine.high %v1087_v51, %v1091_v52 }
  0x67   :  { %951 = vmatprep.subr.bf16.mxu0 %v5580_v8  ;;  %991 = vmatpush1.bf16.msra.mxu1 %v5573_v29  ;;  %v5631_v8 = vcombine.low %v1031_v59, %v1035_v60  ;;  %v1067_v29 = vld [vmem:[%s8762_s3 + $0x120] sm:$0xff] }
  0x68   :  { %992 = vmatprep.subr.bf16.mxu1 %v5582_v31  ;;  %v5642_v31 = vcombine.high %v1040_v25, %v1044_v26  ;;  %v5664_v36 = vcombine.high %v1063_v28, %v1067_v29  ;;  %v1095_v59 = vld [vmem:[%s8762_s3 + $0x200] sm:$0xff] }
  0x69   :  { %v1099_v60 = vld [vmem:[%s8762_s3 + $0x220] sm:$0xff] }
  0x6a   :  { %952 = vmatpush1.bf16.msra.mxu0 %v5579_v13  ;;  %v5621_v13 = vcombine.low %v156_v0, %v160_v1  ;;  %v6965_v0 = vld [vmem:[%s8762_s3 + $0x408] sm:$0xff] }
  0x6b   :  { %953 = vmatprep.subr.bf16.mxu0 %v5588_v15  ;;  %993 = vmatpush1.bf16.msra.mxu1 %v5581_v38  ;;  %v5639_v15 = vcombine.low %v1039_v4, %v1043_v5  ;;  %v1075_v38 = vld [vmem:[%s8762_s3 + $0x160] sm:$0xff]  ;;  %v6970_v4 = vld [vmem:[%s8762_s3 + $0x428] sm:$0xff] }
  0x6c   :  { %994 = vmatprep.subr.bf16.mxu1 %v5590_v40  ;;  %v5650_v40 = vcombine.high %v1048_v34, %v1052_v35  ;;  %v5672_v43 = vcombine.high %v1071_v37, %v1075_v38  ;;  %v1080_v5 = vld [vmem:[%s8762_s3 + $0x188] sm:$0xff] }
  0x6e   :  { %954 = vmatpush1.bf16.msra.mxu0 %v5587_v22  ;;  %v5629_v22 = vcombine.low %v164_v9, %v168_v19  ;;  %v5761_v9 = vcombine.low %v6965_v0, %v6970_v4  ;;  %v1103_v19 = vld [vmem:[%s8762_s3 + $0x240] sm:$0xff] }
  0x6f   :  { %955 = vmatprep.subr.bf16.mxu0 %v5596_v24  ;;  %995 = vmatpush1.bf16.msra.mxu1 %v5589_v45  ;;  %v5647_v24 = vcombine.low %v1047_v11, %v1051_v12  ;;  %v5649_v45 = vcombine.low %v1048_v34, %v1052_v35  ;;  %v1127_v35 = vld [vmem:[%s8762_s3 + $0x300] sm:$0xff] }
  0x70   :  { %996 = vmatprep.subr.bf16.mxu1 %v5598_v47  ;;  %v5671_v47 = vcombine.low %v1071_v37, %v1075_v38 }
  0x72   :  { %956 = vmatpush1.bf16.msra.mxu0 %v5595_v30  ;;  %v5633_v30 = vcombine.low %v1032_v16, %v1036_v17  ;;  %v1111_v17 = vld [vmem:[%s8762_s3 + $0x280] sm:$0xff] }
  0x73   :  { %957 = vmatprep.subr.bf16.mxu0 %v5604_v33  ;;  %997 = vmatpush1.bf16.msra.mxu1 %v5597_v53  ;;  %v5655_v33 = vcombine.low %v1055_v20, %v1059_v21 }
  0x74   :  { %998 = vmatprep.subr.bf16.mxu1 %v5606_v55  ;;  %v5679_v55 = vcombine.low %v1079_v32, %v1083_v44 }
  0x76   :  { %958 = vmatpush1.bf16.msra.mxu0 %v5603_v39  ;;  %v5641_v39 = vcombine.low %v1040_v25, %v1044_v26  ;;  %v1119_v26 = vld [vmem:[%s8762_s3 + $0x2c0] sm:$0xff] }
  0x77   :  { %959 = vmatprep.subr.bf16.mxu0 %v5612_v41  ;;  %999 = vmatpush1.bf16.msra.mxu1 %v5605_v61  ;;  %v5663_v41 = vcombine.low %v1063_v28, %v1067_v29 }
  0x78   :  { %1000 = vmatprep.subr.bf16.mxu1 %v5614_v63  ;;  %v6960_v63 = vld [vmem:[%s8762_s3 + $0x420] sm:$0xff] }
  0x7a   :  { %960 = vmatpush1.bf16.msra.mxu0 %v5611_v46 }
  0x7b   :  { %961 = vmatprep.subr.bf16.mxu0 %v5620_v48  ;;  %1001 = vmatpush1.bf16.msra.mxu1 %v5613_v6  ;;  %v1064_v48 = vld [vmem:[%s8762_s3 + $0x108] sm:$0xff] }
  0x7c   :  { %1002 = vmatprep.subr.bf16.mxu1 %v5622_v7  ;;  %v5665_v61 = vcombine.low %v1064_v48, %v1068_v49  ;;  %v1084_v6 = vld [vmem:[%s8762_s3 + $0x1a8] sm:$0xff]  ;;  %v5696_v7 = vcombine.high %v1095_v59, %v1099_v60 }
  0x7d   :  { %v5682_v12 = vcombine.high %v1080_v5, %v1084_v6  ;;  %v5681_v20 = vcombine.low %v1080_v5, %v1084_v6 }
  0x7e   :  { %962 = vmatpush1.bf16.msra.mxu0 %v5619_v54  ;;  %v5666_v54 = vcombine.high %v1064_v48, %v1068_v49  ;;  %v1143_v49 = vld [vmem:[%s8762_s3 + $0x380] sm:$0xff] }
  0x7f   :  { %963 = vmatprep.subr.bf16.mxu0 %v5628_v56  ;;  %1003 = vmatpush1.bf16.msra.mxu1 %v5621_v13  ;;  %v1072_v56 = vld [vmem:[%s8762_s3 + $0x148] sm:$0xff]  ;;  %v5695_v13 = vcombine.low %v1095_v59, %v1099_v60 }
  0x80   :  { %1004 = vmatprep.subr.bf16.mxu1 %v5630_v14  ;;  %v5674_v1 = vcombine.high %v1072_v56, %v1076_v57  ;;  %v5673_v11 = vcombine.low %v1072_v56, %v1076_v57  ;;  %v1088_v14 = vld [vmem:[%s8762_s3 + $0x1c8] sm:$0xff]  ;;  %v1151_v57 = vld [vmem:[%s8762_s3 + $0x3c0] sm:$0xff] }
  0x82   :  { %964 = vmatpush1.bf16.msra.mxu0 %v5627_v62  ;;  %v6955_v62 = vld [vmem:[%s8762_s3 + $0x400] sm:$0xff] }
  0x83   :  { %4145 = vmatprep.subr.bf16.mxu0 %v5632_v2  ;;  %1005 = vmatpush1.bf16.msra.mxu1 %v5629_v22  ;;  %v5687_v2 = vcombine.low %v1087_v51, %v1091_v52 }
  0x84   :  { %4309 = vmatprep.subr.bf16.mxu1 %v5634_v23  ;;  %v1096_v23 = vld [vmem:[%s8762_s3 + $0x208] sm:$0xff] }
  0x85   :  { %966 = vmatmul.mubr.bf16.vlgmr.msra.gmra.mrb[4].mxu0 %v6668_v3 }
  0x86   :  { %4146 = vmatpush1.bf16.msra.mxu0 %v5631_v8  ;;  %1007 = vmatmul.mubr.bf16.vlgmr.msra.gmra.mrb[4].mxu1 %v6668_v3  ;;  %v1060_v3 = vld [vmem:[%s8762_s3 + $0xe8] sm:$0xff]  ;;  %v5759_v8 = vcombine.low %v6955_v62, %v6960_v63 }
  0x87   :  { %4147 = vmatprep.subr.bf16.mxu0 %v5640_v10  ;;  %4310 = vmatpush1.bf16.msra.mxu1 %v5633_v30  ;;  %v5658_v46 = vcombine.high %v1056_v42, %v1060_v3  ;;  %v5657_v53 = vcombine.low %v1056_v42, %v1060_v3  ;;  %v1107_v10 = vld [vmem:[%s8762_s3 + $0x260] sm:$0xff] }
  0x88   :  { %4311 = vmatprep.subr.bf16.mxu1 %v5642_v31  ;;  %v5704_v16 = vcombine.high %v1103_v19, %v1107_v10  ;;  %v5703_v22 = vcombine.low %v1103_v19, %v1107_v10  ;;  %v1104_v31 = vld [vmem:[%s8762_s3 + $0x248] sm:$0xff]  ;;  %v1135_v3 = vld [vmem:[%s8762_s3 + $0x340] sm:$0xff] }
  0x89   :  { %v1144_v10 = vld [vmem:[%s8762_s3 + $0x388] sm:$0xff] }
  0x8a   :  { %4148 = vmatpush1.bf16.msra.mxu0 %v5639_v15  ;;  %v1092_v15 = vld [vmem:[%s8762_s3 + $0x1e8] sm:$0xff] }
  0x8b   :  { %4149 = vmatprep.subr.bf16.mxu0 %v5648_v18  ;;  %4312 = vmatpush1.bf16.msra.mxu1 %v5641_v39  ;;  %v1115_v18 = vld [vmem:[%s8762_s3 + $0x2a0] sm:$0xff]  ;;  %v5690_v21 = vcombine.high %v1088_v14, %v1092_v15  ;;  %v5689_v28 = vcombine.low %v1088_v14, %v1092_v15  ;;  %v1152_v15 = vld [vmem:[%s8762_s3 + $0x3c8] sm:$0xff] }
  0x8c   :  { %4313 = vmatprep.subr.bf16.mxu1 %v5650_v40  ;;  %v5712_v25 = vcombine.high %v1111_v17, %v1115_v18  ;;  %v5711_v30 = vcombine.low %v1111_v17, %v1115_v18  ;;  %v1112_v40 = vld [vmem:[%s8762_s3 + $0x288] sm:$0xff] }
  0x8e   :  { %4150 = vmatpush1.bf16.msra.mxu0 %v5647_v24  ;;  %v1100_v24 = vld [vmem:[%s8762_s3 + $0x228] sm:$0xff] }
  0x8f   :  { %4151 = vmatprep.subr.bf16.mxu0 %v5656_v27  ;;  %4314 = vmatpush1.bf16.msra.mxu1 %v5649_v45  ;;  %v1123_v27 = vld [vmem:[%s8762_s3 + $0x2e0] sm:$0xff]  ;;  %v5698_v29 = vcombine.high %v1096_v23, %v1100_v24  ;;  %v5697_v37 = vcombine.low %v1096_v23, %v1100_v24 }
  0x90   :  { %4315 = vmatprep.subr.bf16.mxu1 %v5658_v46  ;;  %v5720_v34 = vcombine.high %v1119_v26, %v1123_v27  ;;  %v5719_v39 = vcombine.low %v1119_v26, %v1123_v27  ;;  %v1120_v46 = vld [vmem:[%s8762_s3 + $0x2c8] sm:$0xff] }
  0x92   :  { %4152 = vmatpush1.bf16.msra.mxu0 %v5655_v33  ;;  %v1108_v33 = vld [vmem:[%s8762_s3 + $0x268] sm:$0xff] }
  0x93   :  { %4153 = vmatprep.subr.bf16.mxu0 %v5664_v36  ;;  %4316 = vmatpush1.bf16.msra.mxu1 %v5657_v53  ;;  %v1131_v36 = vld [vmem:[%s8762_s3 + $0x320] sm:$0xff]  ;;  %v5706_v38 = vcombine.high %v1104_v31, %v1108_v33  ;;  %v5705_v32 = vcombine.low %v1104_v31, %v1108_v33 }
  0x94   :  { %4317 = vmatprep.subr.bf16.mxu1 %v5666_v54  ;;  %v5728_v42 = vcombine.high %v1127_v35, %v1131_v36  ;;  %v5727_v45 = vcombine.low %v1127_v35, %v1131_v36  ;;  %v1128_v54 = vld [vmem:[%s8762_s3 + $0x308] sm:$0xff] }
  0x96   :  { %4154 = vmatpush1.bf16.msra.mxu0 %v5663_v41  ;;  %v1116_v41 = vld [vmem:[%s8762_s3 + $0x2a8] sm:$0xff] }
  0x97   :  { %4155 = vmatprep.subr.bf16.mxu0 %v5672_v43  ;;  %4318 = vmatpush1.bf16.msra.mxu1 %v5665_v61  ;;  %v1139_v43 = vld [vmem:[%s8762_s3 + $0x360] sm:$0xff]  ;;  %v5714_v44 = vcombine.high %v1112_v40, %v1116_v41  ;;  %v5713_v51 = vcombine.low %v1112_v40, %v1116_v41  ;;  %v1168_v40 = vld [vmem:[%s8762_s3 + $0x448] sm:$0xff] }
  0x98   :  { %4319 = vmatprep.subr.bf16.mxu1 %v5674_v1  ;;  %v5736_v48 = vcombine.high %v1135_v3, %v1139_v43  ;;  %v5735_v53 = vcombine.low %v1135_v3, %v1139_v43  ;;  %v1136_v1 = vld [vmem:[%s8762_s3 + $0x348] sm:$0xff] }
  0x99   :  { %v1172_v41 = vld [vmem:[%s8762_s3 + $0x468] sm:$0xff] }
  0x9a   :  { %4156 = vmatpush1.bf16.msra.mxu0 %v5671_v47  ;;  %v1124_v47 = vld [vmem:[%s8762_s3 + $0x2e8] sm:$0xff] }
  0x9b   :  { %4157 = vmatprep.subr.bf16.mxu0 %v5680_v50  ;;  %4320 = vmatpush1.bf16.msra.mxu1 %v5673_v11  ;;  %v1147_v50 = vld [vmem:[%s8762_s3 + $0x3a0] sm:$0xff]  ;;  %v5722_v52 = vcombine.high %v1120_v46, %v1124_v47  ;;  %v5721_v59 = vcombine.low %v1120_v46, %v1124_v47  ;;  %v1148_v11 = vld [vmem:[%s8762_s3 + $0x3a8] sm:$0xff] }
  0x9c   :  { %4321 = vmatprep.subr.bf16.mxu1 %v5682_v12  ;;  %v5744_v56 = vcombine.high %v1143_v49, %v1147_v50  ;;  %v5743_v61 = vcombine.low %v1143_v49, %v1147_v50  ;;  %v5760_v12 = vcombine.high %v6955_v62, %v6960_v63  ;;  %v5746_v14 = vcombine.high %v1144_v10, %v1148_v11  ;;  %v1179_v46 = vld [vmem:[%s8762_s3 + $0x4a0] sm:$0xff]  ;;  %v1176_v47 = vld [vmem:[%s8762_s3 + $0x488] sm:$0xff] }
  0x9d   :  { %v5745_v17 = vcombine.low %v1144_v10, %v1148_v11  ;;  %v1187_v62 = vld [vmem:[%s8762_s3 + $0x4e0] sm:$0xff]  ;;  %v1184_v63 = vld [vmem:[%s8762_s3 + $0x4c8] sm:$0xff] }
  0x9e   :  { %4158 = vmatpush1.bf16.msra.mxu0 %v5679_v55  ;;  %v1132_v55 = vld [vmem:[%s8762_s3 + $0x328] sm:$0xff] }
  0x9f   :  { %4159 = vmatprep.subr.bf16.mxu0 %v5688_v58  ;;  %4322 = vmatpush1.bf16.msra.mxu1 %v5681_v20  ;;  %v1155_v58 = vld [vmem:[%s8762_s3 + $0x3e0] sm:$0xff]  ;;  %v5730_v60 = vcombine.high %v1128_v54, %v1132_v55  ;;  %v5729_v6 = vcombine.low %v1128_v54, %v1132_v55 }
  0xa0   :  { %4323 = vmatprep.subr.bf16.mxu1 %v5690_v21  ;;  %v5752_v5 = vcombine.high %v1151_v57, %v1155_v58  ;;  %v5751_v19 = vcombine.low %v1151_v57, %v1155_v58  ;;  %v5762_v21 = vcombine.high %v6965_v0, %v6970_v4  ;;  %v1183_v54 = vld [vmem:[%s8762_s3 + $0x4c0] sm:$0xff]  ;;  %v1188_v0 = vld [vmem:[%s8762_s3 + $0x4e8] sm:$0xff] }
  0xa1   :  { %v5785_v10 = vcombine.low %v1184_v63, %v1188_v0 }
  0xa2   :  { %4160 = vmatpush1.bf16.msra.mxu0 %v5687_v2  ;;  %v1140_v2 = vld [vmem:[%s8762_s3 + $0x368] sm:$0xff] }
  0xa3   :  { %4161 = vmatprep.subr.bf16.mxu0 %v5696_v7  ;;  %4324 = vmatpush1.bf16.msra.mxu1 %v5689_v28  ;;  %v5738_v7 = vcombine.high %v1136_v1, %v1140_v2 }
  0xa4   :  { %4325 = vmatprep.subr.bf16.mxu1 %v5698_v29 }
  0xa6   :  { %4162 = vmatpush1.bf16.msra.mxu0 %v5695_v13  ;;  %v5737_v13 = vcombine.low %v1136_v1, %v1140_v2  ;;  %v1195_v2 = vld [vmem:[%s8762_s3 + $0x520] sm:$0xff] }
  0xa7   :  { %4163 = vmatprep.subr.bf16.mxu0 %v5704_v16  ;;  %4326 = vmatpush1.bf16.msra.mxu1 %v5697_v37  ;;  %v1156_v16 = vld [vmem:[%s8762_s3 + $0x3e8] sm:$0xff]  ;;  %v1167_v37 = vld [vmem:[%s8762_s3 + $0x440] sm:$0xff] }
  0xa8   :  { %4327 = vmatprep.subr.bf16.mxu1 %v5706_v38  ;;  %v5754_v18 = vcombine.high %v1152_v15, %v1156_v16  ;;  %v5753_v20 = vcombine.low %v1152_v15, %v1156_v16  ;;  %v1200_v15 = vld [vmem:[%s8762_s3 + $0x548] sm:$0xff] }
  0xa9   :  { %v1204_v16 = vld [vmem:[%s8762_s3 + $0x568] sm:$0xff] }
  0xaa   :  { %4164 = vmatpush1.bf16.msra.mxu0 %v5703_v22  ;;  %v171_v22 = vlaneseq }
  0xab   :  { %4165 = vmatprep.subr.bf16.mxu0 %v5712_v25  ;;  %4328 = vmatpush1.bf16.msra.mxu1 %v5705_v32  ;;  %v7088_v25 = vld [vmem:[%s8763_s2] sm:$0xff] }
  0xac   :  { %4329 = vmatprep.subr.bf16.mxu1 %v5714_v44  ;;  %v7082_v23 = vshrl.u32 %v171_v22, 7  ;;  %v5770_v44 = vcombine.high %v1168_v40, %v1172_v41  ;;  %v1207_v22 = vld [vmem:[%s8762_s3 + $0x580] sm:$0xff] }
  0xae   :  { %4166 = vmatpush1.bf16.msra.mxu0 %v5711_v30  ;;  %v173_v24 = vsub.s32 0, %v7082_v23  ;;  %v177_v26 = vsub.s32 1, %v7082_v23 }
  0xaf   :  { %4167 = vmatprep.subr.bf16.mxu0 %v5720_v34  ;;  %4330 = vmatpush1.bf16.msra.mxu1 %v5713_v51  ;;  %v5769_v51 = vcombine.low %v1168_v40, %v1172_v41 }
  0xb0   :  { %4331 = vmatprep.subr.bf16.mxu1 %v5722_v52  ;;  %v174_v27 = vrot.slane %v7088_v25, %v173_v24  ;;  %v178_v28 = vrot.slane %v7088_v25, %v177_v26 }
  0xb2   :  { %4168 = vmatpush1.bf16.msra.mxu0 %v5719_v39  ;;  %v1171_v39 = vld [vmem:[%s8762_s3 + $0x460] sm:$0xff] }
  0xb3   :  { %4169 = vmatprep.subr.bf16.mxu0 %v5728_v42  ;;  %4332 = vmatpush1.bf16.msra.mxu1 %v5721_v59  ;;  %v185_v42 = vsub.s32 3, %v7082_v23  ;;  %v5768_v32 = vcombine.high %v1167_v37, %v1171_v39  ;;  %v5767_v50 = vcombine.low %v1167_v37, %v1171_v39  ;;  %v5784_v59 = vcombine.high %v1183_v54, %v1187_v62  ;;  %v1216_v37 = vld [vmem:[%s8762_s3 + $0x5c8] sm:$0xff] }
  0xb4   :  { %4333 = vmatprep.subr.bf16.mxu1 %v5730_v60  ;;  %v5786_v60 = vcombine.high %v1184_v63, %v1188_v0 }
  0xb5   :  { %v186_v49 = vrot.slane %v7088_v25, %v185_v42 }
  0xb6   :  { %4170 = vmatpush1.bf16.msra.mxu0 %v5727_v45  ;;  %v1175_v45 = vld [vmem:[%s8762_s3 + $0x480] sm:$0xff] }
  0xb7   :  { %4171 = vmatprep.subr.bf16.mxu0 %v5736_v48  ;;  %4334 = vmatpush1.bf16.msra.mxu1 %v5729_v6  ;;  %v1180_v48 = vld [vmem:[%s8762_s3 + $0x4a8] sm:$0xff]  ;;  %v5776_v52 = vcombine.high %v1175_v45, %v1179_v46 }
  0xb8   :  { %4335 = vmatprep.subr.bf16.mxu1 %v5738_v7  ;;  %v5777_v57 = vcombine.low %v1176_v47, %v1180_v48  ;;  %v1196_v6 = vld [vmem:[%s8762_s3 + $0x528] sm:$0xff] }
  0xba   :  { %4172 = vmatpush1.bf16.msra.mxu0 %v5735_v53  ;;  %v5778_v53 = vcombine.high %v1176_v47, %v1180_v48  ;;  %v1228_v47 = vld [vmem:[%s8762_s3 + $0x628] sm:$0xff] }
  0xbb   :  { %4173 = vmatprep.subr.bf16.mxu0 %v5744_v56  ;;  %4336 = vmatpush1.bf16.msra.mxu1 %v5737_v13  ;;  %v5775_v56 = vcombine.low %v1175_v45, %v1179_v46  ;;  %v1199_v13 = vld [vmem:[%s8762_s3 + $0x540] sm:$0xff]  ;;  %v1224_v46 = vld [vmem:[%s8762_s3 + $0x608] sm:$0xff] }
  0xbc   :  { %4337 = vmatprep.subr.bf16.mxu1 %v5746_v14  ;;  %v1203_v14 = vld [vmem:[%s8762_s3 + $0x560] sm:$0xff]  ;;  %v5825_v0 = vcombine.low %v1224_v46, %v1228_v47 }
  0xbd   :  { %v1227_v45 = vld [vmem:[%s8762_s3 + $0x620] sm:$0xff] }
  0xbe   :  { %4174 = vmatpush1.bf16.msra.mxu0 %v5743_v61  ;;  %v1191_v61 = vld [vmem:[%s8762_s3 + $0x500] sm:$0xff] }
  0xbf   :  { %4175 = vmatprep.subr.bf16.mxu0 %v5752_v5  ;;  %4338 = vmatpush1.bf16.msra.mxu1 %v5745_v17  ;;  %v1192_v5 = vld [vmem:[%s8762_s3 + $0x508] sm:$0xff]  ;;  %v5792_v11 = vcombine.high %v1191_v61, %v1195_v2  ;;  %v5791_v17 = vcombine.low %v1191_v61, %v1195_v2  ;;  %v1247_v2 = vld [vmem:[%s8762_s3 + $0x6c0] sm:$0xff] }
  0xc0   :  { %4339 = vmatprep.subr.bf16.mxu1 %v5754_v18  ;;  %v5793_v18 = vcombine.low %v1192_v5, %v1196_v6 }
  0xc2   :  { %4176 = vmatpush1.bf16.msra.mxu0 %v5751_v19  ;;  %v5783_v19 = vcombine.low %v1183_v54, %v1187_v62  ;;  %v1232_v54 = vld [vmem:[%s8762_s3 + $0x648] sm:$0xff] }
  0xc3   :  { %4186 = vmatprep.subr.bf16.mxu0 %v5760_v12  ;;  %4340 = vmatpush1.bf16.msra.mxu1 %v5753_v20  ;;  %v5794_v12 = vcombine.high %v1192_v5, %v1196_v6  ;;  %v5800_v20 = vcombine.high %v1199_v13, %v1203_v14  ;;  %v1236_v62 = vld [vmem:[%s8762_s3 + $0x668] sm:$0xff]  ;;  %v1251_v5 = vld [vmem:[%s8762_s3 + $0x6e0] sm:$0xff] }
  0xc4   :  { %4350 = vmatprep.subr.bf16.mxu1 %v5762_v21  ;;  %v5802_v21 = vcombine.high %v1200_v15, %v1204_v16  ;;  %v1248_v6 = vld [vmem:[%s8762_s3 + $0x6c8] sm:$0xff] }
 0x118   :  { %v885_v29 = vpop.f32.mrb[0].mxu0  ;;  %v7142_v55 = vpop.f32.mrb[0].mxu1 }
 0x119   :  { %v886_v30 = vadd.f32 %v885_v29, %v174_v27  ;;  %v887_v31 = vpop.f32.mrb[1].mxu0  ;;  %v928_v4 = vpop.f32.mrb[1].mxu1  ;;  %v1211_v27 = vld [vmem:[%s8762_s3 + $0x5a0] sm:$0xff]  ;;  %v1212_v29 = vld [vmem:[%s8762_s3 + $0x5a8] sm:$0xff] }
 0x11a   :  { %v888_v33 = vadd.f32 %v887_v31, %v178_v28  ;;  %v889_v34 = vpop.f32.mrb[2].mxu0  ;;  %v1208_v28 = vld [vmem:[%s8762_s3 + $0x588] sm:$0xff]  ;;  %v5801_v31 = vcombine.low %v1200_v15, %v1204_v16  ;;  %v5807_v39 = vcombine.low %v1207_v22, %v1211_v27  ;;  %v1259_v15 = vld [vmem:[%s8762_s3 + $0x720] sm:$0xff] }
 0x11b   :  { %v1015_v35 = vmax.f32 %v886_v30, 0.0  ;;  %v890_v36 = vpop.f32.mrb[3].mxu0  ;;  %v5799_v30 = vcombine.low %v1199_v13, %v1203_v14  ;;  %v5810_v34 = vcombine.high %v1208_v28, %v1212_v29  ;;  %v5809_v40 = vcombine.low %v1208_v28, %v1212_v29  ;;  %v1255_v14 = vld [vmem:[%s8762_s3 + $0x700] sm:$0xff]  ;;  %v1256_v16 = vld [vmem:[%s8762_s3 + $0x708] sm:$0xff] }
 0x11c   :  { %v1016_v38 = vmax.f32 %v888_v33, 0.0  ;;  %v5808_v33 = vcombine.high %v1207_v22, %v1211_v27  ;;  %v1219_v36 = vld [vmem:[%s8762_s3 + $0x5e0] sm:$0xff]  ;;  %v1264_v29 = vld [vmem:[%s8762_s3 + $0x748] sm:$0xff] }
 0x11d   :  { %v7112_v43 = vpack.c.bf16 %v1015_v35, %v1015_v35  ;;  %v1215_v35 = vld [vmem:[%s8762_s3 + $0x5c0] sm:$0xff] }
 0x11e   :  { %v7110_v3 = vpack.c.bf16 %v1016_v38, %v1016_v38  ;;  %v1220_v38 = vld [vmem:[%s8762_s3 + $0x5e8] sm:$0xff]  ;;  %v5816_v41 = vcombine.high %v1215_v35, %v1219_v36  ;;  %v5815_v48 = vcombine.low %v1215_v35, %v1219_v36  ;;  %v1263_v27 = vld [vmem:[%s8762_s3 + $0x740] sm:$0xff] }
 0x11f   :  { %v1267_v28 = vld [vmem:[%s8762_s3 + $0x760] sm:$0xff] }
 0x120   :  { %4177 = vmatprep.mubr.bf16.mxu0 %v7110_v3  ;;  %4341 = vmatprep.mubr.bf16.mxu1 %v7110_v3  ;;  %v5864_v35 = vcombine.high %v1263_v27, %v1267_v28 }
 0x121   :  { %4178 = vmatmul.mubr.bf16.vlgmr.msra.gmra.mrb[8].mxu0 %v7112_v43  ;;  %4342 = vmatmul.mubr.bf16.vlgmr.msra.gmra.mrb[8].mxu1 %v7112_v43 }
 0x122   :  { %4187 = vmatpush1.bf16.msra.mxu0 %v5759_v8  ;;  %4351 = vmatpush1.bf16.msra.mxu1 %v5761_v9  ;;  %v929_v8 = vadd.f32 %v928_v4, %v186_v49  ;;  %v930_v9 = vpop.f32.mrb[2].mxu1  ;;  %v5817_v49 = vcombine.low %v1216_v37, %v1220_v38 }
 0x123   :  { %4188 = vmatprep.subr.bf16.mxu0 %v5768_v32  ;;  %4352 = vmatprep.subr.bf16.mxu1 %v5770_v44  ;;  %v931_v58 = vpop.f32.mrb[3].mxu1  ;;  %v5818_v32 = vcombine.high %v1216_v37, %v1220_v38  ;;  %v1223_v44 = vld [vmem:[%s8762_s3 + $0x600] sm:$0xff] }
 0x124   :  { %v1018_v1 = vmax.f32 %v929_v8, 0.0  ;;  %v5823_v63 = vcombine.low %v1223_v44, %v1227_v45  ;;  %v5834_v8 = vcombine.high %v1232_v54, %v1236_v62  ;;  %v1239_v9 = vld [vmem:[%s8762_s3 + $0x680] sm:$0xff]  ;;  %v1244_v58 = vld [vmem:[%s8762_s3 + $0x6a8] sm:$0xff] }
 0x125   :  { %v1271_v37 = vld [vmem:[%s8762_s3 + $0x780] sm:$0xff] }
 0x126   :  { %4189 = vmatpush1.bf16.msra.mxu0 %v5767_v50  ;;  %4353 = vmatpush1.bf16.msra.mxu1 %v5769_v51  ;;  %v7165_v7 = vpack.c.bf16 %v1018_v1, %v1018_v1  ;;  %v5824_v50 = vcombine.high %v1223_v44, %v1227_v45  ;;  %v5826_v51 = vcombine.high %v1224_v46, %v1228_v47  ;;  %v1275_v38 = vld [vmem:[%s8762_s3 + $0x7a0] sm:$0xff]  ;;  %v193_v45 = vsub.s32 5, %v7082_v23 }
 0x127   :  { %4190 = vmatprep.subr.bf16.mxu0 %v5776_v52  ;;  %4354 = vmatprep.subr.bf16.mxu1 %v5778_v53  ;;  %v1231_v52 = vld [vmem:[%s8762_s3 + $0x640] sm:$0xff]  ;;  %v5872_v46 = vcombine.high %v1271_v37, %v1275_v38 }
 0x128   :  { %4218 = vmatprep.mubr.bf16.mxu0 %v7165_v7  ;;  %4382 = vmatprep.mubr.bf16.mxu1 %v7165_v7  ;;  %v1235_v53 = vld [vmem:[%s8762_s3 + $0x660] sm:$0xff] }
 0x129   :  { %v5832_v4 = vcombine.high %v1231_v52, %v1235_v53 }
 0x12a   :  { %4191 = vmatpush1.bf16.msra.mxu0 %v5775_v56  ;;  %4355 = vmatpush1.bf16.msra.mxu1 %v5777_v57  ;;  %v1243_v56 = vld [vmem:[%s8762_s3 + $0x6a0] sm:$0xff]  ;;  %v1240_v57 = vld [vmem:[%s8762_s3 + $0x688] sm:$0xff] }
 0x12b   :  { %4192 = vmatprep.subr.bf16.mxu0 %v5784_v59  ;;  %4356 = vmatprep.subr.bf16.mxu1 %v5786_v60  ;;  %v5831_v59 = vcombine.low %v1231_v52, %v1235_v53  ;;  %v5833_v60 = vcombine.low %v1232_v54, %v1236_v62  ;;  %v5840_v61 = vcombine.high %v1239_v9, %v1243_v56 }
 0x12c   :  { %v5842_v1 = vcombine.high %v1240_v57, %v1244_v58  ;;  %v5871_v53 = vcombine.low %v1271_v37, %v1275_v38  ;;  %v194_v62 = vrot.slane %v7088_v25, %v193_v45  ;;  %v1315_v37 = vld [vmem:[%s8762_s3 + $0x8e0] sm:$0xff]  ;;  %v1312_v38 = vld [vmem:[%s8762_s3 + $0x8c8] sm:$0xff] }
 0x12e   :  { %4193 = vmatpush1.bf16.msra.mxu0 %v5783_v19  ;;  %4357 = vmatpush1.bf16.msra.mxu1 %v5785_v10  ;;  %v1252_v19 = vld [vmem:[%s8762_s3 + $0x6e8] sm:$0xff]  ;;  %v5839_v10 = vcombine.low %v1239_v9, %v1243_v56 }
 0x12f   :  { %4194 = vmatprep.subr.bf16.mxu0 %v5792_v11  ;;  %4358 = vmatprep.subr.bf16.mxu1 %v5794_v12  ;;  %v5841_v11 = vcombine.low %v1240_v57, %v1244_v58  ;;  %v5848_v12 = vcombine.high %v1247_v2, %v1251_v5  ;;  %v5850_v13 = vcombine.high %v1248_v6, %v1252_v19  ;;  %v1292_v9 = vld [vmem:[%s8762_s3 + $0x828] sm:$0xff] }
 0x132   :  { %4195 = vmatpush1.bf16.msra.mxu0 %v5791_v17  ;;  %4359 = vmatpush1.bf16.msra.mxu1 %v5793_v18  ;;  %v1260_v17 = vld [vmem:[%s8762_s3 + $0x728] sm:$0xff]  ;;  %v5847_v18 = vcombine.low %v1247_v2, %v1251_v5 }
 0x133   :  { %4196 = vmatprep.subr.bf16.mxu0 %v5800_v20  ;;  %4360 = vmatprep.subr.bf16.mxu1 %v5802_v21  ;;  %v5849_v20 = vcombine.low %v1248_v6, %v1252_v19  ;;  %v5856_v21 = vcombine.high %v1255_v14, %v1259_v15  ;;  %v5858_v22 = vcombine.high %v1256_v16, %v1260_v17  ;;  %v1295_v6 = vld [vmem:[%s8762_s3 + $0x840] sm:$0xff] }
 0x136   :  { %4197 = vmatpush1.bf16.msra.mxu0 %v5799_v30  ;;  %4361 = vmatpush1.bf16.msra.mxu1 %v5801_v31  ;;  %v1268_v30 = vld [vmem:[%s8762_s3 + $0x768] sm:$0xff]  ;;  %v181_v31 = vsub.s32 2, %v7082_v23 }
 0x137   :  { %4198 = vmatprep.subr.bf16.mxu0 %v5808_v33  ;;  %4362 = vmatprep.subr.bf16.mxu1 %v5810_v34  ;;  %v5855_v33 = vcombine.low %v1255_v14, %v1259_v15  ;;  %v5857_v34 = vcombine.low %v1256_v16, %v1260_v17  ;;  %v5866_v36 = vcombine.high %v1264_v29, %v1268_v30 }
 0x138   :  { %v5865_v44 = vcombine.low %v1264_v29, %v1268_v30 }
 0x13a   :  { %4199 = vmatpush1.bf16.msra.mxu0 %v5807_v39  ;;  %4363 = vmatpush1.bf16.msra.mxu1 %v5809_v40  ;;  %v1272_v39 = vld [vmem:[%s8762_s3 + $0x788] sm:$0xff] }
 0x13b   :  { %4200 = vmatprep.subr.bf16.mxu0 %v5816_v41  ;;  %4364 = vmatprep.subr.bf16.mxu1 %v5818_v32  ;;  %v1276_v40 = vld [vmem:[%s8762_s3 + $0x7a8] sm:$0xff]  ;;  %v182_v41 = vrot.slane %v7088_v25, %v181_v31  ;;  %v5863_v32 = vcombine.low %v1263_v27, %v1267_v28 }
 0x13c   :  { %v5874_v47 = vcombine.high %v1272_v39, %v1276_v40  ;;  %v5873_v54 = vcombine.low %v1272_v39, %v1276_v40  ;;  %v1308_v27 = vld [vmem:[%s8762_s3 + $0x8a8] sm:$0xff] }
 0x13d   :  { %v927_v52 = vadd.f32 %v7142_v55, %v182_v41  ;;  %v1291_v55 = vld [vmem:[%s8762_s3 + $0x820] sm:$0xff]  ;;  %v1316_v39 = vld [vmem:[%s8762_s3 + $0x8e8] sm:$0xff] }
 0x13e   :  { %4201 = vmatpush1.bf16.msra.mxu0 %v5815_v48  ;;  %4365 = vmatpush1.bf16.msra.mxu1 %v5817_v49  ;;  %v1279_v48 = vld [vmem:[%s8762_s3 + $0x7c0] sm:$0xff] }
 0x13f   :  { %4202 = vmatprep.subr.bf16.mxu0 %v5824_v50  ;;  %4366 = vmatprep.subr.bf16.mxu1 %v5826_v51  ;;  %v1283_v49 = vld [vmem:[%s8762_s3 + $0x7e0] sm:$0xff]  ;;  %v1280_v50 = vld [vmem:[%s8762_s3 + $0x7c8] sm:$0xff]  ;;  %v1017_v57 = vmax.f32 %v927_v52, 0.0 }
 0x140   :  { %v1284_v51 = vld [vmem:[%s8762_s3 + $0x7e8] sm:$0xff] }
 0x141   :  { %v7336_v14 = vpack.c.bf16 %v1017_v57, %v1017_v57  ;;  %v1324_v52 = vld [vmem:[%s8762_s3 + $0x928] sm:$0xff] }
 0x142   :  { %4203 = vmatpush1.bf16.msra.mxu0 %v5823_v63  ;;  %4367 = vmatpush1.bf16.msra.mxu1 %v5825_v0  ;;  %v5880_v63 = vcombine.high %v1279_v48, %v1283_v49  ;;  %v5882_v0 = vcombine.high %v1280_v50, %v1284_v51 }
 0x143   :  { %4204 = vmatprep.subr.bf16.mxu0 %v5832_v4  ;;  %4368 = vmatprep.subr.bf16.mxu1 %v5834_v8  ;;  %v1287_v4 = vld [vmem:[%s8762_s3 + $0x800] sm:$0xff]  ;;  %v1288_v8 = vld [vmem:[%s8762_s3 + $0x808] sm:$0xff] }
 0x144   :  { %v5888_v2 = vcombine.high %v1287_v4, %v1291_v55  ;;  %v5890_v5 = vcombine.high %v1288_v8, %v1292_v9  ;;  %v5887_v15 = vcombine.low %v1287_v4, %v1291_v55  ;;  %v5889_v16 = vcombine.low %v1288_v8, %v1292_v9  ;;  %v1331_v4 = vld [vmem:[%s8762_s3 + $0x960] sm:$0xff]  ;;  %v1328_v55 = vld [vmem:[%s8762_s3 + $0x948] sm:$0xff] }
 0x145   :  { %v1332_v8 = vld [vmem:[%s8762_s3 + $0x968] sm:$0xff] }
 0x146   :  { %4205 = vmatpush1.bf16.msra.mxu0 %v5831_v59  ;;  %4369 = vmatpush1.bf16.msra.mxu1 %v5833_v60  ;;  %v5879_v59 = vcombine.low %v1279_v48, %v1283_v49  ;;  %v5881_v60 = vcombine.low %v1280_v50, %v1284_v51  ;;  %v5914_v48 = vcombine.high %v1312_v38, %v1316_v39  ;;  %v1319_v49 = vld [vmem:[%s8762_s3 + $0x900] sm:$0xff]  ;;  %v1320_v51 = vld [vmem:[%s8762_s3 + $0x908] sm:$0xff] }
 0x147   :  { %4206 = vmatprep.subr.bf16.mxu0 %v5840_v61  ;;  %4370 = vmatprep.subr.bf16.mxu1 %v5842_v1  ;;  %v1323_v50 = vld [vmem:[%s8762_s3 + $0x920] sm:$0xff]  ;;  %v5921_v57 = vcombine.low %v1320_v51, %v1324_v52 }
 0x148   :  { %v5919_v9 = vcombine.low %v1319_v49, %v1323_v50 }
 0x14a   :  { %4207 = vmatpush1.bf16.msra.mxu0 %v5839_v10  ;;  %4371 = vmatpush1.bf16.msra.mxu1 %v5841_v11  ;;  %v1299_v10 = vld [vmem:[%s8762_s3 + $0x860] sm:$0xff]  ;;  %v1296_v11 = vld [vmem:[%s8762_s3 + $0x848] sm:$0xff] }
 0x14b   :  { %4208 = vmatprep.subr.bf16.mxu0 %v5848_v12  ;;  %4372 = vmatprep.subr.bf16.mxu1 %v5850_v13  ;;  %v1300_v12 = vld [vmem:[%s8762_s3 + $0x868] sm:$0xff]  ;;  %v5896_v17 = vcombine.high %v1295_v6, %v1299_v10  ;;  %v5895_v29 = vcombine.low %v1295_v6, %v1299_v10  ;;  %v5929_v6 = vcombine.low %v1328_v55, %v1332_v8 }
 0x14c   :  { %v5897_v30 = vcombine.low %v1296_v11, %v1300_v12 }
 0x14e   :  { %4209 = vmatpush1.bf16.msra.mxu0 %v5847_v18  ;;  %4373 = vmatpush1.bf16.msra.mxu1 %v5849_v20  ;;  %v5898_v18 = vcombine.high %v1296_v11, %v1300_v12  ;;  %v1303_v20 = vld [vmem:[%s8762_s3 + $0x880] sm:$0xff] }
 0x14f   :  { %4210 = vmatprep.subr.bf16.mxu0 %v5856_v21  ;;  %4374 = vmatprep.subr.bf16.mxu1 %v5858_v22  ;;  %v1307_v21 = vld [vmem:[%s8762_s3 + $0x8a0] sm:$0xff]  ;;  %v1304_v22 = vld [vmem:[%s8762_s3 + $0x888] sm:$0xff] }
 0x150   :  { %v1343_v11 = vld [vmem:[%s8762_s3 + $0x9c0] sm:$0xff] }
 0x151   :  { %v1347_v12 = vld [vmem:[%s8762_s3 + $0x9e0] sm:$0xff] }
 0x152   :  { %4211 = vmatpush1.bf16.msra.mxu0 %v5855_v33  ;;  %4375 = vmatpush1.bf16.msra.mxu1 %v5857_v34  ;;  %v5904_v33 = vcombine.high %v1303_v20, %v1307_v21  ;;  %v5906_v34 = vcombine.high %v1304_v22, %v1308_v27 }
 0x153   :  { %4212 = vmatprep.subr.bf16.mxu0 %v5864_v35  ;;  %4376 = vmatprep.subr.bf16.mxu1 %v5866_v36  ;;  %v1311_v35 = vld [vmem:[%s8762_s3 + $0x8c0] sm:$0xff] }
 0x156   :  { %4213 = vmatpush1.bf16.msra.mxu0 %v5863_v32  ;;  %4377 = vmatpush1.bf16.msra.mxu1 %v5865_v44  ;;  %v5903_v32 = vcombine.low %v1303_v20, %v1307_v21  ;;  %v5905_v44 = vcombine.low %v1304_v22, %v1308_v27  ;;  %v1351_v21 = vld [vmem:[%s8762_s3 + $0xa00] sm:$0xff]  ;;  %v1352_v27 = vld [vmem:[%s8762_s3 + $0xa08] sm:$0xff] }
 0x157   :  { %4214 = vmatprep.subr.bf16.mxu0 %v5872_v46  ;;  %4378 = vmatprep.subr.bf16.mxu1 %v5874_v47  ;;  %v5912_v47 = vcombine.high %v1311_v35, %v1315_v37  ;;  %v1355_v22 = vld [vmem:[%s8762_s3 + $0xa20] sm:$0xff] }
 0x158   :  { %v7322_v56 = vpop.f32.mrb[4].mxu0 }
 0x159   :  { %v969_v58 = vpop.f32.mrb[5].mxu0  ;;  %v7357_v36 = vpop.f32.mrb[4].mxu1 }
 0x15a   :  { %4215 = vmatpush1.bf16.msra.mxu0 %v5871_v53  ;;  %4379 = vmatpush1.bf16.msra.mxu1 %v5873_v54  ;;  %v970_v61 = vadd.f32 %v969_v58, %v194_v62  ;;  %v971_v1 = vpop.f32.mrb[6].mxu0  ;;  %v7370_v40 = vpop.f32.mrb[5].mxu1  ;;  %v5911_v53 = vcombine.low %v1311_v35, %v1315_v37  ;;  %v5913_v54 = vcombine.low %v1312_v38, %v1316_v39  ;;  %v1359_v37 = vld [vmem:[%s8762_s3 + $0xa40] sm:$0xff]  ;;  %v1360_v39 = vld [vmem:[%s8762_s3 + $0xa48] sm:$0xff] }
 0x15b   :  { %4216 = vmatprep.subr.bf16.mxu0 %v5880_v63  ;;  %4380 = vmatprep.subr.bf16.mxu1 %v5882_v0  ;;  %v972_v19 = vpop.f32.mrb[7].mxu0  ;;  %v1012_v41 = vpop.f32.mrb[6].mxu1  ;;  %v5920_v62 = vcombine.high %v1319_v49, %v1323_v50  ;;  %v5922_v63 = vcombine.high %v1320_v51, %v1324_v52  ;;  %v1327_v0 = vld [vmem:[%s8762_s3 + $0x940] sm:$0xff]  ;;  %v1336_v1 = vld [vmem:[%s8762_s3 + $0x988] sm:$0xff] }
 0x15c   :  { %v1020_v13 = vmax.f32 %v970_v61, 0.0  ;;  %v1013_v46 = vpop.f32.mrb[7].mxu1  ;;  %v5928_v58 = vcombine.high %v1327_v0, %v1331_v4  ;;  %v1339_v61 = vld [vmem:[%s8762_s3 + $0x9a0] sm:$0xff]  ;;  %v1364_v41 = vld [vmem:[%s8762_s3 + $0xa68] sm:$0xff] }
 0x15d   :  { %v1363_v38 = vld [vmem:[%s8762_s3 + $0xa60] sm:$0xff]  ;;  %v1368_v50 = vld [vmem:[%s8762_s3 + $0xa88] sm:$0xff] }
 0x15e   :  { %4217 = vmatpush1.bf16.msra.mxu0 %v5879_v59  ;;  %4381 = vmatpush1.bf16.msra.mxu1 %v5881_v60  ;;  %v7350_v28 = vpack.c.bf16 %v1020_v13, %v1020_v13  ;;  %v5930_v59 = vcombine.high %v1328_v55, %v1332_v8  ;;  %v1335_v60 = vld [vmem:[%s8762_s3 + $0x980] sm:$0xff]  ;;  %v1344_v13 = vld [vmem:[%s8762_s3 + $0x9c8] sm:$0xff]  ;;  %v5960_v46 = vcombine.high %v1359_v37, %v1363_v38 }
 0x15f   :  { %4227 = vmatprep.subr.bf16.mxu0 %v5888_v2  ;;  %4391 = vmatprep.subr.bf16.mxu1 %v5890_v5  ;;  %v1340_v2 = vld [vmem:[%s8762_s3 + $0x9a8] sm:$0xff]  ;;  %v5927_v5 = vcombine.low %v1327_v0, %v1331_v4  ;;  %v5936_v19 = vcombine.high %v1335_v60, %v1339_v61  ;;  %v1371_v49 = vld [vmem:[%s8762_s3 + $0xaa0] sm:$0xff]  ;;  %v5959_v52 = vcombine.low %v1359_v37, %v1363_v38 }
 0x160   :  { %v5938_v10 = vcombine.high %v1336_v1, %v1340_v2  ;;  %v1372_v51 = vld [vmem:[%s8762_s3 + $0xaa8] sm:$0xff]  ;;  %v1379_v0 = vld [vmem:[%s8762_s3 + $0xae0] sm:$0xff] }
 0x161   :  { %4219 = vmatmul.mubr.bf16.vlgmr.msra.gmra.mrb[8].mxu0 %v7336_v14  ;;  %4383 = vmatmul.mubr.bf16.vlgmr.msra.gmra.mrb[8].mxu1 %v7336_v14  ;;  %v1376_v4 = vld [vmem:[%s8762_s3 + $0xac8] sm:$0xff] }
 0x162   :  { %4228 = vmatpush1.bf16.msra.mxu0 %v5887_v15  ;;  %4392 = vmatpush1.bf16.msra.mxu1 %v5889_v16  ;;  %v1348_v15 = vld [vmem:[%s8762_s3 + $0x9e8] sm:$0xff]  ;;  %v5935_v16 = vcombine.low %v1335_v60, %v1339_v61  ;;  %v1387_v60 = vld [vmem:[%s8762_s3 + $0xb20] sm:$0xff] }
 0x163   :  { %4229 = vmatprep.subr.bf16.mxu0 %v5896_v17  ;;  %4393 = vmatprep.subr.bf16.mxu1 %v5898_v18  ;;  %v5937_v17 = vcombine.low %v1336_v1, %v1340_v2  ;;  %v5944_v18 = vcombine.high %v1343_v11, %v1347_v12  ;;  %v5946_v20 = vcombine.high %v1344_v13, %v1348_v15  ;;  %v1380_v55 = vld [vmem:[%s8762_s3 + $0xae8] sm:$0xff] }
 0x164   :  { %4259 = vmatprep.mubr.bf16.mxu0 %v7350_v28  ;;  %4423 = vmatprep.mubr.bf16.mxu1 %v7350_v28  ;;  %v1384_v61 = vld [vmem:[%s8762_s3 + $0xb08] sm:$0xff] }
 0x165   :  { %v1388_v1 = vld [vmem:[%s8762_s3 + $0xb28] sm:$0xff] }
 0x166   :  { %4230 = vmatpush1.bf16.msra.mxu0 %v5895_v29  ;;  %4394 = vmatpush1.bf16.msra.mxu1 %v5897_v30  ;;  %v1356_v29 = vld [vmem:[%s8762_s3 + $0xa28] sm:$0xff]  ;;  %v5943_v30 = vcombine.low %v1343_v11, %v1347_v12  ;;  %v1395_v11 = vld [vmem:[%s8762_s3 + $0xb60] sm:$0xff] }
 0x167   :  { %4231 = vmatprep.subr.bf16.mxu0 %v5904_v33  ;;  %4395 = vmatprep.subr.bf16.mxu1 %v5906_v34  ;;  %v5945_v33 = vcombine.low %v1344_v13, %v1348_v15  ;;  %v5952_v34 = vcombine.high %v1351_v21, %v1355_v22  ;;  %v5954_v35 = vcombine.high %v1352_v27, %v1356_v29  ;;  %v1392_v12 = vld [vmem:[%s8762_s3 + $0xb48] sm:$0xff]  ;;  %v189_v15 = vsub.s32 4, %v7082_v23 }
 0x168   :  { %v1396_v13 = vld [vmem:[%s8762_s3 + $0xb68] sm:$0xff] }
 0x16a   :  { %4232 = vmatpush1.bf16.msra.mxu0 %v5903_v32  ;;  %4396 = vmatpush1.bf16.msra.mxu1 %v5905_v44  ;;  %v5951_v32 = vcombine.low %v1351_v21, %v1355_v22  ;;  %v5953_v44 = vcombine.low %v1352_v27, %v1356_v29  ;;  %v1399_v21 = vld [vmem:[%s8762_s3 + $0xb80] sm:$0xff]  ;;  %v1400_v27 = vld [vmem:[%s8762_s3 + $0xb88] sm:$0xff] }
 0x16b   :  { %4233 = vmatprep.subr.bf16.mxu0 %v5912_v47  ;;  %4397 = vmatprep.subr.bf16.mxu1 %v5914_v48  ;;  %v5962_v47 = vcombine.high %v1360_v39, %v1364_v41  ;;  %v1367_v48 = vld [vmem:[%s8762_s3 + $0xa80] sm:$0xff]  ;;  %v1404_v29 = vld [vmem:[%s8762_s3 + $0xba8] sm:$0xff] }
 0x16c   :  { %v5967_v8 = vcombine.low %v1367_v48, %v1371_v49  ;;  %v1403_v22 = vld [vmem:[%s8762_s3 + $0xba0] sm:$0xff]  ;;  %v6002_v38 = vcombine.high %v1400_v27, %v1404_v29 }
 0x16d   :  { %v6000_v37 = vcombine.high %v1399_v21, %v1403_v22 }
 0x16e   :  { %4234 = vmatpush1.bf16.msra.mxu0 %v5911_v53  ;;  %4398 = vmatpush1.bf16.msra.mxu1 %v5913_v54  ;;  %v5961_v53 = vcombine.low %v1360_v39, %v1364_v41  ;;  %v5968_v54 = vcombine.high %v1367_v48, %v1371_v49  ;;  %v1407_v39 = vld [vmem:[%s8762_s3 + $0xbc0] sm:$0xff]  ;;  %v5999_v48 = vcombine.low %v1399_v21, %v1403_v22  ;;  %v1440_v21 = vld [vmem:[%s8762_s3 + $0xcc8] sm:$0xff] }
 0x16f   :  { %4235 = vmatprep.subr.bf16.mxu0 %v5920_v62  ;;  %4399 = vmatprep.subr.bf16.mxu1 %v5922_v63  ;;  %v5970_v62 = vcombine.high %v1368_v50, %v1372_v51  ;;  %v1375_v63 = vld [vmem:[%s8762_s3 + $0xac0] sm:$0xff]  ;;  %v6001_v49 = vcombine.low %v1400_v27, %v1404_v29  ;;  %v1444_v22 = vld [vmem:[%s8762_s3 + $0xce8] sm:$0xff] }
 0x170   :  { %v5975_v2 = vcombine.low %v1375_v63, %v1379_v0  ;;  %v1411_v41 = vld [vmem:[%s8762_s3 + $0xbe0] sm:$0xff] }
 0x172   :  { %4236 = vmatpush1.bf16.msra.mxu0 %v5919_v9  ;;  %4400 = vmatpush1.bf16.msra.mxu1 %v5921_v57  ;;  %v5969_v9 = vcombine.low %v1368_v50, %v1372_v51  ;;  %v5976_v57 = vcombine.high %v1375_v63, %v1379_v0  ;;  %v6008_v50 = vcombine.high %v1407_v39, %v1411_v41 }
 0x173   :  { %4237 = vmatprep.subr.bf16.mxu0 %v5928_v58  ;;  %4401 = vmatprep.subr.bf16.mxu1 %v5930_v59  ;;  %v5978_v58 = vcombine.high %v1376_v4, %v1380_v55  ;;  %v1383_v59 = vld [vmem:[%s8762_s3 + $0xb00] sm:$0xff]  ;;  %v6007_v63 = vcombine.low %v1407_v39, %v1411_v41  ;;  %v1452_v39 = vld [vmem:[%s8762_s3 + $0xd28] sm:$0xff] }
 0x176   :  { %4238 = vmatpush1.bf16.msra.mxu0 %v5927_v5  ;;  %4402 = vmatpush1.bf16.msra.mxu1 %v5929_v6  ;;  %v5977_v5 = vcombine.low %v1376_v4, %v1380_v55  ;;  %v5984_v6 = vcombine.high %v1383_v59, %v1387_v60 }
 0x177   :  { %4239 = vmatprep.subr.bf16.mxu0 %v5936_v19  ;;  %4403 = vmatprep.subr.bf16.mxu1 %v5938_v10  ;;  %v5986_v19 = vcombine.high %v1384_v61, %v1388_v1  ;;  %v1391_v10 = vld [vmem:[%s8762_s3 + $0xb40] sm:$0xff] }
 0x17a   :  { %4240 = vmatpush1.bf16.msra.mxu0 %v5935_v16  ;;  %4404 = vmatpush1.bf16.msra.mxu1 %v5937_v17  ;;  %v5983_v16 = vcombine.low %v1383_v59, %v1387_v60  ;;  %v5985_v17 = vcombine.low %v1384_v61, %v1388_v1 }
 0x17b   :  { %4241 = vmatprep.subr.bf16.mxu0 %v5944_v18  ;;  %4405 = vmatprep.subr.bf16.mxu1 %v5946_v20  ;;  %v5992_v18 = vcombine.high %v1391_v10, %v1395_v11  ;;  %v5994_v20 = vcombine.high %v1392_v12, %v1396_v13 }
 0x17e   :  { %4242 = vmatpush1.bf16.msra.mxu0 %v5943_v30  ;;  %4406 = vmatpush1.bf16.msra.mxu1 %v5945_v33  ;;  %v201_v30 = vsub.s32 7, %v7082_v23  ;;  %v190_v33 = vrot.slane %v7088_v25, %v189_v15 }
 0x17f   :  { %4243 = vmatprep.subr.bf16.mxu0 %v5952_v34  ;;  %4407 = vmatprep.subr.bf16.mxu1 %v5954_v35  ;;  %v5991_v34 = vcombine.low %v1391_v10, %v1395_v11  ;;  %v5993_v35 = vcombine.low %v1392_v12, %v1396_v13  ;;  %v1436_v10 = vld [vmem:[%s8762_s3 + $0xca8] sm:$0xff] }
 0x182   :  { %4244 = vmatpush1.bf16.msra.mxu0 %v5951_v32  ;;  %4408 = vmatpush1.bf16.msra.mxu1 %v5953_v44  ;;  %v1408_v32 = vld [vmem:[%s8762_s3 + $0xbc8] sm:$0xff] }
 0x183   :  { %4245 = vmatprep.subr.bf16.mxu0 %v5960_v46  ;;  %4409 = vmatprep.subr.bf16.mxu1 %v5962_v47  ;;  %v1412_v44 = vld [vmem:[%s8762_s3 + $0xbe8] sm:$0xff]  ;;  %v202_v46 = vrot.slane %v7088_v25, %v201_v30  ;;  %v968_v47 = vadd.f32 %v7322_v56, %v190_v33 }
 0x184   :  { %v6010_v51 = vcombine.high %v1408_v32, %v1412_v44  ;;  %v1416_v25 = vld [vmem:[%s8762_s3 + $0xc08] sm:$0xff]  ;;  %v6009_v0 = vcombine.low %v1408_v32, %v1412_v44  ;;  %v6041_v32 = vcombine.low %v1440_v21, %v1444_v22 }
 0x185   :  { %v1420_v56 = vld [vmem:[%s8762_s3 + $0xc28] sm:$0xff] }
 0x186   :  { %4246 = vmatpush1.bf16.msra.mxu0 %v5959_v52  ;;  %4410 = vmatpush1.bf16.msra.mxu1 %v5961_v53  ;;  %v1415_v52 = vld [vmem:[%s8762_s3 + $0xc00] sm:$0xff]  ;;  %v6018_v55 = vcombine.high %v1416_v25, %v1420_v56  ;;  %v6017_v61 = vcombine.low %v1416_v25, %v1420_v56 }
 0x187   :  { %4247 = vmatprep.subr.bf16.mxu0 %v5968_v54  ;;  %4411 = vmatprep.subr.bf16.mxu1 %v5970_v62  ;;  %v1419_v53 = vld [vmem:[%s8762_s3 + $0xc20] sm:$0xff]  ;;  %v1011_v54 = vadd.f32 %v7370_v40, %v202_v46  ;;  %v1019_v62 = vmax.f32 %v968_v47, 0.0  ;;  %v1424_v40 = vld [vmem:[%s8762_s3 + $0xc48] sm:$0xff] }
 0x188   :  { %v6016_v4 = vcombine.high %v1415_v52, %v1419_v53  ;;  %v6015_v60 = vcombine.low %v1415_v52, %v1419_v53  ;;  %v1455_v47 = vld [vmem:[%s8762_s3 + $0xd40] sm:$0xff] }
 0x189   :  { %v7550_v59 = vpack.c.bf16 %v1019_v62, %v1019_v62  ;;  %v1463_v56 = vld [vmem:[%s8762_s3 + $0xd80] sm:$0xff]  ;;  %v1464_v62 = vld [vmem:[%s8762_s3 + $0xd88] sm:$0xff] }
 0x18a   :  { %4248 = vmatpush1.bf16.msra.mxu0 %v5967_v8  ;;  %4412 = vmatpush1.bf16.msra.mxu1 %v5969_v9  ;;  %v1423_v8 = vld [vmem:[%s8762_s3 + $0xc40] sm:$0xff] }
 0x18b   :  { %4249 = vmatprep.subr.bf16.mxu0 %v5976_v57  ;;  %4413 = vmatprep.subr.bf16.mxu1 %v5978_v58  ;;  %v1427_v9 = vld [vmem:[%s8762_s3 + $0xc60] sm:$0xff]  ;;  %v1428_v57 = vld [vmem:[%s8762_s3 + $0xc68] sm:$0xff]  ;;  %v1022_v58 = vmax.f32 %v1011_v54, 0.0 }
 0x18c   :  { %v6024_v1 = vcombine.high %v1423_v8, %v1427_v9  ;;  %v6023_v12 = vcombine.low %v1423_v8, %v1427_v9  ;;  %v6025_v13 = vcombine.low %v1424_v40, %v1428_v57  ;;  %v1467_v54 = vld [vmem:[%s8762_s3 + $0xda0] sm:$0xff] }
 0x18d   :  { %v7564_v11 = vpack.c.bf16 %v1022_v58, %v1022_v58  ;;  %v1471_v9 = vld [vmem:[%s8762_s3 + $0xdc0] sm:$0xff]  ;;  %v1476_v58 = vld [vmem:[%s8762_s3 + $0xde8] sm:$0xff] }
 0x18e   :  { %4250 = vmatpush1.bf16.msra.mxu0 %v5975_v2  ;;  %4414 = vmatpush1.bf16.msra.mxu1 %v5977_v5  ;;  %v6026_v2 = vcombine.high %v1424_v40, %v1428_v57  ;;  %v1431_v5 = vld [vmem:[%s8762_s3 + $0xc80] sm:$0xff]  ;;  %v1472_v57 = vld [vmem:[%s8762_s3 + $0xdc8] sm:$0xff] }
 0x18f   :  { %4251 = vmatprep.subr.bf16.mxu0 %v5984_v6  ;;  %4415 = vmatprep.subr.bf16.mxu1 %v5986_v19  ;;  %v1435_v6 = vld [vmem:[%s8762_s3 + $0xca0] sm:$0xff]  ;;  %v1432_v19 = vld [vmem:[%s8762_s3 + $0xc88] sm:$0xff] }
 0x190   :  { %v6031_v27 = vcombine.low %v1431_v5, %v1435_v6  ;;  %v6033_v29 = vcombine.low %v1432_v19, %v1436_v10  ;;  %v1475_v40 = vld [vmem:[%s8762_s3 + $0xde0] sm:$0xff] }
 0x192   :  { %4252 = vmatpush1.bf16.msra.mxu0 %v5983_v16  ;;  %4416 = vmatpush1.bf16.msra.mxu1 %v5985_v17  ;;  %v6032_v16 = vcombine.high %v1431_v5, %v1435_v6  ;;  %v6034_v17 = vcombine.high %v1432_v19, %v1436_v10  ;;  %v1479_v5 = vld [vmem:[%s8762_s3 + $0xe00] sm:$0xff]  ;;  %v1480_v19 = vld [vmem:[%s8762_s3 + $0xe08] sm:$0xff] }
 0x193   :  { %4253 = vmatprep.subr.bf16.mxu0 %v5992_v18  ;;  %4417 = vmatprep.subr.bf16.mxu1 %v5994_v20  ;;  %v1439_v18 = vld [vmem:[%s8762_s3 + $0xcc0] sm:$0xff]  ;;  %v1484_v10 = vld [vmem:[%s8762_s3 + $0xe28] sm:$0xff] }
 0x194   :  { %v1443_v20 = vld [vmem:[%s8762_s3 + $0xce0] sm:$0xff] }
 0x195   :  { %v6040_v33 = vcombine.high %v1439_v18, %v1443_v20  ;;  %v6039_v41 = vcombine.low %v1439_v18, %v1443_v20  ;;  %v1483_v6 = vld [vmem:[%s8762_s3 + $0xe20] sm:$0xff] }
 0x196   :  { %4254 = vmatpush1.bf16.msra.mxu0 %v5991_v34  ;;  %4418 = vmatpush1.bf16.msra.mxu1 %v5993_v35  ;;  %v6042_v34 = vcombine.high %v1440_v21, %v1444_v22  ;;  %v1447_v35 = vld [vmem:[%s8762_s3 + $0xd00] sm:$0xff]  ;;  %v1488_v21 = vld [vmem:[%s8762_s3 + $0xe48] sm:$0xff] }
 0x197   :  { %4255 = vmatprep.subr.bf16.mxu0 %v6000_v37  ;;  %4419 = vmatprep.subr.bf16.mxu1 %v6002_v38  ;;  %v1451_v37 = vld [vmem:[%s8762_s3 + $0xd20] sm:$0xff]  ;;  %v1448_v38 = vld [vmem:[%s8762_s3 + $0xd08] sm:$0xff] }
 0x198   :  { %v6048_v44 = vcombine.high %v1447_v35, %v1451_v37  ;;  %v6050_v46 = vcombine.high %v1448_v38, %v1452_v39  ;;  %v6049_v52 = vcombine.low %v1448_v38, %v1452_v39  ;;  %v1487_v18 = vld [vmem:[%s8762_s3 + $0xe40] sm:$0xff]  ;;  %v1492_v22 = vld [vmem:[%s8762_s3 + $0xe68] sm:$0xff] }
 0x199   :  { %v1491_v20 = vld [vmem:[%s8762_s3 + $0xe60] sm:$0xff]  ;;  %v1496_v38 = vld [vmem:[%s8762_s3 + $0xe88] sm:$0xff] }
 0x19a   :  { %4256 = vmatpush1.bf16.msra.mxu0 %v5999_v48  ;;  %4420 = vmatpush1.bf16.msra.mxu1 %v6001_v49  ;;  %v1459_v48 = vld [vmem:[%s8762_s3 + $0xd60] sm:$0xff]  ;;  %v1456_v49 = vld [vmem:[%s8762_s3 + $0xd48] sm:$0xff] }
 0x19b   :  { %4257 = vmatprep.subr.bf16.mxu0 %v6008_v50  ;;  %4421 = vmatprep.subr.bf16.mxu1 %v6010_v51  ;;  %v1460_v50 = vld [vmem:[%s8762_s3 + $0xd68] sm:$0xff]  ;;  %v6047_v51 = vcombine.low %v1447_v35, %v1451_v37  ;;  %v6056_v53 = vcombine.high %v1455_v47, %v1459_v48  ;;  %v1495_v35 = vld [vmem:[%s8762_s3 + $0xe80] sm:$0xff] }
 0x19c   :  { %v6058_v25 = vcombine.high %v1456_v49, %v1460_v50  ;;  %v1499_v37 = vld [vmem:[%s8762_s3 + $0xea0] sm:$0xff]  ;;  %v1500_v39 = vld [vmem:[%s8762_s3 + $0xea8] sm:$0xff] }
 0x19e   :  { %4258 = vmatpush1.bf16.msra.mxu0 %v6007_v63  ;;  %4422 = vmatpush1.bf16.msra.mxu1 %v6009_v0  ;;  %v1468_v63 = vld [vmem:[%s8762_s3 + $0xda8] sm:$0xff]  ;;  %v6055_v0 = vcombine.low %v1455_v47, %v1459_v48  ;;  %v1503_v47 = vld [vmem:[%s8762_s3 + $0xec0] sm:$0xff] }
 0x19f   :  { %4268 = vmatprep.subr.bf16.mxu0 %v6016_v4  ;;  %4432 = vmatprep.subr.bf16.mxu1 %v6018_v55  ;;  %v6057_v4 = vcombine.low %v1456_v49, %v1460_v50  ;;  %v6064_v55 = vcombine.high %v1463_v56, %v1467_v54  ;;  %v6066_v8 = vcombine.high %v1464_v62, %v1468_v63  ;;  %v1507_v48 = vld [vmem:[%s8762_s3 + $0xee0] sm:$0xff]  ;;  %v1504_v49 = vld [vmem:[%s8762_s3 + $0xec8] sm:$0xff] }
 0x1a0   :  { %v1508_v50 = vld [vmem:[%s8762_s3 + $0xee8] sm:$0xff] }
 0x1a1   :  { %4260 = vmatmul.mubr.bf16.vlgmr.msra.gmra.mrb[8].mxu0 %v7550_v59  ;;  %4424 = vmatmul.mubr.bf16.vlgmr.msra.gmra.mrb[8].mxu1 %v7550_v59 }
 0x1a2   :  { %4269 = vmatpush1.bf16.msra.mxu0 %v6015_v60  ;;  %4433 = vmatpush1.bf16.msra.mxu1 %v6017_v61  ;;  %v6063_v60 = vcombine.low %v1463_v56, %v1467_v54  ;;  %v6065_v61 = vcombine.low %v1464_v62, %v1468_v63  ;;  %v1511_v56 = vld [vmem:[%s8762_s3 + $0xf00] sm:$0xff]  ;;  %v1512_v62 = vld [vmem:[%s8762_s3 + $0xf08] sm:$0xff] }
 0x1a3   :  { %4270 = vmatprep.subr.bf16.mxu0 %v6024_v1  ;;  %4434 = vmatprep.subr.bf16.mxu1 %v6026_v2  ;;  %v6072_v1 = vcombine.high %v1471_v9, %v1475_v40  ;;  %v6074_v2 = vcombine.high %v1472_v57, %v1476_v58  ;;  %v1515_v54 = vld [vmem:[%s8762_s3 + $0xf20] sm:$0xff]  ;;  %v1516_v63 = vld [vmem:[%s8762_s3 + $0xf28] sm:$0xff] }
 0x1a4   :  { %4300 = vmatprep.mubr.bf16.mxu0 %v7564_v11  ;;  %4464 = vmatprep.mubr.bf16.mxu1 %v7564_v11 }
 0x1a6   :  { %4271 = vmatpush1.bf16.msra.mxu0 %v6023_v12  ;;  %4435 = vmatpush1.bf16.msra.mxu1 %v6025_v13  ;;  %v6071_v12 = vcombine.low %v1471_v9, %v1475_v40  ;;  %v6073_v13 = vcombine.low %v1472_v57, %v1476_v58  ;;  %v1519_v9 = vld [vmem:[%s8762_s3 + $0xf40] sm:$0xff]  ;;  %v1520_v57 = vld [vmem:[%s8762_s3 + $0xf48] sm:$0xff] }
 0x1a7   :  { %4272 = vmatprep.subr.bf16.mxu0 %v6032_v16  ;;  %4436 = vmatprep.subr.bf16.mxu1 %v6034_v17  ;;  %v6080_v16 = vcombine.high %v1479_v5, %v1483_v6  ;;  %v6082_v17 = vcombine.high %v1480_v19, %v1484_v10  ;;  %v1523_v40 = vld [vmem:[%s8762_s3 + $0xf60] sm:$0xff]  ;;  %v1524_v58 = vld [vmem:[%s8762_s3 + $0xf68] sm:$0xff] }
 0x1aa   :  { %4273 = vmatpush1.bf16.msra.mxu0 %v6031_v27  ;;  %4437 = vmatpush1.bf16.msra.mxu1 %v6033_v29  ;;  %v6079_v27 = vcombine.low %v1479_v5, %v1483_v6  ;;  %v6081_v29 = vcombine.low %v1480_v19, %v1484_v10  ;;  %v6122_v5 = vcombine.high %v1520_v57, %v1524_v58  ;;  %v1527_v6 = vld [vmem:[%s8762_s3 + $0xf80] sm:$0xff]  ;;  %v1528_v10 = vld [vmem:[%s8762_s3 + $0xf88] sm:$0xff] }
 0x1ab   :  { %4274 = vmatprep.subr.bf16.mxu0 %v6040_v33  ;;  %4438 = vmatprep.subr.bf16.mxu1 %v6042_v34  ;;  %v6088_v33 = vcombine.high %v1487_v18, %v1491_v20  ;;  %v6090_v34 = vcombine.high %v1488_v21, %v1492_v22  ;;  %v1531_v19 = vld [vmem:[%s8762_s3 + $0xfa0] sm:$0xff] }
 0x1ae   :  { %4275 = vmatpush1.bf16.msra.mxu0 %v6039_v41  ;;  %4439 = vmatpush1.bf16.msra.mxu1 %v6041_v32  ;;  %v6087_v41 = vcombine.low %v1487_v18, %v1491_v20  ;;  %v6089_v32 = vcombine.low %v1488_v21, %v1492_v22  ;;  %v6128_v20 = vcombine.high %v1527_v6, %v1531_v19  ;;  %v1535_v22 = vld [vmem:[%s8762_s3 + $0xfc0] sm:$0xff] }
 0x1af   :  { %4276 = vmatprep.subr.bf16.mxu0 %v6048_v44  ;;  %4440 = vmatprep.subr.bf16.mxu1 %v6050_v46  ;;  %v6096_v44 = vcombine.high %v1495_v35, %v1499_v37  ;;  %v6098_v46 = vcombine.high %v1496_v38, %v1500_v39 }
 0x1b2   :  { %4277 = vmatpush1.bf16.msra.mxu0 %v6047_v51  ;;  %4441 = vmatpush1.bf16.msra.mxu1 %v6049_v52  ;;  %v6095_v51 = vcombine.low %v1495_v35, %v1499_v37  ;;  %v6097_v52 = vcombine.low %v1496_v38, %v1500_v39 }
 0x1b3   :  { %4278 = vmatprep.subr.bf16.mxu0 %v6056_v53  ;;  %4442 = vmatprep.subr.bf16.mxu1 %v6058_v25  ;;  %v6104_v53 = vcombine.high %v1503_v47, %v1507_v48  ;;  %v6106_v25 = vcombine.high %v1504_v49, %v1508_v50 }
 0x1b6   :  { %4279 = vmatpush1.bf16.msra.mxu0 %v6055_v0  ;;  %4443 = vmatpush1.bf16.msra.mxu1 %v6057_v4  ;;  %v6103_v0 = vcombine.low %v1503_v47, %v1507_v48  ;;  %v6105_v4 = vcombine.low %v1504_v49, %v1508_v50 }
 0x1b7   :  { %4280 = vmatprep.subr.bf16.mxu0 %v6064_v55  ;;  %4444 = vmatprep.subr.bf16.mxu1 %v6066_v8  ;;  %v6112_v55 = vcombine.high %v1511_v56, %v1515_v54  ;;  %v6114_v8 = vcombine.high %v1512_v62, %v1516_v63 }
 0x1ba   :  { %4281 = vmatpush1.bf16.msra.mxu0 %v6063_v60  ;;  %4445 = vmatpush1.bf16.msra.mxu1 %v6065_v61  ;;  %v6111_v60 = vcombine.low %v1511_v56, %v1515_v54  ;;  %v6113_v61 = vcombine.low %v1512_v62, %v1516_v63 }
 0x1bb   :  { %4282 = vmatprep.subr.bf16.mxu0 %v6072_v1  ;;  %4446 = vmatprep.subr.bf16.mxu1 %v6074_v2  ;;  %v197_v1 = vsub.s32 6, %v7082_v23  ;;  %v6120_v2 = vcombine.high %v1519_v9, %v1523_v40 }
 0x1be   :  { %4283 = vmatpush1.bf16.msra.mxu0 %v6071_v12  ;;  %4447 = vmatpush1.bf16.msra.mxu1 %v6073_v13  ;;  %v1532_v12 = vld [vmem:[%s8762_s3 + $0xfa8] sm:$0xff]  ;;  %v6119_v13 = vcombine.low %v1519_v9, %v1523_v40  ;;  %v1054_v9 = vld [vmem:[%s8762_s3 + $0xb8] sm:$0xff] }
 0x1bf   :  { %4284 = vmatprep.subr.bf16.mxu0 %v6080_v16  ;;  %4448 = vmatprep.subr.bf16.mxu1 %v6082_v17  ;;  %v6121_v16 = vcombine.low %v1520_v57, %v1524_v58  ;;  %v6416_v17 = vld [vmem:[%s8763_s2] sm:$0xff]  ;;  %v6130_v21 = vcombine.high %v1528_v10, %v1532_v12  ;;  %v6129_v35 = vcombine.low %v1528_v10, %v1532_v12 }
 0x1c0   :  { %v198_v18 = vrot.slane %v6416_v17, %v197_v1  ;;  %v1066_v17 = vld [vmem:[%s8762_s3 + $0x118] sm:$0xff] }
 0x1c2   :  { %4285 = vmatpush1.bf16.msra.mxu0 %v6079_v27  ;;  %4449 = vmatpush1.bf16.msra.mxu1 %v6081_v29  ;;  %v1539_v27 = vld [vmem:[%s8762_s3 + $0xfe0] sm:$0xff]  ;;  %v1536_v29 = vld [vmem:[%s8762_s3 + $0xfc8] sm:$0xff]  ;;  %v1009_v37 = vadd.f32 %v7357_v36, %v198_v18  ;;  %v1038_v36 = vld [vmem:[%s8762_s3 + $0x38] sm:$0xff] }
 0x1c3   :  { %4286 = vmatprep.subr.bf16.mxu0 %v6088_v33  ;;  %4450 = vmatprep.subr.bf16.mxu1 %v6090_v34  ;;  %v1540_v33 = vld [vmem:[%s8762_s3 + $0xfe8] sm:$0xff]  ;;  %v6127_v34 = vcombine.low %v1527_v6, %v1531_v19  ;;  %v6136_v38 = vcombine.high %v1535_v22, %v1539_v27  ;;  %v1070_v18 = vld [vmem:[%s8762_s3 + $0x138] sm:$0xff] }
 0x1c4   :  { %v6138_v39 = vcombine.high %v1536_v29, %v1540_v33  ;;  %v6137_v47 = vcombine.low %v1536_v29, %v1540_v33  ;;  %v1021_v48 = vmax.f32 %v1009_v37, 0.0  ;;  %v1073_v29 = vld [vmem:[%s8762_s3 + $0x150] sm:$0xff] }
 0x1c5   :  { %v1077_v33 = vld [vmem:[%s8762_s3 + $0x170] sm:$0xff] }
 0x1c6   :  { %4287 = vmatpush1.bf16.msra.mxu0 %v6087_v41  ;;  %4451 = vmatpush1.bf16.msra.mxu1 %v6089_v32  ;;  %v1033_v41 = vld [vmem:[%s8762_s3 + $0x10] sm:$0xff]  ;;  %v7757_v54 = vpack.c.bf16 %v1021_v48, %v1021_v48 }
 0x1c7   :  { %4288 = vmatprep.subr.bf16.mxu0 %v6096_v44  ;;  %4452 = vmatprep.subr.bf16.mxu1 %v6098_v46  ;;  %v1037_v32 = vld [vmem:[%s8762_s3 + $0x30] sm:$0xff]  ;;  %v1034_v44 = vld [vmem:[%s8762_s3 + $0x18] sm:$0xff]  ;;  %v6135_v46 = vcombine.low %v1535_v22, %v1539_v27  ;;  %v5670_v27 = vcombine.high %v1066_v17, %v1070_v18 }
 0x1c8   :  { %v5636_v49 = vcombine.high %v1033_v41, %v1037_v32  ;;  %v5638_v50 = vcombine.high %v1034_v44, %v1038_v36  ;;  %v5635_v56 = vcombine.low %v1033_v41, %v1037_v32  ;;  %v5637_v62 = vcombine.low %v1034_v44, %v1038_v36  ;;  %v1081_v32 = vld [vmem:[%s8762_s3 + $0x190] sm:$0xff]  ;;  %v1082_v36 = vld [vmem:[%s8762_s3 + $0x198] sm:$0xff] }
 0x1c9   :  { %v1085_v44 = vld [vmem:[%s8762_s3 + $0x1b0] sm:$0xff] }
 0x1ca   :  { %4289 = vmatpush1.bf16.msra.mxu0 %v6095_v51  ;;  %4453 = vmatpush1.bf16.msra.mxu1 %v6097_v52  ;;  %v1041_v51 = vld [vmem:[%s8762_s3 + $0x50] sm:$0xff] }
 0x1cb   :  { %4290 = vmatprep.subr.bf16.mxu0 %v6104_v53  ;;  %4454 = vmatprep.subr.bf16.mxu1 %v6106_v25  ;;  %v1045_v52 = vld [vmem:[%s8762_s3 + $0x70] sm:$0xff]  ;;  %v1042_v53 = vld [vmem:[%s8762_s3 + $0x58] sm:$0xff] }
 0x1cc   :  { %v1046_v25 = vld [vmem:[%s8762_s3 + $0x78] sm:$0xff]  ;;  %v5644_v63 = vcombine.high %v1041_v51, %v1045_v52  ;;  %v5643_v40 = vcombine.low %v1041_v51, %v1045_v52  ;;  %v1089_v51 = vld [vmem:[%s8762_s3 + $0x1d0] sm:$0xff] }
 0x1cd   :  { %v5645_v57 = vcombine.low %v1042_v53, %v1046_v25  ;;  %v1093_v52 = vld [vmem:[%s8762_s3 + $0x1f0] sm:$0xff] }
 0x1ce   :  { %4291 = vmatpush1.bf16.msra.mxu0 %v6103_v0  ;;  %4455 = vmatpush1.bf16.msra.mxu1 %v6105_v4  ;;  %v5646_v0 = vcombine.high %v1042_v53, %v1046_v25  ;;  %v1049_v4 = vld [vmem:[%s8762_s3 + $0x90] sm:$0xff]  ;;  %v1090_v53 = vld [vmem:[%s8762_s3 + $0x1d8] sm:$0xff] }
 0x1cf   :  { %4292 = vmatprep.subr.bf16.mxu0 %v6112_v55  ;;  %4456 = vmatprep.subr.bf16.mxu1 %v6114_v8  ;;  %v1053_v55 = vld [vmem:[%s8762_s3 + $0xb0] sm:$0xff]  ;;  %v1050_v8 = vld [vmem:[%s8762_s3 + $0x98] sm:$0xff] }
 0x1d0   :  { %v5652_v58 = vcombine.high %v1049_v4, %v1053_v55  ;;  %v5651_v6 = vcombine.low %v1049_v4, %v1053_v55  ;;  %v5653_v19 = vcombine.low %v1050_v8, %v1054_v9  ;;  %v1094_v25 = vld [vmem:[%s8762_s3 + $0x1f8] sm:$0xff]  ;;  %v1097_v4 = vld [vmem:[%s8762_s3 + $0x210] sm:$0xff] }
 0x1d1   :  { %v1101_v55 = vld [vmem:[%s8762_s3 + $0x230] sm:$0xff] }
 0x1d2   :  { %4293 = vmatpush1.bf16.msra.mxu0 %v6111_v60  ;;  %4457 = vmatpush1.bf16.msra.mxu1 %v6113_v61  ;;  %v5654_v60 = vcombine.high %v1050_v8, %v1054_v9  ;;  %v1057_v61 = vld [vmem:[%s8762_s3 + $0xd0] sm:$0xff]  ;;  %v1098_v8 = vld [vmem:[%s8762_s3 + $0x218] sm:$0xff] }
 0x1d3   :  { %4294 = vmatprep.subr.bf16.mxu0 %v6120_v2  ;;  %4458 = vmatprep.subr.bf16.mxu1 %v6122_v5  ;;  %v1061_v2 = vld [vmem:[%s8762_s3 + $0xf0] sm:$0xff]  ;;  %v1058_v5 = vld [vmem:[%s8762_s3 + $0xd8] sm:$0xff] }
 0x1d4   :  { %v5660_v10 = vcombine.high %v1057_v61, %v1061_v2  ;;  %v1102_v9 = vld [vmem:[%s8762_s3 + $0x238] sm:$0xff] }
 0x1d6   :  { %4295 = vmatpush1.bf16.msra.mxu0 %v6119_v13  ;;  %4459 = vmatpush1.bf16.msra.mxu1 %v6121_v16  ;;  %v1065_v13 = vld [vmem:[%s8762_s3 + $0x110] sm:$0xff] }
 0x1d7   :  { %4296 = vmatprep.subr.bf16.mxu0 %v6128_v20  ;;  %4460 = vmatprep.subr.bf16.mxu1 %v6130_v21  ;;  %v1069_v16 = vld [vmem:[%s8762_s3 + $0x130] sm:$0xff]  ;;  %v5659_v20 = vcombine.low %v1057_v61, %v1061_v2 }
 0x1d8   :  { %v5668_v22 = vcombine.high %v1065_v13, %v1069_v16  ;;  %v5667_v37 = vcombine.low %v1065_v13, %v1069_v16  ;;  %v1105_v61 = vld [vmem:[%s8762_s3 + $0x250] sm:$0xff] }
 0x1d9   :  { %v1109_v2 = vld [vmem:[%s8762_s3 + $0x270] sm:$0xff] }
 0x1da   :  { %4297 = vmatpush1.bf16.msra.mxu0 %v6127_v34  ;;  %4461 = vmatpush1.bf16.msra.mxu1 %v6129_v35  ;;  %v1074_v34 = vld [vmem:[%s8762_s3 + $0x158] sm:$0xff]  ;;  %v1113_v13 = vld [vmem:[%s8762_s3 + $0x290] sm:$0xff] }
 0x1db   :  { %4298 = vmatprep.subr.bf16.mxu0 %v6136_v38  ;;  %4462 = vmatprep.subr.bf16.mxu1 %v6138_v39  ;;  %v1078_v35 = vld [vmem:[%s8762_s3 + $0x178] sm:$0xff]  ;;  %v5669_v38 = vcombine.low %v1066_v17, %v1070_v18  ;;  %v5676_v39 = vcombine.high %v1073_v29, %v1077_v33  ;;  %v1117_v16 = vld [vmem:[%s8762_s3 + $0x2b0] sm:$0xff] }
 0x1dc   :  { %v5678_v41 = vcombine.high %v1074_v34, %v1078_v35  ;;  %v5677_v48 = vcombine.low %v1074_v34, %v1078_v35  ;;  %v1114_v17 = vld [vmem:[%s8762_s3 + $0x298] sm:$0xff] }
 0x1dd   :  { %v1118_v18 = vld [vmem:[%s8762_s3 + $0x2b8] sm:$0xff] }
 0x1de   :  { %4299 = vmatpush1.bf16.msra.mxu0 %v6135_v46  ;;  %4463 = vmatpush1.bf16.msra.mxu1 %v6137_v47  ;;  %v1086_v46 = vld [vmem:[%s8762_s3 + $0x1b8] sm:$0xff]  ;;  %v5675_v47 = vcombine.low %v1073_v29, %v1077_v33  ;;  %v1121_v29 = vld [vmem:[%s8762_s3 + $0x2d0] sm:$0xff] }
 0x1df   :  { %4473 = vmatprep.subr.bf16.mxu0 %v5636_v49  ;;  %4637 = vmatprep.subr.bf16.mxu1 %v5638_v50  ;;  %v5684_v49 = vcombine.high %v1081_v32, %v1085_v44  ;;  %v5686_v50 = vcombine.high %v1082_v36, %v1086_v46  ;;  %v1125_v33 = vld [vmem:[%s8762_s3 + $0x2f0] sm:$0xff]  ;;  %v1122_v34 = vld [vmem:[%s8762_s3 + $0x2d8] sm:$0xff] }
 0x1e0   :  { %v1126_v35 = vld [vmem:[%s8762_s3 + $0x2f8] sm:$0xff] }
 0x1e1   :  { %4301 = vmatmul.mubr.bf16.vlgmr.msra.gmra.mrb[8].mxu0 %v7757_v54  ;;  %4465 = vmatmul.mubr.bf16.vlgmr.msra.gmra.mrb[8].mxu1 %v7757_v54 }
 0x1e2   :  { %4474 = vmatpush1.bf16.msra.mxu0 %v5635_v56  ;;  %4505 = vmatprep.mubr.bf16.mxu0 %v7110_v3  ;;  %v5683_v56 = vcombine.low %v1081_v32, %v1085_v44  ;;  %v1129_v32 = vld [vmem:[%s8762_s3 + $0x310] sm:$0xff] }
 0x1e3   :  { %4638 = vmatpush1.bf16.msra.mxu1 %v5637_v62  ;;  %4669 = vmatprep.mubr.bf16.mxu1 %v7110_v3  ;;  %v1062_v3 = vld [vmem:[%s8762_s3 + $0xf8] sm:$0xff]  ;;  %v5685_v62 = vcombine.low %v1082_v36, %v1086_v46  ;;  %v1133_v44 = vld [vmem:[%s8762_s3 + $0x330] sm:$0xff] }
 0x1e4   :  { %4475 = vmatprep.subr.bf16.mxu0 %v5644_v63  ;;  %4639 = vmatprep.subr.bf16.mxu1 %v5646_v0  ;;  %v5662_v12 = vcombine.high %v1058_v5, %v1062_v3  ;;  %v5661_v21 = vcombine.low %v1058_v5, %v1062_v3  ;;  %v5692_v63 = vcombine.high %v1089_v51, %v1093_v52  ;;  %v1106_v5 = vld [vmem:[%s8762_s3 + $0x258] sm:$0xff] }
 0x1e5   :  { %v5694_v0 = vcombine.high %v1090_v53, %v1094_v25  ;;  %v1110_v3 = vld [vmem:[%s8762_s3 + $0x278] sm:$0xff] }
 0x1e6   :  { %4476 = vmatpush1.bf16.msra.mxu0 %v5643_v40  ;;  %v5691_v40 = vcombine.low %v1089_v51, %v1093_v52  ;;  %v1130_v36 = vld [vmem:[%s8762_s3 + $0x318] sm:$0xff]  ;;  %v1137_v51 = vld [vmem:[%s8762_s3 + $0x350] sm:$0xff] }
 0x1e7   :  { %4640 = vmatpush1.bf16.msra.mxu1 %v5645_v57  ;;  %4477 = vmatprep.subr.bf16.mxu0 %v5652_v58  ;;  %v5693_v57 = vcombine.low %v1090_v53, %v1094_v25  ;;  %v5700_v58 = vcombine.high %v1097_v4, %v1101_v55  ;;  %v1134_v46 = vld [vmem:[%s8762_s3 + $0x338] sm:$0xff]  ;;  %v1141_v52 = vld [vmem:[%s8762_s3 + $0x370] sm:$0xff] }
 0x1e8   :  { %4641 = vmatprep.subr.bf16.mxu1 %v5654_v60  ;;  %v5702_v60 = vcombine.high %v1098_v8, %v1102_v9  ;;  %v1138_v53 = vld [vmem:[%s8762_s3 + $0x358] sm:$0xff] }
 0x1e9   :  { %v1142_v25 = vld [vmem:[%s8762_s3 + $0x378] sm:$0xff] }
 0x1ea   :  { %4478 = vmatpush1.bf16.msra.mxu0 %v5651_v6  ;;  %v5699_v6 = vcombine.low %v1097_v4, %v1101_v55  ;;  %v1145_v4 = vld [vmem:[%s8762_s3 + $0x390] sm:$0xff] }
 0x1eb   :  { %4642 = vmatpush1.bf16.msra.mxu1 %v5653_v19  ;;  %4479 = vmatprep.subr.bf16.mxu0 %v5660_v10  ;;  %v5701_v19 = vcombine.low %v1098_v8, %v1102_v9  ;;  %v5708_v10 = vcombine.high %v1105_v61, %v1109_v2  ;;  %v1149_v55 = vld [vmem:[%s8762_s3 + $0x3b0] sm:$0xff]  ;;  %v1146_v8 = vld [vmem:[%s8762_s3 + $0x398] sm:$0xff] }
 0x1ec   :  { %4643 = vmatprep.subr.bf16.mxu1 %v5662_v12  ;;  %v5710_v12 = vcombine.high %v1106_v5, %v1110_v3  ;;  %v1150_v9 = vld [vmem:[%s8762_s3 + $0x3b8] sm:$0xff] }
 0x1ee   :  { %4480 = vmatpush1.bf16.msra.mxu0 %v5659_v20  ;;  %v5707_v20 = vcombine.low %v1105_v61, %v1109_v2  ;;  %v1153_v61 = vld [vmem:[%s8762_s3 + $0x3d0] sm:$0xff] }
 0x1ef   :  { %4644 = vmatpush1.bf16.msra.mxu1 %v5661_v21  ;;  %4481 = vmatprep.subr.bf16.mxu0 %v5668_v22  ;;  %v5709_v21 = vcombine.low %v1106_v5, %v1110_v3  ;;  %v5716_v22 = vcombine.high %v1113_v13, %v1117_v16  ;;  %v1157_v2 = vld [vmem:[%s8762_s3 + $0x3f0] sm:$0xff]  ;;  %v1154_v5 = vld [vmem:[%s8762_s3 + $0x3d8] sm:$0xff] }
 0x1f0   :  { %4645 = vmatprep.subr.bf16.mxu1 %v5670_v27  ;;  %v5718_v27 = vcombine.high %v1114_v17, %v1118_v18  ;;  %v1158_v3 = vld [vmem:[%s8762_s3 + $0x3f8] sm:$0xff] }
 0x1f2   :  { %4482 = vmatpush1.bf16.msra.mxu0 %v5667_v37  ;;  %v5715_v37 = vcombine.low %v1113_v13, %v1117_v16  ;;  %v1161_v13 = vld [vmem:[%s8762_s3 + $0x410] sm:$0xff] }
 0x1f3   :  { %4646 = vmatpush1.bf16.msra.mxu1 %v5669_v38  ;;  %4483 = vmatprep.subr.bf16.mxu0 %v5676_v39  ;;  %v5717_v38 = vcombine.low %v1114_v17, %v1118_v18  ;;  %v5724_v39 = vcombine.high %v1121_v29, %v1125_v33  ;;  %v1165_v16 = vld [vmem:[%s8762_s3 + $0x430] sm:$0xff]  ;;  %v1162_v17 = vld [vmem:[%s8762_s3 + $0x418] sm:$0xff] }
 0x1f4   :  { %4647 = vmatprep.subr.bf16.mxu1 %v5678_v41  ;;  %v5726_v41 = vcombine.high %v1122_v34, %v1126_v35  ;;  %v1166_v18 = vld [vmem:[%s8762_s3 + $0x438] sm:$0xff] }
 0x1f6   :  { %4484 = vmatpush1.bf16.msra.mxu0 %v5675_v47  ;;  %v5723_v47 = vcombine.low %v1121_v29, %v1125_v33  ;;  %v1169_v29 = vld [vmem:[%s8762_s3 + $0x450] sm:$0xff] }
 0x1f7   :  { %4648 = vmatpush1.bf16.msra.mxu1 %v5677_v48  ;;  %4485 = vmatprep.subr.bf16.mxu0 %v5684_v49  ;;  %v5725_v48 = vcombine.low %v1122_v34, %v1126_v35  ;;  %v5732_v49 = vcombine.high %v1129_v32, %v1133_v44  ;;  %v1173_v33 = vld [vmem:[%s8762_s3 + $0x470] sm:$0xff]  ;;  %v5763_v34 = vcombine.low %v1161_v13, %v1165_v16  ;;  %v1170_v35 = vld [vmem:[%s8762_s3 + $0x458] sm:$0xff] }
 0x1f8   :  { %4649 = vmatprep.subr.bf16.mxu1 %v5686_v50  ;;  %v5734_v50 = vcombine.high %v1130_v36, %v1134_v46 }
 0x1fa   :  { %4486 = vmatpush1.bf16.msra.mxu0 %v5683_v56  ;;  %v5731_v56 = vcombine.low %v1129_v32, %v1133_v44  ;;  %v1181_v32 = vld [vmem:[%s8762_s3 + $0x4b0] sm:$0xff] }
 0x1fb   :  { %4650 = vmatpush1.bf16.msra.mxu1 %v5685_v62  ;;  %4487 = vmatprep.subr.bf16.mxu0 %v5692_v63  ;;  %v5733_v62 = vcombine.low %v1130_v36, %v1134_v46  ;;  %v5740_v63 = vcombine.high %v1137_v51, %v1141_v52  ;;  %v1178_v36 = vld [vmem:[%s8762_s3 + $0x498] sm:$0xff] }
 0x1fc   :  { %4651 = vmatprep.subr.bf16.mxu1 %v5694_v0  ;;  %v5742_v0 = vcombine.high %v1138_v53, %v1142_v25  ;;  %v1182_v46 = vld [vmem:[%s8762_s3 + $0x4b8] sm:$0xff] }
 0x1fe   :  { %4488 = vmatpush1.bf16.msra.mxu0 %v5691_v40  ;;  %v5739_v40 = vcombine.low %v1137_v51, %v1141_v52  ;;  %v1185_v51 = vld [vmem:[%s8762_s3 + $0x4d0] sm:$0xff] }
 0x1ff   :  { %4652 = vmatpush1.bf16.msra.mxu1 %v5693_v57  ;;  %4489 = vmatprep.subr.bf16.mxu0 %v5700_v58  ;;  %v5741_v57 = vcombine.low %v1138_v53, %v1142_v25  ;;  %v5748_v58 = vcombine.high %v1145_v4, %v1149_v55  ;;  %v1189_v52 = vld [vmem:[%s8762_s3 + $0x4f0] sm:$0xff]  ;;  %v1190_v53 = vld [vmem:[%s8762_s3 + $0x4f8] sm:$0xff]  ;;  %v5781_v25 = vcombine.low %v1178_v36, %v1182_v46 }
 0x200   :  { %4653 = vmatprep.subr.bf16.mxu1 %v5702_v60  ;;  %v5750_v60 = vcombine.high %v1146_v8, %v1150_v9 }
 0x202   :  { %4490 = vmatpush1.bf16.msra.mxu0 %v5699_v6  ;;  %v5747_v6 = vcombine.low %v1145_v4, %v1149_v55  ;;  %v1194_v4 = vld [vmem:[%s8762_s3 + $0x518] sm:$0xff] }
 0x203   :  { %4654 = vmatpush1.bf16.msra.mxu1 %v5701_v19  ;;  %4491 = vmatprep.subr.bf16.mxu0 %v5708_v10  ;;  %v5749_v19 = vcombine.low %v1146_v8, %v1150_v9  ;;  %v5756_v10 = vcombine.high %v1153_v61, %v1157_v2  ;;  %v1198_v55 = vld [vmem:[%s8762_s3 + $0x538] sm:$0xff]  ;;  %v5787_v8 = vcombine.low %v1185_v51, %v1189_v52 }
 0x204   :  { %4655 = vmatprep.subr.bf16.mxu1 %v5710_v12  ;;  %v5758_v12 = vcombine.high %v1154_v5, %v1158_v3 }
 0x206   :  { %4492 = vmatpush1.bf16.msra.mxu0 %v5707_v20  ;;  %v5755_v20 = vcombine.low %v1153_v61, %v1157_v2  ;;  %v1202_v61 = vld [vmem:[%s8762_s3 + $0x558] sm:$0xff] }
 0x207   :  { %4656 = vmatpush1.bf16.msra.mxu1 %v5709_v21  ;;  %4493 = vmatprep.subr.bf16.mxu0 %v5716_v22  ;;  %v5757_v21 = vcombine.low %v1154_v5, %v1158_v3  ;;  %v5764_v22 = vcombine.high %v1161_v13, %v1165_v16  ;;  %v1206_v2 = vld [vmem:[%s8762_s3 + $0x578] sm:$0xff]  ;;  %v5797_v3 = vcombine.low %v1194_v4, %v1198_v55 }
 0x208   :  { %4657 = vmatprep.subr.bf16.mxu1 %v5718_v27  ;;  %v5766_v27 = vcombine.high %v1162_v17, %v1166_v18  ;;  %v1210_v13 = vld [vmem:[%s8762_s3 + $0x598] sm:$0xff] }
 0x209   :  { %v1214_v16 = vld [vmem:[%s8762_s3 + $0x5b8] sm:$0xff] }
 0x20a   :  { %4494 = vmatpush1.bf16.msra.mxu0 %v5715_v37  ;;  %v1174_v37 = vld [vmem:[%s8762_s3 + $0x478] sm:$0xff] }
 0x20b   :  { %4658 = vmatpush1.bf16.msra.mxu1 %v5717_v38  ;;  %4495 = vmatprep.subr.bf16.mxu0 %v5724_v39  ;;  %v5765_v38 = vcombine.low %v1162_v17, %v1166_v18  ;;  %v5772_v39 = vcombine.high %v1169_v29, %v1173_v33  ;;  %v5774_v44 = vcombine.high %v1170_v35, %v1174_v37 }
 0x20c   :  { %4659 = vmatprep.subr.bf16.mxu1 %v5726_v41  ;;  %v1177_v41 = vld [vmem:[%s8762_s3 + $0x490] sm:$0xff]  ;;  %v5805_v18 = vcombine.low %v1202_v61, %v1206_v2 }
 0x20e   :  { %4496 = vmatpush1.bf16.msra.mxu0 %v5723_v47  ;;  %v5771_v47 = vcombine.low %v1169_v29, %v1173_v33  ;;  %v1218_v29 = vld [vmem:[%s8762_s3 + $0x5d8] sm:$0xff] }
 0x20f   :  { %4660 = vmatpush1.bf16.msra.mxu1 %v5725_v48  ;;  %4497 = vmatprep.subr.bf16.mxu0 %v5732_v49  ;;  %v5773_v48 = vcombine.low %v1170_v35, %v1174_v37  ;;  %v5780_v49 = vcombine.high %v1177_v41, %v1181_v32  ;;  %v1222_v33 = vld [vmem:[%s8762_s3 + $0x5f8] sm:$0xff]  ;;  %v5813_v35 = vcombine.low %v1210_v13, %v1214_v16 }
 0x210   :  { %4661 = vmatprep.subr.bf16.mxu1 %v5734_v50  ;;  %v5782_v50 = vcombine.high %v1178_v36, %v1182_v46  ;;  %v5821_v46 = vcombine.low %v1218_v29, %v1222_v33 }
 0x212   :  { %4498 = vmatpush1.bf16.msra.mxu0 %v5731_v56  ;;  %v5788_v56 = vcombine.high %v1185_v51, %v1189_v52  ;;  %v1234_v51 = vld [vmem:[%s8762_s3 + $0x658] sm:$0xff] }
 0x213   :  { %4662 = vmatpush1.bf16.msra.mxu1 %v5733_v62  ;;  %4499 = vmatprep.subr.bf16.mxu0 %v5740_v63  ;;  %v1193_v63 = vld [vmem:[%s8762_s3 + $0x510] sm:$0xff]  ;;  %v1238_v52 = vld [vmem:[%s8762_s3 + $0x678] sm:$0xff] }
 0x214   :  { %4663 = vmatprep.subr.bf16.mxu1 %v5742_v0  ;;  %v1197_v0 = vld [vmem:[%s8762_s3 + $0x530] sm:$0xff] }
 0x215   :  { %v5795_v5 = vcombine.low %v1193_v63, %v1197_v0 }
 0x216   :  { %4500 = vmatpush1.bf16.msra.mxu0 %v5739_v40  ;;  %v5796_v40 = vcombine.high %v1193_v63, %v1197_v0  ;;  %v1242_v63 = vld [vmem:[%s8762_s3 + $0x698] sm:$0xff] }
 0x217   :  { %4664 = vmatpush1.bf16.msra.mxu1 %v5741_v57  ;;  %4501 = vmatprep.subr.bf16.mxu0 %v5748_v58  ;;  %v5798_v57 = vcombine.high %v1194_v4, %v1198_v55  ;;  %v1201_v58 = vld [vmem:[%s8762_s3 + $0x550] sm:$0xff]  ;;  %v1246_v0 = vld [vmem:[%s8762_s3 + $0x6b8] sm:$0xff]  ;;  %v5837_v55 = vcombine.low %v1234_v51, %v1238_v52 }
 0x218   :  { %4665 = vmatprep.subr.bf16.mxu1 %v5750_v60  ;;  %v1205_v60 = vld [vmem:[%s8762_s3 + $0x570] sm:$0xff] }
 0x219   :  { %v5803_v17 = vcombine.low %v1201_v58, %v1205_v60 }
 0x21a   :  { %4502 = vmatpush1.bf16.msra.mxu0 %v5747_v6  ;;  %v5804_v6 = vcombine.high %v1201_v58, %v1205_v60  ;;  %v1250_v58 = vld [vmem:[%s8762_s3 + $0x6d8] sm:$0xff] }
 0x21b   :  { %4666 = vmatpush1.bf16.msra.mxu1 %v5749_v19  ;;  %4503 = vmatprep.subr.bf16.mxu0 %v5756_v10  ;;  %v5806_v19 = vcombine.high %v1202_v61, %v1206_v2  ;;  %v1209_v10 = vld [vmem:[%s8762_s3 + $0x590] sm:$0xff]  ;;  %v1254_v60 = vld [vmem:[%s8762_s3 + $0x6f8] sm:$0xff]  ;;  %v5845_v2 = vcombine.low %v1242_v63, %v1246_v0 }
 0x21c   :  { %4667 = vmatprep.subr.bf16.mxu1 %v5758_v12  ;;  %v1213_v12 = vld [vmem:[%s8762_s3 + $0x5b0] sm:$0xff] }
 0x21e   :  { %4504 = vmatpush1.bf16.msra.mxu0 %v5755_v20  ;;  %v5812_v20 = vcombine.high %v1209_v10, %v1213_v12 }
 0x21f   :  { %4668 = vmatpush1.bf16.msra.mxu1 %v5757_v21  ;;  %4514 = vmatprep.subr.bf16.mxu0 %v5764_v22  ;;  %v5814_v21 = vcombine.high %v1210_v13, %v1214_v16  ;;  %v1217_v22 = vld [vmem:[%s8762_s3 + $0x5d0] sm:$0xff]  ;;  %v5853_v16 = vcombine.low %v1250_v58, %v1254_v60 }
 0x220   :  { %4678 = vmatprep.subr.bf16.mxu1 %v5766_v27  ;;  %v1221_v27 = vld [vmem:[%s8762_s3 + $0x5f0] sm:$0xff] }
 0x221   :  { %4506 = vmatmul.mubr.bf16.vlgmr.msra.gmra.mrb[12].mxu0 %v7112_v43  ;;  %v5820_v37 = vcombine.high %v1217_v22, %v1221_v27  ;;  %v5819_v36 = vcombine.low %v1217_v22, %v1221_v27  ;;  %v1266_v22 = vld [vmem:[%s8762_s3 + $0x758] sm:$0xff] }
 0x222   :  { %4670 = vmatmul.mubr.bf16.vlgmr.msra.gmra.mrb[12].mxu1 %v7112_v43  ;;  %4515 = vmatpush1.bf16.msra.mxu0 %v5763_v34  ;;  %v1186_v43 = vld [vmem:[%s8762_s3 + $0x4d8] sm:$0xff]  ;;  %v5811_v34 = vcombine.low %v1209_v10, %v1213_v12 }
 0x223   :  { %4546 = vmatprep.mubr.bf16.mxu0 %v7165_v7  ;;  %4679 = vmatpush1.bf16.msra.mxu1 %v5765_v38  ;;  %v5790_v62 = vcombine.high %v1186_v43, %v1190_v53  ;;  %v5789_v9 = vcombine.low %v1186_v43, %v1190_v53  ;;  %v5822_v38 = vcombine.high %v1218_v29, %v1222_v33  ;;  %v1258_v10 = vld [vmem:[%s8762_s3 + $0x718] sm:$0xff] }
 0x224   :  { %4710 = vmatprep.mubr.bf16.mxu1 %v7165_v7  ;;  %4516 = vmatprep.subr.bf16.mxu0 %v5772_v39  ;;  %v5779_v7 = vcombine.low %v1177_v41, %v1181_v32  ;;  %v1225_v39 = vld [vmem:[%s8762_s3 + $0x610] sm:$0xff]  ;;  %v1226_v32 = vld [vmem:[%s8762_s3 + $0x618] sm:$0xff] }
 0x225   :  { %4680 = vmatprep.subr.bf16.mxu1 %v5774_v44  ;;  %v1229_v41 = vld [vmem:[%s8762_s3 + $0x630] sm:$0xff]  ;;  %v1230_v44 = vld [vmem:[%s8762_s3 + $0x638] sm:$0xff] }
 0x226   :  { %4517 = vmatpush1.bf16.msra.mxu0 %v5771_v47  ;;  %v5828_v47 = vcombine.high %v1225_v39, %v1229_v41  ;;  %v5827_v43 = vcombine.low %v1225_v39, %v1229_v41  ;;  %v5829_v53 = vcombine.low %v1226_v32, %v1230_v44  ;;  %v1262_v12 = vld [vmem:[%s8762_s3 + $0x738] sm:$0xff] }
 0x227   :  { %4681 = vmatpush1.bf16.msra.mxu1 %v5773_v48  ;;  %4518 = vmatprep.subr.bf16.mxu0 %v5780_v49  ;;  %v5830_v48 = vcombine.high %v1226_v32, %v1230_v44  ;;  %v1233_v49 = vld [vmem:[%s8762_s3 + $0x650] sm:$0xff]  ;;  %v1270_v27 = vld [vmem:[%s8762_s3 + $0x778] sm:$0xff]  ;;  %v5861_v33 = vcombine.low %v1258_v10, %v1262_v12 }
 0x228   :  { %4682 = vmatprep.subr.bf16.mxu1 %v5782_v50  ;;  %v1237_v50 = vld [vmem:[%s8762_s3 + $0x670] sm:$0xff]  ;;  %v1274_v39 = vld [vmem:[%s8762_s3 + $0x798] sm:$0xff]  ;;  %v5869_v44 = vcombine.low %v1266_v22, %v1270_v27 }
 0x229   :  { %v5835_v4 = vcombine.low %v1233_v49, %v1237_v50  ;;  %v1278_v41 = vld [vmem:[%s8762_s3 + $0x7b8] sm:$0xff] }
 0x22a   :  { %4519 = vmatpush1.bf16.msra.mxu0 %v5779_v7  ;;  %v5836_v7 = vcombine.high %v1233_v49, %v1237_v50  ;;  %v1282_v49 = vld [vmem:[%s8762_s3 + $0x7d8] sm:$0xff] }
 0x22b   :  { %4683 = vmatpush1.bf16.msra.mxu1 %v5781_v25  ;;  %4520 = vmatprep.subr.bf16.mxu0 %v5788_v56  ;;  %v5838_v25 = vcombine.high %v1234_v51, %v1238_v52  ;;  %v1241_v56 = vld [vmem:[%s8762_s3 + $0x690] sm:$0xff]  ;;  %v1286_v50 = vld [vmem:[%s8762_s3 + $0x7f8] sm:$0xff]  ;;  %v5877_v52 = vcombine.low %v1274_v39, %v1278_v41 }
 0x22c   :  { %4684 = vmatprep.subr.bf16.mxu1 %v5790_v62  ;;  %v1245_v62 = vld [vmem:[%s8762_s3 + $0x6b0] sm:$0xff] }
 0x22d   :  { %v5843_v61 = vcombine.low %v1241_v56, %v1245_v62 }
 0x22e   :  { %4521 = vmatpush1.bf16.msra.mxu0 %v5787_v8  ;;  %v5844_v8 = vcombine.high %v1241_v56, %v1245_v62  ;;  %v1290_v56 = vld [vmem:[%s8762_s3 + $0x818] sm:$0xff] }
 0x22f   :  { %4685 = vmatpush1.bf16.msra.mxu1 %v5789_v9  ;;  %4522 = vmatprep.subr.bf16.mxu0 %v5796_v40  ;;  %v5846_v9 = vcombine.high %v1242_v63, %v1246_v0  ;;  %v1249_v40 = vld [vmem:[%s8762_s3 + $0x6d0] sm:$0xff]  ;;  %v1294_v62 = vld [vmem:[%s8762_s3 + $0x838] sm:$0xff]  ;;  %v5885_v0 = vcombine.low %v1282_v49, %v1286_v50 }
 0x230   :  { %4686 = vmatprep.subr.bf16.mxu1 %v5798_v57  ;;  %v1253_v57 = vld [vmem:[%s8762_s3 + $0x6f0] sm:$0xff] }
 0x231   :  { %v5851_v13 = vcombine.low %v1249_v40, %v1253_v57 }
 0x232   :  { %4523 = vmatpush1.bf16.msra.mxu0 %v5795_v5  ;;  %v5852_v5 = vcombine.high %v1249_v40, %v1253_v57  ;;  %v1298_v57 = vld [vmem:[%s8762_s3 + $0x858] sm:$0xff] }
 0x233   :  { %4687 = vmatpush1.bf16.msra.mxu1 %v5797_v3  ;;  %4524 = vmatprep.subr.bf16.mxu0 %v5804_v6  ;;  %v5854_v3 = vcombine.high %v1250_v58, %v1254_v60  ;;  %v1257_v6 = vld [vmem:[%s8762_s3 + $0x710] sm:$0xff]  ;;  %v1302_v58 = vld [vmem:[%s8762_s3 + $0x878] sm:$0xff]  ;;  %v5893_v60 = vcombine.low %v1290_v56, %v1294_v62 }
 0x234   :  { %4688 = vmatprep.subr.bf16.mxu1 %v5806_v19  ;;  %v1261_v19 = vld [vmem:[%s8762_s3 + $0x730] sm:$0xff] }
 0x235   :  { %v5859_v29 = vcombine.low %v1257_v6, %v1261_v19 }
 0x236   :  { %4525 = vmatpush1.bf16.msra.mxu0 %v5803_v17  ;;  %v5860_v17 = vcombine.high %v1257_v6, %v1261_v19  ;;  %v5902_v6 = vcombine.high %v1298_v57, %v1302_v58  ;;  %v1310_v19 = vld [vmem:[%s8762_s3 + $0x8b8] sm:$0xff] }
 0x237   :  { %4689 = vmatpush1.bf16.msra.mxu1 %v5805_v18  ;;  %4526 = vmatprep.subr.bf16.mxu0 %v5812_v20  ;;  %v5862_v18 = vcombine.high %v1258_v10, %v1262_v12  ;;  %v1265_v20 = vld [vmem:[%s8762_s3 + $0x750] sm:$0xff] }
 0x238   :  { %4690 = vmatprep.subr.bf16.mxu1 %v5814_v21  ;;  %v1269_v21 = vld [vmem:[%s8762_s3 + $0x770] sm:$0xff] }
 0x239   :  { %v5867_v32 = vcombine.low %v1265_v20, %v1269_v21  ;;  %v1313_v12 = vld [vmem:[%s8762_s3 + $0x8d0] sm:$0xff] }
 0x23a   :  { %4527 = vmatpush1.bf16.msra.mxu0 %v5811_v34  ;;  %v5868_v34 = vcombine.high %v1265_v20, %v1269_v21  ;;  %v1318_v20 = vld [vmem:[%s8762_s3 + $0x8f8] sm:$0xff] }
 0x23b   :  { %4691 = vmatpush1.bf16.msra.mxu1 %v5813_v35  ;;  %4528 = vmatprep.subr.bf16.mxu0 %v5820_v37  ;;  %v5870_v35 = vcombine.high %v1266_v22, %v1270_v27  ;;  %v1273_v37 = vld [vmem:[%s8762_s3 + $0x790] sm:$0xff] }
 0x23c   :  { %4692 = vmatprep.subr.bf16.mxu1 %v5822_v38  ;;  %v1277_v38 = vld [vmem:[%s8762_s3 + $0x7b0] sm:$0xff] }
 0x23d   :  { %v5875_v51 = vcombine.low %v1273_v37, %v1277_v38  ;;  %v1321_v22 = vld [vmem:[%s8762_s3 + $0x910] sm:$0xff] }
 0x23e   :  { %4529 = vmatpush1.bf16.msra.mxu0 %v5819_v36  ;;  %v5876_v36 = vcombine.high %v1273_v37, %v1277_v38  ;;  %v1329_v38 = vld [vmem:[%s8762_s3 + $0x950] sm:$0xff] }
 0x23f   :  { %4693 = vmatpush1.bf16.msra.mxu1 %v5821_v46  ;;  %4530 = vmatprep.subr.bf16.mxu0 %v5828_v47  ;;  %v5878_v46 = vcombine.high %v1274_v39, %v1278_v41  ;;  %v1281_v47 = vld [vmem:[%s8762_s3 + $0x7d0] sm:$0xff] }
 0x240   :  { %4694 = vmatprep.subr.bf16.mxu1 %v5830_v48  ;;  %v1285_v48 = vld [vmem:[%s8762_s3 + $0x7f0] sm:$0xff] }
 0x241   :  { %v5883_v63 = vcombine.low %v1281_v47, %v1285_v48 }
 0x242   :  { %4531 = vmatpush1.bf16.msra.mxu0 %v5827_v43  ;;  %v5884_v43 = vcombine.high %v1281_v47, %v1285_v48  ;;  %v1337_v48 = vld [vmem:[%s8762_s3 + $0x990] sm:$0xff] }
 0x243   :  { %4695 = vmatpush1.bf16.msra.mxu1 %v5829_v53  ;;  %4532 = vmatprep.subr.bf16.mxu0 %v5836_v7  ;;  %v5886_v53 = vcombine.high %v1282_v49, %v1286_v50  ;;  %v1289_v7 = vld [vmem:[%s8762_s3 + $0x810] sm:$0xff] }
 0x244   :  { %4696 = vmatprep.subr.bf16.mxu1 %v5838_v25  ;;  %v1293_v25 = vld [vmem:[%s8762_s3 + $0x830] sm:$0xff] }
 0x245   :  { %v5891_v40 = vcombine.low %v1289_v7, %v1293_v25 }
 0x246   :  { %4533 = vmatpush1.bf16.msra.mxu0 %v5835_v4  ;;  %v5892_v4 = vcombine.high %v1289_v7, %v1293_v25  ;;  %v1345_v25 = vld [vmem:[%s8762_s3 + $0x9d0] sm:$0xff] }
 0x247   :  { %4697 = vmatpush1.bf16.msra.mxu1 %v5837_v55  ;;  %4534 = vmatprep.subr.bf16.mxu0 %v5844_v8  ;;  %v5894_v55 = vcombine.high %v1290_v56, %v1294_v62  ;;  %v1297_v8 = vld [vmem:[%s8762_s3 + $0x850] sm:$0xff] }
 0x248   :  { %4698 = vmatprep.subr.bf16.mxu1 %v5846_v9  ;;  %v1301_v9 = vld [vmem:[%s8762_s3 + $0x870] sm:$0xff] }
 0x249   :  { %v5899_v10 = vcombine.low %v1297_v8, %v1301_v9 }
 0x24a   :  { %4535 = vmatpush1.bf16.msra.mxu0 %v5843_v61  ;;  %v5900_v61 = vcombine.high %v1297_v8, %v1301_v9  ;;  %v1353_v9 = vld [vmem:[%s8762_s3 + $0xa10] sm:$0xff] }
 0x24b   :  { %4699 = vmatpush1.bf16.msra.mxu1 %v5845_v2  ;;  %4536 = vmatprep.subr.bf16.mxu0 %v5852_v5  ;;  %v1305_v2 = vld [vmem:[%s8762_s3 + $0x890] sm:$0xff] }
 0x24c   :  { %4700 = vmatprep.subr.bf16.mxu1 %v5854_v3  ;;  %v1309_v5 = vld [vmem:[%s8762_s3 + $0x8b0] sm:$0xff]  ;;  %v1306_v3 = vld [vmem:[%s8762_s3 + $0x898] sm:$0xff] }
 0x24d   :  { %v5907_v21 = vcombine.low %v1305_v2, %v1309_v5 }
 0x24e   :  { %4537 = vmatpush1.bf16.msra.mxu0 %v5851_v13  ;;  %v5901_v13 = vcombine.low %v1298_v57, %v1302_v58  ;;  %v1357_v58 = vld [vmem:[%s8762_s3 + $0xa30] sm:$0xff] }
 0x24f   :  { %4701 = vmatpush1.bf16.msra.mxu1 %v5853_v16  ;;  %4538 = vmatprep.subr.bf16.mxu0 %v5860_v17  ;;  %v5908_v16 = vcombine.high %v1305_v2, %v1309_v5  ;;  %v1317_v17 = vld [vmem:[%s8762_s3 + $0x8f0] sm:$0xff]  ;;  %v1358_v2 = vld [vmem:[%s8762_s3 + $0xa38] sm:$0xff] }
 0x250   :  { %4702 = vmatprep.subr.bf16.mxu1 %v5862_v18  ;;  %v5910_v18 = vcombine.high %v1306_v3, %v1310_v19  ;;  %v5916_v27 = vcombine.high %v1313_v12, %v1317_v17  ;;  %v5915_v37 = vcombine.low %v1313_v12, %v1317_v17  ;;  %v5955_v17 = vcombine.low %v1353_v9, %v1357_v58 }
 0x252   :  { %4539 = vmatpush1.bf16.msra.mxu0 %v5859_v29  ;;  %v1325_v29 = vld [vmem:[%s8762_s3 + $0x930] sm:$0xff] }
 0x253   :  { %4703 = vmatpush1.bf16.msra.mxu1 %v5861_v33  ;;  %4540 = vmatprep.subr.bf16.mxu0 %v5868_v34  ;;  %v1322_v34 = vld [vmem:[%s8762_s3 + $0x918] sm:$0xff]  ;;  %v5924_v41 = vcombine.high %v1321_v22, %v1325_v29  ;;  %v5923_v47 = vcombine.low %v1321_v22, %v1325_v29 }
 0x254   :  { %4704 = vmatprep.subr.bf16.mxu1 %v5870_v35  ;;  %v1326_v35 = vld [vmem:[%s8762_s3 + $0x938] sm:$0xff] }
 0x255   :  { %v5925_v49 = vcombine.low %v1322_v34, %v1326_v35  ;;  %v1370_v22 = vld [vmem:[%s8762_s3 + $0xa98] sm:$0xff] }
 0x256   :  { %4541 = vmatpush1.bf16.msra.mxu0 %v5867_v32  ;;  %v1333_v32 = vld [vmem:[%s8762_s3 + $0x970] sm:$0xff] }
 0x257   :  { %4705 = vmatpush1.bf16.msra.mxu1 %v5869_v44  ;;  %4542 = vmatprep.subr.bf16.mxu0 %v5876_v36  ;;  %v5926_v44 = vcombine.high %v1322_v34, %v1326_v35  ;;  %v1330_v36 = vld [vmem:[%s8762_s3 + $0x958] sm:$0xff]  ;;  %v5932_v50 = vcombine.high %v1329_v38, %v1333_v32  ;;  %v5931_v7 = vcombine.low %v1329_v38, %v1333_v32 }
 0x258   :  { %4706 = vmatprep.subr.bf16.mxu1 %v5878_v46  ;;  %v1334_v46 = vld [vmem:[%s8762_s3 + $0x978] sm:$0xff] }
 0x259   :  { %v5933_v56 = vcombine.low %v1330_v36, %v1334_v46 }
 0x25a   :  { %4543 = vmatpush1.bf16.msra.mxu0 %v5875_v51  ;;  %v1341_v51 = vld [vmem:[%s8762_s3 + $0x9b0] sm:$0xff] }
 0x25b   :  { %4707 = vmatpush1.bf16.msra.mxu1 %v5877_v52  ;;  %4544 = vmatprep.subr.bf16.mxu0 %v5884_v43  ;;  %v5934_v52 = vcombine.high %v1330_v36, %v1334_v46  ;;  %v1338_v43 = vld [vmem:[%s8762_s3 + $0x998] sm:$0xff]  ;;  %v5940_v62 = vcombine.high %v1337_v48, %v1341_v51  ;;  %v5939_v8 = vcombine.low %v1337_v48, %v1341_v51 }
 0x25c   :  { %4708 = vmatprep.subr.bf16.mxu1 %v5886_v53  ;;  %v1342_v53 = vld [vmem:[%s8762_s3 + $0x9b8] sm:$0xff] }
 0x25e   :  { %4545 = vmatpush1.bf16.msra.mxu0 %v5883_v63  ;;  %v1349_v63 = vld [vmem:[%s8762_s3 + $0x9f0] sm:$0xff] }
 0x25f   :  { %4709 = vmatpush1.bf16.msra.mxu1 %v5885_v0  ;;  %4555 = vmatprep.subr.bf16.mxu0 %v5892_v4  ;;  %v5942_v0 = vcombine.high %v1338_v43, %v1342_v53  ;;  %v1346_v4 = vld [vmem:[%s8762_s3 + $0x9d8] sm:$0xff]  ;;  %v5948_v57 = vcombine.high %v1345_v25, %v1349_v63  ;;  %v5947_v5 = vcombine.low %v1345_v25, %v1349_v63 }
 0x260   :  { %4719 = vmatprep.subr.bf16.mxu1 %v5894_v55  ;;  %v1350_v55 = vld [vmem:[%s8762_s3 + $0x9f8] sm:$0xff] }
 0x261   :  { %4547 = vmatmul.mubr.bf16.vlgmr.msra.gmra.mrb[12].mxu0 %v7336_v14 }
 0x262   :  { %4711 = vmatmul.mubr.bf16.vlgmr.msra.gmra.mrb[12].mxu1 %v7336_v14  ;;  %4556 = vmatpush1.bf16.msra.mxu0 %v5891_v40  ;;  %v1314_v14 = vld [vmem:[%s8762_s3 + $0x8d8] sm:$0xff]  ;;  %v5941_v40 = vcombine.low %v1338_v43, %v1342_v53 }
 0x263   :  { %4587 = vmatprep.mubr.bf16.mxu0 %v7350_v28  ;;  %4720 = vmatpush1.bf16.msra.mxu1 %v5893_v60  ;;  %v5918_v33 = vcombine.high %v1314_v14, %v1318_v20  ;;  %v5917_v39 = vcombine.low %v1314_v14, %v1318_v20  ;;  %v5950_v60 = vcombine.high %v1346_v4, %v1350_v55  ;;  %v1373_v14 = vld [vmem:[%s8762_s3 + $0xab0] sm:$0xff] }
 0x264   :  { %4751 = vmatprep.mubr.bf16.mxu1 %v7350_v28  ;;  %4557 = vmatprep.subr.bf16.mxu0 %v5900_v61  ;;  %v5909_v28 = vcombine.low %v1306_v3, %v1310_v19  ;;  %v1354_v61 = vld [vmem:[%s8762_s3 + $0xa18] sm:$0xff]  ;;  %v1361_v3 = vld [vmem:[%s8762_s3 + $0xa50] sm:$0xff]  ;;  %v5956_v19 = vcombine.high %v1353_v9, %v1357_v58 }
 0x265   :  { %4721 = vmatprep.subr.bf16.mxu1 %v5902_v6  ;;  %v5949_v6 = vcombine.low %v1346_v4, %v1350_v55  ;;  %v5958_v12 = vcombine.high %v1354_v61, %v1358_v2  ;;  %v5957_v20 = vcombine.low %v1354_v61, %v1358_v2 }
 0x266   :  { %4558 = vmatpush1.bf16.msra.mxu0 %v5899_v10  ;;  %v1365_v10 = vld [vmem:[%s8762_s3 + $0xa70] sm:$0xff] }
 0x267   :  { %4722 = vmatpush1.bf16.msra.mxu1 %v5901_v13  ;;  %4559 = vmatprep.subr.bf16.mxu0 %v5908_v16  ;;  %v1362_v13 = vld [vmem:[%s8762_s3 + $0xa58] sm:$0xff]  ;;  %v5963_v29 = vcombine.low %v1361_v3, %v1365_v10 }
 0x268   :  { %4723 = vmatprep.subr.bf16.mxu1 %v5910_v18  ;;  %v1366_v16 = vld [vmem:[%s8762_s3 + $0xa78] sm:$0xff]  ;;  %v1369_v18 = vld [vmem:[%s8762_s3 + $0xa90] sm:$0xff] }
 0x269   :  { %v5965_v34 = vcombine.low %v1362_v13, %v1366_v16  ;;  %v5972_v35 = vcombine.high %v1369_v18, %v1373_v14  ;;  %v5971_v32 = vcombine.low %v1369_v18, %v1373_v14  ;;  %v1418_v18 = vld [vmem:[%s8762_s3 + $0xc18] sm:$0xff] }
 0x26a   :  { %4560 = vmatpush1.bf16.msra.mxu0 %v5907_v21  ;;  %v5964_v21 = vcombine.high %v1361_v3, %v1365_v10 }
 0x26b   :  { %4724 = vmatpush1.bf16.msra.mxu1 %v5909_v28  ;;  %4561 = vmatprep.subr.bf16.mxu0 %v5916_v27  ;;  %v5966_v28 = vcombine.high %v1362_v13, %v1366_v16  ;;  %v1374_v27 = vld [vmem:[%s8762_s3 + $0xab8] sm:$0xff]  ;;  %v1421_v13 = vld [vmem:[%s8762_s3 + $0xc30] sm:$0xff] }
 0x26c   :  { %4725 = vmatprep.subr.bf16.mxu1 %v5918_v33  ;;  %v1377_v33 = vld [vmem:[%s8762_s3 + $0xad0] sm:$0xff]  ;;  %v5974_v38 = vcombine.high %v1370_v22, %v1374_v27  ;;  %v5973_v36 = vcombine.low %v1370_v22, %v1374_v27 }
 0x26d   :  { %v1425_v27 = vld [vmem:[%s8762_s3 + $0xc50] sm:$0xff] }
 0x26e   :  { %4562 = vmatpush1.bf16.msra.mxu0 %v5915_v37  ;;  %v1381_v37 = vld [vmem:[%s8762_s3 + $0xaf0] sm:$0xff] }
 0x26f   :  { %4726 = vmatpush1.bf16.msra.mxu1 %v5917_v39  ;;  %4563 = vmatprep.subr.bf16.mxu0 %v5924_v41  ;;  %v1378_v39 = vld [vmem:[%s8762_s3 + $0xad8] sm:$0xff]  ;;  %v5980_v46 = vcombine.high %v1377_v33, %v1381_v37  ;;  %v5979_v51 = vcombine.low %v1377_v33, %v1381_v37 }
 0x270   :  { %4727 = vmatprep.subr.bf16.mxu1 %v5926_v44  ;;  %v1382_v41 = vld [vmem:[%s8762_s3 + $0xaf8] sm:$0xff]  ;;  %v1385_v44 = vld [vmem:[%s8762_s3 + $0xb10] sm:$0xff] }
 0x271   :  { %v5982_v48 = vcombine.high %v1378_v39, %v1382_v41  ;;  %v5981_v43 = vcombine.low %v1378_v39, %v1382_v41  ;;  %v1430_v37 = vld [vmem:[%s8762_s3 + $0xc78] sm:$0xff]  ;;  %v1433_v41 = vld [vmem:[%s8762_s3 + $0xc90] sm:$0xff] }
 0x272   :  { %4564 = vmatpush1.bf16.msra.mxu0 %v5923_v47  ;;  %v1389_v47 = vld [vmem:[%s8762_s3 + $0xb30] sm:$0xff] }
 0x273   :  { %4728 = vmatpush1.bf16.msra.mxu1 %v5925_v49  ;;  %4565 = vmatprep.subr.bf16.mxu0 %v5932_v50  ;;  %v1386_v49 = vld [vmem:[%s8762_s3 + $0xb18] sm:$0xff]  ;;  %v5988_v53 = vcombine.high %v1385_v44, %v1389_v47  ;;  %v5987_v63 = vcombine.low %v1385_v44, %v1389_v47 }
 0x274   :  { %4729 = vmatprep.subr.bf16.mxu1 %v5934_v52  ;;  %v1390_v50 = vld [vmem:[%s8762_s3 + $0xb38] sm:$0xff]  ;;  %v1393_v52 = vld [vmem:[%s8762_s3 + $0xb50] sm:$0xff] }
 0x275   :  { %v5990_v25 = vcombine.high %v1386_v49, %v1390_v50  ;;  %v5989_v4 = vcombine.low %v1386_v49, %v1390_v50 }
 0x276   :  { %4566 = vmatpush1.bf16.msra.mxu0 %v5931_v7  ;;  %v1397_v7 = vld [vmem:[%s8762_s3 + $0xb70] sm:$0xff] }
 0x277   :  { %4730 = vmatpush1.bf16.msra.mxu1 %v5933_v56  ;;  %4567 = vmatprep.subr.bf16.mxu0 %v5940_v62  ;;  %v1394_v56 = vld [vmem:[%s8762_s3 + $0xb58] sm:$0xff]  ;;  %v5996_v55 = vcombine.high %v1393_v52, %v1397_v7  ;;  %v5995_v58 = vcombine.low %v1393_v52, %v1397_v7  ;;  %v1445_v52 = vld [vmem:[%s8762_s3 + $0xcf0] sm:$0xff] }
 0x278   :  { %4731 = vmatprep.subr.bf16.mxu1 %v5942_v0  ;;  %v1398_v62 = vld [vmem:[%s8762_s3 + $0xb78] sm:$0xff]  ;;  %v1401_v0 = vld [vmem:[%s8762_s3 + $0xb90] sm:$0xff] }
 0x279   :  { %v5998_v9 = vcombine.high %v1394_v56, %v1398_v62  ;;  %v5997_v61 = vcombine.low %v1394_v56, %v1398_v62  ;;  %v1449_v56 = vld [vmem:[%s8762_s3 + $0xd10] sm:$0xff] }
 0x27a   :  { %4568 = vmatpush1.bf16.msra.mxu0 %v5939_v8  ;;  %v1405_v8 = vld [vmem:[%s8762_s3 + $0xbb0] sm:$0xff] }
 0x27b   :  { %4732 = vmatpush1.bf16.msra.mxu1 %v5941_v40  ;;  %4569 = vmatprep.subr.bf16.mxu0 %v5948_v57  ;;  %v1402_v40 = vld [vmem:[%s8762_s3 + $0xb98] sm:$0xff]  ;;  %v6004_v2 = vcombine.high %v1401_v0, %v1405_v8  ;;  %v6003_v10 = vcombine.low %v1401_v0, %v1405_v8  ;;  %v1453_v62 = vld [vmem:[%s8762_s3 + $0xd30] sm:$0xff] }
 0x27c   :  { %4733 = vmatprep.subr.bf16.mxu1 %v5950_v60  ;;  %v1406_v57 = vld [vmem:[%s8762_s3 + $0xbb8] sm:$0xff]  ;;  %v1409_v60 = vld [vmem:[%s8762_s3 + $0xbd0] sm:$0xff]  ;;  %v6052_v8 = vcombine.high %v1449_v56, %v1453_v62 }
 0x27d   :  { %v6006_v3 = vcombine.high %v1402_v40, %v1406_v57  ;;  %v6005_v16 = vcombine.low %v1402_v40, %v1406_v57  ;;  %v1454_v0 = vld [vmem:[%s8762_s3 + $0xd38] sm:$0xff]  ;;  %v1457_v40 = vld [vmem:[%s8762_s3 + $0xd50] sm:$0xff] }
 0x27e   :  { %4570 = vmatpush1.bf16.msra.mxu0 %v5947_v5  ;;  %v1413_v5 = vld [vmem:[%s8762_s3 + $0xbf0] sm:$0xff] }
 0x27f   :  { %4734 = vmatpush1.bf16.msra.mxu1 %v5949_v6  ;;  %4571 = vmatprep.subr.bf16.mxu0 %v5956_v19  ;;  %v1410_v6 = vld [vmem:[%s8762_s3 + $0xbd8] sm:$0xff]  ;;  %v1461_v57 = vld [vmem:[%s8762_s3 + $0xd70] sm:$0xff] }
 0x280   :  { %4735 = vmatprep.subr.bf16.mxu1 %v5958_v12  ;;  %v1414_v19 = vld [vmem:[%s8762_s3 + $0xbf8] sm:$0xff]  ;;  %v1417_v12 = vld [vmem:[%s8762_s3 + $0xc10] sm:$0xff] }
 0x281   :  { %v6014_v14 = vcombine.high %v1410_v6, %v1414_v19  ;;  %v6013_v22 = vcombine.low %v1410_v6, %v1414_v19  ;;  %v1465_v6 = vld [vmem:[%s8762_s3 + $0xd90] sm:$0xff] }
 0x282   :  { %4572 = vmatpush1.bf16.msra.mxu0 %v5955_v17  ;;  %v6012_v17 = vcombine.high %v1409_v60, %v1413_v5  ;;  %v1469_v19 = vld [vmem:[%s8762_s3 + $0xdb0] sm:$0xff] }
 0x283   :  { %4736 = vmatpush1.bf16.msra.mxu1 %v5957_v20  ;;  %4573 = vmatprep.subr.bf16.mxu0 %v5964_v21  ;;  %v1422_v20 = vld [vmem:[%s8762_s3 + $0xc38] sm:$0xff]  ;;  %v6011_v21 = vcombine.low %v1409_v60, %v1413_v5  ;;  %v6060_v5 = vcombine.high %v1457_v40, %v1461_v57 }
 0x284   :  { %4737 = vmatprep.subr.bf16.mxu1 %v5966_v28  ;;  %v6020_v28 = vcombine.high %v1417_v12, %v1421_v13  ;;  %v6022_v33 = vcombine.high %v1418_v18, %v1422_v20  ;;  %v1462_v60 = vld [vmem:[%s8762_s3 + $0xd78] sm:$0xff] }
 0x286   :  { %4574 = vmatpush1.bf16.msra.mxu0 %v5963_v29  ;;  %v1429_v29 = vld [vmem:[%s8762_s3 + $0xc70] sm:$0xff] }
 0x287   :  { %4738 = vmatpush1.bf16.msra.mxu1 %v5965_v34  ;;  %4575 = vmatprep.subr.bf16.mxu0 %v5972_v35  ;;  %v6019_v34 = vcombine.low %v1417_v12, %v1421_v13  ;;  %v1426_v35 = vld [vmem:[%s8762_s3 + $0xc58] sm:$0xff]  ;;  %v6028_v39 = vcombine.high %v1425_v27, %v1429_v29  ;;  %v6027_v47 = vcombine.low %v1425_v27, %v1429_v29 }
 0x288   :  { %4739 = vmatprep.subr.bf16.mxu1 %v5974_v38  ;;  %v6021_v38 = vcombine.low %v1418_v18, %v1422_v20  ;;  %v6030_v44 = vcombine.high %v1426_v35, %v1430_v37  ;;  %v1470_v12 = vld [vmem:[%s8762_s3 + $0xdb8] sm:$0xff]  ;;  %v6059_v13 = vcombine.low %v1457_v40, %v1461_v57 }
 0x289   :  { %v1474_v29 = vld [vmem:[%s8762_s3 + $0xdd8] sm:$0xff] }
 0x28a   :  { %4576 = vmatpush1.bf16.msra.mxu0 %v5971_v32  ;;  %v1437_v32 = vld [vmem:[%s8762_s3 + $0xcb0] sm:$0xff] }
 0x28b   :  { %4740 = vmatpush1.bf16.msra.mxu1 %v5973_v36  ;;  %4577 = vmatprep.subr.bf16.mxu0 %v5980_v46  ;;  %v1434_v36 = vld [vmem:[%s8762_s3 + $0xc98] sm:$0xff]  ;;  %v6036_v49 = vcombine.high %v1433_v41, %v1437_v32 }
 0x28c   :  { %4741 = vmatprep.subr.bf16.mxu1 %v5982_v48  ;;  %v1438_v46 = vld [vmem:[%s8762_s3 + $0xcb8] sm:$0xff]  ;;  %v6029_v48 = vcombine.low %v1426_v35, %v1430_v37  ;;  %v6067_v37 = vcombine.low %v1465_v6, %v1469_v19 }
 0x28d   :  { %v6038_v50 = vcombine.high %v1434_v36, %v1438_v46 }
 0x28e   :  { %4578 = vmatpush1.bf16.msra.mxu0 %v5979_v51  ;;  %v1441_v51 = vld [vmem:[%s8762_s3 + $0xcd0] sm:$0xff] }
 0x28f   :  { %4742 = vmatpush1.bf16.msra.mxu1 %v5981_v43  ;;  %4579 = vmatprep.subr.bf16.mxu0 %v5988_v53  ;;  %v1446_v43 = vld [vmem:[%s8762_s3 + $0xcf8] sm:$0xff]  ;;  %v6037_v53 = vcombine.low %v1434_v36, %v1438_v46  ;;  %v6044_v7 = vcombine.high %v1441_v51, %v1445_v52  ;;  %v1481_v36 = vld [vmem:[%s8762_s3 + $0xe10] sm:$0xff] }
 0x290   :  { %4743 = vmatprep.subr.bf16.mxu1 %v5990_v25  ;;  %v1485_v46 = vld [vmem:[%s8762_s3 + $0xe30] sm:$0xff] }
 0x292   :  { %4580 = vmatpush1.bf16.msra.mxu0 %v5987_v63  ;;  %v1450_v63 = vld [vmem:[%s8762_s3 + $0xd18] sm:$0xff] }
 0x293   :  { %4744 = vmatpush1.bf16.msra.mxu1 %v5989_v4  ;;  %4581 = vmatprep.subr.bf16.mxu0 %v5996_v55  ;;  %v6043_v4 = vcombine.low %v1441_v51, %v1445_v52  ;;  %v6084_v51 = vcombine.high %v1481_v36, %v1485_v46 }
 0x294   :  { %4745 = vmatprep.subr.bf16.mxu1 %v5998_v9  ;;  %v6054_v9 = vcombine.high %v1450_v63, %v1454_v0 }
 0x296   :  { %4582 = vmatpush1.bf16.msra.mxu0 %v5995_v58  ;;  %v1458_v58 = vld [vmem:[%s8762_s3 + $0xd58] sm:$0xff] }
 0x297   :  { %4746 = vmatpush1.bf16.msra.mxu1 %v5997_v61  ;;  %4583 = vmatprep.subr.bf16.mxu0 %v6004_v2  ;;  %v6051_v61 = vcombine.low %v1449_v56, %v1453_v62  ;;  %v6053_v2 = vcombine.low %v1450_v63, %v1454_v0  ;;  %v1497_v63 = vld [vmem:[%s8762_s3 + $0xe90] sm:$0xff] }
 0x298   :  { %4747 = vmatprep.subr.bf16.mxu1 %v6006_v3  ;;  %v6062_v3 = vcombine.high %v1458_v58, %v1462_v60  ;;  %v1501_v0 = vld [vmem:[%s8762_s3 + $0xeb0] sm:$0xff] }
 0x299   :  { %v6100_v40 = vcombine.high %v1497_v63, %v1501_v0 }
 0x29a   :  { %4584 = vmatpush1.bf16.msra.mxu0 %v6003_v10  ;;  %v1466_v10 = vld [vmem:[%s8762_s3 + $0xd98] sm:$0xff] }
 0x29b   :  { %4748 = vmatpush1.bf16.msra.mxu1 %v6005_v16  ;;  %4585 = vmatprep.subr.bf16.mxu0 %v6012_v17  ;;  %v6061_v16 = vcombine.low %v1458_v58, %v1462_v60  ;;  %v6068_v17 = vcombine.high %v1465_v6, %v1469_v19  ;;  %v6070_v20 = vcombine.high %v1466_v10, %v1470_v12  ;;  %v1505_v58 = vld [vmem:[%s8762_s3 + $0xed0] sm:$0xff] }
 0x29c   :  { %4749 = vmatprep.subr.bf16.mxu1 %v6014_v14  ;;  %v1509_v60 = vld [vmem:[%s8762_s3 + $0xef0] sm:$0xff] }
 0x29d   :  { %v6108_v6 = vcombine.high %v1505_v58, %v1509_v60 }
 0x29e   :  { %4586 = vmatpush1.bf16.msra.mxu0 %v6011_v21  ;;  %v1473_v21 = vld [vmem:[%s8762_s3 + $0xdd0] sm:$0xff] }
 0x29f   :  { %4750 = vmatpush1.bf16.msra.mxu1 %v6013_v22  ;;  %4596 = vmatprep.subr.bf16.mxu0 %v6020_v28  ;;  %v1477_v22 = vld [vmem:[%s8762_s3 + $0xdf0] sm:$0xff] }
 0x2a0   :  { %4760 = vmatprep.subr.bf16.mxu1 %v6022_v33  ;;  %v1478_v33 = vld [vmem:[%s8762_s3 + $0xdf8] sm:$0xff] }
 0x2a1   :  { %4588 = vmatmul.mubr.bf16.vlgmr.msra.gmra.mrb[12].mxu0 %v7550_v59 }
 0x2a2   :  { %4752 = vmatmul.mubr.bf16.vlgmr.msra.gmra.mrb[12].mxu1 %v7550_v59  ;;  %4597 = vmatpush1.bf16.msra.mxu0 %v6019_v34  ;;  %v1442_v59 = vld [vmem:[%s8762_s3 + $0xcd8] sm:$0xff] }
 0x2a3   :  { %4628 = vmatprep.mubr.bf16.mxu0 %v7564_v11  ;;  %4761 = vmatpush1.bf16.msra.mxu1 %v6021_v38  ;;  %v6046_v25 = vcombine.high %v1442_v59, %v1446_v43  ;;  %v6045_v55 = vcombine.low %v1442_v59, %v1446_v43  ;;  %v1489_v59 = vld [vmem:[%s8762_s3 + $0xe50] sm:$0xff] }
 0x2a4   :  { %4792 = vmatprep.mubr.bf16.mxu1 %v7564_v11  ;;  %4598 = vmatprep.subr.bf16.mxu0 %v6028_v39  ;;  %v6035_v11 = vcombine.low %v1433_v41, %v1437_v32  ;;  %v6069_v41 = vcombine.low %v1466_v10, %v1470_v12  ;;  %v6076_v32 = vcombine.high %v1473_v21, %v1477_v22  ;;  %v1493_v43 = vld [vmem:[%s8762_s3 + $0xe70] sm:$0xff] }
 0x2a5   :  { %4762 = vmatprep.subr.bf16.mxu1 %v6030_v44  ;;  %v6078_v44 = vcombine.high %v1474_v29, %v1478_v33  ;;  %v6092_v56 = vcombine.high %v1489_v59, %v1493_v43  ;;  %v1513_v10 = vld [vmem:[%s8762_s3 + $0xf10] sm:$0xff] }
 0x2a6   :  { %4599 = vmatpush1.bf16.msra.mxu0 %v6027_v47  ;;  %v1482_v47 = vld [vmem:[%s8762_s3 + $0xe18] sm:$0xff]  ;;  %v1517_v12 = vld [vmem:[%s8762_s3 + $0xf30] sm:$0xff] }
 0x2a7   :  { %4763 = vmatpush1.bf16.msra.mxu1 %v6029_v48  ;;  %4600 = vmatprep.subr.bf16.mxu0 %v6036_v49  ;;  %v1486_v48 = vld [vmem:[%s8762_s3 + $0xe38] sm:$0xff]  ;;  %v6075_v49 = vcombine.low %v1473_v21, %v1477_v22  ;;  %v6116_v21 = vcombine.high %v1513_v10, %v1517_v12 }
 0x2a8   :  { %4764 = vmatprep.subr.bf16.mxu1 %v6038_v50  ;;  %v6077_v50 = vcombine.low %v1474_v29, %v1478_v33  ;;  %v6086_v52 = vcombine.high %v1482_v47, %v1486_v48  ;;  %v1521_v29 = vld [vmem:[%s8762_s3 + $0xf50] sm:$0xff] }
 0x2a9   :  { %v1525_v33 = vld [vmem:[%s8762_s3 + $0xf70] sm:$0xff] }
 0x2aa   :  { %4601 = vmatpush1.bf16.msra.mxu0 %v6035_v11  ;;  %v1490_v11 = vld [vmem:[%s8762_s3 + $0xe58] sm:$0xff] }
 0x2ab   :  { %4765 = vmatpush1.bf16.msra.mxu1 %v6037_v53  ;;  %4602 = vmatprep.subr.bf16.mxu0 %v6044_v7  ;;  %v1494_v53 = vld [vmem:[%s8762_s3 + $0xe78] sm:$0xff]  ;;  %v6083_v7 = vcombine.low %v1481_v36, %v1485_v46 }
 0x2ac   :  { %4766 = vmatprep.subr.bf16.mxu1 %v6046_v25  ;;  %v6085_v25 = vcombine.low %v1482_v47, %v1486_v48  ;;  %v6094_v62 = vcombine.high %v1490_v11, %v1494_v53  ;;  %v1530_v36 = vld [vmem:[%s8762_s3 + $0xf98] sm:$0xff]  ;;  %v8518_v47 = vld [vmem:[%s8765_s4] sm:$0xff]  ;;  %v6123_v48 = vcombine.low %v1521_v29, %v1525_v33 }
 0x2ad   :  { %v1534_v46 = vld [vmem:[%s8762_s3 + $0xfb8] sm:$0xff] }
 0x2ae   :  { %4603 = vmatpush1.bf16.msra.mxu0 %v6043_v4  ;;  %v1498_v4 = vld [vmem:[%s8762_s3 + $0xe98] sm:$0xff] }
 0x2af   :  { %4767 = vmatpush1.bf16.msra.mxu1 %v6045_v55  ;;  %4604 = vmatprep.subr.bf16.mxu0 %v6052_v8  ;;  %v1502_v55 = vld [vmem:[%s8762_s3 + $0xeb8] sm:$0xff]  ;;  %v6091_v8 = vcombine.low %v1489_v59, %v1493_v43  ;;  %v1541_v59 = vld [vmem:[%s8762_s3 + $0xff0] sm:$0xff]  ;;  %v1552_v43 = vrot.slane %v8518_v47, %v177_v26 }
 0x2b0   :  { %4768 = vmatprep.subr.bf16.mxu1 %v6054_v9  ;;  %v6093_v9 = vcombine.low %v1490_v11, %v1494_v53  ;;  %v6102_v57 = vcombine.high %v1498_v4, %v1502_v55  ;;  %v1538_v11 = vld [vmem:[%s8762_s3 + $0xfd8] sm:$0xff] }
 0x2b1   :  { %v1542_v53 = vld [vmem:[%s8762_s3 + $0xff8] sm:$0xff] }
 0x2b2   :  { %4605 = vmatpush1.bf16.msra.mxu0 %v6051_v61  ;;  %v1506_v61 = vld [vmem:[%s8762_s3 + $0xed8] sm:$0xff]  ;;  %v6142_v26 = vcombine.high %v1538_v11, %v1542_v53 }
 0x2b3   :  { %4769 = vmatpush1.bf16.msra.mxu1 %v6053_v2  ;;  %4606 = vmatprep.subr.bf16.mxu0 %v6060_v5  ;;  %v1510_v2 = vld [vmem:[%s8762_s3 + $0xef8] sm:$0xff]  ;;  %v6099_v5 = vcombine.low %v1497_v63, %v1501_v0 }
 0x2b4   :  { %v8411_v18 = vpop.f32.mrb[8].mxu0  ;;  %v8413_v14 = vpop.f32.mrb[8].mxu1  ;;  %4770 = vmatprep.subr.bf16.mxu1 %v6062_v3  ;;  %v6101_v3 = vcombine.low %v1498_v4, %v1502_v55  ;;  %v6110_v19 = vcombine.high %v1506_v61, %v1510_v2  ;;  %v6141_v55 = vcombine.low %v1538_v11, %v1542_v53  ;;  %v6388_v11 = vld [vmem:[%s8764_s5 + $0x148] sm:$0xff]  }
 0x2b5   :  { %v8421_v28 = vpop.f32.mrb[9].mxu0  ;;  %v8423_v27 = vpop.f32.mrb[9].mxu1 }
 0x2b6   :  { %v4306_v34 = vpop.f32.mrb[10].mxu0  ;;  %v4470_v35 = vpop.f32.mrb[10].mxu1  ;;  %4607 = vmatpush1.bf16.msra.mxu0 %v6059_v13  ;;  %v1514_v13 = vld [vmem:[%s8762_s3 + $0xf18] sm:$0xff]  ;;  %v6297_v63 = vadd.f32 %v8421_v28, %v1552_v43  ;;  %v6354_v28 = vld [vmem:[%s8764_s5] sm:$0xff]  }
 0x2b7   :  { %4771 = vmatpush1.bf16.msra.mxu1 %v6061_v16  ;;  %v4307_v38 = vpop.f32.mrb[11].mxu0  ;;  %v4471_v39 = vpop.f32.mrb[11].mxu1  ;;  %4608 = vmatprep.subr.bf16.mxu0 %v6068_v17  ;;  %v1518_v16 = vld [vmem:[%s8762_s3 + $0xf38] sm:$0xff]  ;;  %v6107_v17 = vcombine.low %v1505_v58, %v1509_v60  ;;  %v6357_v60 = vld [vmem:[%s8764_s5 + $0xc8] sm:$0xff]   ;;  %v6387_v43 = vld [vmem:[%s8764_s5 + $0x180] sm:$0xff]  }
 0x2b8   :  { %4772 = vmatprep.subr.bf16.mxu1 %v6070_v20  ;;  %v6109_v20 = vcombine.low %v1506_v61, %v1510_v2  ;;  %v6118_v22 = vcombine.high %v1514_v13, %v1518_v16  ;;  %v1522_v34 = vld [vmem:[%s8762_s3 + $0xf58] sm:$0xff]  ;;  %v6117_v38 = vcombine.low %v1514_v13, %v1518_v16  ;;  %v6124_v39 = vcombine.high %v1521_v29, %v1525_v33  ;;  %v6358_v2 = vld [vmem:[%s8764_s5 + $0x8] sm:$0xff]  }
 0x2b9   :  { %v1526_v35 = vld [vmem:[%s8762_s3 + $0xf78] sm:$0xff]  ;;  %v6372_v29 = vld [vmem:[%s8764_s5 + $0x68] sm:$0xff]  }
 0x2ba   :  { %4609 = vmatpush1.bf16.msra.mxu0 %v6067_v37  ;;  %v6115_v37 = vcombine.low %v1513_v10, %v1517_v12  ;;  %v6364_v10 = vld [vmem:[%s8764_s5 + $0x58] sm:$0xff]   ;;  %v6373_v33 = vld [vmem:[%s8764_s5 + $0xe8] sm:$0xff]  }
 0x2bb   :  { %4773 = vmatpush1.bf16.msra.mxu1 %v6069_v41  ;;  %4610 = vmatprep.subr.bf16.mxu0 %v6076_v32  ;;  %v6126_v41 = vcombine.high %v1522_v34, %v1526_v35  ;;  %v1529_v32 = vld [vmem:[%s8762_s3 + $0xf90] sm:$0xff]  ;;  %v6365_v12 = vld [vmem:[%s8764_s5 + $0xd8] sm:$0xff]  }
 0x2bc   :  { %4774 = vmatprep.subr.bf16.mxu1 %v6078_v44  ;;  %v1533_v44 = vld [vmem:[%s8762_s3 + $0xfb0] sm:$0xff]  ;;  %v6366_v13 = vld [vmem:[%s8764_s5 + $0x18] sm:$0xff]  }
 0x2bd   :  { %v6367_v16 = vld [vmem:[%s8764_s5 + $0x98] sm:$0xff]  }
 0x2be   :  { %4611 = vmatpush1.bf16.msra.mxu0 %v6075_v49  ;;  %v6125_v49 = vcombine.low %v1522_v34, %v1526_v35  ;;  %v6374_v34 = vld [vmem:[%s8764_s5 + $0x28] sm:$0xff]   ;;  %v1548_v35 = vrot.slane %v8518_v47, %v173_v24  ;;  %v6378_v24 = vld [vmem:[%s8764_s5 + $0x30] sm:$0xff]  }
 0x2bf   :  { %4775 = vmatpush1.bf16.msra.mxu1 %v6077_v50  ;;  %4612 = vmatprep.subr.bf16.mxu0 %v6084_v51  ;;  %v6132_v50 = vcombine.high %v1529_v32, %v1533_v44  ;;  %v6134_v51 = vcombine.high %v1530_v36, %v1534_v46 }
 0x2c0   :  { %4776 = vmatprep.subr.bf16.mxu1 %v6086_v52  ;;  %v1537_v52 = vld [vmem:[%s8762_s3 + $0xfd0] sm:$0xff] }
 0x2c1   :  { %v6139_v4 = vcombine.low %v1537_v52, %v1541_v59 }
 0x2c2   :  { %4613 = vmatpush1.bf16.msra.mxu0 %v6083_v7  ;;  %v1560_v7 = vrot.slane %v8518_v47, %v185_v42  ;;  %v6352_v42 = vld [vmem:[%s8764_s5 + $0x40] sm:$0xff]  }
 0x2c3   :  { %4777 = vmatpush1.bf16.msra.mxu1 %v6085_v25  ;;  %4614 = vmatprep.subr.bf16.mxu0 %v6092_v56  ;;  %v6131_v25 = vcombine.low %v1529_v32, %v1533_v44  ;;  %v6133_v56 = vcombine.low %v1530_v36, %v1534_v46  ;;  %v6296_v32 = vadd.f32 %v8411_v18, %v1548_v35  ;;  %v6379_v44 = vld [vmem:[%s8764_s5 + $0xb0] sm:$0xff]   ;;  %v6381_v46 = vld [vmem:[%s8764_s5 + $0xf8] sm:$0xff]  }
 0x2c4   :  { %4778 = vmatprep.subr.bf16.mxu1 %v6094_v62  ;;  %v6140_v62 = vcombine.high %v1537_v52, %v1541_v59  ;;  %v6299_v0 = vadd.f32 %v8423_v27, %v1560_v7  ;;  %v6355_v27 = vld [vmem:[%s8764_s5 + $0x80] sm:$0xff]   ;;  %v6382_v18 = vld [vmem:[%s8764_s5 + $0x38] sm:$0xff]   ;;  %v6389_v7 = vld [vmem:[%s8764_s5 + $0x1c8] sm:$0xff]  }
 0x2c5   :  { %v6386_v52 = vld [vmem:[%s8764_s5 + $0x100] sm:$0xff]  }
 0x2c6   :  { %4615 = vmatpush1.bf16.msra.mxu0 %v6091_v8  ;;  %v6353_v8 = vld [vmem:[%s8764_s5 + $0xc0] sm:$0xff]  }
 0x2c7   :  { %4779 = vmatpush1.bf16.msra.mxu1 %v6093_v9  ;;  %4616 = vmatprep.subr.bf16.mxu0 %v6100_v40  ;;  %v4802_v9 = vmax.f32 %v6297_v63, 0.0  ;;  %v4804_v40 = vmax.f32 %v6299_v0, 0.0  ;;  %v6394_v63 = vld [vmem:[%s8764_s5 + $0x110] sm:$0xff]  }
 0x2c8   :  { %4780 = vmatprep.subr.bf16.mxu1 %v6102_v57  ;;  %v6356_v57 = vld [vmem:[%s8764_s5 + $0x48] sm:$0xff]   ;;  %v6395_v0 = vld [vmem:[%s8764_s5 + $0x190] sm:$0xff]  }
 0x2c9   :  { %v4810_v58 = vpack.c.bf16 %v4802_v9, %v4802_v9  ;;  %v4812_v61 = vpack.c.bf16 %v4804_v40, %v4804_v40  ;;  %v6400_v9 = vld [vmem:[%s8764_s5 + $0x160] sm:$0xff]  }
 0x2ca   :  { %4617 = vmatpush1.bf16.msra.mxu0 %v6099_v5  ;;  %v6359_v5 = vld [vmem:[%s8764_s5 + $0x88] sm:$0xff]   ;;  %v6401_v40 = vld [vmem:[%s8764_s5 + $0x1e0] sm:$0xff]  }
 0x2cb   :  { %4781 = vmatpush1.bf16.msra.mxu1 %v6101_v3  ;;  %4618 = vmatprep.subr.bf16.mxu0 %v6108_v6  ;;  %v6360_v3 = vld [vmem:[%s8764_s5 + $0x50] sm:$0xff]  }
 0x2cc   :  { %4782 = vmatprep.subr.bf16.mxu1 %v6110_v19  ;;  %v6362_v6 = vld [vmem:[%s8764_s5 + $0x10] sm:$0xff]  }
 0x2cd   :  { %v6363_v19 = vld [vmem:[%s8764_s5 + $0x90] sm:$0xff]  }
 0x2ce   :  { %4619 = vmatpush1.bf16.msra.mxu0 %v6107_v17  ;;  %v6368_v17 = vld [vmem:[%s8764_s5 + $0x60] sm:$0xff]  }
 0x2cf   :  { %4783 = vmatpush1.bf16.msra.mxu1 %v6109_v20  ;;  %4620 = vmatprep.subr.bf16.mxu0 %v6116_v21  ;;  %v6369_v20 = vld [vmem:[%s8764_s5 + $0xe0] sm:$0xff]  }
 0x2d0   :  { %4784 = vmatprep.subr.bf16.mxu1 %v6118_v22  ;;  %v6370_v21 = vld [vmem:[%s8764_s5 + $0x20] sm:$0xff]  }
 0x2d1   :  { %v6371_v22 = vld [vmem:[%s8764_s5 + $0xa0] sm:$0xff]  }
 0x2d2   :  { %4621 = vmatpush1.bf16.msra.mxu0 %v6115_v37  ;;  %v6375_v37 = vld [vmem:[%s8764_s5 + $0xa8] sm:$0xff]  }
 0x2d3   :  { %4785 = vmatpush1.bf16.msra.mxu1 %v6117_v38  ;;  %4622 = vmatprep.subr.bf16.mxu0 %v6124_v39  ;;  %v6376_v38 = vld [vmem:[%s8764_s5 + $0x70] sm:$0xff]   ;;  %v1556_v39 = vrot.slane %v8518_v47, %v181_v31  ;;  %v6380_v31 = vld [vmem:[%s8764_s5 + $0x78] sm:$0xff]  }
 0x2d4   :  { %4786 = vmatprep.subr.bf16.mxu1 %v6126_v41  ;;  %v6377_v41 = vld [vmem:[%s8764_s5 + $0xf0] sm:$0xff]  }
 0x2d5   :  { %v6298_v36 = vadd.f32 %v8413_v14, %v1556_v39  ;;  %v6384_v14 = vld [vmem:[%s8764_s5 + $0x140] sm:$0xff]  }
 0x2d6   :  { %4623 = vmatpush1.bf16.msra.mxu0 %v6123_v48  ;;  %v4801_v48 = vmax.f32 %v6296_v32, 0.0 }
 0x2d7   :  { %4787 = vmatpush1.bf16.msra.mxu1 %v6125_v49  ;;  %4624 = vmatprep.subr.bf16.mxu0 %v6132_v50  ;;  %v6383_v49 = vld [vmem:[%s8764_s5 + $0xb8] sm:$0xff]   ;;  %v4803_v50 = vmax.f32 %v6298_v36, 0.0 }
 0x2d8   :  { %4788 = vmatprep.subr.bf16.mxu1 %v6134_v51  ;;  %v6385_v51 = vld [vmem:[%s8764_s5 + $0x1c0] sm:$0xff]   ;;  %v4809_v59 = vpack.c.bf16 %v4801_v48, %v4801_v48 }
 0x2d9   :  { %v4811_v53 = vpack.c.bf16 %v4803_v50, %v4803_v50 }
 0x2da   :  { %4625 = vmatpush1.bf16.msra.mxu0 %v6131_v25  ;;  %v6390_v25 = vld [vmem:[%s8764_s5 + $0x108] sm:$0xff]  }
 0x2db   :  { %4789 = vmatpush1.bf16.msra.mxu1 %v6133_v56  ;;  %4626 = vmatprep.subr.bf16.mxu0 %v6140_v62  ;;  %v6391_v56 = vld [vmem:[%s8764_s5 + $0x188] sm:$0xff]   ;;  %v6392_v62 = vld [vmem:[%s8764_s5 + $0x150] sm:$0xff]  }
 0x2dc   :  { %4790 = vmatprep.subr.bf16.mxu1 %v6142_v26  ;;  %v6393_v26 = vld [vmem:[%s8764_s5 + $0x1d0] sm:$0xff]  }
 0x2de   :  { %4627 = vmatpush1.bf16.msra.mxu0 %v6139_v4  ;;  %v6396_v4 = vld [vmem:[%s8764_s5 + $0x158] sm:$0xff]  }
 0x2df   :  { %4791 = vmatpush1.bf16.msra.mxu1 %v6141_v55  ;;  %6208 = vmatprep.subr.bf16.mxu0 %v6352_v42  ;;  %v6397_v55 = vld [vmem:[%s8764_s5 + $0x1d8] sm:$0xff]  }
 0x2e0   :  { %6230 = vmatprep.subr.bf16.mxu1 %v6353_v8  ;;  %v6398_v42 = vld [vmem:[%s8764_s5 + $0x118] sm:$0xff]  }
 0x2e1   :  { %4629 = vmatmul.mubr.bf16.vlgmr.msra.gmra.mrb[12].mxu0 %v7757_v54  ;;  %v6399_v8 = vld [vmem:[%s8764_s5 + $0x198] sm:$0xff]  }
 0x2e2   :  { %4793 = vmatmul.mubr.bf16.vlgmr.msra.gmra.mrb[12].mxu1 %v7757_v54  ;;  %6209 = vmatpush3.bf16.msra.mxu0 %v6354_v28  ;;  %v6361_v54 = vld [vmem:[%s8764_s5 + $0xd0] sm:$0xff]   ;;  %v6402_v28 = vld [vmem:[%s8764_s5 + $0x120] sm:$0xff]  }
 0x2e3   :  { %5368 = vmatprep.mubr.bf16.mxu0 %v4810_v58  ;;  %6231 = vmatpush3.bf16.msra.mxu1 %v6355_v27  ;;  %v6403_v27 = vld [vmem:[%s8764_s5 + $0x1a0] sm:$0xff]   ;;  %v6405_v58 = vld [vmem:[%s8764_s5 + $0x1e8] sm:$0xff]  }
 0x2e4   :  { %5408 = vmatprep.mubr.bf16.mxu1 %v4812_v61  ;;  %6210 = vmatprep.subr.bf16.mxu0 %v6356_v57  ;;  %v6404_v57 = vld [vmem:[%s8764_s5 + $0x168] sm:$0xff]  }
 0x2e5   :  { %6232 = vmatprep.subr.bf16.mxu1 %v6357_v60  ;;  %v6406_v60 = vld [vmem:[%s8764_s5 + $0x128] sm:$0xff]  }
 0x2e6   :  { %6211 = vmatpush3.bf16.msra.mxu0 %v6358_v2  ;;  %v6407_v61 = vld [vmem:[%s8764_s5 + $0x1a8] sm:$0xff]   ;;  %v6408_v2 = vld [vmem:[%s8764_s5 + $0x170] sm:$0xff]  }
 0x2e7   :  { %6233 = vmatpush3.bf16.msra.mxu1 %v6359_v5  ;;  %6212 = vmatprep.subr.bf16.mxu0 %v6360_v3  ;;  %v6409_v5 = vld [vmem:[%s8764_s5 + $0x1f0] sm:$0xff]  }
 0x2e8   :  { %6234 = vmatprep.subr.bf16.mxu1 %v6361_v54  ;;  %v6410_v3 = vld [vmem:[%s8764_s5 + $0x130] sm:$0xff]  }
 0x2e9   :  { %v6411_v54 = vld [vmem:[%s8764_s5 + $0x1b0] sm:$0xff]  }
 0x2ea   :  { %6213 = vmatpush3.bf16.msra.mxu0 %v6362_v6  ;;  %v6412_v6 = vld [vmem:[%s8764_s5 + $0x178] sm:$0xff]  }
 0x2eb   :  { %6235 = vmatpush3.bf16.msra.mxu1 %v6363_v19  ;;  %6214 = vmatprep.subr.bf16.mxu0 %v6364_v10  ;;  %v6413_v19 = vld [vmem:[%s8764_s5 + $0x1f8] sm:$0xff]  }
 0x2ec   :  { %6236 = vmatprep.subr.bf16.mxu1 %v6365_v12  ;;  %v6414_v10 = vld [vmem:[%s8764_s5 + $0x138] sm:$0xff]  }
 0x2ed   :  { %v6415_v12 = vld [vmem:[%s8764_s5 + $0x1b8] sm:$0xff]  }
 0x2ee   :  { %6215 = vmatpush3.bf16.msra.mxu0 %v6366_v13  ;;  %v1564_v13 = vrot.slane %v8518_v47, %v189_v15 }
 0x2ef   :  { %6237 = vmatpush3.bf16.msra.mxu1 %v6367_v16  ;;  %6216 = vmatprep.subr.bf16.mxu0 %v6368_v17  ;;  %v1572_v16 = vrot.slane %v8518_v47, %v197_v1  ;;  %v1568_v17 = vrot.slane %v8518_v47, %v193_v45 }
 0x2f0   :  { %6238 = vmatprep.subr.bf16.mxu1 %v6369_v20  ;;  %v1576_v20 = vrot.slane %v8518_v47, %v201_v30 }
 0x2f2   :  { %6217 = vmatpush3.bf16.msra.mxu0 %v6370_v21 }
 0x2f3   :  { %6239 = vmatpush3.bf16.msra.mxu1 %v6371_v22  ;;  %6218 = vmatprep.subr.bf16.mxu0 %v6372_v29 }
 0x2f4   :  { %6240 = vmatprep.subr.bf16.mxu1 %v6373_v33 }
 0x2f6   :  { %6219 = vmatpush3.bf16.msra.mxu0 %v6374_v34 }
 0x2f7   :  { %6241 = vmatpush3.bf16.msra.mxu1 %v6375_v37  ;;  %6220 = vmatprep.subr.bf16.mxu0 %v6376_v38 }
 0x2f8   :  { %6242 = vmatprep.subr.bf16.mxu1 %v6377_v41 }
 0x2fa   :  { %6221 = vmatpush3.bf16.msra.mxu0 %v6378_v24 }
 0x2fb   :  { %6243 = vmatpush3.bf16.msra.mxu1 %v6379_v44  ;;  %6222 = vmatprep.subr.bf16.mxu0 %v6380_v31 }
 0x2fc   :  { %6244 = vmatprep.subr.bf16.mxu1 %v6381_v46 }
 0x2fe   :  { %6223 = vmatpush3.bf16.msra.mxu0 %v6382_v18  ;;  %v6143_v18 = vld [vmem:[%s8766_s6] ss:$0 sm:$0xff] }
 0x2ff   :  { %6245 = vmatpush3.bf16.msra.mxu1 %v6383_v49  ;;  %6252 = vmatprep.subr.bf16.mxu0 %v6384_v14 }
 0x300   :  { %6274 = vmatprep.subr.bf16.mxu1 %v6385_v51 }
 0x301   :  { %5369 = vmatmul.mubr.bf16.vlgmr.msra.gmra.mrb[16].mxu0 %v4809_v59 }
 0x302   :  { %5409 = vmatmul.mubr.bf16.vlgmr.msra.gmra.mrb[16].mxu1 %v4811_v53  ;;  %6253 = vmatpush3.bf16.msra.mxu0 %v6386_v52 }
 0x303   :  { %6275 = vmatpush3.bf16.msra.mxu1 %v6387_v43  ;;  %6254 = vmatprep.subr.bf16.mxu0 %v6388_v11 }
 0x304   :  { %6276 = vmatprep.subr.bf16.mxu1 %v6389_v7 }
 0x306   :  { %6255 = vmatpush3.bf16.msra.mxu0 %v6390_v25 }
 0x307   :  { %6277 = vmatpush3.bf16.msra.mxu1 %v6391_v56  ;;  %6256 = vmatprep.subr.bf16.mxu0 %v6392_v62 }
 0x308   :  { %6278 = vmatprep.subr.bf16.mxu1 %v6393_v26 }
 0x30a   :  { %6257 = vmatpush3.bf16.msra.mxu0 %v6394_v63 }
 0x30b   :  { %6279 = vmatpush3.bf16.msra.mxu1 %v6395_v0  ;;  %6258 = vmatprep.subr.bf16.mxu0 %v6396_v4 }
 0x30c   :  { %6280 = vmatprep.subr.bf16.mxu1 %v6397_v55 }
 0x30e   :  { %6259 = vmatpush3.bf16.msra.mxu0 %v6398_v42 }
 0x30f   :  { %6281 = vmatpush3.bf16.msra.mxu1 %v6399_v8  ;;  %6260 = vmatprep.subr.bf16.mxu0 %v6400_v9 }
 0x310   :  { %6282 = vmatprep.subr.bf16.mxu1 %v6401_v40 }
 0x312   :  { %6261 = vmatpush3.bf16.msra.mxu0 %v6402_v28 }
 0x313   :  { %6283 = vmatpush3.bf16.msra.mxu1 %v6403_v27  ;;  %6262 = vmatprep.subr.bf16.mxu0 %v6404_v57 }
 0x314   :  { %6284 = vmatprep.subr.bf16.mxu1 %v6405_v58 }
 0x316   :  { %6263 = vmatpush3.bf16.msra.mxu0 %v6406_v60 }
 0x317   :  { %6285 = vmatpush3.bf16.msra.mxu1 %v6407_v61  ;;  %6264 = vmatprep.subr.bf16.mxu0 %v6408_v2 }
 0x318   :  { %6286 = vmatprep.subr.bf16.mxu1 %v6409_v5 }
 0x31a   :  { %6265 = vmatpush3.bf16.msra.mxu0 %v6410_v3 }
 0x31b   :  { %6287 = vmatpush3.bf16.msra.mxu1 %v6411_v54  ;;  %6266 = vmatprep.subr.bf16.mxu0 %v6412_v6 }
 0x31c   :  { %6288 = vmatprep.subr.bf16.mxu1 %v6413_v19 }
 0x31e   :  { %6267 = vmatpush3.bf16.msra.mxu0 %v6414_v10 }
 0x31f   :  { %6289 = vmatpush3.bf16.msra.mxu1 %v6415_v12 }
 0x3b4   :  { %v4630_v21 = vpop.f32.mrb[12].mxu0 }
 0x3b5   :  { %v6300_v22 = vadd.f32 %v4630_v21, %v1564_v13  ;;  %v4794_v29 = vpop.f32.mrb[12].mxu1  ;;  %v4632_v33 = vpop.f32.mrb[13].mxu0 }
 0x3b6   :  { %v6302_v34 = vadd.f32 %v4794_v29, %v1572_v16  ;;  %v6301_v35 = vadd.f32 %v4632_v33, %v1568_v17  ;;  %v4796_v37 = vpop.f32.mrb[13].mxu1  ;;  %v4634_v15 = vpop.f32.mrb[14].mxu0 }
 0x3b7   :  { %v4805_v38 = vmax.f32 %v6300_v22, 0.0  ;;  %v6303_v39 = vadd.f32 %v4796_v37, %v1576_v20  ;;  %v4798_v41 = vpop.f32.mrb[14].mxu1  ;;  %v4635_v1 = vpop.f32.mrb[15].mxu0 }
 0x3b8   :  { %v4807_v24 = vmax.f32 %v6302_v34, 0.0  ;;  %v4806_v32 = vmax.f32 %v6301_v35, 0.0  ;;  %v4799_v44 = vpop.f32.mrb[15].mxu1 }
 0x3b9   :  { %v4808_v45 = vmax.f32 %v6303_v39, 0.0  ;;  %v4813_v23 = vpack.c.bf16 %v4805_v38, %v4805_v38 }
 0x3ba   :  { %v4814_v31 = vpack.c.bf16 %v4806_v32, %v4806_v32  ;;  %v4815_v30 = vpack.c.bf16 %v4807_v24, %v4807_v24 }
 0x3bb   :  { %v4816_v36 = vpack.c.bf16 %v4808_v45, %v4808_v45 }
 0x3bc   :  { %5448 = vmatprep.mubr.bf16.mxu0 %v4814_v31 }
 0x3bd   :  { %5488 = vmatprep.mubr.bf16.mxu1 %v4816_v36  ;;  %5449 = vmatmul.mubr.bf16.vlgmr.msra.gmra.mrb[20].mxu0 %v4813_v23 }
 0x3be   :  { %5489 = vmatmul.mubr.bf16.vlgmr.msra.gmra.mrb[20].mxu1 %v4815_v30 }
 0x3d4   :  { %v6224_v47 = vpop.f32.mrb[16].mxu0 }
 0x3d5   :  { %v6246_v46 = vpop.f32.mrb[16].mxu1  ;;  %v6225_v48 = vpop.f32.mrb[17].mxu0 }
 0x3d6   :  { %v6226_v49 = vadd.f32 %v6225_v48, %v6224_v47  ;;  %v6247_v14 = vpop.f32.mrb[17].mxu1  ;;  %v6227_v50 = vpop.f32.mrb[18].mxu0 }
 0x3d7   :  { %v6248_v51 = vadd.f32 %v6247_v14, %v6246_v46  ;;  %v6249_v52 = vpop.f32.mrb[18].mxu1  ;;  %v6228_v59 = vpop.f32.mrb[19].mxu0 }
 0x3d8   :  { %v5371_v43 = vadd.f32 %v6226_v49, %v6143_v18  ;;  %v6250_v11 = vpop.f32.mrb[19].mxu1 }
 0x3da   :  { %v5411_v53 = vadd.f32 %v6248_v51, %v5371_v43 }
 0x490   :  { %v6268_v7 = vpop.f32.mrb[20].mxu0 }
 0x491   :  { %v6290_v25 = vpop.f32.mrb[20].mxu1  ;;  %v6269_v56 = vpop.f32.mrb[21].mxu0 }
 0x492   :  { %v6270_v62 = vadd.f32 %v6269_v56, %v6268_v7  ;;  %v6291_v26 = vpop.f32.mrb[21].mxu1  ;;  %v6271_v63 = vpop.f32.mrb[22].mxu0 }
 0x493   :  { %v6292_v0 = vadd.f32 %v6291_v26, %v6290_v25  ;;  %v6293_v4 = vpop.f32.mrb[22].mxu1  ;;  %v6272_v55 = vpop.f32.mrb[23].mxu0 }
 0x494   :  { %v5451_v42 = vadd.f32 %v6270_v62, %v5411_v53  ;;  %v6294_v8 = vpop.f32.mrb[23].mxu1 }
 0x496   :  { %v5491_v9 = vadd.f32 %v6292_v0, %v5451_v42 }
 0x498   :  { %5497 = vst.msk [vmem:[%s8767_s7] sm:$0x3] %vm5496_vm0, %v5491_v9 }

</bundles_post_ra>
